<compile_context>
chip_gen: v7x
topology: tpu7x:2x2x1
jax: 0.10.0
libtpu: 0.0.40
codegen_flags: <defaults>
</compile_context>

<pallas_src>
import numpy as np
import jax
import jax.numpy as jnp
from jax.experimental import pallas as pl
from jax.experimental.pallas import tpu as pltpu

EPS = 1e-5
H_IN = W_IN = 28

# (name, kernel_size, padding, cin, cout); MaxPool2d(2,2) applied after conv3.
CONV_CFG = [
    ("conv1", 3, 0, 1, 16),
    ("conv2", 3, 0, 16, 16),
    ("conv3", 3, 0, 16, 16),
    ("conv4", 1, 0, 16, 16),
    ("conv5", 3, 0, 16, 16),
    ("conv6", 3, 0, 16, 16),
    ("conv7", 3, 0, 16, 16),
    ("conv8", 3, 1, 16, 16),
    ("conv9", 3, 1, 16, 16),
]
POOL_AFTER = 2                      # pool right after CONV_CFG[2] (conv3)
NUM_LAYERS = len(CONV_CFG)


# ----------------------------------------------------------------------------
# The single fused Pallas kernel: whole network for one image per grid step.
# ----------------------------------------------------------------------------
def _net_kernel(*refs):
    x_ref = refs[0]
    out_ref = refs[-1]
    body = refs[1:-1]
    layer_refs = body[:3 * NUM_LAYERS]
    qe_ref, qo_ref, pe_ref, po_ref, gw_ref, hb_ref = body[3 * NUM_LAYERS:]

    x = x_ref[0]                                     # (28, 28) = (H, W*Cin), Cin=1
    for li in range(NUM_LAYERS):
        t_ref = layer_refs[3 * li + 0]               # (kh, Win*Cin, Wout*Cout)
        s_ref = layer_refs[3 * li + 1]               # (kh, Hout, Hin)
        e_ref = layer_refs[3 * li + 2]               # (3,  Wout*Cout): bias/scale/shift
        kh = t_ref.shape[0]
        acc = jnp.dot(jnp.dot(s_ref[0], x, preferred_element_type=jnp.float32),
                      t_ref[0], preferred_element_type=jnp.float32)
        for dy in range(1, kh):
            acc = acc + jnp.dot(
                jnp.dot(s_ref[dy], x, preferred_element_type=jnp.float32),
                t_ref[dy], preferred_element_type=jnp.float32)
        # conv-bias -> ReLU -> BatchNorm (eval, folded): bnX(F.relu(convX(x)))
        x = jnp.maximum(acc + e_ref[0:1, :], 0.0) * e_ref[1:2, :] + e_ref[2:3, :]
        if li == POOL_AFTER:                         # fused MaxPool2d(2, 2)
            v = jnp.maximum(
                jnp.dot(qe_ref[...], x, preferred_element_type=jnp.float32),
                jnp.dot(qo_ref[...], x, preferred_element_type=jnp.float32))
            x = jnp.maximum(
                jnp.dot(v, pe_ref[...], preferred_element_type=jnp.float32),
                jnp.dot(v, po_ref[...], preferred_element_type=jnp.float32))
        # TODO(synk): Dropout2d (dp5..dp9) and training-mode BatchNorm are not
        #             implemented; eval-mode (identity / running stats) is used.

    # AvgPool2d(5) + view(-1, 16) + Linear(16, 10), folded into one matmul.
    s = jnp.sum(x, axis=0, keepdims=True)            # (1, W*C): row-sum over H
    logits = jnp.dot(s, gw_ref[...], preferred_element_type=jnp.float32) + hb_ref[...]
    m = jnp.max(logits, axis=-1, keepdims=True)      # log_softmax over classes
    z = logits - m
    lse = jnp.log(jnp.sum(jnp.exp(z), axis=-1, keepdims=True))
    out_ref[0] = z - lse


# ----------------------------------------------------------------------------
# One-time host-side parameter preparation (Toeplitz / selector matrices).
# ----------------------------------------------------------------------------
def _toeplitz(w, w_in, pad):
    """w: (kh, kw, cin, cout) -> (kh, w_in*cin, w_out*cout) block-Toeplitz."""
    kh, kw, cin, cout = w.shape
    w_out = w_in - kw + 1 + 2 * pad
    t = np.zeros((kh, w_in * cin, w_out * cout), np.float32)
    for dy in range(kh):
        for wo in range(w_out):
            for dx in range(kw):
                wi = wo + dx - pad
                if 0 <= wi < w_in:
                    t[dy, wi * cin:(wi + 1) * cin, wo * cout:(wo + 1) * cout] = w[dy, dx]
    return t


def _row_select(h_in, h_out, kh, pad):
    """(kh, h_out, h_in) 0/1 selectors: row ho picks input row ho+dy-pad."""
    s = np.zeros((kh, h_out, h_in), np.float32)
    for dy in range(kh):
        for ho in range(h_out):
            hi = ho + dy - pad
            if 0 <= hi < h_in:
                s[dy, ho, hi] = 1.0
    return s


def _pool_mats(h_in, w_in, c):
    """MaxPool2d(2,2) as row / column-block selectors."""
    h_out, w_out = h_in // 2, w_in // 2
    qe = np.zeros((h_out, h_in), np.float32)
    qo = np.zeros((h_out, h_in), np.float32)
    for ho in range(h_out):
        qe[ho, 2 * ho] = 1.0
        qo[ho, 2 * ho + 1] = 1.0
    pe = np.zeros((w_in * c, w_out * c), np.float32)
    po = np.zeros((w_in * c, w_out * c), np.float32)
    for wo in range(w_out):
        for ci in range(c):
            pe[(2 * wo) * c + ci, wo * c + ci] = 1.0
            po[(2 * wo + 1) * c + ci, wo * c + ci] = 1.0
    return qe, qo, pe, po


def prepare_operands(params):
    """Builds the flat operand tuple consumed by the fused kernel."""
    ops = []
    pool = None
    h, w = H_IN, W_IN
    c = 1
    for li, (name, k, pad, cin, cout) in enumerate(CONV_CFG):
        p = params[name]
        wk = np.asarray(p["w"], np.float32)                    # (k, k, cin, cout)
        t = _toeplitz(wk, w, pad)
        h_out = h - k + 1 + 2 * pad
        w_out = w - k + 1 + 2 * pad
        s = _row_select(h, h_out, k, pad)
        scale = np.asarray(p["gamma"], np.float32) / np.sqrt(
            np.asarray(p["var"], np.float32) + EPS)
        shift = np.asarray(p["beta"], np.float32) - np.asarray(p["mean"], np.float32) * scale
        epi = np.stack([np.tile(np.asarray(p["b"], np.float32), w_out),
                        np.tile(scale, w_out),
                        np.tile(shift, w_out)], axis=0)        # (3, w_out*cout)
        ops += [jnp.asarray(t), jnp.asarray(s), jnp.asarray(epi)]
        h, w, c = h_out, w_out, cout
        if li == POOL_AFTER:
            qe, qo, pe, po = _pool_mats(h, w, c)
            pool = [jnp.asarray(a) for a in (qe, qo, pe, po)]
            h, w = h // 2, w // 2
    ops += pool
    # Fold AvgPool2d(h x w) mean and Linear(16, 10) into one (w*c, 10) matrix.
    lin_w = np.asarray(params["linear"]["w"], np.float32)      # (16, 10)
    gw = np.zeros((w * c, lin_w.shape[1]), np.float32)
    for wi in range(w):
        gw[wi * c:(wi + 1) * c, :] = lin_w / float(h * w)
    ops.append(jnp.asarray(gw))
    ops.append(jnp.asarray(np.asarray(params["linear"]["b"], np.float32).reshape(1, -1)))
    return tuple(ops)


def _cost_estimate(operands, n):
    flops = 0
    for li in range(NUM_LAYERS):
        t = operands[3 * li + 0]
        s = operands[3 * li + 1]
        kh, k, l = t.shape
        _, h_out, h_in = s.shape
        flops += kh * (2 * h_out * h_in * k + 2 * h_out * k * l)
    qe, qo, pe, po, gw, hb = operands[3 * NUM_LAYERS:]
    flops += 2 * (2 * qe.shape[0] * qe.shape[1] * pe.shape[0])   # Qe/Qo @ x
    flops += 2 * (2 * qe.shape[0] * pe.shape[0] * pe.shape[1])   # v @ Pe/Po
    flops += 2 * gw.shape[0] * gw.shape[1]
    bytes_accessed = 4 * (n * H_IN * W_IN + n * 10 +
                          sum(int(np.prod(o.shape)) for o in operands))
    return pl.CostEstimate(flops=int(n * flops), transcendentals=int(n * 10),
                           bytes_accessed=int(bytes_accessed))


# ----------------------------------------------------------------------------
# Forward pass: one fused pallas_call, grid over the batch.
# ----------------------------------------------------------------------------
def net_forward(x_nchw, operands):
    """x_nchw: (N, 1, 28, 28) float32 (PyTorch NCHW convention)."""
    n = x_nchw.shape[0]
    x = x_nchw.reshape(n, H_IN, W_IN).astype(jnp.float32)      # Cin == 1
    in_specs = [pl.BlockSpec((1, H_IN, W_IN), lambda i: (i, 0, 0))]
    for op in operands:
        in_specs.append(pl.BlockSpec(op.shape, lambda i, nd=op.ndim: (0,) * nd))
    out = pl.pallas_call(
        _net_kernel,
        out_shape=jax.ShapeDtypeStruct((n, 1, 10), jnp.float32),
        grid=(n,),
        in_specs=in_specs,
        out_specs=pl.BlockSpec((1, 1, 10), lambda i: (i, 0, 0)),
        compiler_params=pltpu.CompilerParams(
            dimension_semantics=("parallel",),
            vmem_limit_bytes=32 * 1024 * 1024),
        cost_estimate=_cost_estimate(operands, n),
    )(x, *operands)
    return out.reshape(n, 10)


# ----------------------------------------------------------------------------
# Synthetic parameter init and a pure-JAX reference for validation.
# ----------------------------------------------------------------------------
def init_params(key):
    params = {}
    for name, k, _, cin, cout in CONV_CFG:
        key, kw_, kb_, kg_, kbe_, km_, kv_ = jax.random.split(key, 7)
        params[name] = dict(
            w=0.1 * jax.random.normal(kw_, (k, k, cin, cout), jnp.float32),
            b=0.05 * jax.random.normal(kb_, (cout,), jnp.float32),
            gamma=1.0 + 0.1 * jax.random.normal(kg_, (cout,), jnp.float32),
            beta=0.1 * jax.random.normal(kbe_, (cout,), jnp.float32),
            mean=0.1 * jax.random.normal(km_, (cout,), jnp.float32),
            var=1.0 + 0.1 * jax.random.uniform(kv_, (cout,), jnp.float32),
        )
    key, kw_, kb_ = jax.random.split(key, 3)
    params["linear"] = dict(
        w=0.1 * jax.random.normal(kw_, (16, 10), jnp.float32),   # (in, out)
        b=0.05 * jax.random.normal(kb_, (10,), jnp.float32),
    )
    return params


def reference_forward(x_nchw, params):
    """Pure-JAX/XLA reference implementing the same eval-mode forward."""
    x = x_nchw.astype(jnp.float32)
    for name, k, pad, cin, cout in CONV_CFG:
        p = params[name]
        x = jax.lax.conv_general_dilated(
            x, p["w"], window_strides=(1, 1), padding=[(pad, pad), (pad, pad)],
            dimension_numbers=("NCHW", "HWIO", "NCHW"),
            precision=jax.lax.Precision.HIGHEST)
        x = jnp.maximum(x + p["b"].reshape(1, -1, 1, 1), 0.0)
        scale = p["gamma"] / jnp.sqrt(p["var"] + EPS)
        shift = p["beta"] - p["mean"] * scale
        x = x * scale.reshape(1, -1, 1, 1) + shift.reshape(1, -1, 1, 1)
        if name == "conv3":
            x = jnp.maximum(jnp.maximum(x[:, :, 0::2, 0::2], x[:, :, 0::2, 1::2]),
                            jnp.maximum(x[:, :, 1::2, 0::2], x[:, :, 1::2, 1::2]))
    pooled = jnp.mean(x, axis=(2, 3))                            # AvgPool2d(5) on 5x5
    logits = jnp.dot(pooled, params["linear"]["w"],
                     precision=jax.lax.Precision.HIGHEST) + params["linear"]["b"]
    return jax.nn.log_softmax(logits, axis=-1)


if __name__ == "__main__":
    key = jax.random.PRNGKey(0)
    kp, kx = jax.random.split(key)
    params = init_params(kp)
    operands = prepare_operands(params)                          # one-time prep
    x = jax.random.normal(kx, (2, 1, 28, 28), jnp.float32)       # MNIST-like input

    out = jax.jit(net_forward)(x, operands)
    out = jax.block_until_ready(out)

    assert out.shape == (2, 10), out.shape
    # log-softmax rows sum to 1 in probability space
    assert jnp.allclose(jnp.sum(jnp.exp(out), axis=-1), 1.0, atol=1e-4)
    # cross-check the fused Pallas kernel against the pure-JAX reference
    ref = jax.jit(reference_forward)(x, params)
    max_err = float(jnp.max(jnp.abs(out - ref)))
    assert max_err < 2e-2, f"mismatch vs reference: {max_err}"
    print("KERNEL_OK")
</pallas_src>

<mosaic_0001>
module attributes {stable_mosaic.version = 11 : i64} {
  func.func @_net_kernel(%arg0: i32, %arg1: memref<1x28x28xf32, #tpu.memory_space<vmem>>, %arg2: memref<3x28x416xf32, #tpu.memory_space<vmem>>, %arg3: memref<3x26x28xf32, #tpu.memory_space<vmem>>, %arg4: memref<3x416xf32, #tpu.memory_space<vmem>>, %arg5: memref<3x416x384xf32, #tpu.memory_space<vmem>>, %arg6: memref<3x24x26xf32, #tpu.memory_space<vmem>>, %arg7: memref<3x384xf32, #tpu.memory_space<vmem>>, %arg8: memref<3x384x352xf32, #tpu.memory_space<vmem>>, %arg9: memref<3x22x24xf32, #tpu.memory_space<vmem>>, %arg10: memref<3x352xf32, #tpu.memory_space<vmem>>, %arg11: memref<1x176x176xf32, #tpu.memory_space<vmem>>, %arg12: memref<1x11x11xf32, #tpu.memory_space<vmem>>, %arg13: memref<3x176xf32, #tpu.memory_space<vmem>>, %arg14: memref<3x176x144xf32, #tpu.memory_space<vmem>>, %arg15: memref<3x9x11xf32, #tpu.memory_space<vmem>>, %arg16: memref<3x144xf32, #tpu.memory_space<vmem>>, %arg17: memref<3x144x112xf32, #tpu.memory_space<vmem>>, %arg18: memref<3x7x9xf32, #tpu.memory_space<vmem>>, %arg19: memref<3x112xf32, #tpu.memory_space<vmem>>, %arg20: memref<3x112x80xf32, #tpu.memory_space<vmem>>, %arg21: memref<3x5x7xf32, #tpu.memory_space<vmem>>, %arg22: memref<3x80xf32, #tpu.memory_space<vmem>>, %arg23: memref<3x80x80xf32, #tpu.memory_space<vmem>>, %arg24: memref<3x5x5xf32, #tpu.memory_space<vmem>>, %arg25: memref<3x80xf32, #tpu.memory_space<vmem>>, %arg26: memref<3x80x80xf32, #tpu.memory_space<vmem>>, %arg27: memref<3x5x5xf32, #tpu.memory_space<vmem>>, %arg28: memref<3x80xf32, #tpu.memory_space<vmem>>, %arg29: memref<11x22xf32, #tpu.memory_space<vmem>>, %arg30: memref<11x22xf32, #tpu.memory_space<vmem>>, %arg31: memref<352x176xf32, #tpu.memory_space<vmem>>, %arg32: memref<352x176xf32, #tpu.memory_space<vmem>>, %arg33: memref<80x10xf32, #tpu.memory_space<vmem>>, %arg34: memref<1x10xf32, #tpu.memory_space<vmem>>, %arg35: memref<1x1x10xf32, #tpu.memory_space<vmem>>) attributes {dimension_semantics = [#tpu.dimension_semantics<parallel>], iteration_bounds = array<i64: 2>, scalar_prefetch = 0 : i64, scratch_operands = 0 : i64, tpu.core_type = #tpu.core_type<tc>, window_params = [{transform_indices = @transform_0, window_bounds = array<i64: 1, 28, 28>}, {pipeline_mode = #tpu.pipeline_mode<synchronous>, transform_indices = @transform_1, window_bounds = array<i64: 3, 28, 416>}, {pipeline_mode = #tpu.pipeline_mode<synchronous>, transform_indices = @transform_2, window_bounds = array<i64: 3, 26, 28>}, {pipeline_mode = #tpu.pipeline_mode<synchronous>, transform_indices = @transform_3, window_bounds = array<i64: 3, 416>}, {pipeline_mode = #tpu.pipeline_mode<synchronous>, transform_indices = @transform_4, window_bounds = array<i64: 3, 416, 384>}, {pipeline_mode = #tpu.pipeline_mode<synchronous>, transform_indices = @transform_5, window_bounds = array<i64: 3, 24, 26>}, {pipeline_mode = #tpu.pipeline_mode<synchronous>, transform_indices = @transform_6, window_bounds = array<i64: 3, 384>}, {pipeline_mode = #tpu.pipeline_mode<synchronous>, transform_indices = @transform_7, window_bounds = array<i64: 3, 384, 352>}, {pipeline_mode = #tpu.pipeline_mode<synchronous>, transform_indices = @transform_8, window_bounds = array<i64: 3, 22, 24>}, {pipeline_mode = #tpu.pipeline_mode<synchronous>, transform_indices = @transform_9, window_bounds = array<i64: 3, 352>}, {pipeline_mode = #tpu.pipeline_mode<synchronous>, transform_indices = @transform_10, window_bounds = array<i64: 1, 176, 176>}, {pipeline_mode = #tpu.pipeline_mode<synchronous>, transform_indices = @transform_11, window_bounds = array<i64: 1, 11, 11>}, {pipeline_mode = #tpu.pipeline_mode<synchronous>, transform_indices = @transform_12, window_bounds = array<i64: 3, 176>}, {pipeline_mode = #tpu.pipeline_mode<synchronous>, transform_indices = @transform_13, window_bounds = array<i64: 3, 176, 144>}, {pipeline_mode = #tpu.pipeline_mode<synchronous>, transform_indices = @transform_14, window_bounds = array<i64: 3, 9, 11>}, {pipeline_mode = #tpu.pipeline_mode<synchronous>, transform_indices = @transform_15, window_bounds = array<i64: 3, 144>}, {pipeline_mode = #tpu.pipeline_mode<synchronous>, transform_indices = @transform_16, window_bounds = array<i64: 3, 144, 112>}, {pipeline_mode = #tpu.pipeline_mode<synchronous>, transform_indices = @transform_17, window_bounds = array<i64: 3, 7, 9>}, {pipeline_mode = #tpu.pipeline_mode<synchronous>, transform_indices = @transform_18, window_bounds = array<i64: 3, 112>}, {pipeline_mode = #tpu.pipeline_mode<synchronous>, transform_indices = @transform_19, window_bounds = array<i64: 3, 112, 80>}, {pipeline_mode = #tpu.pipeline_mode<synchronous>, transform_indices = @transform_20, window_bounds = array<i64: 3, 5, 7>}, {pipeline_mode = #tpu.pipeline_mode<synchronous>, transform_indices = @transform_21, window_bounds = array<i64: 3, 80>}, {pipeline_mode = #tpu.pipeline_mode<synchronous>, transform_indices = @transform_22, window_bounds = array<i64: 3, 80, 80>}, {pipeline_mode = #tpu.pipeline_mode<synchronous>, transform_indices = @transform_23, window_bounds = array<i64: 3, 5, 5>}, {pipeline_mode = #tpu.pipeline_mode<synchronous>, transform_indices = @transform_24, window_bounds = array<i64: 3, 80>}, {pipeline_mode = #tpu.pipeline_mode<synchronous>, transform_indices = @transform_25, window_bounds = array<i64: 3, 80, 80>}, {pipeline_mode = #tpu.pipeline_mode<synchronous>, transform_indices = @transform_26, window_bounds = array<i64: 3, 5, 5>}, {pipeline_mode = #tpu.pipeline_mode<synchronous>, transform_indices = @transform_27, window_bounds = array<i64: 3, 80>}, {pipeline_mode = #tpu.pipeline_mode<synchronous>, transform_indices = @transform_28, window_bounds = array<i64: 11, 22>}, {pipeline_mode = #tpu.pipeline_mode<synchronous>, transform_indices = @transform_29, window_bounds = array<i64: 11, 22>}, {pipeline_mode = #tpu.pipeline_mode<synchronous>, transform_indices = @transform_30, window_bounds = array<i64: 352, 176>}, {pipeline_mode = #tpu.pipeline_mode<synchronous>, transform_indices = @transform_31, window_bounds = array<i64: 352, 176>}, {pipeline_mode = #tpu.pipeline_mode<synchronous>, transform_indices = @transform_32, window_bounds = array<i64: 80, 10>}, {pipeline_mode = #tpu.pipeline_mode<synchronous>, transform_indices = @transform_33, window_bounds = array<i64: 1, 10>}, {transform_indices = @transform_34, window_bounds = array<i64: 1, 1, 10>}]} {
    %c0 = arith.constant 0 : index
    %c0_0 = arith.constant 0 : index
    %c0_1 = arith.constant 0 : index
    %0 = vector.load %arg1[%c0, %c0_0, %c0_1] : memref<1x28x28xf32, #tpu.memory_space<vmem>>, vector<1x28x28xf32>
    %1 = vector.shape_cast %0 : vector<1x28x28xf32> to vector<28x28xf32>
    %c0_2 = arith.constant 0 : index
    %c0_3 = arith.constant 0 : index
    %c0_4 = arith.constant 0 : index
    %2 = vector.load %arg3[%c0_2, %c0_3, %c0_4] : memref<3x26x28xf32, #tpu.memory_space<vmem>>, vector<1x26x28xf32>
    %3 = vector.shape_cast %2 : vector<1x26x28xf32> to vector<26x28xf32>
    %cst = arith.constant dense<0.000000e+00> : vector<26x28xf32>
    %4 = tpu.matmul %3, %1, %cst {dimension_numbers = #tpu.dot_dimension_numbers<[1], [0], [0], [1], [0, 0, 1, 1], [], []>} : vector<26x28xf32>, vector<28x28xf32>, vector<26x28xf32> -> vector<26x28xf32>
    %c0_5 = arith.constant 0 : index
    %c0_6 = arith.constant 0 : index
    %c0_7 = arith.constant 0 : index
    %5 = vector.load %arg2[%c0_5, %c0_6, %c0_7] : memref<3x28x416xf32, #tpu.memory_space<vmem>>, vector<1x28x416xf32>
    %6 = vector.shape_cast %5 : vector<1x28x416xf32> to vector<28x416xf32>
    %cst_8 = arith.constant dense<0.000000e+00> : vector<26x416xf32>
    %7 = tpu.matmul %4, %6, %cst_8 {dimension_numbers = #tpu.dot_dimension_numbers<[1], [0], [0], [1], [0, 0, 1, 1], [], []>} : vector<26x28xf32>, vector<28x416xf32>, vector<26x416xf32> -> vector<26x416xf32>
    %c1 = arith.constant 1 : index
    %c0_9 = arith.constant 0 : index
    %c0_10 = arith.constant 0 : index
    %8 = vector.load %arg3[%c1, %c0_9, %c0_10] : memref<3x26x28xf32, #tpu.memory_space<vmem>>, vector<1x26x28xf32>
    %9 = vector.shape_cast %8 : vector<1x26x28xf32> to vector<26x28xf32>
    %cst_11 = arith.constant dense<0.000000e+00> : vector<26x28xf32>
    %10 = tpu.matmul %9, %1, %cst_11 {dimension_numbers = #tpu.dot_dimension_numbers<[1], [0], [0], [1], [0, 0, 1, 1], [], []>} : vector<26x28xf32>, vector<28x28xf32>, vector<26x28xf32> -> vector<26x28xf32>
    %c1_12 = arith.constant 1 : index
    %c0_13 = arith.constant 0 : index
    %c0_14 = arith.constant 0 : index
    %11 = vector.load %arg2[%c1_12, %c0_13, %c0_14] : memref<3x28x416xf32, #tpu.memory_space<vmem>>, vector<1x28x416xf32>
    %12 = vector.shape_cast %11 : vector<1x28x416xf32> to vector<28x416xf32>
    %cst_15 = arith.constant dense<0.000000e+00> : vector<26x416xf32>
    %13 = tpu.matmul %10, %12, %cst_15 {dimension_numbers = #tpu.dot_dimension_numbers<[1], [0], [0], [1], [0, 0, 1, 1], [], []>} : vector<26x28xf32>, vector<28x416xf32>, vector<26x416xf32> -> vector<26x416xf32>
    %14 = arith.addf %7, %13 : vector<26x416xf32>
    %c2 = arith.constant 2 : index
    %c0_16 = arith.constant 0 : index
    %c0_17 = arith.constant 0 : index
    %15 = vector.load %arg3[%c2, %c0_16, %c0_17] : memref<3x26x28xf32, #tpu.memory_space<vmem>>, vector<1x26x28xf32>
    %16 = vector.shape_cast %15 : vector<1x26x28xf32> to vector<26x28xf32>
    %cst_18 = arith.constant dense<0.000000e+00> : vector<26x28xf32>
    %17 = tpu.matmul %16, %1, %cst_18 {dimension_numbers = #tpu.dot_dimension_numbers<[1], [0], [0], [1], [0, 0, 1, 1], [], []>} : vector<26x28xf32>, vector<28x28xf32>, vector<26x28xf32> -> vector<26x28xf32>
    %c2_19 = arith.constant 2 : index
    %c0_20 = arith.constant 0 : index
    %c0_21 = arith.constant 0 : index
    %18 = vector.load %arg2[%c2_19, %c0_20, %c0_21] : memref<3x28x416xf32, #tpu.memory_space<vmem>>, vector<1x28x416xf32>
    %19 = vector.shape_cast %18 : vector<1x28x416xf32> to vector<28x416xf32>
    %cst_22 = arith.constant dense<0.000000e+00> : vector<26x416xf32>
    %20 = tpu.matmul %17, %19, %cst_22 {dimension_numbers = #tpu.dot_dimension_numbers<[1], [0], [0], [1], [0, 0, 1, 1], [], []>} : vector<26x28xf32>, vector<28x416xf32>, vector<26x416xf32> -> vector<26x416xf32>
    %21 = arith.addf %14, %20 : vector<26x416xf32>
    %c0_23 = arith.constant 0 : index
    %c0_24 = arith.constant 0 : index
    %22 = vector.load %arg4[%c0_23, %c0_24] : memref<3x416xf32, #tpu.memory_space<vmem>>, vector<1x416xf32>
    %23 = vector.broadcast %22 : vector<1x416xf32> to vector<26x416xf32>
    %24 = arith.addf %21, %23 : vector<26x416xf32>
    %cst_25 = arith.constant 0.000000e+00 : f32
    %25 = vector.broadcast %cst_25 : f32 to vector<26x416xf32>
    %26 = arith.maximumf %24, %25 : vector<26x416xf32>
    %c1_26 = arith.constant 1 : index
    %c0_27 = arith.constant 0 : index
    %27 = vector.load %arg4[%c1_26, %c0_27] : memref<3x416xf32, #tpu.memory_space<vmem>>, vector<1x416xf32>
    %28 = vector.broadcast %27 : vector<1x416xf32> to vector<26x416xf32>
    %29 = arith.mulf %26, %28 : vector<26x416xf32>
    %c2_28 = arith.constant 2 : index
    %c0_29 = arith.constant 0 : index
    %30 = vector.load %arg4[%c2_28, %c0_29] : memref<3x416xf32, #tpu.memory_space<vmem>>, vector<1x416xf32>
    %31 = vector.broadcast %30 : vector<1x416xf32> to vector<26x416xf32>
    %32 = arith.addf %29, %31 : vector<26x416xf32>
    %c0_30 = arith.constant 0 : index
    %c0_31 = arith.constant 0 : index
    %c0_32 = arith.constant 0 : index
    %33 = vector.load %arg6[%c0_30, %c0_31, %c0_32] : memref<3x24x26xf32, #tpu.memory_space<vmem>>, vector<1x24x26xf32>
    %34 = vector.shape_cast %33 : vector<1x24x26xf32> to vector<24x26xf32>
    %cst_33 = arith.constant dense<0.000000e+00> : vector<24x416xf32>
    %35 = tpu.matmul %34, %32, %cst_33 {dimension_numbers = #tpu.dot_dimension_numbers<[1], [0], [0], [1], [0, 0, 1, 1], [], []>} : vector<24x26xf32>, vector<26x416xf32>, vector<24x416xf32> -> vector<24x416xf32>
    %c0_34 = arith.constant 0 : index
    %c0_35 = arith.constant 0 : index
    %c0_36 = arith.constant 0 : index
    %36 = vector.load %arg5[%c0_34, %c0_35, %c0_36] : memref<3x416x384xf32, #tpu.memory_space<vmem>>, vector<1x416x384xf32>
    %37 = vector.shape_cast %36 : vector<1x416x384xf32> to vector<416x384xf32>
    %cst_37 = arith.constant dense<0.000000e+00> : vector<24x384xf32>
    %38 = tpu.matmul %35, %37, %cst_37 {dimension_numbers = #tpu.dot_dimension_numbers<[1], [0], [0], [1], [0, 0, 1, 1], [], []>} : vector<24x416xf32>, vector<416x384xf32>, vector<24x384xf32> -> vector<24x384xf32>
    %c1_38 = arith.constant 1 : index
    %c0_39 = arith.constant 0 : index
    %c0_40 = arith.constant 0 : index
    %39 = vector.load %arg6[%c1_38, %c0_39, %c0_40] : memref<3x24x26xf32, #tpu.memory_space<vmem>>, vector<1x24x26xf32>
    %40 = vector.shape_cast %39 : vector<1x24x26xf32> to vector<24x26xf32>
    %cst_41 = arith.constant dense<0.000000e+00> : vector<24x416xf32>
    %41 = tpu.matmul %40, %32, %cst_41 {dimension_numbers = #tpu.dot_dimension_numbers<[1], [0], [0], [1], [0, 0, 1, 1], [], []>} : vector<24x26xf32>, vector<26x416xf32>, vector<24x416xf32> -> vector<24x416xf32>
    %c1_42 = arith.constant 1 : index
    %c0_43 = arith.constant 0 : index
    %c0_44 = arith.constant 0 : index
    %42 = vector.load %arg5[%c1_42, %c0_43, %c0_44] : memref<3x416x384xf32, #tpu.memory_space<vmem>>, vector<1x416x384xf32>
    %43 = vector.shape_cast %42 : vector<1x416x384xf32> to vector<416x384xf32>
    %cst_45 = arith.constant dense<0.000000e+00> : vector<24x384xf32>
    %44 = tpu.matmul %41, %43, %cst_45 {dimension_numbers = #tpu.dot_dimension_numbers<[1], [0], [0], [1], [0, 0, 1, 1], [], []>} : vector<24x416xf32>, vector<416x384xf32>, vector<24x384xf32> -> vector<24x384xf32>
    %45 = arith.addf %38, %44 : vector<24x384xf32>
    %c2_46 = arith.constant 2 : index
    %c0_47 = arith.constant 0 : index
    %c0_48 = arith.constant 0 : index
    %46 = vector.load %arg6[%c2_46, %c0_47, %c0_48] : memref<3x24x26xf32, #tpu.memory_space<vmem>>, vector<1x24x26xf32>
    %47 = vector.shape_cast %46 : vector<1x24x26xf32> to vector<24x26xf32>
    %cst_49 = arith.constant dense<0.000000e+00> : vector<24x416xf32>
    %48 = tpu.matmul %47, %32, %cst_49 {dimension_numbers = #tpu.dot_dimension_numbers<[1], [0], [0], [1], [0, 0, 1, 1], [], []>} : vector<24x26xf32>, vector<26x416xf32>, vector<24x416xf32> -> vector<24x416xf32>
    %c2_50 = arith.constant 2 : index
    %c0_51 = arith.constant 0 : index
    %c0_52 = arith.constant 0 : index
    %49 = vector.load %arg5[%c2_50, %c0_51, %c0_52] : memref<3x416x384xf32, #tpu.memory_space<vmem>>, vector<1x416x384xf32>
    %50 = vector.shape_cast %49 : vector<1x416x384xf32> to vector<416x384xf32>
    %cst_53 = arith.constant dense<0.000000e+00> : vector<24x384xf32>
    %51 = tpu.matmul %48, %50, %cst_53 {dimension_numbers = #tpu.dot_dimension_numbers<[1], [0], [0], [1], [0, 0, 1, 1], [], []>} : vector<24x416xf32>, vector<416x384xf32>, vector<24x384xf32> -> vector<24x384xf32>
    %52 = arith.addf %45, %51 : vector<24x384xf32>
    %c0_54 = arith.constant 0 : index
    %c0_55 = arith.constant 0 : index
    %53 = vector.load %arg7[%c0_54, %c0_55] : memref<3x384xf32, #tpu.memory_space<vmem>>, vector<1x384xf32>
    %54 = vector.broadcast %53 : vector<1x384xf32> to vector<24x384xf32>
    %55 = arith.addf %52, %54 : vector<24x384xf32>
    %cst_56 = arith.constant 0.000000e+00 : f32
    %56 = vector.broadcast %cst_56 : f32 to vector<24x384xf32>
    %57 = arith.maximumf %55, %56 : vector<24x384xf32>
    %c1_57 = arith.constant 1 : index
    %c0_58 = arith.constant 0 : index
    %58 = vector.load %arg7[%c1_57, %c0_58] : memref<3x384xf32, #tpu.memory_space<vmem>>, vector<1x384xf32>
    %59 = vector.broadcast %58 : vector<1x384xf32> to vector<24x384xf32>
    %60 = arith.mulf %57, %59 : vector<24x384xf32>
    %c2_59 = arith.constant 2 : index
    %c0_60 = arith.constant 0 : index
    %61 = vector.load %arg7[%c2_59, %c0_60] : memref<3x384xf32, #tpu.memory_space<vmem>>, vector<1x384xf32>
    %62 = vector.broadcast %61 : vector<1x384xf32> to vector<24x384xf32>
    %63 = arith.addf %60, %62 : vector<24x384xf32>
    %c0_61 = arith.constant 0 : index
    %c0_62 = arith.constant 0 : index
    %c0_63 = arith.constant 0 : index
    %64 = vector.load %arg9[%c0_61, %c0_62, %c0_63] : memref<3x22x24xf32, #tpu.memory_space<vmem>>, vector<1x22x24xf32>
    %65 = vector.shape_cast %64 : vector<1x22x24xf32> to vector<22x24xf32>
    %cst_64 = arith.constant dense<0.000000e+00> : vector<22x384xf32>
    %66 = tpu.matmul %65, %63, %cst_64 {dimension_numbers = #tpu.dot_dimension_numbers<[1], [0], [0], [1], [0, 0, 1, 1], [], []>} : vector<22x24xf32>, vector<24x384xf32>, vector<22x384xf32> -> vector<22x384xf32>
    %c0_65 = arith.constant 0 : index
    %c0_66 = arith.constant 0 : index
    %c0_67 = arith.constant 0 : index
    %67 = vector.load %arg8[%c0_65, %c0_66, %c0_67] : memref<3x384x352xf32, #tpu.memory_space<vmem>>, vector<1x384x352xf32>
    %68 = vector.shape_cast %67 : vector<1x384x352xf32> to vector<384x352xf32>
    %cst_68 = arith.constant dense<0.000000e+00> : vector<22x352xf32>
    %69 = tpu.matmul %66, %68, %cst_68 {dimension_numbers = #tpu.dot_dimension_numbers<[1], [0], [0], [1], [0, 0, 1, 1], [], []>} : vector<22x384xf32>, vector<384x352xf32>, vector<22x352xf32> -> vector<22x352xf32>
    %c1_69 = arith.constant 1 : index
    %c0_70 = arith.constant 0 : index
    %c0_71 = arith.constant 0 : index
    %70 = vector.load %arg9[%c1_69, %c0_70, %c0_71] : memref<3x22x24xf32, #tpu.memory_space<vmem>>, vector<1x22x24xf32>
    %71 = vector.shape_cast %70 : vector<1x22x24xf32> to vector<22x24xf32>
    %cst_72 = arith.constant dense<0.000000e+00> : vector<22x384xf32>
    %72 = tpu.matmul %71, %63, %cst_72 {dimension_numbers = #tpu.dot_dimension_numbers<[1], [0], [0], [1], [0, 0, 1, 1], [], []>} : vector<22x24xf32>, vector<24x384xf32>, vector<22x384xf32> -> vector<22x384xf32>
    %c1_73 = arith.constant 1 : index
    %c0_74 = arith.constant 0 : index
    %c0_75 = arith.constant 0 : index
    %73 = vector.load %arg8[%c1_73, %c0_74, %c0_75] : memref<3x384x352xf32, #tpu.memory_space<vmem>>, vector<1x384x352xf32>
    %74 = vector.shape_cast %73 : vector<1x384x352xf32> to vector<384x352xf32>
    %cst_76 = arith.constant dense<0.000000e+00> : vector<22x352xf32>
    %75 = tpu.matmul %72, %74, %cst_76 {dimension_numbers = #tpu.dot_dimension_numbers<[1], [0], [0], [1], [0, 0, 1, 1], [], []>} : vector<22x384xf32>, vector<384x352xf32>, vector<22x352xf32> -> vector<22x352xf32>
    %76 = arith.addf %69, %75 : vector<22x352xf32>
    %c2_77 = arith.constant 2 : index
    %c0_78 = arith.constant 0 : index
    %c0_79 = arith.constant 0 : index
    %77 = vector.load %arg9[%c2_77, %c0_78, %c0_79] : memref<3x22x24xf32, #tpu.memory_space<vmem>>, vector<1x22x24xf32>
    %78 = vector.shape_cast %77 : vector<1x22x24xf32> to vector<22x24xf32>
    %cst_80 = arith.constant dense<0.000000e+00> : vector<22x384xf32>
    %79 = tpu.matmul %78, %63, %cst_80 {dimension_numbers = #tpu.dot_dimension_numbers<[1], [0], [0], [1], [0, 0, 1, 1], [], []>} : vector<22x24xf32>, vector<24x384xf32>, vector<22x384xf32> -> vector<22x384xf32>
    %c2_81 = arith.constant 2 : index
    %c0_82 = arith.constant 0 : index
    %c0_83 = arith.constant 0 : index
    %80 = vector.load %arg8[%c2_81, %c0_82, %c0_83] : memref<3x384x352xf32, #tpu.memory_space<vmem>>, vector<1x384x352xf32>
    %81 = vector.shape_cast %80 : vector<1x384x352xf32> to vector<384x352xf32>
    %cst_84 = arith.constant dense<0.000000e+00> : vector<22x352xf32>
    %82 = tpu.matmul %79, %81, %cst_84 {dimension_numbers = #tpu.dot_dimension_numbers<[1], [0], [0], [1], [0, 0, 1, 1], [], []>} : vector<22x384xf32>, vector<384x352xf32>, vector<22x352xf32> -> vector<22x352xf32>
    %83 = arith.addf %76, %82 : vector<22x352xf32>
    %c0_85 = arith.constant 0 : index
    %c0_86 = arith.constant 0 : index
    %84 = vector.load %arg10[%c0_85, %c0_86] : memref<3x352xf32, #tpu.memory_space<vmem>>, vector<1x352xf32>
    %85 = vector.broadcast %84 : vector<1x352xf32> to vector<22x352xf32>
    %86 = arith.addf %83, %85 : vector<22x352xf32>
    %cst_87 = arith.constant 0.000000e+00 : f32
    %87 = vector.broadcast %cst_87 : f32 to vector<22x352xf32>
    %88 = arith.maximumf %86, %87 : vector<22x352xf32>
    %c1_88 = arith.constant 1 : index
    %c0_89 = arith.constant 0 : index
    %89 = vector.load %arg10[%c1_88, %c0_89] : memref<3x352xf32, #tpu.memory_space<vmem>>, vector<1x352xf32>
    %90 = vector.broadcast %89 : vector<1x352xf32> to vector<22x352xf32>
    %91 = arith.mulf %88, %90 : vector<22x352xf32>
    %c2_90 = arith.constant 2 : index
    %c0_91 = arith.constant 0 : index
    %92 = vector.load %arg10[%c2_90, %c0_91] : memref<3x352xf32, #tpu.memory_space<vmem>>, vector<1x352xf32>
    %93 = vector.broadcast %92 : vector<1x352xf32> to vector<22x352xf32>
    %94 = arith.addf %91, %93 : vector<22x352xf32>
    %c0_92 = arith.constant 0 : index
    %c0_93 = arith.constant 0 : index
    %95 = vector.load %arg29[%c0_92, %c0_93] : memref<11x22xf32, #tpu.memory_space<vmem>>, vector<11x22xf32>
    %cst_94 = arith.constant dense<0.000000e+00> : vector<11x352xf32>
    %96 = tpu.matmul %95, %94, %cst_94 {dimension_numbers = #tpu.dot_dimension_numbers<[1], [0], [0], [1], [0, 0, 1, 1], [], []>} : vector<11x22xf32>, vector<22x352xf32>, vector<11x352xf32> -> vector<11x352xf32>
    %c0_95 = arith.constant 0 : index
    %c0_96 = arith.constant 0 : index
    %97 = vector.load %arg30[%c0_95, %c0_96] : memref<11x22xf32, #tpu.memory_space<vmem>>, vector<11x22xf32>
    %cst_97 = arith.constant dense<0.000000e+00> : vector<11x352xf32>
    %98 = tpu.matmul %97, %94, %cst_97 {dimension_numbers = #tpu.dot_dimension_numbers<[1], [0], [0], [1], [0, 0, 1, 1], [], []>} : vector<11x22xf32>, vector<22x352xf32>, vector<11x352xf32> -> vector<11x352xf32>
    %99 = arith.maximumf %96, %98 : vector<11x352xf32>
    %c0_98 = arith.constant 0 : index
    %c0_99 = arith.constant 0 : index
    %100 = vector.load %arg31[%c0_98, %c0_99] : memref<352x176xf32, #tpu.memory_space<vmem>>, vector<352x176xf32>
    %cst_100 = arith.constant dense<0.000000e+00> : vector<11x176xf32>
    %101 = tpu.matmul %99, %100, %cst_100 {dimension_numbers = #tpu.dot_dimension_numbers<[1], [0], [0], [1], [0, 0, 1, 1], [], []>} : vector<11x352xf32>, vector<352x176xf32>, vector<11x176xf32> -> vector<11x176xf32>
    %c0_101 = arith.constant 0 : index
    %c0_102 = arith.constant 0 : index
    %102 = vector.load %arg32[%c0_101, %c0_102] : memref<352x176xf32, #tpu.memory_space<vmem>>, vector<352x176xf32>
    %cst_103 = arith.constant dense<0.000000e+00> : vector<11x176xf32>
    %103 = tpu.matmul %99, %102, %cst_103 {dimension_numbers = #tpu.dot_dimension_numbers<[1], [0], [0], [1], [0, 0, 1, 1], [], []>} : vector<11x352xf32>, vector<352x176xf32>, vector<11x176xf32> -> vector<11x176xf32>
    %104 = arith.maximumf %101, %103 : vector<11x176xf32>
    %c0_104 = arith.constant 0 : index
    %c0_105 = arith.constant 0 : index
    %c0_106 = arith.constant 0 : index
    %105 = vector.load %arg12[%c0_104, %c0_105, %c0_106] : memref<1x11x11xf32, #tpu.memory_space<vmem>>, vector<1x11x11xf32>
    %106 = vector.shape_cast %105 : vector<1x11x11xf32> to vector<11x11xf32>
    %cst_107 = arith.constant dense<0.000000e+00> : vector<11x176xf32>
    %107 = tpu.matmul %106, %104, %cst_107 {dimension_numbers = #tpu.dot_dimension_numbers<[1], [0], [0], [1], [0, 0, 1, 1], [], []>} : vector<11x11xf32>, vector<11x176xf32>, vector<11x176xf32> -> vector<11x176xf32>
    %c0_108 = arith.constant 0 : index
    %c0_109 = arith.constant 0 : index
    %c0_110 = arith.constant 0 : index
    %108 = vector.load %arg11[%c0_108, %c0_109, %c0_110] : memref<1x176x176xf32, #tpu.memory_space<vmem>>, vector<1x176x176xf32>
    %109 = vector.shape_cast %108 : vector<1x176x176xf32> to vector<176x176xf32>
    %cst_111 = arith.constant dense<0.000000e+00> : vector<11x176xf32>
    %110 = tpu.matmul %107, %109, %cst_111 {dimension_numbers = #tpu.dot_dimension_numbers<[1], [0], [0], [1], [0, 0, 1, 1], [], []>} : vector<11x176xf32>, vector<176x176xf32>, vector<11x176xf32> -> vector<11x176xf32>
    %c0_112 = arith.constant 0 : index
    %c0_113 = arith.constant 0 : index
    %111 = vector.load %arg13[%c0_112, %c0_113] : memref<3x176xf32, #tpu.memory_space<vmem>>, vector<1x176xf32>
    %112 = vector.broadcast %111 : vector<1x176xf32> to vector<11x176xf32>
    %113 = arith.addf %110, %112 : vector<11x176xf32>
    %cst_114 = arith.constant 0.000000e+00 : f32
    %114 = vector.broadcast %cst_114 : f32 to vector<11x176xf32>
    %115 = arith.maximumf %113, %114 : vector<11x176xf32>
    %c1_115 = arith.constant 1 : index
    %c0_116 = arith.constant 0 : index
    %116 = vector.load %arg13[%c1_115, %c0_116] : memref<3x176xf32, #tpu.memory_space<vmem>>, vector<1x176xf32>
    %117 = vector.broadcast %116 : vector<1x176xf32> to vector<11x176xf32>
    %118 = arith.mulf %115, %117 : vector<11x176xf32>
    %c2_117 = arith.constant 2 : index
    %c0_118 = arith.constant 0 : index
    %119 = vector.load %arg13[%c2_117, %c0_118] : memref<3x176xf32, #tpu.memory_space<vmem>>, vector<1x176xf32>
    %120 = vector.broadcast %119 : vector<1x176xf32> to vector<11x176xf32>
    %121 = arith.addf %118, %120 : vector<11x176xf32>
    %c0_119 = arith.constant 0 : index
    %c0_120 = arith.constant 0 : index
    %c0_121 = arith.constant 0 : index
    %122 = vector.load %arg15[%c0_119, %c0_120, %c0_121] : memref<3x9x11xf32, #tpu.memory_space<vmem>>, vector<1x9x11xf32>
    %123 = vector.shape_cast %122 : vector<1x9x11xf32> to vector<9x11xf32>
    %cst_122 = arith.constant dense<0.000000e+00> : vector<9x176xf32>
    %124 = tpu.matmul %123, %121, %cst_122 {dimension_numbers = #tpu.dot_dimension_numbers<[1], [0], [0], [1], [0, 0, 1, 1], [], []>} : vector<9x11xf32>, vector<11x176xf32>, vector<9x176xf32> -> vector<9x176xf32>
    %c0_123 = arith.constant 0 : index
    %c0_124 = arith.constant 0 : index
    %c0_125 = arith.constant 0 : index
    %125 = vector.load %arg14[%c0_123, %c0_124, %c0_125] : memref<3x176x144xf32, #tpu.memory_space<vmem>>, vector<1x176x144xf32>
    %126 = vector.shape_cast %125 : vector<1x176x144xf32> to vector<176x144xf32>
    %cst_126 = arith.constant dense<0.000000e+00> : vector<9x144xf32>
    %127 = tpu.matmul %124, %126, %cst_126 {dimension_numbers = #tpu.dot_dimension_numbers<[1], [0], [0], [1], [0, 0, 1, 1], [], []>} : vector<9x176xf32>, vector<176x144xf32>, vector<9x144xf32> -> vector<9x144xf32>
    %c1_127 = arith.constant 1 : index
    %c0_128 = arith.constant 0 : index
    %c0_129 = arith.constant 0 : index
    %128 = vector.load %arg15[%c1_127, %c0_128, %c0_129] : memref<3x9x11xf32, #tpu.memory_space<vmem>>, vector<1x9x11xf32>
    %129 = vector.shape_cast %128 : vector<1x9x11xf32> to vector<9x11xf32>
    %cst_130 = arith.constant dense<0.000000e+00> : vector<9x176xf32>
    %130 = tpu.matmul %129, %121, %cst_130 {dimension_numbers = #tpu.dot_dimension_numbers<[1], [0], [0], [1], [0, 0, 1, 1], [], []>} : vector<9x11xf32>, vector<11x176xf32>, vector<9x176xf32> -> vector<9x176xf32>
    %c1_131 = arith.constant 1 : index
    %c0_132 = arith.constant 0 : index
    %c0_133 = arith.constant 0 : index
    %131 = vector.load %arg14[%c1_131, %c0_132, %c0_133] : memref<3x176x144xf32, #tpu.memory_space<vmem>>, vector<1x176x144xf32>
    %132 = vector.shape_cast %131 : vector<1x176x144xf32> to vector<176x144xf32>
    %cst_134 = arith.constant dense<0.000000e+00> : vector<9x144xf32>
    %133 = tpu.matmul %130, %132, %cst_134 {dimension_numbers = #tpu.dot_dimension_numbers<[1], [0], [0], [1], [0, 0, 1, 1], [], []>} : vector<9x176xf32>, vector<176x144xf32>, vector<9x144xf32> -> vector<9x144xf32>
    %134 = arith.addf %127, %133 : vector<9x144xf32>
    %c2_135 = arith.constant 2 : index
    %c0_136 = arith.constant 0 : index
    %c0_137 = arith.constant 0 : index
    %135 = vector.load %arg15[%c2_135, %c0_136, %c0_137] : memref<3x9x11xf32, #tpu.memory_space<vmem>>, vector<1x9x11xf32>
    %136 = vector.shape_cast %135 : vector<1x9x11xf32> to vector<9x11xf32>
    %cst_138 = arith.constant dense<0.000000e+00> : vector<9x176xf32>
    %137 = tpu.matmul %136, %121, %cst_138 {dimension_numbers = #tpu.dot_dimension_numbers<[1], [0], [0], [1], [0, 0, 1, 1], [], []>} : vector<9x11xf32>, vector<11x176xf32>, vector<9x176xf32> -> vector<9x176xf32>
    %c2_139 = arith.constant 2 : index
    %c0_140 = arith.constant 0 : index
    %c0_141 = arith.constant 0 : index
    %138 = vector.load %arg14[%c2_139, %c0_140, %c0_141] : memref<3x176x144xf32, #tpu.memory_space<vmem>>, vector<1x176x144xf32>
    %139 = vector.shape_cast %138 : vector<1x176x144xf32> to vector<176x144xf32>
    %cst_142 = arith.constant dense<0.000000e+00> : vector<9x144xf32>
    %140 = tpu.matmul %137, %139, %cst_142 {dimension_numbers = #tpu.dot_dimension_numbers<[1], [0], [0], [1], [0, 0, 1, 1], [], []>} : vector<9x176xf32>, vector<176x144xf32>, vector<9x144xf32> -> vector<9x144xf32>
    %141 = arith.addf %134, %140 : vector<9x144xf32>
    %c0_143 = arith.constant 0 : index
    %c0_144 = arith.constant 0 : index
    %142 = vector.load %arg16[%c0_143, %c0_144] : memref<3x144xf32, #tpu.memory_space<vmem>>, vector<1x144xf32>
    %143 = vector.broadcast %142 : vector<1x144xf32> to vector<9x144xf32>
    %144 = arith.addf %141, %143 : vector<9x144xf32>
    %cst_145 = arith.constant 0.000000e+00 : f32
    %145 = vector.broadcast %cst_145 : f32 to vector<9x144xf32>
    %146 = arith.maximumf %144, %145 : vector<9x144xf32>
    %c1_146 = arith.constant 1 : index
    %c0_147 = arith.constant 0 : index
    %147 = vector.load %arg16[%c1_146, %c0_147] : memref<3x144xf32, #tpu.memory_space<vmem>>, vector<1x144xf32>
    %148 = vector.broadcast %147 : vector<1x144xf32> to vector<9x144xf32>
    %149 = arith.mulf %146, %148 : vector<9x144xf32>
    %c2_148 = arith.constant 2 : index
    %c0_149 = arith.constant 0 : index
    %150 = vector.load %arg16[%c2_148, %c0_149] : memref<3x144xf32, #tpu.memory_space<vmem>>, vector<1x144xf32>
    %151 = vector.broadcast %150 : vector<1x144xf32> to vector<9x144xf32>
    %152 = arith.addf %149, %151 : vector<9x144xf32>
    %c0_150 = arith.constant 0 : index
    %c0_151 = arith.constant 0 : index
    %c0_152 = arith.constant 0 : index
    %153 = vector.load %arg18[%c0_150, %c0_151, %c0_152] : memref<3x7x9xf32, #tpu.memory_space<vmem>>, vector<1x7x9xf32>
    %154 = vector.shape_cast %153 : vector<1x7x9xf32> to vector<7x9xf32>
    %cst_153 = arith.constant dense<0.000000e+00> : vector<7x144xf32>
    %155 = tpu.matmul %154, %152, %cst_153 {dimension_numbers = #tpu.dot_dimension_numbers<[1], [0], [0], [1], [0, 0, 1, 1], [], []>} : vector<7x9xf32>, vector<9x144xf32>, vector<7x144xf32> -> vector<7x144xf32>
    %c0_154 = arith.constant 0 : index
    %c0_155 = arith.constant 0 : index
    %c0_156 = arith.constant 0 : index
    %156 = vector.load %arg17[%c0_154, %c0_155, %c0_156] : memref<3x144x112xf32, #tpu.memory_space<vmem>>, vector<1x144x112xf32>
    %157 = vector.shape_cast %156 : vector<1x144x112xf32> to vector<144x112xf32>
    %cst_157 = arith.constant dense<0.000000e+00> : vector<7x112xf32>
    %158 = tpu.matmul %155, %157, %cst_157 {dimension_numbers = #tpu.dot_dimension_numbers<[1], [0], [0], [1], [0, 0, 1, 1], [], []>} : vector<7x144xf32>, vector<144x112xf32>, vector<7x112xf32> -> vector<7x112xf32>
    %c1_158 = arith.constant 1 : index
    %c0_159 = arith.constant 0 : index
    %c0_160 = arith.constant 0 : index
    %159 = vector.load %arg18[%c1_158, %c0_159, %c0_160] : memref<3x7x9xf32, #tpu.memory_space<vmem>>, vector<1x7x9xf32>
    %160 = vector.shape_cast %159 : vector<1x7x9xf32> to vector<7x9xf32>
    %cst_161 = arith.constant dense<0.000000e+00> : vector<7x144xf32>
    %161 = tpu.matmul %160, %152, %cst_161 {dimension_numbers = #tpu.dot_dimension_numbers<[1], [0], [0], [1], [0, 0, 1, 1], [], []>} : vector<7x9xf32>, vector<9x144xf32>, vector<7x144xf32> -> vector<7x144xf32>
    %c1_162 = arith.constant 1 : index
    %c0_163 = arith.constant 0 : index
    %c0_164 = arith.constant 0 : index
    %162 = vector.load %arg17[%c1_162, %c0_163, %c0_164] : memref<3x144x112xf32, #tpu.memory_space<vmem>>, vector<1x144x112xf32>
    %163 = vector.shape_cast %162 : vector<1x144x112xf32> to vector<144x112xf32>
    %cst_165 = arith.constant dense<0.000000e+00> : vector<7x112xf32>
    %164 = tpu.matmul %161, %163, %cst_165 {dimension_numbers = #tpu.dot_dimension_numbers<[1], [0], [0], [1], [0, 0, 1, 1], [], []>} : vector<7x144xf32>, vector<144x112xf32>, vector<7x112xf32> -> vector<7x112xf32>
    %165 = arith.addf %158, %164 : vector<7x112xf32>
    %c2_166 = arith.constant 2 : index
    %c0_167 = arith.constant 0 : index
    %c0_168 = arith.constant 0 : index
    %166 = vector.load %arg18[%c2_166, %c0_167, %c0_168] : memref<3x7x9xf32, #tpu.memory_space<vmem>>, vector<1x7x9xf32>
    %167 = vector.shape_cast %166 : vector<1x7x9xf32> to vector<7x9xf32>
    %cst_169 = arith.constant dense<0.000000e+00> : vector<7x144xf32>
    %168 = tpu.matmul %167, %152, %cst_169 {dimension_numbers = #tpu.dot_dimension_numbers<[1], [0], [0], [1], [0, 0, 1, 1], [], []>} : vector<7x9xf32>, vector<9x144xf32>, vector<7x144xf32> -> vector<7x144xf32>
    %c2_170 = arith.constant 2 : index
    %c0_171 = arith.constant 0 : index
    %c0_172 = arith.constant 0 : index
    %169 = vector.load %arg17[%c2_170, %c0_171, %c0_172] : memref<3x144x112xf32, #tpu.memory_space<vmem>>, vector<1x144x112xf32>
    %170 = vector.shape_cast %169 : vector<1x144x112xf32> to vector<144x112xf32>
    %cst_173 = arith.constant dense<0.000000e+00> : vector<7x112xf32>
    %171 = tpu.matmul %168, %170, %cst_173 {dimension_numbers = #tpu.dot_dimension_numbers<[1], [0], [0], [1], [0, 0, 1, 1], [], []>} : vector<7x144xf32>, vector<144x112xf32>, vector<7x112xf32> -> vector<7x112xf32>
    %172 = arith.addf %165, %171 : vector<7x112xf32>
    %c0_174 = arith.constant 0 : index
    %c0_175 = arith.constant 0 : index
    %173 = vector.load %arg19[%c0_174, %c0_175] : memref<3x112xf32, #tpu.memory_space<vmem>>, vector<1x112xf32>
    %174 = vector.broadcast %173 : vector<1x112xf32> to vector<7x112xf32>
    %175 = arith.addf %172, %174 : vector<7x112xf32>
    %cst_176 = arith.constant 0.000000e+00 : f32
    %176 = vector.broadcast %cst_176 : f32 to vector<7x112xf32>
    %177 = arith.maximumf %175, %176 : vector<7x112xf32>
    %c1_177 = arith.constant 1 : index
    %c0_178 = arith.constant 0 : index
    %178 = vector.load %arg19[%c1_177, %c0_178] : memref<3x112xf32, #tpu.memory_space<vmem>>, vector<1x112xf32>
    %179 = vector.broadcast %178 : vector<1x112xf32> to vector<7x112xf32>
    %180 = arith.mulf %177, %179 : vector<7x112xf32>
    %c2_179 = arith.constant 2 : index
    %c0_180 = arith.constant 0 : index
    %181 = vector.load %arg19[%c2_179, %c0_180] : memref<3x112xf32, #tpu.memory_space<vmem>>, vector<1x112xf32>
    %182 = vector.broadcast %181 : vector<1x112xf32> to vector<7x112xf32>
    %183 = arith.addf %180, %182 : vector<7x112xf32>
    %c0_181 = arith.constant 0 : index
    %c0_182 = arith.constant 0 : index
    %c0_183 = arith.constant 0 : index
    %184 = vector.load %arg21[%c0_181, %c0_182, %c0_183] : memref<3x5x7xf32, #tpu.memory_space<vmem>>, vector<1x5x7xf32>
    %185 = vector.shape_cast %184 : vector<1x5x7xf32> to vector<5x7xf32>
    %cst_184 = arith.constant dense<0.000000e+00> : vector<5x112xf32>
    %186 = tpu.matmul %185, %183, %cst_184 {dimension_numbers = #tpu.dot_dimension_numbers<[1], [0], [0], [1], [0, 0, 1, 1], [], []>} : vector<5x7xf32>, vector<7x112xf32>, vector<5x112xf32> -> vector<5x112xf32>
    %c0_185 = arith.constant 0 : index
    %c0_186 = arith.constant 0 : index
    %c0_187 = arith.constant 0 : index
    %187 = vector.load %arg20[%c0_185, %c0_186, %c0_187] : memref<3x112x80xf32, #tpu.memory_space<vmem>>, vector<1x112x80xf32>
    %188 = vector.shape_cast %187 : vector<1x112x80xf32> to vector<112x80xf32>
    %cst_188 = arith.constant dense<0.000000e+00> : vector<5x80xf32>
    %189 = tpu.matmul %186, %188, %cst_188 {dimension_numbers = #tpu.dot_dimension_numbers<[1], [0], [0], [1], [0, 0, 1, 1], [], []>} : vector<5x112xf32>, vector<112x80xf32>, vector<5x80xf32> -> vector<5x80xf32>
    %c1_189 = arith.constant 1 : index
    %c0_190 = arith.constant 0 : index
    %c0_191 = arith.constant 0 : index
    %190 = vector.load %arg21[%c1_189, %c0_190, %c0_191] : memref<3x5x7xf32, #tpu.memory_space<vmem>>, vector<1x5x7xf32>
    %191 = vector.shape_cast %190 : vector<1x5x7xf32> to vector<5x7xf32>
    %cst_192 = arith.constant dense<0.000000e+00> : vector<5x112xf32>
    %192 = tpu.matmul %191, %183, %cst_192 {dimension_numbers = #tpu.dot_dimension_numbers<[1], [0], [0], [1], [0, 0, 1, 1], [], []>} : vector<5x7xf32>, vector<7x112xf32>, vector<5x112xf32> -> vector<5x112xf32>
    %c1_193 = arith.constant 1 : index
    %c0_194 = arith.constant 0 : index
    %c0_195 = arith.constant 0 : index
    %193 = vector.load %arg20[%c1_193, %c0_194, %c0_195] : memref<3x112x80xf32, #tpu.memory_space<vmem>>, vector<1x112x80xf32>
    %194 = vector.shape_cast %193 : vector<1x112x80xf32> to vector<112x80xf32>
    %cst_196 = arith.constant dense<0.000000e+00> : vector<5x80xf32>
    %195 = tpu.matmul %192, %194, %cst_196 {dimension_numbers = #tpu.dot_dimension_numbers<[1], [0], [0], [1], [0, 0, 1, 1], [], []>} : vector<5x112xf32>, vector<112x80xf32>, vector<5x80xf32> -> vector<5x80xf32>
    %196 = arith.addf %189, %195 : vector<5x80xf32>
    %c2_197 = arith.constant 2 : index
    %c0_198 = arith.constant 0 : index
    %c0_199 = arith.constant 0 : index
    %197 = vector.load %arg21[%c2_197, %c0_198, %c0_199] : memref<3x5x7xf32, #tpu.memory_space<vmem>>, vector<1x5x7xf32>
    %198 = vector.shape_cast %197 : vector<1x5x7xf32> to vector<5x7xf32>
    %cst_200 = arith.constant dense<0.000000e+00> : vector<5x112xf32>
    %199 = tpu.matmul %198, %183, %cst_200 {dimension_numbers = #tpu.dot_dimension_numbers<[1], [0], [0], [1], [0, 0, 1, 1], [], []>} : vector<5x7xf32>, vector<7x112xf32>, vector<5x112xf32> -> vector<5x112xf32>
    %c2_201 = arith.constant 2 : index
    %c0_202 = arith.constant 0 : index
    %c0_203 = arith.constant 0 : index
    %200 = vector.load %arg20[%c2_201, %c0_202, %c0_203] : memref<3x112x80xf32, #tpu.memory_space<vmem>>, vector<1x112x80xf32>
    %201 = vector.shape_cast %200 : vector<1x112x80xf32> to vector<112x80xf32>
    %cst_204 = arith.constant dense<0.000000e+00> : vector<5x80xf32>
    %202 = tpu.matmul %199, %201, %cst_204 {dimension_numbers = #tpu.dot_dimension_numbers<[1], [0], [0], [1], [0, 0, 1, 1], [], []>} : vector<5x112xf32>, vector<112x80xf32>, vector<5x80xf32> -> vector<5x80xf32>
    %203 = arith.addf %196, %202 : vector<5x80xf32>
    %c0_205 = arith.constant 0 : index
    %c0_206 = arith.constant 0 : index
    %204 = vector.load %arg22[%c0_205, %c0_206] : memref<3x80xf32, #tpu.memory_space<vmem>>, vector<1x80xf32>
    %205 = vector.broadcast %204 : vector<1x80xf32> to vector<5x80xf32>
    %206 = arith.addf %203, %205 : vector<5x80xf32>
    %cst_207 = arith.constant 0.000000e+00 : f32
    %207 = vector.broadcast %cst_207 : f32 to vector<5x80xf32>
    %208 = arith.maximumf %206, %207 : vector<5x80xf32>
    %c1_208 = arith.constant 1 : index
    %c0_209 = arith.constant 0 : index
    %209 = vector.load %arg22[%c1_208, %c0_209] : memref<3x80xf32, #tpu.memory_space<vmem>>, vector<1x80xf32>
    %210 = vector.broadcast %209 : vector<1x80xf32> to vector<5x80xf32>
    %211 = arith.mulf %208, %210 : vector<5x80xf32>
    %c2_210 = arith.constant 2 : index
    %c0_211 = arith.constant 0 : index
    %212 = vector.load %arg22[%c2_210, %c0_211] : memref<3x80xf32, #tpu.memory_space<vmem>>, vector<1x80xf32>
    %213 = vector.broadcast %212 : vector<1x80xf32> to vector<5x80xf32>
    %214 = arith.addf %211, %213 : vector<5x80xf32>
    %c0_212 = arith.constant 0 : index
    %c0_213 = arith.constant 0 : index
    %c0_214 = arith.constant 0 : index
    %215 = vector.load %arg24[%c0_212, %c0_213, %c0_214] : memref<3x5x5xf32, #tpu.memory_space<vmem>>, vector<1x5x5xf32>
    %216 = vector.shape_cast %215 : vector<1x5x5xf32> to vector<5x5xf32>
    %cst_215 = arith.constant dense<0.000000e+00> : vector<5x80xf32>
    %217 = tpu.matmul %216, %214, %cst_215 {dimension_numbers = #tpu.dot_dimension_numbers<[1], [0], [0], [1], [0, 0, 1, 1], [], []>} : vector<5x5xf32>, vector<5x80xf32>, vector<5x80xf32> -> vector<5x80xf32>
    %c0_216 = arith.constant 0 : index
    %c0_217 = arith.constant 0 : index
    %c0_218 = arith.constant 0 : index
    %218 = vector.load %arg23[%c0_216, %c0_217, %c0_218] : memref<3x80x80xf32, #tpu.memory_space<vmem>>, vector<1x80x80xf32>
    %219 = vector.shape_cast %218 : vector<1x80x80xf32> to vector<80x80xf32>
    %cst_219 = arith.constant dense<0.000000e+00> : vector<5x80xf32>
    %220 = tpu.matmul %217, %219, %cst_219 {dimension_numbers = #tpu.dot_dimension_numbers<[1], [0], [0], [1], [0, 0, 1, 1], [], []>} : vector<5x80xf32>, vector<80x80xf32>, vector<5x80xf32> -> vector<5x80xf32>
    %c1_220 = arith.constant 1 : index
    %c0_221 = arith.constant 0 : index
    %c0_222 = arith.constant 0 : index
    %221 = vector.load %arg24[%c1_220, %c0_221, %c0_222] : memref<3x5x5xf32, #tpu.memory_space<vmem>>, vector<1x5x5xf32>
    %222 = vector.shape_cast %221 : vector<1x5x5xf32> to vector<5x5xf32>
    %cst_223 = arith.constant dense<0.000000e+00> : vector<5x80xf32>
    %223 = tpu.matmul %222, %214, %cst_223 {dimension_numbers = #tpu.dot_dimension_numbers<[1], [0], [0], [1], [0, 0, 1, 1], [], []>} : vector<5x5xf32>, vector<5x80xf32>, vector<5x80xf32> -> vector<5x80xf32>
    %c1_224 = arith.constant 1 : index
    %c0_225 = arith.constant 0 : index
    %c0_226 = arith.constant 0 : index
    %224 = vector.load %arg23[%c1_224, %c0_225, %c0_226] : memref<3x80x80xf32, #tpu.memory_space<vmem>>, vector<1x80x80xf32>
    %225 = vector.shape_cast %224 : vector<1x80x80xf32> to vector<80x80xf32>
    %cst_227 = arith.constant dense<0.000000e+00> : vector<5x80xf32>
    %226 = tpu.matmul %223, %225, %cst_227 {dimension_numbers = #tpu.dot_dimension_numbers<[1], [0], [0], [1], [0, 0, 1, 1], [], []>} : vector<5x80xf32>, vector<80x80xf32>, vector<5x80xf32> -> vector<5x80xf32>
    %227 = arith.addf %220, %226 : vector<5x80xf32>
    %c2_228 = arith.constant 2 : index
    %c0_229 = arith.constant 0 : index
    %c0_230 = arith.constant 0 : index
    %228 = vector.load %arg24[%c2_228, %c0_229, %c0_230] : memref<3x5x5xf32, #tpu.memory_space<vmem>>, vector<1x5x5xf32>
    %229 = vector.shape_cast %228 : vector<1x5x5xf32> to vector<5x5xf32>
    %cst_231 = arith.constant dense<0.000000e+00> : vector<5x80xf32>
    %230 = tpu.matmul %229, %214, %cst_231 {dimension_numbers = #tpu.dot_dimension_numbers<[1], [0], [0], [1], [0, 0, 1, 1], [], []>} : vector<5x5xf32>, vector<5x80xf32>, vector<5x80xf32> -> vector<5x80xf32>
    %c2_232 = arith.constant 2 : index
    %c0_233 = arith.constant 0 : index
    %c0_234 = arith.constant 0 : index
    %231 = vector.load %arg23[%c2_232, %c0_233, %c0_234] : memref<3x80x80xf32, #tpu.memory_space<vmem>>, vector<1x80x80xf32>
    %232 = vector.shape_cast %231 : vector<1x80x80xf32> to vector<80x80xf32>
    %cst_235 = arith.constant dense<0.000000e+00> : vector<5x80xf32>
    %233 = tpu.matmul %230, %232, %cst_235 {dimension_numbers = #tpu.dot_dimension_numbers<[1], [0], [0], [1], [0, 0, 1, 1], [], []>} : vector<5x80xf32>, vector<80x80xf32>, vector<5x80xf32> -> vector<5x80xf32>
    %234 = arith.addf %227, %233 : vector<5x80xf32>
    %c0_236 = arith.constant 0 : index
    %c0_237 = arith.constant 0 : index
    %235 = vector.load %arg25[%c0_236, %c0_237] : memref<3x80xf32, #tpu.memory_space<vmem>>, vector<1x80xf32>
    %236 = vector.broadcast %235 : vector<1x80xf32> to vector<5x80xf32>
    %237 = arith.addf %234, %236 : vector<5x80xf32>
    %cst_238 = arith.constant 0.000000e+00 : f32
    %238 = vector.broadcast %cst_238 : f32 to vector<5x80xf32>
    %239 = arith.maximumf %237, %238 : vector<5x80xf32>
    %c1_239 = arith.constant 1 : index
    %c0_240 = arith.constant 0 : index
    %240 = vector.load %arg25[%c1_239, %c0_240] : memref<3x80xf32, #tpu.memory_space<vmem>>, vector<1x80xf32>
    %241 = vector.broadcast %240 : vector<1x80xf32> to vector<5x80xf32>
    %242 = arith.mulf %239, %241 : vector<5x80xf32>
    %c2_241 = arith.constant 2 : index
    %c0_242 = arith.constant 0 : index
    %243 = vector.load %arg25[%c2_241, %c0_242] : memref<3x80xf32, #tpu.memory_space<vmem>>, vector<1x80xf32>
    %244 = vector.broadcast %243 : vector<1x80xf32> to vector<5x80xf32>
    %245 = arith.addf %242, %244 : vector<5x80xf32>
    %c0_243 = arith.constant 0 : index
    %c0_244 = arith.constant 0 : index
    %c0_245 = arith.constant 0 : index
    %246 = vector.load %arg27[%c0_243, %c0_244, %c0_245] : memref<3x5x5xf32, #tpu.memory_space<vmem>>, vector<1x5x5xf32>
    %247 = vector.shape_cast %246 : vector<1x5x5xf32> to vector<5x5xf32>
    %cst_246 = arith.constant dense<0.000000e+00> : vector<5x80xf32>
    %248 = tpu.matmul %247, %245, %cst_246 {dimension_numbers = #tpu.dot_dimension_numbers<[1], [0], [0], [1], [0, 0, 1, 1], [], []>} : vector<5x5xf32>, vector<5x80xf32>, vector<5x80xf32> -> vector<5x80xf32>
    %c0_247 = arith.constant 0 : index
    %c0_248 = arith.constant 0 : index
    %c0_249 = arith.constant 0 : index
    %249 = vector.load %arg26[%c0_247, %c0_248, %c0_249] : memref<3x80x80xf32, #tpu.memory_space<vmem>>, vector<1x80x80xf32>
    %250 = vector.shape_cast %249 : vector<1x80x80xf32> to vector<80x80xf32>
    %cst_250 = arith.constant dense<0.000000e+00> : vector<5x80xf32>
    %251 = tpu.matmul %248, %250, %cst_250 {dimension_numbers = #tpu.dot_dimension_numbers<[1], [0], [0], [1], [0, 0, 1, 1], [], []>} : vector<5x80xf32>, vector<80x80xf32>, vector<5x80xf32> -> vector<5x80xf32>
    %c1_251 = arith.constant 1 : index
    %c0_252 = arith.constant 0 : index
    %c0_253 = arith.constant 0 : index
    %252 = vector.load %arg27[%c1_251, %c0_252, %c0_253] : memref<3x5x5xf32, #tpu.memory_space<vmem>>, vector<1x5x5xf32>
    %253 = vector.shape_cast %252 : vector<1x5x5xf32> to vector<5x5xf32>
    %cst_254 = arith.constant dense<0.000000e+00> : vector<5x80xf32>
    %254 = tpu.matmul %253, %245, %cst_254 {dimension_numbers = #tpu.dot_dimension_numbers<[1], [0], [0], [1], [0, 0, 1, 1], [], []>} : vector<5x5xf32>, vector<5x80xf32>, vector<5x80xf32> -> vector<5x80xf32>
    %c1_255 = arith.constant 1 : index
    %c0_256 = arith.constant 0 : index
    %c0_257 = arith.constant 0 : index
    %255 = vector.load %arg26[%c1_255, %c0_256, %c0_257] : memref<3x80x80xf32, #tpu.memory_space<vmem>>, vector<1x80x80xf32>
    %256 = vector.shape_cast %255 : vector<1x80x80xf32> to vector<80x80xf32>
    %cst_258 = arith.constant dense<0.000000e+00> : vector<5x80xf32>
    %257 = tpu.matmul %254, %256, %cst_258 {dimension_numbers = #tpu.dot_dimension_numbers<[1], [0], [0], [1], [0, 0, 1, 1], [], []>} : vector<5x80xf32>, vector<80x80xf32>, vector<5x80xf32> -> vector<5x80xf32>
    %258 = arith.addf %251, %257 : vector<5x80xf32>
    %c2_259 = arith.constant 2 : index
    %c0_260 = arith.constant 0 : index
    %c0_261 = arith.constant 0 : index
    %259 = vector.load %arg27[%c2_259, %c0_260, %c0_261] : memref<3x5x5xf32, #tpu.memory_space<vmem>>, vector<1x5x5xf32>
    %260 = vector.shape_cast %259 : vector<1x5x5xf32> to vector<5x5xf32>
    %cst_262 = arith.constant dense<0.000000e+00> : vector<5x80xf32>
    %261 = tpu.matmul %260, %245, %cst_262 {dimension_numbers = #tpu.dot_dimension_numbers<[1], [0], [0], [1], [0, 0, 1, 1], [], []>} : vector<5x5xf32>, vector<5x80xf32>, vector<5x80xf32> -> vector<5x80xf32>
    %c2_263 = arith.constant 2 : index
    %c0_264 = arith.constant 0 : index
    %c0_265 = arith.constant 0 : index
    %262 = vector.load %arg26[%c2_263, %c0_264, %c0_265] : memref<3x80x80xf32, #tpu.memory_space<vmem>>, vector<1x80x80xf32>
    %263 = vector.shape_cast %262 : vector<1x80x80xf32> to vector<80x80xf32>
    %cst_266 = arith.constant dense<0.000000e+00> : vector<5x80xf32>
    %264 = tpu.matmul %261, %263, %cst_266 {dimension_numbers = #tpu.dot_dimension_numbers<[1], [0], [0], [1], [0, 0, 1, 1], [], []>} : vector<5x80xf32>, vector<80x80xf32>, vector<5x80xf32> -> vector<5x80xf32>
    %265 = arith.addf %258, %264 : vector<5x80xf32>
    %c0_267 = arith.constant 0 : index
    %c0_268 = arith.constant 0 : index
    %266 = vector.load %arg28[%c0_267, %c0_268] : memref<3x80xf32, #tpu.memory_space<vmem>>, vector<1x80xf32>
    %267 = vector.broadcast %266 : vector<1x80xf32> to vector<5x80xf32>
    %268 = arith.addf %265, %267 : vector<5x80xf32>
    %cst_269 = arith.constant 0.000000e+00 : f32
    %269 = vector.broadcast %cst_269 : f32 to vector<5x80xf32>
    %270 = arith.maximumf %268, %269 : vector<5x80xf32>
    %c1_270 = arith.constant 1 : index
    %c0_271 = arith.constant 0 : index
    %271 = vector.load %arg28[%c1_270, %c0_271] : memref<3x80xf32, #tpu.memory_space<vmem>>, vector<1x80xf32>
    %272 = vector.broadcast %271 : vector<1x80xf32> to vector<5x80xf32>
    %273 = arith.mulf %270, %272 : vector<5x80xf32>
    %c2_272 = arith.constant 2 : index
    %c0_273 = arith.constant 0 : index
    %274 = vector.load %arg28[%c2_272, %c0_273] : memref<3x80xf32, #tpu.memory_space<vmem>>, vector<1x80xf32>
    %275 = vector.broadcast %274 : vector<1x80xf32> to vector<5x80xf32>
    %276 = arith.addf %273, %275 : vector<5x80xf32>
    %cst_274 = arith.constant dense<0.000000e+00> : vector<80xf32>
    %277 = vector.multi_reduction <add>, %276, %cst_274 [0] : vector<5x80xf32> to vector<80xf32>
    %278 = vector.shape_cast %277 : vector<80xf32> to vector<1x80xf32>
    %c0_275 = arith.constant 0 : index
    %c0_276 = arith.constant 0 : index
    %279 = vector.load %arg33[%c0_275, %c0_276] : memref<80x10xf32, #tpu.memory_space<vmem>>, vector<80x10xf32>
    %cst_277 = arith.constant dense<0.000000e+00> : vector<1x10xf32>
    %280 = tpu.matmul %278, %279, %cst_277 {dimension_numbers = #tpu.dot_dimension_numbers<[1], [0], [0], [1], [0, 0, 1, 1], [], []>} : vector<1x80xf32>, vector<80x10xf32>, vector<1x10xf32> -> vector<1x10xf32>
    %c0_278 = arith.constant 0 : index
    %c0_279 = arith.constant 0 : index
    %281 = vector.load %arg34[%c0_278, %c0_279] : memref<1x10xf32, #tpu.memory_space<vmem>>, vector<1x10xf32>
    %282 = arith.addf %280, %281 : vector<1x10xf32>
    %cst_280 = arith.constant dense<0xFF800000> : vector<1xf32>
    %283 = vector.multi_reduction <maximumf>, %282, %cst_280 [1] : vector<1x10xf32> to vector<1xf32>
    %284 = vector.shape_cast %283 : vector<1xf32> to vector<1x1xf32>
    %285 = vector.broadcast %284 : vector<1x1xf32> to vector<1x10xf32>
    %286 = arith.subf %282, %285 : vector<1x10xf32>
    %287 = math.exp %286 : vector<1x10xf32>
    %cst_281 = arith.constant dense<0.000000e+00> : vector<1xf32>
    %288 = vector.multi_reduction <add>, %287, %cst_281 [1] : vector<1x10xf32> to vector<1xf32>
    %289 = vector.shape_cast %288 : vector<1xf32> to vector<1x1xf32>
    %290 = math.log %289 : vector<1x1xf32>
    %291 = vector.broadcast %290 : vector<1x1xf32> to vector<1x10xf32>
    %292 = arith.subf %286, %291 : vector<1x10xf32>
    %c0_282 = arith.constant 0 : index
    %c0_283 = arith.constant 0 : index
    %c0_284 = arith.constant 0 : index
    %293 = vector.load %arg35[%c0_282, %c0_283, %c0_284] : memref<1x1x10xf32, #tpu.memory_space<vmem>>, vector<1x1x10xf32>
    %294 = vector.shape_cast %293 : vector<1x1x10xf32> to vector<1x10xf32>
    %295 = vector.shape_cast %292 : vector<1x10xf32> to vector<1x1x10xf32>
    tpu.vector_store %arg35[%c0_282, %c0_283, %c0_284], %295 {strides = array<i32>} : memref<1x1x10xf32, #tpu.memory_space<vmem>>, vector<1x1x10xf32>,
    return
  }
  func.func @transform_0(%arg0: i32) -> (i32, i32, i32) {
    %c0_i32 = arith.constant 0 : i32
    %c0_i32_0 = arith.constant 0 : i32
    %c0_i32_1 = arith.constant 0 : i32
    return %arg0, %c0_i32, %c0_i32_0 : i32, i32, i32
  }
  func.func @transform_1(%arg0: i32) -> (i32, i32, i32) {
    %c0_i32 = arith.constant 0 : i32
    %c0_i32_0 = arith.constant 0 : i32
    %c0_i32_1 = arith.constant 0 : i32
    %c0_i32_2 = arith.constant 0 : i32
    return %c0_i32, %c0_i32_0, %c0_i32_1 : i32, i32, i32
  }
  func.func @transform_2(%arg0: i32) -> (i32, i32, i32) {
    %c0_i32 = arith.constant 0 : i32
    %c0_i32_0 = arith.constant 0 : i32
    %c0_i32_1 = arith.constant 0 : i32
    %c0_i32_2 = arith.constant 0 : i32
    return %c0_i32, %c0_i32_0, %c0_i32_1 : i32, i32, i32
  }
  func.func @transform_3(%arg0: i32) -> (i32, i32) {
    %c0_i32 = arith.constant 0 : i32
    %c0_i32_0 = arith.constant 0 : i32
    %c0_i32_1 = arith.constant 0 : i32
    return %c0_i32, %c0_i32_0 : i32, i32
  }
  func.func @transform_4(%arg0: i32) -> (i32, i32, i32) {
    %c0_i32 = arith.constant 0 : i32
    %c0_i32_0 = arith.constant 0 : i32
    %c0_i32_1 = arith.constant 0 : i32
    %c0_i32_2 = arith.constant 0 : i32
    return %c0_i32, %c0_i32_0, %c0_i32_1 : i32, i32, i32
  }
  func.func @transform_5(%arg0: i32) -> (i32, i32, i32) {
    %c0_i32 = arith.constant 0 : i32
    %c0_i32_0 = arith.constant 0 : i32
    %c0_i32_1 = arith.constant 0 : i32
    %c0_i32_2 = arith.constant 0 : i32
    return %c0_i32, %c0_i32_0, %c0_i32_1 : i32, i32, i32
  }
  func.func @transform_6(%arg0: i32) -> (i32, i32) {
    %c0_i32 = arith.constant 0 : i32
    %c0_i32_0 = arith.constant 0 : i32
    %c0_i32_1 = arith.constant 0 : i32
    return %c0_i32, %c0_i32_0 : i32, i32
  }
  func.func @transform_7(%arg0: i32) -> (i32, i32, i32) {
    %c0_i32 = arith.constant 0 : i32
    %c0_i32_0 = arith.constant 0 : i32
    %c0_i32_1 = arith.constant 0 : i32
    %c0_i32_2 = arith.constant 0 : i32
    return %c0_i32, %c0_i32_0, %c0_i32_1 : i32, i32, i32
  }
  func.func @transform_8(%arg0: i32) -> (i32, i32, i32) {
    %c0_i32 = arith.constant 0 : i32
    %c0_i32_0 = arith.constant 0 : i32
    %c0_i32_1 = arith.constant 0 : i32
    %c0_i32_2 = arith.constant 0 : i32
    return %c0_i32, %c0_i32_0, %c0_i32_1 : i32, i32, i32
  }
  func.func @transform_9(%arg0: i32) -> (i32, i32) {
    %c0_i32 = arith.constant 0 : i32
    %c0_i32_0 = arith.constant 0 : i32
    %c0_i32_1 = arith.constant 0 : i32
    return %c0_i32, %c0_i32_0 : i32, i32
  }
  func.func @transform_10(%arg0: i32) -> (i32, i32, i32) {
    %c0_i32 = arith.constant 0 : i32
    %c0_i32_0 = arith.constant 0 : i32
    %c0_i32_1 = arith.constant 0 : i32
    %c0_i32_2 = arith.constant 0 : i32
    return %c0_i32, %c0_i32_0, %c0_i32_1 : i32, i32, i32
  }
  func.func @transform_11(%arg0: i32) -> (i32, i32, i32) {
    %c0_i32 = arith.constant 0 : i32
    %c0_i32_0 = arith.constant 0 : i32
    %c0_i32_1 = arith.constant 0 : i32
    %c0_i32_2 = arith.constant 0 : i32
    return %c0_i32, %c0_i32_0, %c0_i32_1 : i32, i32, i32
  }
  func.func @transform_12(%arg0: i32) -> (i32, i32) {
    %c0_i32 = arith.constant 0 : i32
    %c0_i32_0 = arith.constant 0 : i32
    %c0_i32_1 = arith.constant 0 : i32
    return %c0_i32, %c0_i32_0 : i32, i32
  }
  func.func @transform_13(%arg0: i32) -> (i32, i32, i32) {
    %c0_i32 = arith.constant 0 : i32
    %c0_i32_0 = arith.constant 0 : i32
    %c0_i32_1 = arith.constant 0 : i32
    %c0_i32_2 = arith.constant 0 : i32
    return %c0_i32, %c0_i32_0, %c0_i32_1 : i32, i32, i32
  }
  func.func @transform_14(%arg0: i32) -> (i32, i32, i32) {
    %c0_i32 = arith.constant 0 : i32
    %c0_i32_0 = arith.constant 0 : i32
    %c0_i32_1 = arith.constant 0 : i32
    %c0_i32_2 = arith.constant 0 : i32
    return %c0_i32, %c0_i32_0, %c0_i32_1 : i32, i32, i32
  }
  func.func @transform_15(%arg0: i32) -> (i32, i32) {
    %c0_i32 = arith.constant 0 : i32
    %c0_i32_0 = arith.constant 0 : i32
    %c0_i32_1 = arith.constant 0 : i32
    return %c0_i32, %c0_i32_0 : i32, i32
  }
  func.func @transform_16(%arg0: i32) -> (i32, i32, i32) {
    %c0_i32 = arith.constant 0 : i32
    %c0_i32_0 = arith.constant 0 : i32
    %c0_i32_1 = arith.constant 0 : i32
    %c0_i32_2 = arith.constant 0 : i32
    return %c0_i32, %c0_i32_0, %c0_i32_1 : i32, i32, i32
  }
  func.func @transform_17(%arg0: i32) -> (i32, i32, i32) {
    %c0_i32 = arith.constant 0 : i32
    %c0_i32_0 = arith.constant 0 : i32
    %c0_i32_1 = arith.constant 0 : i32
    %c0_i32_2 = arith.constant 0 : i32
    return %c0_i32, %c0_i32_0, %c0_i32_1 : i32, i32, i32
  }
  func.func @transform_18(%arg0: i32) -> (i32, i32) {
    %c0_i32 = arith.constant 0 : i32
    %c0_i32_0 = arith.constant 0 : i32
    %c0_i32_1 = arith.constant 0 : i32
    return %c0_i32, %c0_i32_0 : i32, i32
  }
  func.func @transform_19(%arg0: i32) -> (i32, i32, i32) {
    %c0_i32 = arith.constant 0 : i32
    %c0_i32_0 = arith.constant 0 : i32
    %c0_i32_1 = arith.constant 0 : i32
    %c0_i32_2 = arith.constant 0 : i32
    return %c0_i32, %c0_i32_0, %c0_i32_1 : i32, i32, i32
  }
  func.func @transform_20(%arg0: i32) -> (i32, i32, i32) {
    %c0_i32 = arith.constant 0 : i32
    %c0_i32_0 = arith.constant 0 : i32
    %c0_i32_1 = arith.constant 0 : i32
    %c0_i32_2 = arith.constant 0 : i32
    return %c0_i32, %c0_i32_0, %c0_i32_1 : i32, i32, i32
  }
  func.func @transform_21(%arg0: i32) -> (i32, i32) {
    %c0_i32 = arith.constant 0 : i32
    %c0_i32_0 = arith.constant 0 : i32
    %c0_i32_1 = arith.constant 0 : i32
    return %c0_i32, %c0_i32_0 : i32, i32
  }
  func.func @transform_22(%arg0: i32) -> (i32, i32, i32) {
    %c0_i32 = arith.constant 0 : i32
    %c0_i32_0 = arith.constant 0 : i32
    %c0_i32_1 = arith.constant 0 : i32
    %c0_i32_2 = arith.constant 0 : i32
    return %c0_i32, %c0_i32_0, %c0_i32_1 : i32, i32, i32
  }
  func.func @transform_23(%arg0: i32) -> (i32, i32, i32) {
    %c0_i32 = arith.constant 0 : i32
    %c0_i32_0 = arith.constant 0 : i32
    %c0_i32_1 = arith.constant 0 : i32
    %c0_i32_2 = arith.constant 0 : i32
    return %c0_i32, %c0_i32_0, %c0_i32_1 : i32, i32, i32
  }
  func.func @transform_24(%arg0: i32) -> (i32, i32) {
    %c0_i32 = arith.constant 0 : i32
    %c0_i32_0 = arith.constant 0 : i32
    %c0_i32_1 = arith.constant 0 : i32
    return %c0_i32, %c0_i32_0 : i32, i32
  }
  func.func @transform_25(%arg0: i32) -> (i32, i32, i32) {
    %c0_i32 = arith.constant 0 : i32
    %c0_i32_0 = arith.constant 0 : i32
    %c0_i32_1 = arith.constant 0 : i32
    %c0_i32_2 = arith.constant 0 : i32
    return %c0_i32, %c0_i32_0, %c0_i32_1 : i32, i32, i32
  }
  func.func @transform_26(%arg0: i32) -> (i32, i32, i32) {
    %c0_i32 = arith.constant 0 : i32
    %c0_i32_0 = arith.constant 0 : i32
    %c0_i32_1 = arith.constant 0 : i32
    %c0_i32_2 = arith.constant 0 : i32
    return %c0_i32, %c0_i32_0, %c0_i32_1 : i32, i32, i32
  }
  func.func @transform_27(%arg0: i32) -> (i32, i32) {
    %c0_i32 = arith.constant 0 : i32
    %c0_i32_0 = arith.constant 0 : i32
    %c0_i32_1 = arith.constant 0 : i32
    return %c0_i32, %c0_i32_0 : i32, i32
  }
  func.func @transform_28(%arg0: i32) -> (i32, i32) {
    %c0_i32 = arith.constant 0 : i32
    %c0_i32_0 = arith.constant 0 : i32
    %c0_i32_1 = arith.constant 0 : i32
    return %c0_i32, %c0_i32_0 : i32, i32
  }
  func.func @transform_29(%arg0: i32) -> (i32, i32) {
    %c0_i32 = arith.constant 0 : i32
    %c0_i32_0 = arith.constant 0 : i32
    %c0_i32_1 = arith.constant 0 : i32
    return %c0_i32, %c0_i32_0 : i32, i32
  }
  func.func @transform_30(%arg0: i32) -> (i32, i32) {
    %c0_i32 = arith.constant 0 : i32
    %c0_i32_0 = arith.constant 0 : i32
    %c0_i32_1 = arith.constant 0 : i32
    return %c0_i32, %c0_i32_0 : i32, i32
  }
  func.func @transform_31(%arg0: i32) -> (i32, i32) {
    %c0_i32 = arith.constant 0 : i32
    %c0_i32_0 = arith.constant 0 : i32
    %c0_i32_1 = arith.constant 0 : i32
    return %c0_i32, %c0_i32_0 : i32, i32
  }
  func.func @transform_32(%arg0: i32) -> (i32, i32) {
    %c0_i32 = arith.constant 0 : i32
    %c0_i32_0 = arith.constant 0 : i32
    %c0_i32_1 = arith.constant 0 : i32
    return %c0_i32, %c0_i32_0 : i32, i32
  }
  func.func @transform_33(%arg0: i32) -> (i32, i32) {
    %c0_i32 = arith.constant 0 : i32
    %c0_i32_0 = arith.constant 0 : i32
    %c0_i32_1 = arith.constant 0 : i32
    return %c0_i32, %c0_i32_0 : i32, i32
  }
  func.func @transform_34(%arg0: i32) -> (i32, i32, i32) {
    %c0_i32 = arith.constant 0 : i32
    %c0_i32_0 = arith.constant 0 : i32
    %c0_i32_1 = arith.constant 0 : i32
    return %arg0, %c0_i32, %c0_i32_0 : i32, i32, i32
  }
}

</mosaic_0001>

<bundles_post_ra>
// kernel: net_forward.1
= control target key start
LH: loop header
LB: loop body
LE: loop exit
PB: predicated region body
PF: predicated region fallthrough
CT: control target
= control target key end

     0   :  { %s14524_s6 = smov 1   ;;  %s14525_s10 = smov 2   ;;  %s17356_s0 = inlined_call_operand.smem [shape: u32[35], index: -1, kind: input, shape index: {}] }
   0x1   :  { %s14571_s5 = sld [smem:[%s17356_s0]]   ;;  %s14526_s14 = smov 3  }
   0x2   :  { %s14576_s9 = sld [smem:[%s17356_s0 + %s14524_s6]]   ;;  %s14527_s18 = smov 4  }
   0x3   :  { %s14581_s13 = sld [smem:[%s17356_s0 + %s14525_s10]]   ;;  %s14528_s22 = smov 5  }
   0x4   :  { %s14586_s17 = sld [smem:[%s17356_s0 + %s14526_s14]]   ;;  %s14529_s26 = smov 6  }
   0x5   :  { %s14591_s21 = sld [smem:[%s17356_s0 + %s14527_s18]]   ;;  %s14530_s30 = smov 7  }
   0x6   :  { %s14596_s25 = sld [smem:[%s17356_s0 + %s14528_s22]]   ;;  %s14531_s4 = smov 8  }
   0x7   :  { %17395 = sst [smem:[#allocation5_spill]] %s14571_s5  ;;  %s14532_s10 = smov 9  }
   0x8   :  { %17396 = sst [smem:[#allocation6_spill]] %s14576_s9  ;;  %s14533_s15 = smov 10  }
   0x9   :  { %s14601_s29 = sld [smem:[%s17356_s0 + %s14529_s26]]   ;;  %s14534_s20 = smov 11  }
   0xa   :  { %s14606_s3 = sld [smem:[%s17356_s0 + %s14530_s30]]   ;;  %s14535_s26 = smov 12  }
   0xb   :  { %s14611_s8 = sld [smem:[%s17356_s0 + %s14531_s4]]   ;;  %s14536_s1 = smov 13  }
   0xc   :  { %s14616_s14 = sld [smem:[%s17356_s0 + %s14532_s10]]   ;;  %s14537_s7 = smov 14  }
   0xd   :  { %s14621_s19 = sld [smem:[%s17356_s0 + %s14533_s15]]   ;;  %s14538_s15 = smov 15  }
   0xe   :  { %s14626_s24 = sld [smem:[%s17356_s0 + %s14534_s20]]   ;;  %s14539_s22 = smov 16  }
   0xf   :  { %s14631_s30 = sld [smem:[%s17356_s0 + %s14535_s26]]   ;;  %s14540_s28 = smov 17  }
  0x10   :  { %17397 = sst [smem:[#allocation7_spill]] %s14606_s3 }
  0x11   :  { %17398 = sst [smem:[#allocation8_spill]] %s14611_s8 }
  0x12   :  { %s14636_s6 = sld [smem:[%s17356_s0 + %s14536_s1]]  }
  0x13   :  { %s14641_s12 = sld [smem:[%s17356_s0 + %s14537_s7]]   ;;  %s14541_s7 = smov 18  }
  0x14   :  { %17399 = sst [smem:[#allocation9_spill]] %s14626_s24 }
  0x15   :  { %17400 = sst [smem:[#allocation10_spill]] %s14631_s30 }
  0x16   :  { %s14646_s20 = sld [smem:[%s17356_s0 + %s14538_s15]]   ;;  %s14542_s15 = smov 19  }
  0x17   :  { %s14651_s27 = sld [smem:[%s17356_s0 + %s14539_s22]]   ;;  %s14543_s22 = smov 20  }
  0x18   :  { %17401 = sst [smem:[#allocation11_spill]] %s14636_s6 }
  0x19   :  { %17402 = sst [smem:[#allocation12_spill]] %s14641_s12 }
  0x1a   :  { %s14656_s4 = sld [smem:[%s17356_s0 + %s14540_s28]]   ;;  %s14544_s28 = smov 21  }
  0x1b   :  { %s14661_s12 = sld [smem:[%s17356_s0 + %s14541_s7]]   ;;  %s14545_s7 = smov 22  }
  0x1c   :  { %17403 = sst [smem:[#allocation13_spill]] %s14646_s20 }
  0x1d   :  { %17404 = sst [smem:[#allocation14_spill]] %s14651_s27 }
  0x1e   :  { %s14666_s20 = sld [smem:[%s17356_s0 + %s14542_s15]]   ;;  %s14546_s15 = smov 23  }
  0x1f   :  { %s14671_s27 = sld [smem:[%s17356_s0 + %s14543_s22]]   ;;  %s14547_s22 = smov 24  }
  0x20   :  { %17405 = sst [smem:[#allocation15_spill]] %s14656_s4 }
  0x21   :  { %17406 = sst [smem:[#allocation16_spill]] %s14661_s12 }
  0x22   :  { %s14676_s4 = sld [smem:[%s17356_s0 + %s14544_s28]]   ;;  %s14548_s28 = smov 25  }
  0x23   :  { %s14681_s12 = sld [smem:[%s17356_s0 + %s14545_s7]]   ;;  %s14549_s7 = smov 26  }
  0x24   :  { %17407 = sst [smem:[#allocation17_spill]] %s14666_s20 }
  0x25   :  { %17408 = sst [smem:[#allocation18_spill]] %s14671_s27 }
  0x26   :  { %s14686_s20 = sld [smem:[%s17356_s0 + %s14546_s15]]   ;;  %s14550_s15 = smov 27  }
  0x27   :  { %s14691_s27 = sld [smem:[%s17356_s0 + %s14547_s22]]   ;;  %s14551_s22 = smov 28  }
  0x28   :  { %17409 = sst [smem:[#allocation19_spill]] %s14676_s4 }
  0x29   :  { %17410 = sst [smem:[#allocation20_spill]] %s14681_s12 }
  0x2a   :  { %s14696_s4 = sld [smem:[%s17356_s0 + %s14548_s28]]   ;;  %s14552_s28 = smov 29  }
  0x2b   :  { %s14701_s12 = sld [smem:[%s17356_s0 + %s14549_s7]]   ;;  %s14553_s7 = smov 30  }
  0x2c   :  { %17411 = sst [smem:[#allocation21_spill]] %s14686_s20 }
  0x2d   :  { %17412 = sst [smem:[#allocation22_spill]] %s14691_s27 }
  0x2e   :  { %s14706_s20 = sld [smem:[%s17356_s0 + %s14550_s15]]   ;;  %s14554_s15 = smov 31  }
  0x2f   :  { %s14711_s27 = sld [smem:[%s17356_s0 + %s14551_s22]]   ;;  %s14555_s22 = smov 32  }
  0x30   :  { %17413 = sst [smem:[#allocation23_spill]] %s14696_s4 }
  0x31   :  { %17414 = sst [smem:[#allocation24_spill]] %s14701_s12 }
  0x32   :  { %s14716_s4 = sld [smem:[%s17356_s0 + %s14552_s28]]   ;;  %s14556_s28 = smov 33  }
  0x33   :  { %s14721_s12 = sld [smem:[%s17356_s0 + %s14553_s7]]   ;;  %s14557_s7 = smov 34  }
  0x34   :  { %17415 = sst [smem:[#allocation25_spill]] %s14706_s20 }
  0x35   :  { %s14726_s20 = sld [smem:[%s17356_s0 + %s14554_s15]]  }
  0x36   :  { %s14731_s6 = sld [smem:[%s17356_s0 + %s14555_s22]]  }
  0x37   :  { %s14736_s30 = sld [smem:[%s17356_s0 + %s14556_s28]]  }
  0x38   :  { %17416 = sst [smem:[#allocation26_spill]] %s14716_s4 }
  0x39   :  { %17417 = sst [smem:[#allocation27_spill]] %s14721_s12 }
  0x3a   :  { %s14741_s24 = sld [smem:[%s17356_s0 + %s14557_s7]]  }
  0x3c   :  { %17418 = sst [smem:[#allocation28_spill]] %s14731_s6 }
  0x3d   :  { %74 = vsyncpa [#allocation3], 0 }
  0x3e   :  { %76 = vsyncpa [#allocation3 + $0x1], 0  ;;  %s14743_s15 = smov 0   ;;  %s14745_s16 = smov 0  }
  0x3f   :  { %s14747_s18 = smov 0   ;;  %s14749_s22 = smov 0  }
  0x40 LB: > { %s17419_s12 = sld [smem:[#allocation27_spill]]  ;;  %s17420_s9 = sld [smem:[#allocation6_spill]]  ;;  %s14514_s16 = sphi %s14745_s16, %s17454_s16   ;;  %s14510_s15 = sphi %s14743_s15, %s17453_s15   ;;  %s14522_s22 = sphi %s14749_s22, %s17456_s22   ;;  %s14518_s18 = sphi %s14747_s18, %s17455_s18  }
  0x41   : > { %s17421_s8 = sld [smem:[#allocation8_spill]]  ;;  %s17422_s6 = sld [smem:[#allocation28_spill]] }
  0x42   : > { %s17423_s4 = sld [smem:[#allocation26_spill]]  ;;  %s17424_s3 = sld [smem:[#allocation7_spill]] }
  0x43   : > { %s14764_s0 = sadd.s32 4294967295, %s14522_s22   ;;  %s10378_s23 = sadd.s32 4294967294, %s14522_s22  }
  0x44   : > { %s14768_s26 = sadd.s32 1, %s14522_s22   ;;  %s808_s28 = sadd.s32 1, %s14518_s18 }
  0x45   : > { %s805_s1 = ssub.s32 %s14522_s22, %s14768_s26  ;;  %p818_p0 = scmp.ne.s32.totalorder %s14518_s18, %s14514_s16 }
  0x46   : > { %p806_p1 = scmp.eq.s32.totalorder %s805_s1, 0  ;;  %p819_p2 = scmp.eq.s32.totalorder %s14764_s0, 1 }
  0x47   : > { %p824_p3 = scmp.ne.s32.totalorder %s14514_s16, %s14510_s15  ;;  %p825_p4 = scmp.eq.s32.totalorder %s10378_s23, 1 }
  0x48   : > { %s14779_s2 = scalar_select %p806_p1, %s14518_s18, %s808_s28  }
  0x49   : > { %p14781_p5 = por %p819_p2, %p818_p0  ;;  %p14785_p6 = por %p825_p4, %p824_p3 }
  0x4a   : > { %p10381_p7 = scmp.ge.s32.totalorder %s14522_s22, 1  ;;  %p950_p8 = scmp.lt.s32.totalorder %s14522_s22, 3 }
  0x4c   : > { %p951_p9 = pnand %p10381_p7, %p950_p8 }
  0x4d   : > { %s17427_s5 = sld [smem:[#allocation5_spill]] (!%p951_p9)  ;;  %p1035_p10 = scmp.lt.s32.totalorder (!%p951_p9), %s14764_s0, 1  ;;  %vm1048_vm0 = vcmask (!%p951_p9), 228352   ;;  %v10389_v0 = vld [vmem:[%s14581_s13 + $0x20] sm:$0xff] (!%p951_p9)  ;;  %vm1061_vm1 = vcmask (!%p951_p9), 1043456   ;;  %vm14558_vm2 = vmmov (!%p951_p9), 1   ;;  %v2028_v7 = vlaneseq (!%p951_p9) }
  0x4e   : > { %954 = sbr.rel (%p951_p9) target bundleno = 7142 (0x1be6), region = 156  ;;  %11982 = vmatprep.mubr.msk.f32.mxu1 (!%p951_p9), %vm1048_vm0, %v10389_v0  ;;  %v1044_v1 = vld [vmem:[%s14581_s13] sm:$0xff] (!%p951_p9)  ;;  %vm14801_vm3 = vmpackc.low (!%p951_p9), %vm1061_vm1, %vm14558_vm2  ;;  %v10399_v8 = vld [vmem:[%s17420_s9 + $0x88] sm:$0xff] (!%p951_p9)  ;;  %v14559_v39 = vmov (!%p951_p9), 0.0   ;;  %vm2171_vm4 = vcmask (!%p951_p9), 1041408   ;;  %vm2161_vm6 = vcmask (!%p951_p9), 211968  }
  0x4f   : > { %11968 = vmatprep.mubr.msk.f32.mxu0 (!%p951_p9), %vm1048_vm0, %v1044_v1  ;;  %v10403_v10 = vld [vmem:[%s17420_s9 + $0xa8] sm:$0xff] (!%p951_p9)  ;;  %v10401_v11 = vld [vmem:[%s17420_s9 + $0x98] sm:$0xff] (!%p951_p9)  ;;  %v10398_v15 = vld [vmem:[%s17420_s9 + $0x80] sm:$0xff] (!%p951_p9)  ;;  %vm2842_vm7 = vcmask (!%p951_p9), 261120   ;;  %vm4285_vm8 = vcmask (!%p951_p9), 195584   ;;  %vm14561_vm9 = vmmov (!%p951_p9), 0  }
  0x50   : > { %v10405_v12 = vld [vmem:[%s17420_s9 + $0xb8] sm:$0xff] (!%p951_p9)  ;;  %v12507_v13 = vpack.c.bf16 (!%p951_p9), %v10403_v10, %v10399_v8  ;;  %v10402_v16 = vld [vmem:[%s17420_s9 + $0xa0] sm:$0xff] (!%p951_p9)  ;;  %v10400_v17 = vld [vmem:[%s17420_s9 + $0x90] sm:$0xff] (!%p951_p9)  ;;  %vm6329_vm10 = vcmask (!%p951_p9), 1045504   ;;  %vm6322_vm11 = vcmask (!%p951_p9), 179200   ;;  %vm6745_vm12 = vcmask (!%p951_p9), 785408  }
  0x51   : > { %v12517_v14 = vpack.c.bf16 (!%p951_p9), %v10405_v12, %v10401_v11  ;;  %v10404_v18 = vld [vmem:[%s17420_s9 + $0xb0] sm:$0xff] (!%p951_p9)  ;;  %v10407_v19 = vld [vmem:[%s17420_s9 + $0xc8] sm:$0xff] (!%p951_p9)  ;;  %v10409_v21 = vld [vmem:[%s17420_s9 + $0xd8] sm:$0xff] (!%p951_p9)  ;;  %v12509_v27 = vpack.c.bf16 (!%p951_p9), %v10402_v16, %v10398_v15  ;;  %vm7161_vm13 = vcmask (!%p951_p9), 1042432   ;;  %s17432_s1 = sld [smem:[#allocation9_spill]] (!%p951_p9)  ;;  %vm7154_vm15 = vcmask (!%p951_p9), 89088  }
  0x52   : > { %v10411_v20 = vld [vmem:[%s17420_s9 + $0xe8] sm:$0xf] (!%p951_p9)  ;;  %v10413_v22 = vld [vmem:[%s17420_s9 + $0xf8] sm:$0xf] (!%p951_p9)  ;;  %v10391_v25 = vld [vmem:[%s14581_s13 + $0x30] sm:$0xff] (!%p951_p9)  ;;  %v12519_v28 = vpack.c.bf16 (!%p951_p9), %v10404_v18, %v10400_v17  ;;  %vm8132_vm1 = vcmask (!%p951_p9), 1040384  }
  0x53   : > { %v10390_v23 = vld [vmem:[%s14581_s13 + $0x28] sm:$0xff] (!%p951_p9)  ;;  %v1046_v26 = vld [vmem:[%s14581_s13 + $0x10] sm:$0xff] (!%p951_p9)  ;;  %v10406_v29 = vld [vmem:[%s17420_s9 + $0xc0] sm:$0xff] (!%p951_p9)  ;;  %v12511_v30 = vpack.c.bf16 (!%p951_p9), %v10411_v20, %v10407_v19  ;;  %v12521_v31 = vpack.c.bf16 (!%p951_p9), %v10413_v22, %v10409_v21 }
  0x54   : > { %v1045_v24 = vld [vmem:[%s14581_s13 + $0x8] sm:$0xff] (!%p951_p9)  ;;  %v10410_v32 = vld [vmem:[%s17420_s9 + $0xe0] sm:$0xf] (!%p951_p9)  ;;  %v10408_v33 = vld [vmem:[%s17420_s9 + $0xd0] sm:$0xff] (!%p951_p9) }
  0x55   : > { %s1036_s11 = scalar_select %p1035_p10, %s14764_s0, 1  ;;  %v10412_v34 = vld [vmem:[%s17420_s9 + $0xf0] sm:$0xf]  ;;  %v10392_v35 = vld [vmem:[%s14581_s13 + $0x38] sm:$0x3]  ;;  %v12514_v37 = vpack.c.bf16 %v10410_v32, %v10406_v29  ;;  %v1151_v40 = vld [vmem:[%s17420_s9 + $0x8] sm:$0xff] }
  0x56   : > { %v1047_v36 = vld [vmem:[%s14581_s13 + $0x18] sm:$0x3]  ;;  %v12524_v38 = vpack.c.bf16 %v10412_v34, %v10408_v33  ;;  %v1155_v41 = vld [vmem:[%s17420_s9 + $0x28] sm:$0xff]  ;;  %v1150_v46 = vld [vmem:[%s17420_s9] sm:$0xff] }
  0x57   : > { %s11464_s23 = sshll.u32 %s1036_s11, 5  ;;  %v12527_v42 = vpack.c.bf16 %v1155_v41, %v1151_v40  ;;  %v1153_v43 = vld [vmem:[%s17420_s9 + $0x18] sm:$0xff]  ;;  %v1154_v47 = vld [vmem:[%s17420_s9 + $0x20] sm:$0xff]  ;;  %v1152_v48 = vld [vmem:[%s17420_s9 + $0x10] sm:$0xff]  ;;  %s17435_s11 = sld [smem:[#allocation10_spill]] }
  0x58   : > { %s1039_s28 = scalar_lea.vmem %s17427_s5, %s11464_s23  ;;  %v1157_v44 = vld [vmem:[%s17420_s9 + $0x38] sm:$0xff]  ;;  %v1156_v49 = vld [vmem:[%s17420_s9 + $0x30] sm:$0xff]  ;;  %v1159_v50 = vld [vmem:[%s17420_s9 + $0x48] sm:$0xff]  ;;  %v12529_v55 = vpack.c.bf16 %v1154_v47, %v1150_v46  ;;  %s17436_s23 = sld [smem:[#allocation11_spill]] }
  0x59   : > { %v1040_v2 = vld [vmem:[%s1039_s28] sm:$0xff]  ;;  %v1041_v3 = vld [vmem:[%s1039_s28 + $0x8] sm:$0xff]  ;;  %v1042_v4 = vld [vmem:[%s1039_s28 + $0x10] sm:$0xff]  ;;  %v12537_v45 = vpack.c.bf16 %v1157_v44, %v1153_v43  ;;  %v12539_v56 = vpack.c.bf16 %v1156_v49, %v1152_v48 }
  0x5a   : > { %v14798_v5 = vpack.c.bf16 %v1041_v3, %v1040_v2  ;;  %v1043_v6 = vld [vmem:[%s1039_s28 + $0x18] sm:$0xf]  ;;  %v1163_v51 = vld [vmem:[%s17420_s9 + $0x68] sm:$0xf]  ;;  %v1162_v58 = vld [vmem:[%s17420_s9 + $0x60] sm:$0xf] }
  0x5b   : > { %v14806_v9 = vpack.c.bf16 %v1043_v6, %v1042_v4  ;;  %v1161_v52 = vld [vmem:[%s17420_s9 + $0x58] sm:$0xff]  ;;  %v12531_v60 = vpack.c.bf16 %v1163_v51, %v1159_v50  ;;  %v1158_v62 = vld [vmem:[%s17420_s9 + $0x40] sm:$0xff]  ;;  %v1160_v63 = vld [vmem:[%s17420_s9 + $0x50] sm:$0xff]  ;;  %s17437_s28 = sld [smem:[#allocation12_spill]] }
  0x5c   : > { %12498 = vmatprep.subr.bf16.mxu1 %v14798_v5  ;;  %12488 = vmatprep.subr.bf16.mxu0 %v14798_v5  ;;  %v1165_v53 = vld [vmem:[%s17420_s9 + $0x78] sm:$0xf]  ;;  %v1164_v0 = vld [vmem:[%s17420_s9 + $0x70] sm:$0xf]  ;;  %v12534_v6 = vpack.c.bf16 %v1162_v58, %v1158_v62  ;;  %v10448_v22 = vld [vmem:[%s17420_s9 + $0x108] sm:$0xff] }
  0x5d   : > { %12500 = vmatpush3.bf16.msra.mxu1 %v14798_v5  ;;  %12490 = vmatpush3.bf16.msra.mxu0 %v14798_v5  ;;  %v12541_v61 = vpack.c.bf16 %v1165_v53, %v1161_v52  ;;  %v10450_v2 = vld [vmem:[%s17420_s9 + $0x118] sm:$0xff]  ;;  %v12544_v8 = vpack.c.bf16 %v1164_v0, %v1160_v63  ;;  %v10453_v15 = vld [vmem:[%s17420_s9 + $0x130] sm:$0xff]  ;;  %v10439_v29 = vld [vmem:[%s14581_s13 + $0x48] sm:$0xff] }
  0x5e   : > { %12503 = vmatprep.subr.msk.bf16.mxu1 %vm14801_vm3, %v14806_v9  ;;  %12493 = vmatprep.subr.msk.bf16.mxu0 %vm14801_vm3, %v14806_v9  ;;  %v10454_v3 = vld [vmem:[%s17420_s9 + $0x138] sm:$0xff]  ;;  %v10457_v20 = vld [vmem:[%s17420_s9 + $0x150] sm:$0xff]  ;;  %v10455_v33 = vld [vmem:[%s17420_s9 + $0x140] sm:$0xff] }
  0x5f   : > { %v10458_v16 = vld [vmem:[%s17420_s9 + $0x158] sm:$0xff]  ;;  %v10461_v21 = vld [vmem:[%s17420_s9 + $0x170] sm:$0xf]  ;;  %v10459_v34 = vld [vmem:[%s17420_s9 + $0x160] sm:$0xf] }
  0x60   : > { %v10462_v17 = vld [vmem:[%s17420_s9 + $0x178] sm:$0xf]  ;;  %v10475_v50 = vld [vmem:[%s14586_s17 + $0x1] ss:$4 sm:$0xf]  ;;  %vm15084_vm5 = vmpackc.low %vm2171_vm4, %vm14558_vm2  ;;  %vm8128_vm4 = vcmask 72704  }
  0x61   : > { %12506 = vmatpush3.bf16.msk.msra.mxu1 %vm14801_vm3, %v14806_v9  ;;  %12496 = vmatpush3.bf16.msk.msra.mxu0 %vm14801_vm3, %v14806_v9  ;;  %v12571_v19 = vpack.c.bf16 %v10462_v17, %v10458_v16  ;;  %vm16659_vm14 = vmpackc.low %vm7161_vm13, %vm14558_vm2 }
  0x62   : > { %12508 = vmatprep.subr.bf16.mxu0 %v12507_v13  ;;  %12518 = vmatprep.subr.bf16.mxu1 %v12517_v14  ;;  %v12567_v13 = vpack.c.bf16 %v10454_v3, %v10450_v2  ;;  %v10449_v14 = vld [vmem:[%s17420_s9 + $0x110] sm:$0xff] }
  0x63   : > { %v12569_v18 = vpack.c.bf16 %v10453_v15, %v10449_v14 }
  0x64   : > { %11983 = vmatmul.mubr.msk.f32.vlgmr.msra.gmra.mrb[0].mxu1 %vm1048_vm0, %v10390_v23  ;;  %11969 = vmatmul.mubr.msk.f32.vlgmr.msra.gmra.mrb[0].mxu0 %vm1048_vm0, %v1045_v24  ;;  %v10452_v23 = vld [vmem:[%s17420_s9 + $0x128] sm:$0xff]  ;;  %v12574_v24 = vpack.c.bf16 %v10461_v21, %v10457_v20 }
  0x65   : > { %11985 = vmatprep.mubr.msk.f32.mxu1 %vm1048_vm0, %v10391_v25  ;;  %11971 = vmatprep.mubr.msk.f32.mxu0 %vm1048_vm0, %v1046_v26  ;;  %v12557_v25 = vpack.c.bf16 %v10452_v23, %v10448_v22  ;;  %v10447_v26 = vld [vmem:[%s17420_s9 + $0x100] sm:$0xff] }
  0x66   : > { %12510 = vmatpush1.bf16.msra.mxu0 %v12509_v27  ;;  %12520 = vmatpush1.bf16.msra.mxu1 %v12519_v28  ;;  %v10451_v27 = vld [vmem:[%s17420_s9 + $0x120] sm:$0xff]  ;;  %v10460_v28 = vld [vmem:[%s17420_s9 + $0x168] sm:$0xf] }
  0x67   : > { %12513 = vmatprep.subr.msk.bf16.mxu0 %vm14801_vm3, %v12511_v30  ;;  %12523 = vmatprep.subr.msk.bf16.mxu1 %vm14801_vm3, %v12521_v31  ;;  %v12559_v30 = vpack.c.bf16 %v10451_v27, %v10447_v26  ;;  %v10440_v31 = vld [vmem:[%s14581_s13 + $0x50] sm:$0xff] }
  0x68   : > { %11986 = vmatmul.mubr.msk.f32.gmra.mrb[2].mxu1 %vm1048_vm0, %v10392_v35  ;;  %11972 = vmatmul.mubr.msk.f32.gmra.mrb[2].mxu0 %vm1048_vm0, %v1047_v36  ;;  %v10441_v35 = vld [vmem:[%s14581_s13 + $0x58] sm:$0x3]  ;;  %v12564_v36 = vpack.c.bf16 %v10459_v34, %v10455_v33 }
  0x69   : > { %1373 = vmatprep.mubr.f32.mxu0 %v14559_v39  ;;  %1462 = vmatprep.mubr.f32.mxu1 %v14559_v39 }
  0x6a   : > { %12516 = vmatpush1.bf16.msk.msra.mxu0 %vm14801_vm3, %v12514_v37  ;;  %12526 = vmatpush1.bf16.msk.msra.mxu1 %vm14801_vm3, %v12524_v38 }
  0x6b   : > { %12528 = vmatprep.subr.bf16.mxu0 %v12527_v42  ;;  %12538 = vmatprep.subr.bf16.mxu1 %v12537_v45  ;;  %v2029_v42 = vshrl.u32 %v2028_v7, 7  ;;  %v2026_v45 = vld [vmem:[%s14586_s17] ss:$4 sm:$0xf] }
  0x6d   : > { %v14977_v43 = vsub.s32 0, %v2029_v42  ;;  %v14979_v44 = vsub.s32 2, %v2029_v42  ;;  %v14982_v46 = vsub.s32 1, %v2029_v42  ;;  %v2042_v47 = vsub.s32 3, %v2029_v42 }
  0x6f   : > { %v14985_v48 = vrot.slane %v2026_v45, %v14977_v43  ;;  %v14988_v49 = vrot.slane %v2026_v45, %v14979_v44  ;;  %v14992_v51 = vrot.slane %v2026_v45, %v14982_v46  ;;  %v14994_v52 = vrot.slane %v2026_v45, %v2042_v47 }
  0x70   : > { %v15008_v2 = vrot.slane %v10475_v50, %v14982_v46  ;;  %v15010_v3 = vrot.slane %v10475_v50, %v2042_v47 }
 0x137   : > { %v11984_v54 = vpop.f32.mrb[0].mxu1  ;;  %v14873_v57 = vpop.f32.mrb[0].mxu0 }
 0x138   : > { %v1249_v59 = vpop.f32.mrb[1].mxu1  ;;  %v1131_v1 = vpop.f32.mrb[1].mxu0 }
 0x139   : > { %10416 = vmatmul.mubr.msk.f32.vlgmr.msra.gmra.mrb[4].mxu0 %vm1048_vm0, %v1249_v59  ;;  %10422 = vmatmul.mubr.msk.f32.vlgmr.msra.gmra.mrb[4].mxu1 %vm1048_vm0, %v1249_v59  ;;  %v15003_v59 = vrot.slane %v10475_v50, %v14979_v44 }
 0x13a   : > { %1379 = vmatprep.mubr.f32.mxu0 %v14559_v39  ;;  %1468 = vmatprep.mubr.f32.mxu1 %v14559_v39 }
 0x13b   : > { %v11987_v4 = vpop.f32.mrb[2].mxu1  ;;  %12530 = vmatpush1.bf16.msra.mxu0 %v12529_v55  ;;  %12540 = vmatpush1.bf16.msra.mxu1 %v12539_v56  ;;  %v11973_v10 = vpop.f32.mrb[2].mxu0  ;;  %v14998_v56 = vrot.slane %v10475_v50, %v14977_v43 }
 0x13c   : > { %v1259_v11 = vpop.f32.mrb[3].mxu1  ;;  %12533 = vmatprep.subr.msk.bf16.mxu0 %vm14801_vm3, %v12531_v60  ;;  %12543 = vmatprep.subr.msk.bf16.mxu1 %vm14801_vm3, %v12541_v61  ;;  %v1141_v12 = vpop.f32.mrb[3].mxu0 }
 0x13d   : > { %10417 = vmatmul.mubr.msk.f32.gmra.mrb[6].mxu0 %vm1048_vm0, %v11984_v54  ;;  %10423 = vmatmul.mubr.msk.f32.gmra.mrb[6].mxu1 %vm1048_vm0, %v11984_v54 }
 0x13e   : > { %1385 = vmatprep.mubr.f32.mxu0 %v14559_v39  ;;  %1474 = vmatprep.mubr.f32.mxu1 %v14559_v39 }
 0x13f   : > { %12536 = vmatpush1.bf16.msk.msra.mxu0 %vm14801_vm3, %v12534_v6  ;;  %12546 = vmatpush1.bf16.msk.msra.mxu1 %vm14801_vm3, %v12544_v8 }
 0x140   : > { %12548 = vmatprep.subr.bf16.mxu0 %v14798_v5  ;;  %12568 = vmatprep.subr.bf16.mxu1 %v12567_v13 }
 0x141   : > { %10418 = vmatmul.mubr.msk.f32.gmra.mrb[8].mxu0 %vm1048_vm0, %v1259_v11  ;;  %10424 = vmatmul.mubr.msk.f32.gmra.mrb[8].mxu1 %vm1048_vm0, %v1259_v11 }
 0x142   : > { %1391 = vmatprep.mubr.f32.mxu0 %v14559_v39  ;;  %1480 = vmatprep.mubr.f32.mxu1 %v14559_v39 }
 0x145   : > { %10419 = vmatmul.mubr.msk.f32.gmra.mrb[10].mxu0 %vm1048_vm0, %v11987_v4  ;;  %10425 = vmatmul.mubr.msk.f32.gmra.mrb[10].mxu1 %vm1048_vm0, %v11987_v4 }
 0x146   : > { %1575 = vmatprep.mubr.f32.mxu0 %v14559_v39  ;;  %1664 = vmatprep.mubr.f32.mxu1 %v14559_v39 }
 0x149   : > { %10428 = vmatmul.mubr.msk.f32.vlgmr.msra.gmra.mrb[4].mxu0 %vm1048_vm0, %v1131_v1  ;;  %10434 = vmatmul.mubr.msk.f32.vlgmr.msra.gmra.mrb[4].mxu1 %vm1048_vm0, %v1131_v1 }
 0x14a   : > { %1581 = vmatprep.mubr.f32.mxu0 %v14559_v39  ;;  %1670 = vmatprep.mubr.f32.mxu1 %v14559_v39 }
 0x14b   : > { %12550 = vmatpush3.bf16.msra.mxu0 %v14798_v5  ;;  %12570 = vmatpush1.bf16.msra.mxu1 %v12569_v18  ;;  %v10438_v5 = vld [vmem:[%s14581_s13 + $0x40] sm:$0xff] }
 0x14c   : > { %12553 = vmatprep.subr.msk.bf16.mxu0 %vm14801_vm3, %v14806_v9  ;;  %12573 = vmatprep.subr.msk.bf16.mxu1 %vm14801_vm3, %v12571_v19 }
 0x14d   : > { %10429 = vmatmul.mubr.msk.f32.gmra.mrb[6].mxu0 %vm1048_vm0, %v14873_v57  ;;  %10435 = vmatmul.mubr.msk.f32.gmra.mrb[6].mxu1 %vm1048_vm0, %v14873_v57  ;;  %v10476_v57 = vld [vmem:[%s14586_s17 + $0x2] ss:$4 sm:$0xf] }
 0x14e   : > { %1587 = vmatprep.mubr.f32.mxu0 %v14559_v39  ;;  %1676 = vmatprep.mubr.f32.mxu1 %v14559_v39  ;;  %v15013_v4 = vrot.slane %v10476_v57, %v14977_v43  ;;  %v15016_v6 = vrot.slane %v10476_v57, %v14979_v44  ;;  %v15023_v19 = vrot.slane %v10476_v57, %v14982_v46 }
 0x14f   : > { %12556 = vmatpush3.bf16.msk.msra.mxu0 %vm14801_vm3, %v14806_v9  ;;  %12576 = vmatpush1.bf16.msk.msra.mxu1 %vm14801_vm3, %v12574_v24  ;;  %v10456_v9 = vld [vmem:[%s17420_s9 + $0x148] sm:$0xff]  ;;  %v15025_v20 = vrot.slane %v10476_v57, %v2042_v47 }
 0x150   : > { %12558 = vmatprep.subr.bf16.mxu0 %v12557_v25  ;;  %v12561_v32 = vpack.c.bf16 %v10460_v28, %v10456_v9 }
 0x151   : > { %10430 = vmatmul.mubr.msk.f32.gmra.mrb[8].mxu0 %vm1048_vm0, %v1141_v12  ;;  %10436 = vmatmul.mubr.msk.f32.gmra.mrb[8].mxu1 %vm1048_vm0, %v1141_v12 }
 0x152   : > { %1593 = vmatprep.mubr.f32.mxu0 %v14559_v39  ;;  %1682 = vmatprep.mubr.f32.mxu1 %v14559_v39 }
 0x155   : > { %10431 = vmatmul.mubr.msk.f32.gmra.mrb[10].mxu0 %vm1048_vm0, %v11973_v10  ;;  %10437 = vmatmul.mubr.msk.f32.gmra.mrb[10].mxu1 %vm1048_vm0, %v11973_v10 }
 0x156   : > { %11996 = vmatprep.mubr.msk.f32.mxu0 %vm1048_vm0, %v10438_v5  ;;  %1985 = vmatprep.mubr.f32.mxu1 %v14559_v39 }
 0x159   : > { %11997 = vmatmul.mubr.msk.f32.vlgmr.msra.gmra.mrb[12].mxu0 %vm1048_vm0, %v10439_v29 }
 0x15a   : > { %11999 = vmatprep.mubr.msk.f32.mxu0 %vm1048_vm0, %v10440_v31  ;;  %12560 = vmatpush1.bf16.msra.mxu0 %v12559_v30 }
 0x15b   : > { %12563 = vmatprep.subr.msk.bf16.mxu0 %vm14801_vm3, %v12561_v32 }
 0x15d   : > { %12000 = vmatmul.mubr.msk.f32.gmra.mrb[14].mxu0 %vm1048_vm0, %v10441_v35 }
 0x15e   : > { %12566 = vmatpush1.bf16.msk.msra.mxu0 %vm14801_vm3, %v12564_v36  ;;  %1896 = vmatprep.mubr.f32.mxu0 %v14559_v39  ;;  %vm16929_vm3 = vmpackc.low %vm8132_vm1, %vm14558_vm2  ;;  %vm8323_vm2 = vcmask 130048  }
 0x22c   : > { %v11998_v37 = vpop.f32.mrb[12].mxu0 }
 0x22d   : > { %v1772_v38 = vpop.f32.mrb[13].mxu0 }
 0x22e   : > { %10465 = vmatmul.mubr.msk.f32.vlgmr.msra.gmra.mrb[4].mxu0 %vm1048_vm0, %v1772_v38  ;;  %10471 = vmatmul.mubr.msk.f32.vlgmr.msra.gmra.mrb[4].mxu1 %vm1048_vm0, %v1772_v38 }
 0x22f   : > { %1902 = vmatprep.mubr.f32.mxu0 %v14559_v39  ;;  %1991 = vmatprep.mubr.f32.mxu1 %v14559_v39 }
 0x230   : > { %v12001_v40 = vpop.f32.mrb[14].mxu0 }
 0x231   : > { %v1782_v41 = vpop.f32.mrb[15].mxu0 }
 0x232   : > { %10466 = vmatmul.mubr.msk.f32.gmra.mrb[6].mxu0 %vm1048_vm0, %v11998_v37  ;;  %10472 = vmatmul.mubr.msk.f32.gmra.mrb[6].mxu1 %vm1048_vm0, %v11998_v37 }
 0x233   : > { %1908 = vmatprep.mubr.f32.mxu0 %v14559_v39  ;;  %1997 = vmatprep.mubr.f32.mxu1 %v14559_v39 }
 0x236   : > { %10467 = vmatmul.mubr.msk.f32.gmra.mrb[8].mxu0 %vm1048_vm0, %v1782_v41  ;;  %10473 = vmatmul.mubr.msk.f32.gmra.mrb[8].mxu1 %vm1048_vm0, %v1782_v41 }
 0x237   : > { %1914 = vmatprep.mubr.f32.mxu0 %v14559_v39  ;;  %2003 = vmatprep.mubr.f32.mxu1 %v14559_v39 }
 0x23a   : > { %10468 = vmatmul.mubr.msk.f32.gmra.mrb[10].mxu0 %vm1048_vm0, %v12001_v40  ;;  %10474 = vmatmul.mubr.msk.f32.gmra.mrb[10].mxu1 %vm1048_vm0, %v12001_v40  ;;  %vm7301_vm0 = vcmask 392192  }
 0x23b   : > { %2248 = vmatprep.mubr.f32.mxu1 %v14559_v39  ;;  %2331 = vmatprep.mubr.f32.mxu0 %v14559_v39 }
 0x301   : > { %v1898_v53 = vpop.f32.mrb[4].mxu0  ;;  %v1987_v54 = vpop.f32.mrb[4].mxu1 }
 0x302   : > { %v2048_v55 = vadd.f32 %v14985_v48, %v1898_v53  ;;  %v2050_v58 = vadd.f32 %v14988_v49, %v1987_v54  ;;  %v1900_v60 = vpop.f32.mrb[5].mxu0  ;;  %v1989_v61 = vpop.f32.mrb[5].mxu1 }
 0x303   : > { %v2049_v62 = vadd.f32 %v14992_v51, %v1900_v60  ;;  %v2051_v63 = vadd.f32 %v14994_v52, %v1989_v61 }
 0x304   : > { %v2064_v0 = vmax.f32 %v2048_v55, 0.0  ;;  %v2066_v1 = vmax.f32 %v2050_v58, 0.0 }
 0x305   : > { %v2065_v8 = vmax.f32 %v2049_v62, 0.0  ;;  %v2067_v10 = vmax.f32 %v2051_v63, 0.0  ;;  %v1904_v11 = vpop.f32.mrb[6].mxu0  ;;  %v1993_v12 = vpop.f32.mrb[6].mxu1 }
 0x306   : > { %v2103_v13 = vmul.f32 %v14998_v56, %v2064_v0  ;;  %v2105_v14 = vmul.f32 %v15003_v59, %v2066_v1  ;;  %v2052_v15 = vadd.f32 %v14985_v48, %v1904_v11  ;;  %v2054_v16 = vadd.f32 %v14988_v49, %v1993_v12  ;;  %v1906_v17 = vpop.f32.mrb[7].mxu0  ;;  %v1995_v18 = vpop.f32.mrb[7].mxu1 }
 0x307   : > { %v2053_v21 = vadd.f32 %v14992_v51, %v1906_v17  ;;  %v2055_v22 = vadd.f32 %v14994_v52, %v1995_v18  ;;  %v2104_v23 = vmul.f32 %v15008_v2, %v2065_v8  ;;  %v2106_v24 = vmul.f32 %v15010_v3, %v2067_v10 }
 0x308   : > { %v2068_v25 = vmax.f32 %v2052_v15, 0.0  ;;  %v2070_v5 = vmax.f32 %v2054_v16, 0.0  ;;  %v2142_v26 = vadd.f32 %v15013_v4, %v2103_v13  ;;  %v2144_v27 = vadd.f32 %v15016_v6, %v2105_v14 }
 0x309   : > { %v2069_v9 = vmax.f32 %v2053_v21, 0.0  ;;  %v2071_v28 = vmax.f32 %v2055_v22, 0.0  ;;  %v1910_v29 = vpop.f32.mrb[8].mxu0  ;;  %v1999_v30 = vpop.f32.mrb[8].mxu1  ;;  %v2143_v0 = vadd.f32 %v15023_v19, %v2104_v23  ;;  %v2145_v1 = vadd.f32 %v15025_v20, %v2106_v24 }
 0x30a   : > { %v2107_v31 = vmul.f32 %v14998_v56, %v2068_v25  ;;  %v2109_v32 = vmul.f32 %v15003_v59, %v2070_v5  ;;  %v2056_v33 = vadd.f32 %v14985_v48, %v1910_v29  ;;  %v2058_v34 = vadd.f32 %v14988_v49, %v1999_v30  ;;  %v1912_v35 = vpop.f32.mrb[9].mxu0  ;;  %v2001_v36 = vpop.f32.mrb[9].mxu1  ;;  %v10504_v30 = vld [vmem:[%s14591_s21 + $0x500] sm:$0xff] }
 0x30b   : > { %v2108_v37 = vmul.f32 %v15008_v2, %v2069_v9  ;;  %v2110_v38 = vmul.f32 %v15010_v3, %v2071_v28  ;;  %v2057_v40 = vadd.f32 %v14992_v51, %v1912_v35  ;;  %v2059_v41 = vadd.f32 %v14994_v52, %v2001_v36  ;;  %v2160_v36 = vld [vmem:[%s14596_s25 + $0x10] sm:$0xff] }
 0x30c   : > { %v2146_v7 = vadd.f32 %v15013_v4, %v2107_v31  ;;  %v2148_v42 = vadd.f32 %v15016_v6, %v2109_v32  ;;  %v2072_v45 = vmax.f32 %v2056_v33, 0.0  ;;  %v2074_v47 = vmax.f32 %v2058_v34, 0.0  ;;  %v10550_v31 = vld [vmem:[%s14591_s21 + $0x670] sm:$0xff]  ;;  %v10553_v32 = vld [vmem:[%s14591_s21 + $0x688] sm:$0xff] }
 0x30d   : > { %v2073_v50 = vmax.f32 %v2057_v40, 0.0  ;;  %v2075_v53 = vmax.f32 %v2059_v41, 0.0  ;;  %v1916_v54 = vpop.f32.mrb[10].mxu0  ;;  %v2005_v55 = vpop.f32.mrb[10].mxu1  ;;  %v2147_v60 = vadd.f32 %v15023_v19, %v2108_v37  ;;  %v2149_v61 = vadd.f32 %v15025_v20, %v2110_v38  ;;  %v2159_v33 = vld [vmem:[%s14596_s25 + $0x8] sm:$0xff]  ;;  %v10500_v37 = vld [vmem:[%s14591_s21 + $0x4e0] sm:$0xff] }
 0x30e   : > { %v15043_v57 = vpack.c.bf16 %v2146_v7, %v2142_v26  ;;  %v15045_v58 = vpack.c.bf16 %v2148_v42, %v2144_v27  ;;  %v1918_v62 = vpop.f32.mrb[11].mxu0  ;;  %v2007_v63 = vpop.f32.mrb[11].mxu1  ;;  %v2060_v8 = vadd.f32 %v14985_v48, %v1916_v54  ;;  %v2062_v10 = vadd.f32 %v14988_v49, %v2005_v55  ;;  %v10503_v38 = vld [vmem:[%s14591_s21 + $0x4f8] sm:$0xff]  ;;  %v10502_v41 = vld [vmem:[%s14591_s21 + $0x4f0] sm:$0xff]  ;;  %v10505_v7 = vld [vmem:[%s14591_s21 + $0x508] sm:$0xff] }
 0x30f   : > { %v2111_v11 = vmul.f32 %v14998_v56, %v2072_v45  ;;  %v2113_v12 = vmul.f32 %v15003_v59, %v2074_v47  ;;  %v2061_v13 = vadd.f32 %v14992_v51, %v1918_v62  ;;  %v2063_v14 = vadd.f32 %v14994_v52, %v2007_v63  ;;  %v10507_v40 = vld [vmem:[%s14591_s21 + $0x518] sm:$0xff]  ;;  %v10510_v42 = vld [vmem:[%s14591_s21 + $0x530] sm:$0xff]  ;;  %v10556_v45 = vld [vmem:[%s14591_s21 + $0x6a0] sm:$0xff] }
 0x310   : > { %v2112_v15 = vmul.f32 %v15008_v2, %v2073_v50  ;;  %v2114_v16 = vmul.f32 %v15010_v3, %v2075_v53  ;;  %v2076_v17 = vmax.f32 %v2060_v8, 0.0  ;;  %v2078_v18 = vmax.f32 %v2062_v10, 0.0  ;;  %v10559_v47 = vld [vmem:[%s14591_s21 + $0x6b8] sm:$0xff]  ;;  %v10506_v54 = vld [vmem:[%s14591_s21 + $0x510] sm:$0xff]  ;;  %v10509_v55 = vld [vmem:[%s14591_s21 + $0x528] sm:$0xff] }
 0x311   : > { %v2077_v21 = vmax.f32 %v2061_v13, 0.0  ;;  %v2079_v22 = vmax.f32 %v2063_v14, 0.0  ;;  %v15059_v23 = vpack.c.bf16 %v2147_v60, %v2143_v0  ;;  %v15061_v48 = vpack.c.bf16 %v2149_v61, %v2145_v1  ;;  %v10487_v50 = vld [vmem:[%s14596_s25 + $0x18] sm:$0xff]  ;;  %v10513_v62 = vld [vmem:[%s14591_s21 + $0x548] sm:$0xff]  ;;  %v10508_v0 = vld [vmem:[%s14591_s21 + $0x520] sm:$0xff] }
 0x312   : > { %v2115_v49 = vmul.f32 %v14998_v56, %v2076_v17  ;;  %v2117_v24 = vmul.f32 %v15003_v59, %v2078_v18  ;;  %v2150_v51 = vadd.f32 %v15013_v4, %v2111_v11  ;;  %v2152_v5 = vadd.f32 %v15016_v6, %v2113_v12  ;;  %v10511_v1 = vld [vmem:[%s14591_s21 + $0x538] sm:$0xff]  ;;  %v10516_v8 = vld [vmem:[%s14591_s21 + $0x560] sm:$0xff]  ;;  %v10562_v10 = vld [vmem:[%s14591_s21 + $0x6d0] sm:$0xff] }
 0x313   : > { %v2116_v52 = vmul.f32 %v15008_v2, %v2077_v21  ;;  %v2118_v25 = vmul.f32 %v15010_v3, %v2079_v22  ;;  %12578 = vmatprep.subr.bf16.mxu1 %v15059_v23  ;;  %12588 = vmatprep.subr.bf16.mxu0 %v15061_v48  ;;  %v2151_v56 = vadd.f32 %v15023_v19, %v2112_v15  ;;  %v10565_v11 = vld [vmem:[%s14591_s21 + $0x6e8] sm:$0xff]  ;;  %v10488_v12 = vld [vmem:[%s14596_s25 + $0x20] sm:$0xff]  ;;  %v10515_v15 = vld [vmem:[%s14591_s21 + $0x558] sm:$0xff] }
 0x314   : > { %v2154_v26 = vadd.f32 %v15013_v4, %v2115_v49  ;;  %v2156_v27 = vadd.f32 %v15016_v6, %v2117_v24  ;;  %12580 = vmatpush1.bf16.msra.mxu1 %v15043_v57  ;;  %12590 = vmatpush1.bf16.msra.mxu0 %v15045_v58  ;;  %v2153_v59 = vadd.f32 %v15025_v20, %v2114_v16  ;;  %v10512_v14 = vld [vmem:[%s14591_s21 + $0x540] sm:$0xff]  ;;  %v10519_v18 = vld [vmem:[%s14591_s21 + $0x578] sm:$0xff]  ;;  %v10514_v22 = vld [vmem:[%s14591_s21 + $0x550] sm:$0xff] }
 0x315   : > { %v2155_v2 = vadd.f32 %v15023_v19, %v2116_v52  ;;  %v2157_v3 = vadd.f32 %v15025_v20, %v2118_v25  ;;  %v2158_v19 = vld [vmem:[%s14596_s25] sm:$0xff]  ;;  %v10501_v20 = vld [vmem:[%s14591_s21 + $0x4e8] sm:$0xff]  ;;  %v12721_v35 = vpack.c.bf16 %v10553_v32, %v10550_v31  ;;  %v12619_v53 = vpack.c.bf16 %v10503_v38, %v10500_v37  ;;  %v10522_v24 = vld [vmem:[%s14591_s21 + $0x590] sm:$0xff] }
 0x316   : > { %v15079_v9 = vpack.c.bf16 %v2154_v26, %v2150_v51  ;;  %v15081_v4 = vpack.c.bf16 %v2156_v27, %v2152_v5  ;;  %v12617_v34 = vpack.c.bf16 %v10504_v30, %v10501_v20  ;;  %v12723_v60 = vpack.c.bf16 %v10505_v7, %v10502_v41  ;;  %v10517_v49 = vld [vmem:[%s14591_s21 + $0x568] sm:$0xff]  ;;  %v10568_v51 = vld [vmem:[%s14591_s21 + $0x700] sm:$0xff]  ;;  %v10571_v52 = vld [vmem:[%s14591_s21 + $0x718] sm:$0xff] }
 0x317   : > { %v15088_v28 = vpack.c.bf16 %v2155_v2, %v2151_v56  ;;  %v15090_v29 = vpack.c.bf16 %v2157_v3, %v2153_v59  ;;  %v12621_v61 = vpack.c.bf16 %v10510_v42, %v10507_v40  ;;  %v12725_v63 = vpack.c.bf16 %v10559_v47, %v10556_v45  ;;  %v10489_v25 = vld [vmem:[%s14596_s25 + $0x28] sm:$0xff]  ;;  %v10518_v26 = vld [vmem:[%s14591_s21 + $0x570] sm:$0xff]  ;;  %v10523_v20 = vld [vmem:[%s14591_s21 + $0x598] sm:$0xff] }
 0x318   : > { %v12623_v13 = vpack.c.bf16 %v10509_v55, %v10506_v54  ;;  %v12727_v16 = vpack.c.bf16 %v10511_v1, %v10508_v0  ;;  %v12625_v17 = vpack.c.bf16 %v10516_v8, %v10513_v62  ;;  %v12729_v21 = vpack.c.bf16 %v10565_v11, %v10562_v10  ;;  %v10521_v27 = vld [vmem:[%s14591_s21 + $0x588] sm:$0xff]  ;;  %v10528_v30 = vld [vmem:[%s14591_s21 + $0x5c0] sm:$0xff]  ;;  %v10574_v31 = vld [vmem:[%s14591_s21 + $0x730] sm:$0xff] }
 0x319   : > { %12583 = vmatprep.subr.msk.bf16.mxu1 %vm15084_vm5, %v15088_v28  ;;  %12593 = vmatprep.subr.msk.bf16.mxu0 %vm15084_vm5, %v15090_v29  ;;  %v12627_v5 = vpack.c.bf16 %v10515_v15, %v10512_v14  ;;  %v12731_v56 = vpack.c.bf16 %v10517_v49, %v10514_v22  ;;  %v12629_v59 = vpack.c.bf16 %v10522_v24, %v10519_v18  ;;  %v10525_v2 = vld [vmem:[%s14591_s21 + $0x5a8] sm:$0xff]  ;;  %v10527_v37 = vld [vmem:[%s14591_s21 + $0x5b8] sm:$0xff]  ;;  %v10526_v40 = vld [vmem:[%s14591_s21 + $0x5b0] sm:$0xff] }
 0x31a   : > { %12586 = vmatpush1.bf16.msk.msra.mxu1 %vm15084_vm5, %v15079_v9  ;;  %12596 = vmatpush1.bf16.msk.msra.mxu0 %vm15084_vm5, %v15081_v4  ;;  %v12733_v3 = vpack.c.bf16 %v10571_v52, %v10568_v51  ;;  %v10577_v32 = vld [vmem:[%s14591_s21 + $0x748] sm:$0xff]  ;;  %v10531_v7 = vld [vmem:[%s14591_s21 + $0x5d8] sm:$0xff]  ;;  %v10534_v42 = vld [vmem:[%s14591_s21 + $0x5f0] sm:$0xff] }
 0x31b   : > { %12598 = vmatprep.subr.bf16.mxu1 %v15059_v23  ;;  %12608 = vmatprep.subr.bf16.mxu0 %v15061_v48  ;;  %v12737_v38 = vpack.c.bf16 %v10577_v32, %v10574_v31  ;;  %v10529_v41 = vld [vmem:[%s14591_s21 + $0x5c8] sm:$0xff]  ;;  %v10539_v0 = vld [vmem:[%s14591_s21 + $0x618] sm:$0xff]  ;;  %v10546_v8 = vld [vmem:[%s14591_s21 + $0x650] sm:$0xff] }
 0x31c   : > { %v12739_v47 = vpack.c.bf16 %v10529_v41, %v10526_v40  ;;  %v10533_v54 = vld [vmem:[%s14591_s21 + $0x5e8] sm:$0xff]  ;;  %v10543_v1 = vld [vmem:[%s14591_s21 + $0x638] sm:$0xff]  ;;  %v10552_v15 = vld [vmem:[%s14591_s21 + $0x680] sm:$0xff] }
 0x31d   : > { %10479 = vmatmul.mubr.msk.f32.vlgmr.msra.gmra.mrb[12].mxu1 %vm2161_vm6, %v2158_v19  ;;  %10484 = vmatmul.mubr.msk.f32.vlgmr.msra.gmra.mrb[16].mxu0 %vm2161_vm6, %v2158_v19  ;;  %v10520_v19 = vld [vmem:[%s14591_s21 + $0x580] sm:$0xff]  ;;  %v10537_v55 = vld [vmem:[%s14591_s21 + $0x608] sm:$0xff]  ;;  %v12645_v11 = vpack.c.bf16 %v10546_v8, %v10543_v1  ;;  %v10555_v22 = vld [vmem:[%s14591_s21 + $0x698] sm:$0xff] }
 0x31e   : > { %12600 = vmatpush1.bf16.msra.mxu1 %v15043_v57  ;;  %12610 = vmatpush1.bf16.msra.mxu0 %v15045_v58  ;;  %v10549_v14 = vld [vmem:[%s14591_s21 + $0x668] sm:$0xff]  ;;  %v10548_v18 = vld [vmem:[%s14591_s21 + $0x660] sm:$0xff]  ;;  %v10558_v49 = vld [vmem:[%s14591_s21 + $0x6b0] sm:$0xff] }
 0x31f   : > { %12603 = vmatprep.subr.msk.bf16.mxu1 %vm15084_vm5, %v15088_v28  ;;  %12613 = vmatprep.subr.msk.bf16.mxu0 %vm15084_vm5, %v15090_v29  ;;  %v12653_v51 = vpack.c.bf16 %v10558_v49, %v10555_v22  ;;  %v10554_v52 = vld [vmem:[%s14591_s21 + $0x690] sm:$0xff]  ;;  %v10569_v32 = vld [vmem:[%s14591_s21 + $0x708] sm:$0xff]  ;;  %v10579_v41 = vld [vmem:[%s14591_s21 + $0x758] sm:$0xff] }
 0x320   : > { %2254 = vmatprep.mubr.f32.mxu1 %v14559_v39  ;;  %2337 = vmatprep.mubr.f32.mxu0 %v14559_v39  ;;  %v10566_v31 = vld [vmem:[%s14591_s21 + $0x6f0] sm:$0xff]  ;;  %v10592_v22 = vld [vmem:[%s14591_s21 + $0x7c0] sm:$0xff] }
 0x321   : > { %10480 = vmatmul.mubr.msk.f32.gmra.mrb[14].mxu1 %vm2161_vm6, %v2159_v33  ;;  %10485 = vmatmul.mubr.msk.f32.gmra.mrb[18].mxu0 %vm2161_vm6, %v2159_v33  ;;  %v12631_v33 = vpack.c.bf16 %v10521_v27, %v10518_v26  ;;  %v10564_v26 = vld [vmem:[%s14591_s21 + $0x6e0] sm:$0xff]  ;;  %v10586_v1 = vld [vmem:[%s14591_s21 + $0x790] sm:$0xff] }
 0x322   : > { %12606 = vmatpush1.bf16.msk.msra.mxu1 %vm15084_vm5, %v15079_v9  ;;  %12616 = vmatpush1.bf16.msk.msra.mxu0 %vm15084_vm5, %v15081_v4  ;;  %v2500_v6 = vld [vmem:[%s14591_s21 + $0x4b0] sm:$0xff] }
 0x323   : > { %2260 = vmatprep.mubr.f32.mxu1 %v14559_v39  ;;  %2343 = vmatprep.mubr.f32.mxu0 %v14559_v39 }
 0x324   : > { %12618 = vmatprep.subr.bf16.mxu1 %v12617_v34  ;;  %12722 = vmatprep.subr.bf16.mxu0 %v12721_v35  ;;  %v10524_v34 = vld [vmem:[%s14591_s21 + $0x5a0] sm:$0xff]  ;;  %v12735_v35 = vpack.c.bf16 %v10523_v20, %v10520_v19  ;;  %v10570_v19 = vld [vmem:[%s14591_s21 + $0x710] sm:$0xff] }
 0x325   : > { %10481 = vmatmul.mubr.msk.f32.gmra.mrb[16].mxu1 %vm2161_vm6, %v2160_v36  ;;  %10486 = vmatmul.mubr.msk.f32.gmra.mrb[20].mxu0 %vm2161_vm6, %v2160_v36  ;;  %v12633_v36 = vpack.c.bf16 %v10528_v30, %v10525_v2  ;;  %v12635_v45 = vpack.c.bf16 %v10527_v37, %v10524_v34  ;;  %v10563_v2 = vld [vmem:[%s14591_s21 + $0x6d8] sm:$0xff]  ;;  %v10576_v34 = vld [vmem:[%s14591_s21 + $0x740] sm:$0xff] }
 0x326   : > { %2583 = vmatprep.mubr.f32.mxu1 %v14559_v39  ;;  %2666 = vmatprep.mubr.f32.mxu0 %v14559_v39  ;;  %v10572_v37 = vld [vmem:[%s14591_s21 + $0x720] sm:$0xff] }
 0x329   : > { %10492 = vmatmul.mubr.msk.f32.vlgmr.msra.gmra.mrb[18].mxu1 %vm2161_vm6, %v10487_v50  ;;  %10497 = vmatmul.mubr.msk.f32.vlgmr.msra.gmra.mrb[22].mxu0 %vm2161_vm6, %v10487_v50  ;;  %v12637_v50 = vpack.c.bf16 %v10534_v42, %v10531_v7  ;;  %v10582_v7 = vld [vmem:[%s14591_s21 + $0x770] sm:$0xff]  ;;  %v10580_v42 = vld [vmem:[%s14591_s21 + $0x760] sm:$0xff] }
 0x32a   : > { %2589 = vmatprep.mubr.f32.mxu1 %v14559_v39  ;;  %2672 = vmatprep.mubr.f32.mxu0 %v14559_v39 }
 0x32b   : > { %12620 = vmatpush1.bf16.msra.mxu1 %v12619_v53  ;;  %12724 = vmatpush3.bf16.msra.mxu0 %v12723_v60  ;;  %v10530_v53 = vld [vmem:[%s14591_s21 + $0x5d0] sm:$0xff]  ;;  %v10540_v60 = vld [vmem:[%s14591_s21 + $0x620] sm:$0xff] }
 0x32c   : > { %12622 = vmatprep.subr.bf16.mxu1 %v12621_v61  ;;  %12726 = vmatprep.subr.bf16.mxu0 %v12725_v63  ;;  %v12639_v61 = vpack.c.bf16 %v10533_v54, %v10530_v53  ;;  %v12641_v62 = vpack.c.bf16 %v10540_v60, %v10537_v55  ;;  %v10536_v63 = vld [vmem:[%s14591_s21 + $0x600] sm:$0xff]  ;;  %v10581_v53 = vld [vmem:[%s14591_s21 + $0x768] sm:$0xff] }
 0x32d   : > { %10493 = vmatmul.mubr.msk.f32.gmra.mrb[20].mxu1 %vm2161_vm6, %v10488_v12  ;;  %10498 = vmatmul.mubr.msk.f32.gmra.mrb[24].mxu0 %vm2161_vm6, %v10488_v12  ;;  %v12643_v10 = vpack.c.bf16 %v10539_v0, %v10536_v63  ;;  %v10542_v12 = vld [vmem:[%s14591_s21 + $0x630] sm:$0xff]  ;;  %v10532_v60 = vld [vmem:[%s14591_s21 + $0x5e0] sm:$0xff]  ;;  %v10585_v63 = vld [vmem:[%s14591_s21 + $0x788] sm:$0xff] }
 0x32e   : > { %2595 = vmatprep.mubr.f32.mxu1 %v14559_v39  ;;  %2678 = vmatprep.mubr.f32.mxu0 %v14559_v39  ;;  %v10588_v0 = vld [vmem:[%s14591_s21 + $0x7a0] sm:$0xff] }
 0x32f   : > { %12624 = vmatpush1.bf16.msra.mxu1 %v12623_v13  ;;  %12728 = vmatpush3.bf16.msra.mxu0 %v12727_v16  ;;  %v10545_v13 = vld [vmem:[%s14591_s21 + $0x648] sm:$0xff]  ;;  %v12673_v8 = vpack.c.bf16 %v10588_v0, %v10585_v63 }
 0x330   : > { %12626 = vmatprep.subr.bf16.mxu1 %v12625_v17  ;;  %12730 = vmatprep.subr.bf16.mxu0 %v12729_v21  ;;  %v12647_v16 = vpack.c.bf16 %v10545_v13, %v10542_v12  ;;  %v12649_v17 = vpack.c.bf16 %v10552_v15, %v10549_v14  ;;  %v10551_v21 = vld [vmem:[%s14591_s21 + $0x678] sm:$0xff]  ;;  %v10538_v15 = vld [vmem:[%s14591_s21 + $0x610] sm:$0xff] }
 0x331   : > { %10494 = vmatmul.mubr.msk.f32.gmra.mrb[22].mxu1 %vm2161_vm6, %v10489_v25  ;;  %10499 = vmatmul.mubr.msk.f32.gmra.mrb[26].mxu0 %vm2161_vm6, %v10489_v25  ;;  %v12651_v24 = vpack.c.bf16 %v10551_v21, %v10548_v18  ;;  %v10557_v25 = vld [vmem:[%s14591_s21 + $0x6a8] sm:$0xff]  ;;  %v10587_v12 = vld [vmem:[%s14591_s21 + $0x798] sm:$0xff]  ;;  %v10594_v21 = vld [vmem:[%s14591_s21 + $0x7d0] sm:$0xff] }
 0x332   : > { %v12655_v27 = vpack.c.bf16 %v10557_v25, %v10554_v52  ;;  %v10591_v18 = vld [vmem:[%s14591_s21 + $0x7b8] sm:$0xff]  ;;  %v10593_v52 = vld [vmem:[%s14591_s21 + $0x7c8] sm:$0xff] }
 0x333   : > { %12628 = vmatpush1.bf16.msra.mxu1 %v12627_v5  ;;  %12732 = vmatpush3.bf16.msra.mxu0 %v12731_v56  ;;  %v10561_v5 = vld [vmem:[%s14591_s21 + $0x6c8] sm:$0xff]  ;;  %v12677_v49 = vpack.c.bf16 %v10594_v21, %v10591_v18 }
 0x334   : > { %12630 = vmatprep.subr.bf16.mxu1 %v12629_v59  ;;  %12734 = vmatprep.subr.bf16.mxu0 %v12733_v3  ;;  %v12657_v56 = vpack.c.bf16 %v10564_v26, %v10561_v5  ;;  %v10560_v59 = vld [vmem:[%s14591_s21 + $0x6c0] sm:$0xff]  ;;  %v10567_v3 = vld [vmem:[%s14591_s21 + $0x6f8] sm:$0xff] }
 0x335   : > { %v12659_v20 = vpack.c.bf16 %v10563_v2, %v10560_v59  ;;  %v12661_v30 = vpack.c.bf16 %v10570_v19, %v10567_v3  ;;  %v10544_v26 = vld [vmem:[%s14591_s21 + $0x640] sm:$0xff]  ;;  %v10597_v59 = vld [vmem:[%s14591_s21 + $0x7e8] sm:$0xff]  ;;  %v14560_v19 = vmov 0.0|0.0  }
 0x336   : > { %v10600_v2 = vld [vmem:[%s14591_s21 + $0x800] sm:$0xff] }
 0x337   : > { %12632 = vmatpush1.bf16.msra.mxu1 %v12631_v33  ;;  %12736 = vmatpush3.bf16.msra.mxu0 %v12735_v35  ;;  %v10573_v33 = vld [vmem:[%s14591_s21 + $0x728] sm:$0xff]  ;;  %v12663_v35 = vpack.c.bf16 %v10569_v32, %v10566_v31  ;;  %v12681_v3 = vpack.c.bf16 %v10600_v2, %v10597_v59 }
 0x338   : > { %12634 = vmatprep.subr.bf16.mxu1 %v12633_v36  ;;  %12738 = vmatprep.subr.bf16.mxu0 %v12737_v38  ;;  %v12665_v36 = vpack.c.bf16 %v10576_v34, %v10573_v33  ;;  %v10575_v38 = vld [vmem:[%s14591_s21 + $0x738] sm:$0xff] }
 0x339   : > { %v12667_v40 = vpack.c.bf16 %v10575_v38, %v10572_v37  ;;  %v10596_v38 = vld [vmem:[%s14591_s21 + $0x7e0] sm:$0xff] }
 0x33b   : > { %12636 = vmatpush1.bf16.msra.mxu1 %v12635_v45  ;;  %12740 = vmatpush3.bf16.msra.mxu0 %v12739_v47  ;;  %v12669_v45 = vpack.c.bf16 %v10582_v7, %v10579_v41  ;;  %v10583_v47 = vld [vmem:[%s14591_s21 + $0x778] sm:$0xff] }
 0x33c   : > { %12638 = vmatprep.subr.bf16.mxu1 %v12637_v50  ;;  %v10578_v50 = vld [vmem:[%s14591_s21 + $0x750] sm:$0xff]  ;;  %v12741_v54 = vpack.c.bf16 %v10583_v47, %v10580_v42  ;;  %v10599_v7 = vld [vmem:[%s14591_s21 + $0x7f8] sm:$0xff] }
 0x33d   : > { %v12671_v55 = vpack.c.bf16 %v10581_v53, %v10578_v50  ;;  %v10598_v42 = vld [vmem:[%s14591_s21 + $0x7f0] sm:$0xff]  ;;  %v10603_v50 = vld [vmem:[%s14591_s21 + $0x818] sm:$0xff] }
 0x33e   : > { %12742 = vmatprep.subr.bf16.mxu0 %v12741_v54  ;;  %v10606_v53 = vld [vmem:[%s14591_s21 + $0x830] sm:$0xff] }
 0x33f   : > { %12640 = vmatpush1.bf16.msra.mxu1 %v12639_v61  ;;  %v10535_v61 = vld [vmem:[%s14591_s21 + $0x5f8] sm:$0xff]  ;;  %v12685_v0 = vpack.c.bf16 %v10606_v53, %v10603_v50  ;;  %v10621_v53 = vld [vmem:[%s14591_s21 + $0x8a8] sm:$0xff] }
 0x340   : > { %12642 = vmatprep.subr.bf16.mxu1 %v12641_v62  ;;  %v12743_v62 = vpack.c.bf16 %v10535_v61, %v10532_v60  ;;  %v10602_v61 = vld [vmem:[%s14591_s21 + $0x810] sm:$0xff] }
 0x342   : > { %12744 = vmatpush3.bf16.msra.mxu0 %v12743_v62 }
 0x343   : > { %12644 = vmatpush1.bf16.msra.mxu1 %v12643_v10  ;;  %v10589_v10 = vld [vmem:[%s14591_s21 + $0x7a8] sm:$0xff] }
 0x344   : > { %12646 = vmatprep.subr.bf16.mxu1 %v12645_v11  ;;  %v10584_v11 = vld [vmem:[%s14591_s21 + $0x780] sm:$0xff]  ;;  %v12745_v13 = vpack.c.bf16 %v10589_v10, %v10586_v1  ;;  %v10605_v1 = vld [vmem:[%s14591_s21 + $0x828] sm:$0xff]  ;;  %v10607_v10 = vld [vmem:[%s14591_s21 + $0x838] sm:$0xff] }
 0x345   : > { %v12675_v14 = vpack.c.bf16 %v10587_v12, %v10584_v11  ;;  %v10609_v12 = vld [vmem:[%s14591_s21 + $0x848] sm:$0xff] }
 0x346   : > { %12746 = vmatprep.subr.bf16.mxu0 %v12745_v13  ;;  %v10612_v13 = vld [vmem:[%s14591_s21 + $0x860] sm:$0xff] }
 0x347   : > { %12648 = vmatpush1.bf16.msra.mxu1 %v12647_v16  ;;  %v10541_v16 = vld [vmem:[%s14591_s21 + $0x628] sm:$0xff]  ;;  %v12689_v21 = vpack.c.bf16 %v10612_v13, %v10609_v12  ;;  %v10630_v12 = vld [vmem:[%s14591_s21 + $0x8f0] sm:$0xff] }
 0x348   : > { %12650 = vmatprep.subr.bf16.mxu1 %v12649_v17  ;;  %v12747_v17 = vpack.c.bf16 %v10541_v16, %v10538_v15  ;;  %v10608_v16 = vld [vmem:[%s14591_s21 + $0x840] sm:$0xff] }
 0x34a   : > { %12748 = vmatpush3.bf16.msra.mxu0 %v12747_v17 }
 0x34b   : > { %12652 = vmatpush1.bf16.msra.mxu1 %v12651_v24  ;;  %v10595_v24 = vld [vmem:[%s14591_s21 + $0x7d8] sm:$0xff] }
 0x34c   : > { %12654 = vmatprep.subr.bf16.mxu1 %v12653_v51  ;;  %v10590_v51 = vld [vmem:[%s14591_s21 + $0x7b0] sm:$0xff]  ;;  %v12749_v25 = vpack.c.bf16 %v10595_v24, %v10592_v22  ;;  %v10611_v22 = vld [vmem:[%s14591_s21 + $0x858] sm:$0xff]  ;;  %v10613_v24 = vld [vmem:[%s14591_s21 + $0x868] sm:$0xff] }
 0x34d   : > { %v12679_v5 = vpack.c.bf16 %v10593_v52, %v10590_v51 }
 0x34e   : > { %12750 = vmatprep.subr.bf16.mxu0 %v12749_v25  ;;  %v10615_v25 = vld [vmem:[%s14591_s21 + $0x878] sm:$0xff] }
 0x34f   : > { %12656 = vmatpush1.bf16.msra.mxu1 %v12655_v27  ;;  %v10547_v27 = vld [vmem:[%s14591_s21 + $0x658] sm:$0xff] }
 0x350   : > { %12658 = vmatprep.subr.bf16.mxu1 %v12657_v56  ;;  %v12751_v56 = vpack.c.bf16 %v10547_v27, %v10544_v26  ;;  %v12691_v26 = vpack.c.bf16 %v10611_v22, %v10608_v16  ;;  %v10631_v22 = vld [vmem:[%s14591_s21 + $0x8f8] sm:$0xff] }
 0x352   : > { %12752 = vmatpush3.bf16.msra.mxu0 %v12751_v56  ;;  %v10614_v56 = vld [vmem:[%s14591_s21 + $0x870] sm:$0xff] }
 0x353   : > { %12660 = vmatpush1.bf16.msra.mxu1 %v12659_v20  ;;  %12753 = vmatprep.subr.bf16.mxu0 %v14560_v19 }
 0x354   : > { %12662 = vmatprep.subr.bf16.mxu1 %v12661_v30 }
 0x357   : > { %12664 = vmatpush1.bf16.msra.mxu1 %v12663_v35 }
 0x358   : > { %12666 = vmatprep.subr.bf16.mxu1 %v12665_v36 }
 0x35b   : > { %12668 = vmatpush1.bf16.msra.mxu1 %v12667_v40 }
 0x35c   : > { %12670 = vmatprep.subr.bf16.mxu1 %v12669_v45  ;;  %v10601_v45 = vld [vmem:[%s14591_s21 + $0x808] sm:$0xff] }
 0x35d   : > { %v12754_v60 = vpack.c.bf16 %v10601_v45, %v10598_v42  ;;  %v10619_v42 = vld [vmem:[%s14591_s21 + $0x898] sm:$0xff] }
 0x35f   : > { %12672 = vmatpush1.bf16.msra.mxu1 %v12671_v55  ;;  %v12683_v55 = vpack.c.bf16 %v10599_v7, %v10596_v38  ;;  %v10617_v38 = vld [vmem:[%s14591_s21 + $0x888] sm:$0xff]  ;;  %v10616_v7 = vld [vmem:[%s14591_s21 + $0x880] sm:$0xff] }
 0x360   : > { %12674 = vmatprep.subr.bf16.mxu1 %v12673_v8  ;;  %v10604_v8 = vld [vmem:[%s14591_s21 + $0x820] sm:$0xff] }
 0x361   : > { %v12757_v15 = vpack.c.bf16 %v10607_v10, %v10604_v8  ;;  %v10625_v8 = vld [vmem:[%s14591_s21 + $0x8c8] sm:$0xff]  ;;  %v10627_v10 = vld [vmem:[%s14591_s21 + $0x8d8] sm:$0xff] }
 0x362   : > { %v12701_v16 = vpack.c.bf16 %v10630_v12, %v10627_v10  ;;  %v10647_v10 = vld [vmem:[%s14591_s21 + $0x978] sm:$0xff]  ;;  %v10646_v12 = vld [vmem:[%s14591_s21 + $0x970] sm:$0xff] }
 0x363   : > { %12676 = vmatpush1.bf16.msra.mxu1 %v12675_v14  ;;  %v12687_v14 = vpack.c.bf16 %v10605_v1, %v10602_v61  ;;  %v10620_v61 = vld [vmem:[%s14591_s21 + $0x8a0] sm:$0xff]  ;;  %v10622_v1 = vld [vmem:[%s14591_s21 + $0x8b0] sm:$0xff] }
 0x364   : > { %12678 = vmatprep.subr.bf16.mxu1 %v12677_v49  ;;  %v10610_v49 = vld [vmem:[%s14591_s21 + $0x850] sm:$0xff] }
 0x365   : > { %v12760_v27 = vpack.c.bf16 %v10613_v24, %v10610_v49  ;;  %v10633_v49 = vld [vmem:[%s14591_s21 + $0x908] sm:$0xff] }
 0x367   : > { %12680 = vmatpush1.bf16.msra.mxu1 %v12679_v5  ;;  %v10618_v5 = vld [vmem:[%s14591_s21 + $0x890] sm:$0xff] }
 0x368   : > { %12682 = vmatprep.subr.bf16.mxu1 %v12681_v3  ;;  %v12693_v3 = vpack.c.bf16 %v10618_v5, %v10615_v25  ;;  %v10632_v25 = vld [vmem:[%s14591_s21 + $0x900] sm:$0xff] }
 0x3f0   : > { %v15247_v20 = vpop.f32.mrb[12].mxu1  ;;  %v15249_v30 = vpop.f32.mrb[16].mxu0 }
 0x3f1   : > { %v15251_v31 = vpop.f32.mrb[13].mxu1  ;;  %v15253_v32 = vpop.f32.mrb[17].mxu0 }
 0x3f4   : > { %v15255_v33 = vpop.f32.mrb[14].mxu1  ;;  %v15257_v34 = vpop.f32.mrb[18].mxu0 }
 0x3f5   : > { %v15259_v35 = vpop.f32.mrb[15].mxu1  ;;  %v15261_v36 = vpop.f32.mrb[19].mxu0 }
 0x3f8   : > { %v15263_v37 = vpop.f32.mrb[16].mxu1  ;;  %v15266_v40 = vpop.f32.mrb[20].mxu0 }
 0x3f9   : > { %v15268_v41 = vpop.f32.mrb[17].mxu1  ;;  %v15273_v47 = vpop.f32.mrb[21].mxu0 }
 0x3fc   : > { %v2585_v54 = vpop.f32.mrb[18].mxu1  ;;  %v15278_v62 = vpop.f32.mrb[22].mxu0 }
 0x3fd   : > { %v2587_v63 = vpop.f32.mrb[19].mxu1  ;;  %v15283_v11 = vpop.f32.mrb[23].mxu0 }
 0x3fe   : > { %2916 = vmatprep.mubr.f32.mxu1 %v2587_v63  ;;  %3082 = vmatprep.mubr.f32.mxu0 %v2587_v63 }
 0x3ff   : > { %2917 = vmatmul.mubr.f32.vlgmr.msra.gmra.mrb[24].mxu1 %v2585_v54  ;;  %3083 = vmatmul.mubr.f32.vlgmr.msra.gmra.mrb[28].mxu0 %v2585_v54  ;;  %v10624_v54 = vld [vmem:[%s14591_s21 + $0x8c0] sm:$0xff] }
 0x400   : > { %12684 = vmatpush1.bf16.msra.mxu1 %v12683_v55  ;;  %12755 = vmatpush1.bf16.msra.mxu0 %v12754_v60  ;;  %v2591_v17 = vpop.f32.mrb[20].mxu1  ;;  %v15288_v18 = vpop.f32.mrb[24].mxu0  ;;  %v12695_v55 = vpack.c.bf16 %v10617_v38, %v10614_v56  ;;  %v12763_v60 = vpack.c.bf16 %v10619_v42, %v10616_v7  ;;  %v12697_v63 = vpack.c.bf16 %v10624_v54, %v10621_v53  ;;  %v10637_v56 = vld [vmem:[%s14591_s21 + $0x928] sm:$0xff]  ;;  %v10638_v42 = vld [vmem:[%s14591_s21 + $0x930] sm:$0xff]  ;;  %v10640_v54 = vld [vmem:[%s14591_s21 + $0x940] sm:$0xff] }
 0x401   : > { %12686 = vmatprep.subr.bf16.mxu1 %v12685_v0  ;;  %12756 = vmatprep.subr.bf16.mxu0 %v14560_v19  ;;  %v2593_v51 = vpop.f32.mrb[21].mxu1  ;;  %v15294_v52 = vpop.f32.mrb[25].mxu0  ;;  %v10623_v0 = vld [vmem:[%s14591_s21 + $0x8b8] sm:$0xff]  ;;  %v10641_v53 = vld [vmem:[%s14591_s21 + $0x948] sm:$0xff] }
 0x402   : > { %3087 = vmatprep.mubr.f32.mxu0 %v2593_v51  ;;  %2922 = vmatprep.mubr.f32.mxu1 %v2593_v51  ;;  %v12699_v13 = vpack.c.bf16 %v10623_v0, %v10620_v61  ;;  %v10648_v61 = vld [vmem:[%s14591_s21 + $0x980] sm:$0xff] }
 0x403   : > { %3088 = vmatmul.mubr.f32.gmra.mrb[30].mxu0 %v2591_v17  ;;  %2923 = vmatmul.mubr.f32.gmra.mrb[26].mxu1 %v2591_v17  ;;  %v10629_v17 = vld [vmem:[%s14591_s21 + $0x8e8] sm:$0xff] }
 0x404   : > { %12688 = vmatpush1.bf16.msra.mxu1 %v12687_v14  ;;  %12758 = vmatpush1.bf16.msra.mxu0 %v12757_v15  ;;  %v2597_v59 = vpop.f32.mrb[22].mxu1  ;;  %v15299_v2 = vpop.f32.mrb[26].mxu0  ;;  %v12766_v14 = vpack.c.bf16 %v10625_v8, %v10622_v1  ;;  %v10626_v15 = vld [vmem:[%s14591_s21 + $0x8d0] sm:$0xff]  ;;  %v10644_v1 = vld [vmem:[%s14591_s21 + $0x960] sm:$0xff] }
 0x405   : > { %12690 = vmatprep.subr.bf16.mxu1 %v12689_v21  ;;  %12759 = vmatprep.subr.bf16.mxu0 %v14560_v19  ;;  %v2599_v45 = vpop.f32.mrb[23].mxu1  ;;  %v15305_v50 = vpop.f32.mrb[27].mxu0  ;;  %v10628_v21 = vld [vmem:[%s14591_s21 + $0x8e0] sm:$0xff]  ;;  %v12703_v24 = vpack.c.bf16 %v10629_v17, %v10626_v15  ;;  %v10654_v15 = vld [vmem:[%s14591_s21 + $0x9b0] sm:$0xff] }
 0x406   : > { %3092 = vmatprep.mubr.f32.mxu0 %v2599_v45  ;;  %2928 = vmatprep.mubr.f32.mxu1 %v2599_v45  ;;  %v12769_v51 = vpack.c.bf16 %v10631_v22, %v10628_v21  ;;  %v10650_v21 = vld [vmem:[%s14591_s21 + $0x990] sm:$0xff]  ;;  %v10653_v22 = vld [vmem:[%s14591_s21 + $0x9a8] sm:$0xff] }
 0x407   : > { %3093 = vmatmul.mubr.f32.gmra.mrb[32].mxu0 %v2597_v59  ;;  %2929 = vmatmul.mubr.f32.gmra.mrb[28].mxu1 %v2597_v59  ;;  %v10639_v59 = vld [vmem:[%s14591_s21 + $0x938] sm:$0xff] }
 0x408   : > { %12692 = vmatpush1.bf16.msra.mxu1 %v12691_v26  ;;  %12761 = vmatpush1.bf16.msra.mxu0 %v12760_v27  ;;  %v10635_v26 = vld [vmem:[%s14591_s21 + $0x918] sm:$0xff]  ;;  %v10634_v27 = vld [vmem:[%s14591_s21 + $0x910] sm:$0xff] }
 0x409   : > { %12694 = vmatprep.subr.bf16.mxu1 %v12693_v3  ;;  %12762 = vmatprep.subr.bf16.mxu0 %v14560_v19  ;;  %v10642_v3 = vld [vmem:[%s14591_s21 + $0x950] sm:$0xff]  ;;  %v12707_v38 = vpack.c.bf16 %v10635_v26, %v10632_v25  ;;  %v12772_v7 = vpack.c.bf16 %v10637_v56, %v10634_v27  ;;  %v2354_v25 = vld [vmem:[%s14591_s21 + $0x20] sm:$0xff]  ;;  %v2403_v26 = vld [vmem:[%s14591_s21 + $0x1a8] sm:$0xff]  ;;  %v12719_v27 = vpack.c.bf16 %v10653_v22, %v10650_v21 }
 0x40a   : > { %10656 = vmatprep.mubr.msk.f32.mxu1 %vm2842_vm7, %v15283_v11  ;;  %10659 = vmatprep.mubr.msk.f32.mxu0 %vm2842_vm7, %v15283_v11  ;;  %v10636_v11 = vld [vmem:[%s14591_s21 + $0x920] sm:$0xff]  ;;  %v12709_v45 = vpack.c.bf16 %v10642_v3, %v10639_v59 }
 0x40b   : > { %v12705_v5 = vpack.c.bf16 %v10636_v11, %v10633_v49  ;;  %v10652_v11 = vld [vmem:[%s14591_s21 + $0x9a0] sm:$0xff] }
 0x40c   : > { %12696 = vmatpush1.bf16.msra.mxu1 %v12695_v55  ;;  %12764 = vmatpush1.bf16.msra.mxu0 %v12763_v60  ;;  %v10643_v55 = vld [vmem:[%s14591_s21 + $0x958] sm:$0xff]  ;;  %v10645_v60 = vld [vmem:[%s14591_s21 + $0x968] sm:$0xff]  ;;  %v2350_v59 = vld [vmem:[%s14591_s21] sm:$0xff] }
 0x40d   : > { %12698 = vmatprep.subr.bf16.mxu1 %v12697_v63  ;;  %12765 = vmatprep.subr.bf16.mxu0 %v14560_v19  ;;  %v12711_v63 = vpack.c.bf16 %v10641_v53, %v10638_v42  ;;  %v12775_v0 = vpack.c.bf16 %v10643_v55, %v10640_v54  ;;  %v12713_v8 = vpack.c.bf16 %v10648_v61, %v10645_v60  ;;  %v2352_v42 = vld [vmem:[%s14591_s21 + $0x10] sm:$0xff]  ;;  %v2357_v53 = vld [vmem:[%s14591_s21 + $0x38] sm:$0xff]  ;;  %v2406_v55 = vld [vmem:[%s14591_s21 + $0x1c0] sm:$0xff] }
 0x40e   : > { %v2360_v54 = vld [vmem:[%s14591_s21 + $0x50] sm:$0xff]  ;;  %v2409_v60 = vld [vmem:[%s14591_s21 + $0x1d8] sm:$0xff] }
 0x410   : > { %12700 = vmatpush1.bf16.msra.mxu1 %v12699_v13  ;;  %12767 = vmatpush1.bf16.msra.mxu0 %v12766_v14  ;;  %v10649_v13 = vld [vmem:[%s14591_s21 + $0x988] sm:$0xff]  ;;  %v10651_v14 = vld [vmem:[%s14591_s21 + $0x998] sm:$0xff] }
 0x411   : > { %12702 = vmatprep.subr.bf16.mxu1 %v12701_v16  ;;  %12768 = vmatprep.subr.bf16.mxu0 %v14560_v19  ;;  %v12715_v16 = vpack.c.bf16 %v10647_v10, %v10644_v1  ;;  %v12778_v17 = vpack.c.bf16 %v10649_v13, %v10646_v12  ;;  %v12717_v49 = vpack.c.bf16 %v10654_v15, %v10651_v14  ;;  %v2359_v1 = vld [vmem:[%s14591_s21 + $0x48] sm:$0xff]  ;;  %v2361_v10 = vld [vmem:[%s14591_s21 + $0x58] sm:$0xff]  ;;  %v2366_v15 = vld [vmem:[%s14591_s21 + $0x80] sm:$0xff] }
 0x412   : > { %v12787_v12 = vpack.c.bf16 %v2360_v54, %v2357_v53  ;;  %v12891_v13 = vpack.c.bf16 %v2409_v60, %v2406_v55  ;;  %v2363_v14 = vld [vmem:[%s14591_s21 + $0x68] sm:$0xff]  ;;  %v2378_v54 = vld [vmem:[%s14591_s21 + $0xe0] sm:$0xff] }
 0x413   : > { %v2375_v53 = vld [vmem:[%s14591_s21 + $0xc8] sm:$0xff] }
 0x414   : > { %12704 = vmatpush1.bf16.msra.mxu1 %v12703_v24  ;;  %12770 = vmatpush1.bf16.msra.mxu0 %v12769_v51  ;;  %v10655_v24 = vld [vmem:[%s14591_s21 + $0x9b8] sm:$0xff]  ;;  %v2351_v51 = vld [vmem:[%s14591_s21 + $0x8] sm:$0xff] }
 0x415   : > { %12706 = vmatprep.subr.bf16.mxu1 %v12705_v5  ;;  %12771 = vmatprep.subr.bf16.mxu0 %v14560_v19  ;;  %v2400_v5 = vld [vmem:[%s14591_s21 + $0x190] sm:$0xff]  ;;  %v12781_v56 = vpack.c.bf16 %v10655_v24, %v10652_v11  ;;  %v12783_v3 = vpack.c.bf16 %v2354_v25, %v2351_v51  ;;  %v12791_v11 = vpack.c.bf16 %v2366_v15, %v2363_v14  ;;  %v2367_v25 = vld [vmem:[%s14591_s21 + $0x88] sm:$0xff]  ;;  %v2430_v14 = vld [vmem:[%s14591_s21 + $0x280] sm:$0xff] }
 0x416   : > { %v2364_v51 = vld [vmem:[%s14591_s21 + $0x70] sm:$0xff]  ;;  %v2427_v55 = vld [vmem:[%s14591_s21 + $0x268] sm:$0xff] }
 0x418   : > { %12708 = vmatpush1.bf16.msra.mxu1 %v12707_v38  ;;  %12773 = vmatpush1.bf16.msra.mxu0 %v12772_v7  ;;  %v12887_v38 = vpack.c.bf16 %v2403_v26, %v2400_v5  ;;  %v2353_v7 = vld [vmem:[%s14591_s21 + $0x18] sm:$0xff]  ;;  %v2372_v26 = vld [vmem:[%s14591_s21 + $0xb0] sm:$0xff] }
 0x419   : > { %12710 = vmatprep.subr.bf16.mxu1 %v12709_v45  ;;  %12774 = vmatprep.subr.bf16.mxu0 %v14560_v19  ;;  %v2355_v45 = vld [vmem:[%s14591_s21 + $0x28] sm:$0xff]  ;;  %v12785_v61 = vpack.c.bf16 %v2353_v7, %v2350_v59  ;;  %v2369_v5 = vld [vmem:[%s14591_s21 + $0x98] sm:$0xff]  ;;  %v12897_v59 = vpack.c.bf16 %v2367_v25, %v2364_v51  ;;  %v2390_v51 = vld [vmem:[%s14591_s21 + $0x140] sm:$0xff] }
 0x41a   : > { %v12795_v7 = vpack.c.bf16 %v2372_v26, %v2369_v5  ;;  %v2436_v25 = vld [vmem:[%s14591_s21 + $0x2b0] sm:$0xff]  ;;  %v2439_v5 = vld [vmem:[%s14591_s21 + $0x2c8] sm:$0xff] }
 0x41c   : > { %12712 = vmatpush1.bf16.msra.mxu1 %v12711_v63  ;;  %12776 = vmatpush1.bf16.msra.mxu0 %v12775_v0  ;;  %v12889_v63 = vpack.c.bf16 %v2355_v45, %v2352_v42  ;;  %v2356_v0 = vld [vmem:[%s14591_s21 + $0x30] sm:$0xff]  ;;  %v2373_v45 = vld [vmem:[%s14591_s21 + $0xb8] sm:$0xff] }
 0x41d   : > { %12714 = vmatprep.subr.bf16.mxu1 %v12713_v8  ;;  %12777 = vmatprep.subr.bf16.mxu0 %v14560_v19  ;;  %v2358_v8 = vld [vmem:[%s14591_s21 + $0x40] sm:$0xff]  ;;  %v12789_v21 = vpack.c.bf16 %v2359_v1, %v2356_v0  ;;  %v2377_v1 = vld [vmem:[%s14591_s21 + $0xd8] sm:$0xff] }
 0x41e   : > { %v12893_v22 = vpack.c.bf16 %v2361_v10, %v2358_v8  ;;  %v2374_v0 = vld [vmem:[%s14591_s21 + $0xc0] sm:$0xff]  ;;  %v2379_v10 = vld [vmem:[%s14591_s21 + $0xe8] sm:$0xff] }
 0x41f   : > { %v12801_v15 = vpack.c.bf16 %v2377_v1, %v2374_v0  ;;  %v2397_v1 = vld [vmem:[%s14591_s21 + $0x178] sm:$0xff] }
 0x420   : > { %12716 = vmatpush1.bf16.msra.mxu1 %v12715_v16  ;;  %12779 = vmatpush1.bf16.msra.mxu0 %v12778_v17  ;;  %v2412_v16 = vld [vmem:[%s14591_s21 + $0x1f0] sm:$0xff]  ;;  %v2415_v17 = vld [vmem:[%s14591_s21 + $0x208] sm:$0xff] }
 0x421   : > { %12718 = vmatprep.subr.bf16.mxu1 %v12717_v49  ;;  %12780 = vmatprep.subr.bf16.mxu0 %v14560_v19  ;;  %v2365_v49 = vld [vmem:[%s14591_s21 + $0x78] sm:$0xff]  ;;  %v12895_v24 = vpack.c.bf16 %v2415_v17, %v2412_v16 }
 0x424   : > { %12720 = vmatpush1.bf16.msra.mxu1 %v12719_v27  ;;  %12782 = vmatpush1.bf16.msra.mxu0 %v12781_v56  ;;  %v2418_v27 = vld [vmem:[%s14591_s21 + $0x220] sm:$0xff] }
 0x425   : > { %12784 = vmatprep.subr.bf16.mxu1 %v12783_v3  ;;  %12888 = vmatprep.subr.bf16.mxu0 %v12887_v38  ;;  %v2368_v3 = vld [vmem:[%s14591_s21 + $0x90] sm:$0xff]  ;;  %v2370_v38 = vld [vmem:[%s14591_s21 + $0xa0] sm:$0xff] }
 0x427   : > { %3000 = vmatmul.mubr.f32.vlgmr.msra.gmra.mrb[24].mxu1 %v15278_v62  ;;  %3163 = vmatmul.mubr.f32.vlgmr.msra.gmra.mrb[34].mxu0 %v15278_v62  ;;  %v2362_v62 = vld [vmem:[%s14591_s21 + $0x60] sm:$0xff] }
 0x428   : > { %12786 = vmatpush1.bf16.msra.mxu1 %v12785_v61  ;;  %12890 = vmatpush3.bf16.msra.mxu0 %v12889_v63  ;;  %v12793_v56 = vpack.c.bf16 %v2365_v49, %v2362_v62  ;;  %v12901_v61 = vpack.c.bf16 %v2373_v45, %v2370_v38  ;;  %v12799_v63 = vpack.c.bf16 %v2378_v54, %v2375_v53  ;;  %v2382_v62 = vld [vmem:[%s14591_s21 + $0x100] sm:$0xff]  ;;  %v2391_v38 = vld [vmem:[%s14591_s21 + $0x148] sm:$0xff]  ;;  %v2445_v53 = vld [vmem:[%s14591_s21 + $0x2f8] sm:$0xff] }
 0x429   : > { %10657 = vmatprep.mubr.msk.f32.mxu1 %vm2842_vm7, %v15294_v52  ;;  %10660 = vmatprep.mubr.msk.f32.mxu0 %vm2842_vm7, %v15294_v52  ;;  %v2421_v52 = vld [vmem:[%s14591_s21 + $0x238] sm:$0xff]  ;;  %v2442_v45 = vld [vmem:[%s14591_s21 + $0x2e0] sm:$0xff] }
 0x42a   : > { %12788 = vmatprep.subr.bf16.mxu1 %v12787_v12  ;;  %12892 = vmatprep.subr.bf16.mxu0 %v12891_v13  ;;  %v12899_v42 = vpack.c.bf16 %v2421_v52, %v2418_v27  ;;  %v2381_v12 = vld [vmem:[%s14591_s21 + $0xf8] sm:$0xff]  ;;  %v2384_v13 = vld [vmem:[%s14591_s21 + $0x110] sm:$0xff]  ;;  %v12915_v0 = vpack.c.bf16 %v2445_v53, %v2442_v45 }
 0x42b   : > { %3006 = vmatmul.mubr.f32.gmra.mrb[26].mxu1 %v15288_v18  ;;  %3168 = vmatmul.mubr.f32.gmra.mrb[36].mxu0 %v15288_v18  ;;  %v2371_v18 = vld [vmem:[%s14591_s21 + $0xa8] sm:$0xff]  ;;  %v12803_v17 = vpack.c.bf16 %v2384_v13, %v2381_v12 }
 0x42c   : > { %12790 = vmatpush1.bf16.msra.mxu1 %v12789_v21  ;;  %12894 = vmatpush3.bf16.msra.mxu0 %v12893_v22  ;;  %v12797_v60 = vpack.c.bf16 %v2371_v18, %v2368_v3  ;;  %v2380_v21 = vld [vmem:[%s14591_s21 + $0xf0] sm:$0xff]  ;;  %v2383_v22 = vld [vmem:[%s14591_s21 + $0x108] sm:$0xff]  ;;  %v12911_v18 = vpack.c.bf16 %v2439_v5, %v2436_v25  ;;  %v2457_v25 = vld [vmem:[%s14591_s21 + $0x358] sm:$0xff] }
 0x42d   : > { %10658 = vmatprep.mubr.msk.f32.mxu1 %vm2842_vm7, %v15305_v50  ;;  %10661 = vmatprep.mubr.msk.f32.mxu0 %vm2842_vm7, %v15305_v50  ;;  %v2424_v50 = vld [vmem:[%s14591_s21 + $0x250] sm:$0xff]  ;;  %v12805_v26 = vpack.c.bf16 %v2383_v22, %v2380_v21  ;;  %v2411_v5 = vld [vmem:[%s14591_s21 + $0x1e8] sm:$0xff] }
 0x42e   : > { %12792 = vmatprep.subr.bf16.mxu1 %v12791_v11  ;;  %12896 = vmatprep.subr.bf16.mxu0 %v12895_v24  ;;  %v12903_v8 = vpack.c.bf16 %v2427_v55, %v2424_v50  ;;  %v2385_v11 = vld [vmem:[%s14591_s21 + $0x118] sm:$0xff]  ;;  %v2387_v24 = vld [vmem:[%s14591_s21 + $0x128] sm:$0xff]  ;;  %v2388_v3 = vld [vmem:[%s14591_s21 + $0x130] sm:$0xff] }
 0x42f   : > { %3012 = vmatmul.mubr.f32.gmra.mrb[28].mxu1 %v15299_v2  ;;  %3173 = vmatmul.mubr.f32.gmra.mrb[38].mxu0 %v15299_v2  ;;  %v2376_v2 = vld [vmem:[%s14591_s21 + $0xd0] sm:$0xff]  ;;  %v12909_v27 = vpack.c.bf16 %v2385_v11, %v2382_v62  ;;  %v12807_v52 = vpack.c.bf16 %v2390_v51, %v2387_v24  ;;  %v12913_v50 = vpack.c.bf16 %v2391_v38, %v2388_v3  ;;  %v2407_v11 = vld [vmem:[%s14591_s21 + $0x1c8] sm:$0xff]  ;;  %v2454_v51 = vld [vmem:[%s14591_s21 + $0x340] sm:$0xff] }
 0x430   : > { %12794 = vmatpush1.bf16.msra.mxu1 %v12793_v56  ;;  %3251 = vmatprep.mubr.f32.mxu1 %v15251_v31  ;;  %v12905_v16 = vpack.c.bf16 %v2379_v10, %v2376_v2  ;;  %v2386_v56 = vld [vmem:[%s14591_s21 + $0x120] sm:$0xff]  ;;  %v2399_v2 = vld [vmem:[%s14591_s21 + $0x188] sm:$0xff]  ;;  %v2408_v21 = vld [vmem:[%s14591_s21 + $0x1d0] sm:$0xff] }
 0x431   : > { %12898 = vmatpush3.bf16.msra.mxu0 %v12897_v59  ;;  %3417 = vmatprep.mubr.f32.mxu0 %v15251_v31  ;;  %v2433_v31 = vld [vmem:[%s14591_s21 + $0x298] sm:$0xff]  ;;  %v2463_v38 = vld [vmem:[%s14591_s21 + $0x388] sm:$0xff] }
 0x432   : > { %12796 = vmatprep.subr.bf16.mxu1 %v12795_v7  ;;  %12900 = vmatprep.subr.bf16.mxu0 %v12899_v42  ;;  %v12907_v49 = vpack.c.bf16 %v2433_v31, %v2430_v14  ;;  %v2389_v59 = vld [vmem:[%s14591_s21 + $0x138] sm:$0xff]  ;;  %v2396_v42 = vld [vmem:[%s14591_s21 + $0x170] sm:$0xff]  ;;  %v2398_v14 = vld [vmem:[%s14591_s21 + $0x180] sm:$0xff] }
 0x433   : > { %v2393_v7 = vld [vmem:[%s14591_s21 + $0x158] sm:$0xff]  ;;  %v12809_v54 = vpack.c.bf16 %v2389_v59, %v2386_v56  ;;  %v2410_v56 = vld [vmem:[%s14591_s21 + $0x1e0] sm:$0xff] }
 0x434   : > { %12798 = vmatpush1.bf16.msra.mxu1 %v12797_v60  ;;  %v12811_v55 = vpack.c.bf16 %v2396_v42, %v2393_v7  ;;  %v2392_v60 = vld [vmem:[%s14591_s21 + $0x150] sm:$0xff]  ;;  %v2401_v31 = vld [vmem:[%s14591_s21 + $0x198] sm:$0xff] }
 0x435   : > { %12902 = vmatpush3.bf16.msra.mxu0 %v12901_v61  ;;  %12800 = vmatprep.subr.bf16.mxu1 %v12799_v63  ;;  %v2395_v61 = vld [vmem:[%s14591_s21 + $0x168] sm:$0xff]  ;;  %v2394_v63 = vld [vmem:[%s14591_s21 + $0x160] sm:$0xff]  ;;  %v12817_v22 = vpack.c.bf16 %v2401_v31, %v2398_v14  ;;  %v2413_v59 = vld [vmem:[%s14591_s21 + $0x1f8] sm:$0xff] }
 0x436   : > { %12904 = vmatprep.subr.bf16.mxu0 %v12903_v8  ;;  %v2402_v8 = vld [vmem:[%s14591_s21 + $0x1a0] sm:$0xff]  ;;  %v12813_v10 = vpack.c.bf16 %v2395_v61, %v2392_v60  ;;  %v12917_v12 = vpack.c.bf16 %v2397_v1, %v2394_v63  ;;  %v2417_v7 = vld [vmem:[%s14591_s21 + $0x218] sm:$0xff]  ;;  %v2420_v42 = vld [vmem:[%s14591_s21 + $0x230] sm:$0xff]  ;;  %v12825_v45 = vpack.c.bf16 %v2413_v59, %v2410_v56 }
 0x437   : > { %v12815_v13 = vpack.c.bf16 %v2402_v8, %v2399_v2  ;;  %v12827_v60 = vpack.c.bf16 %v2420_v42, %v2417_v7  ;;  %v2469_v61 = vld [vmem:[%s14591_s21 + $0x3b8] sm:$0xff]  ;;  %v2423_v63 = vld [vmem:[%s14591_s21 + $0x248] sm:$0xff]  ;;  %v2484_v56 = vld [vmem:[%s14591_s21 + $0x430] sm:$0xff] }
 0x438   : > { %12802 = vmatpush1.bf16.msra.mxu1 %v12801_v15  ;;  %v2448_v15 = vld [vmem:[%s14591_s21 + $0x310] sm:$0xff]  ;;  %v2475_v14 = vld [vmem:[%s14591_s21 + $0x3e8] sm:$0xff]  ;;  %v2429_v31 = vld [vmem:[%s14591_s21 + $0x278] sm:$0xff] }
 0x439   : > { %12906 = vmatpush3.bf16.msra.mxu0 %v12905_v16  ;;  %12804 = vmatprep.subr.bf16.mxu1 %v12803_v17  ;;  %v2451_v16 = vld [vmem:[%s14591_s21 + $0x328] sm:$0xff]  ;;  %v2405_v17 = vld [vmem:[%s14591_s21 + $0x1b8] sm:$0xff] }
 0x43a   : > { %12908 = vmatprep.subr.bf16.mxu0 %v12907_v49  ;;  %v12920_v62 = vpack.c.bf16 %v2451_v16, %v2448_v15  ;;  %v2404_v49 = vld [vmem:[%s14591_s21 + $0x1b0] sm:$0xff]  ;;  %v12819_v24 = vpack.c.bf16 %v2408_v21, %v2405_v17  ;;  %v2487_v59 = vld [vmem:[%s14591_s21 + $0x448] sm:$0xff] }
 0x43b   : > { %v2432_v15 = vld [vmem:[%s14591_s21 + $0x290] sm:$0xff]  ;;  %v12938_v7 = vpack.c.bf16 %v2487_v59, %v2484_v56  ;;  %v2471_v59 = vld [vmem:[%s14591_s21 + $0x3c8] sm:$0xff] }
 0x43c   : > { %12806 = vmatpush1.bf16.msra.mxu1 %v12805_v26  ;;  %v2414_v26 = vld [vmem:[%s14591_s21 + $0x200] sm:$0xff]  ;;  %v12835_v21 = vpack.c.bf16 %v2432_v15, %v2429_v31 }
 0x43d   : > { %12910 = vmatpush3.bf16.msra.mxu0 %v12909_v27  ;;  %12808 = vmatprep.subr.bf16.mxu1 %v12807_v52  ;;  %v12821_v27 = vpack.c.bf16 %v2407_v11, %v2404_v49  ;;  %v12923_v52 = vpack.c.bf16 %v2457_v25, %v2454_v51  ;;  %v12823_v3 = vpack.c.bf16 %v2414_v26, %v2411_v5  ;;  %v2478_v49 = vld [vmem:[%s14591_s21 + $0x400] sm:$0xff]  ;;  %v2481_v11 = vld [vmem:[%s14591_s21 + $0x418] sm:$0xff] }
 0x43e   : > { %12912 = vmatprep.subr.bf16.mxu0 %v12911_v18  ;;  %v2460_v18 = vld [vmem:[%s14591_s21 + $0x370] sm:$0xff]  ;;  %v2438_v51 = vld [vmem:[%s14591_s21 + $0x2c0] sm:$0xff]  ;;  %v12935_v5 = vpack.c.bf16 %v2481_v11, %v2478_v49 }
 0x43f   : > { %v12926_v53 = vpack.c.bf16 %v2463_v38, %v2460_v18  ;;  %v2444_v18 = vld [vmem:[%s14591_s21 + $0x2f0] sm:$0xff]  ;;  %v2462_v49 = vld [vmem:[%s14591_s21 + $0x380] sm:$0xff] }
 0x440   : > { %12810 = vmatpush1.bf16.msra.mxu1 %v12809_v54  ;;  %v2416_v54 = vld [vmem:[%s14591_s21 + $0x210] sm:$0xff] }
 0x441   : > { %12914 = vmatpush3.bf16.msra.mxu0 %v12913_v50  ;;  %12812 = vmatprep.subr.bf16.mxu1 %v12811_v55  ;;  %v2419_v50 = vld [vmem:[%s14591_s21 + $0x228] sm:$0xff]  ;;  %v2466_v55 = vld [vmem:[%s14591_s21 + $0x3a0] sm:$0xff] }
 0x442   : > { %12916 = vmatprep.subr.bf16.mxu0 %v12915_v0  ;;  %v2426_v0 = vld [vmem:[%s14591_s21 + $0x260] sm:$0xff]  ;;  %v12829_v1 = vpack.c.bf16 %v2419_v50, %v2416_v54  ;;  %v12929_v2 = vpack.c.bf16 %v2469_v61, %v2466_v55  ;;  %v2493_v50 = vld [vmem:[%s14591_s21 + $0x478] sm:$0xff]  ;;  %v2447_v55 = vld [vmem:[%s14591_s21 + $0x308] sm:$0xff] }
 0x443   : > { %v12831_v8 = vpack.c.bf16 %v2426_v0, %v2423_v63  ;;  %v2490_v54 = vld [vmem:[%s14591_s21 + $0x460] sm:$0xff] }
 0x444   : > { %12814 = vmatpush1.bf16.msra.mxu1 %v12813_v10  ;;  %v2422_v10 = vld [vmem:[%s14591_s21 + $0x240] sm:$0xff]  ;;  %v12941_v63 = vpack.c.bf16 %v2493_v50, %v2490_v54  ;;  %v10668_v54 = vld [vmem:[%s14596_s25 + $0x30] sm:$0xff] }
 0x445   : > { %12918 = vmatpush3.bf16.msra.mxu0 %v12917_v12  ;;  %12816 = vmatprep.subr.bf16.mxu1 %v12815_v13  ;;  %v2425_v12 = vld [vmem:[%s14591_s21 + $0x258] sm:$0xff]  ;;  %v2472_v13 = vld [vmem:[%s14591_s21 + $0x3d0] sm:$0xff] }
 0x446   : > { %12919 = vmatprep.subr.bf16.mxu0 %v14560_v19  ;;  %v12833_v16 = vpack.c.bf16 %v2425_v12, %v2422_v10  ;;  %v12932_v17 = vpack.c.bf16 %v2475_v14, %v2472_v13  ;;  %v2499_v10 = vld [vmem:[%s14591_s21 + $0x4a8] sm:$0xff]  ;;  %v2453_v12 = vld [vmem:[%s14591_s21 + $0x338] sm:$0xff]  ;;  %v2456_v13 = vld [vmem:[%s14591_s21 + $0x350] sm:$0xff] }
 0x447   : > { %v12851_v15 = vpack.c.bf16 %v2456_v13, %v2453_v12  ;;  %v2494_v13 = vld [vmem:[%s14591_s21 + $0x480] sm:$0xff] }
 0x448   : > { %3418 = vmatmul.mubr.f32.vlgmr.msra.gmra.mrb[40].mxu0 %v15247_v20  ;;  %12818 = vmatpush1.bf16.msra.mxu1 %v12817_v22  ;;  %v2428_v22 = vld [vmem:[%s14591_s21 + $0x270] sm:$0xff] }
 0x449   : > { %3422 = vmatprep.mubr.f32.mxu0 %v15259_v35  ;;  %12921 = vmatpush1.bf16.msra.mxu0 %v12920_v62  ;;  %v2431_v62 = vld [vmem:[%s14591_s21 + $0x288] sm:$0xff] }
 0x44a   : > { %12820 = vmatprep.subr.bf16.mxu1 %v12819_v24  ;;  %12922 = vmatprep.subr.bf16.mxu0 %v14560_v19  ;;  %v2435_v24 = vld [vmem:[%s14591_s21 + $0x2a8] sm:$0xff]  ;;  %v12837_v25 = vpack.c.bf16 %v2431_v62, %v2428_v22  ;;  %v2505_v22 = vld [vmem:[%s14591_s21 + $0x4d8] sm:$0xff] }
 0x44b   : > { %v12839_v26 = vpack.c.bf16 %v2438_v51, %v2435_v24  ;;  %v2459_v62 = vld [vmem:[%s14591_s21 + $0x368] sm:$0xff] }
 0x44c   : > { %3423 = vmatmul.mubr.f32.gmra.mrb[42].mxu0 %v15255_v33  ;;  %12822 = vmatpush1.bf16.msra.mxu1 %v12821_v27  ;;  %v2434_v27 = vld [vmem:[%s14591_s21 + $0x2a0] sm:$0xff]  ;;  %v12855_v51 = vpack.c.bf16 %v2462_v49, %v2459_v62 }
 0x44d   : > { %3427 = vmatprep.mubr.f32.mxu0 %v15268_v41  ;;  %12924 = vmatpush1.bf16.msra.mxu0 %v12923_v52  ;;  %v2437_v52 = vld [vmem:[%s14591_s21 + $0x2b8] sm:$0xff] }
 0x44e   : > { %12824 = vmatprep.subr.bf16.mxu1 %v12823_v3  ;;  %12925 = vmatprep.subr.bf16.mxu0 %v14560_v19  ;;  %v2441_v3 = vld [vmem:[%s14591_s21 + $0x2d8] sm:$0xff]  ;;  %v12841_v38 = vpack.c.bf16 %v2437_v52, %v2434_v27  ;;  %v2464_v27 = vld [vmem:[%s14591_s21 + $0x390] sm:$0xff]  ;;  %v2467_v52 = vld [vmem:[%s14591_s21 + $0x3a8] sm:$0xff] }
 0x44f   : > { %v12843_v42 = vpack.c.bf16 %v2444_v18, %v2441_v3  ;;  %v2474_v3 = vld [vmem:[%s14591_s21 + $0x3e0] sm:$0xff]  ;;  %v2473_v18 = vld [vmem:[%s14591_s21 + $0x3d8] sm:$0xff] }
 0x450   : > { %3428 = vmatmul.mubr.f32.gmra.mrb[44].mxu0 %v15263_v37  ;;  %12826 = vmatpush1.bf16.msra.mxu1 %v12825_v45  ;;  %v2440_v45 = vld [vmem:[%s14591_s21 + $0x2d0] sm:$0xff] }
 0x451   : > { %12927 = vmatpush1.bf16.msra.mxu0 %v12926_v53  ;;  %10665 = vmatprep.mubr.msk.f32.mxu0 %vm2842_vm7, %v15253_v32  ;;  %v2443_v53 = vld [vmem:[%s14591_s21 + $0x2e8] sm:$0xff] }
 0x452   : > { %12828 = vmatprep.subr.bf16.mxu1 %v12827_v60  ;;  %12928 = vmatprep.subr.bf16.mxu0 %v14560_v19  ;;  %v2450_v60 = vld [vmem:[%s14591_s21 + $0x320] sm:$0xff]  ;;  %v12845_v61 = vpack.c.bf16 %v2443_v53, %v2440_v45 }
 0x453   : > { %v12847_v0 = vpack.c.bf16 %v2450_v60, %v2447_v55  ;;  %v2486_v45 = vld [vmem:[%s14591_s21 + $0x440] sm:$0xff]  ;;  %v2489_v60 = vld [vmem:[%s14591_s21 + $0x458] sm:$0xff] }
 0x454   : > { %12830 = vmatpush1.bf16.msra.mxu1 %v12829_v1  ;;  %v2446_v1 = vld [vmem:[%s14591_s21 + $0x300] sm:$0xff] }
 0x455   : > { %12930 = vmatpush1.bf16.msra.mxu0 %v12929_v2  ;;  %12832 = vmatprep.subr.bf16.mxu1 %v12831_v8  ;;  %v2449_v2 = vld [vmem:[%s14591_s21 + $0x318] sm:$0xff]  ;;  %v2496_v8 = vld [vmem:[%s14591_s21 + $0x490] sm:$0xff]  ;;  %v2482_v55 = vld [vmem:[%s14591_s21 + $0x420] sm:$0xff] }
 0x456   : > { %12931 = vmatprep.subr.bf16.mxu0 %v14560_v19  ;;  %v12849_v14 = vpack.c.bf16 %v2449_v2, %v2446_v1  ;;  %v12944_v31 = vpack.c.bf16 %v2499_v10, %v2496_v8  ;;  %v2491_v1 = vld [vmem:[%s14591_s21 + $0x468] sm:$0xff]  ;;  %v10669_v2 = vld [vmem:[%s14596_s25 + $0x38] sm:$0xff]  ;;  %v2498_v10 = vld [vmem:[%s14591_s21 + $0x4a0] sm:$0xff] }
 0x457   : > { %v2495_v8 = vld [vmem:[%s14591_s21 + $0x488] sm:$0xff] }
 0x458   : > { %12834 = vmatpush1.bf16.msra.mxu1 %v12833_v16  ;;  %v2452_v16 = vld [vmem:[%s14591_s21 + $0x330] sm:$0xff]  ;;  %v12879_v12 = vpack.c.bf16 %v2498_v10, %v2495_v8  ;;  %v10726_v10 = vld [vmem:[%s14591_s21 + $0xb28] sm:$0xff] }
 0x459   : > { %12933 = vmatpush1.bf16.msra.mxu0 %v12932_v17  ;;  %12836 = vmatprep.subr.bf16.mxu1 %v12835_v21  ;;  %v2455_v17 = vld [vmem:[%s14591_s21 + $0x348] sm:$0xff]  ;;  %v2502_v21 = vld [vmem:[%s14591_s21 + $0x4c0] sm:$0xff] }
 0x45a   : > { %12934 = vmatprep.subr.bf16.mxu0 %v14560_v19  ;;  %v12853_v11 = vpack.c.bf16 %v2455_v17, %v2452_v16  ;;  %v12947_v24 = vpack.c.bf16 %v2505_v22, %v2502_v21  ;;  %v2503_v17 = vld [vmem:[%s14591_s21 + $0x4c8] sm:$0xff]  ;;  %v10685_v22 = vld [vmem:[%s14591_s21 + $0x9e0] sm:$0xff] }
 0x45b   : > { %v10682_v21 = vld [vmem:[%s14591_s21 + $0x9c8] sm:$0xff]  ;;  %v12885_v62 = vpack.c.bf16 %v2503_v17, %v2500_v6  ;;  %v10737_v17 = vld [vmem:[%s14591_s21 + $0xb80] sm:$0xff] }
 0x45c   : > { %12838 = vmatpush1.bf16.msra.mxu1 %v12837_v25  ;;  %v2458_v25 = vld [vmem:[%s14591_s21 + $0x360] sm:$0xff]  ;;  %v12969_v49 = vpack.c.bf16 %v10685_v22, %v10682_v21  ;;  %v10740_v21 = vld [vmem:[%s14591_s21 + $0xb98] sm:$0xff] }
 0x45d   : > { %12936 = vmatpush1.bf16.msra.mxu0 %v12935_v5  ;;  %12840 = vmatprep.subr.bf16.mxu1 %v12839_v26  ;;  %v2461_v5 = vld [vmem:[%s14591_s21 + $0x378] sm:$0xff] }
 0x45e   : > { %12937 = vmatprep.subr.bf16.mxu0 %v14560_v19  ;;  %v2465_v26 = vld [vmem:[%s14591_s21 + $0x398] sm:$0xff] }
 0x460   : > { %12842 = vmatpush1.bf16.msra.mxu1 %v12841_v38  ;;  %v2480_v38 = vld [vmem:[%s14591_s21 + $0x410] sm:$0xff] }
 0x461   : > { %12939 = vmatpush1.bf16.msra.mxu0 %v12938_v7  ;;  %12844 = vmatprep.subr.bf16.mxu1 %v12843_v42  ;;  %v2479_v42 = vld [vmem:[%s14591_s21 + $0x408] sm:$0xff] }
 0x462   : > { %12940 = vmatprep.subr.bf16.mxu0 %v14560_v19 }
 0x464   : > { %12846 = vmatpush1.bf16.msra.mxu1 %v12845_v61  ;;  %v2492_v61 = vld [vmem:[%s14591_s21 + $0x470] sm:$0xff] }
 0x465   : > { %12942 = vmatpush1.bf16.msra.mxu0 %v12941_v63  ;;  %12848 = vmatprep.subr.bf16.mxu1 %v12847_v0  ;;  %v12875_v63 = vpack.c.bf16 %v2492_v61, %v2489_v60  ;;  %v2488_v0 = vld [vmem:[%s14591_s21 + $0x450] sm:$0xff]  ;;  %v10717_v60 = vld [vmem:[%s14591_s21 + $0xae0] sm:$0xff] }
 0x466   : > { %12943 = vmatprep.subr.bf16.mxu0 %v14560_v19 }
 0x467   : > { %3252 = vmatmul.mubr.f32.vlgmr.msra.gmra.mrb[24].mxu1 %v15247_v20  ;;  %v2468_v20 = vld [vmem:[%s14591_s21 + $0x3b0] sm:$0xff] }
 0x468   : > { %3257 = vmatprep.mubr.f32.mxu1 %v15259_v35  ;;  %12850 = vmatpush1.bf16.msra.mxu1 %v12849_v14  ;;  %v12857_v35 = vpack.c.bf16 %v2461_v5, %v2458_v25  ;;  %v12859_v56 = vpack.c.bf16 %v2468_v20, %v2465_v26  ;;  %v10670_v14 = vld [vmem:[%s14596_s25 + $0x40] sm:$0xff]  ;;  %v10691_v25 = vld [vmem:[%s14591_s21 + $0xa10] sm:$0xff] }
 0x469   : > { %12945 = vmatpush1.bf16.msra.mxu0 %v12944_v31  ;;  %12852 = vmatprep.subr.bf16.mxu1 %v12851_v15  ;;  %v2501_v31 = vld [vmem:[%s14591_s21 + $0x4b8] sm:$0xff]  ;;  %v2504_v15 = vld [vmem:[%s14591_s21 + $0x4d0] sm:$0xff] }
 0x46a   : > { %12946 = vmatprep.subr.bf16.mxu0 %v14560_v19  ;;  %v10687_v20 = vld [vmem:[%s14591_s21 + $0x9f0] sm:$0xff] }
 0x46b   : > { %3258 = vmatmul.mubr.f32.gmra.mrb[26].mxu1 %v15255_v33  ;;  %v12861_v33 = vpack.c.bf16 %v2467_v52, %v2464_v27  ;;  %v10694_v27 = vld [vmem:[%s14591_s21 + $0xa28] sm:$0xff]  ;;  %v10697_v52 = vld [vmem:[%s14591_s21 + $0xa40] sm:$0xff] }
 0x46c   : > { %3263 = vmatprep.mubr.f32.mxu1 %v15268_v41  ;;  %12854 = vmatpush1.bf16.msra.mxu1 %v12853_v11  ;;  %v12863_v41 = vpack.c.bf16 %v2474_v3, %v2471_v59  ;;  %v10681_v11 = vld [vmem:[%s14591_s21 + $0x9c0] sm:$0xff]  ;;  %v12977_v59 = vpack.c.bf16 %v10697_v52, %v10694_v27  ;;  %v10735_v27 = vld [vmem:[%s14591_s21 + $0xb70] sm:$0xff] }
 0x46d   : > { %12948 = vmatpush1.bf16.msra.mxu0 %v12947_v24  ;;  %12856 = vmatprep.subr.bf16.mxu1 %v12855_v51  ;;  %v10684_v24 = vld [vmem:[%s14591_s21 + $0x9d8] sm:$0xff]  ;;  %v10693_v3 = vld [vmem:[%s14591_s21 + $0xa20] sm:$0xff] }
 0x46e   : > { %12950 = vmatprep.subr.bf16.mxu0 %v15059_v23  ;;  %v2470_v23 = vld [vmem:[%s14591_s21 + $0x3c0] sm:$0xff]  ;;  %v10688_v51 = vld [vmem:[%s14591_s21 + $0x9f8] sm:$0xff]  ;;  %v12971_v5 = vpack.c.bf16 %v10684_v24, %v10681_v11 }
 0x46f   : > { %3264 = vmatmul.mubr.f32.gmra.mrb[28].mxu1 %v15263_v37  ;;  %v2477_v37 = vld [vmem:[%s14591_s21 + $0x3f8] sm:$0xff]  ;;  %v12973_v26 = vpack.c.bf16 %v10691_v25, %v10688_v51  ;;  %v10689_v11 = vld [vmem:[%s14591_s21 + $0xa00] sm:$0xff]  ;;  %v10739_v25 = vld [vmem:[%s14591_s21 + $0xb90] sm:$0xff] }
 0x470   : > { %3498 = vmatmul.mubr.f32.vlgmr.msra.gmra.mrb[46].mxu0 %v15249_v30  ;;  %12858 = vmatpush1.bf16.msra.mxu1 %v12857_v35  ;;  %v12867_v7 = vpack.c.bf16 %v2480_v38, %v2477_v37  ;;  %v10690_v35 = vld [vmem:[%s14591_s21 + $0xa08] sm:$0xff]  ;;  %v10709_v38 = vld [vmem:[%s14591_s21 + $0xaa0] sm:$0xff]  ;;  %v10692_v24 = vld [vmem:[%s14591_s21 + $0xa18] sm:$0xff] }
 0x471   : > { %10662 = vmatprep.mubr.msk.f32.mxu1 %vm2842_vm7, %v15253_v32  ;;  %10666 = vmatprep.mubr.msk.f32.mxu0 %vm2842_vm7, %v15261_v36  ;;  %v12865_v32 = vpack.c.bf16 %v2473_v18, %v2470_v23  ;;  %v10699_v18 = vld [vmem:[%s14591_s21 + $0xa50] sm:$0xff]  ;;  %v10736_v51 = vld [vmem:[%s14591_s21 + $0xb78] sm:$0xff] }
 0x472   : > { %12952 = vmatpush1.bf16.msra.mxu0 %v15043_v57  ;;  %12860 = vmatprep.subr.bf16.mxu1 %v12859_v56  ;;  %v2476_v57 = vld [vmem:[%s14591_s21 + $0x3f0] sm:$0xff]  ;;  %v12975_v56 = vpack.c.bf16 %v10690_v35, %v10687_v20  ;;  %v10746_v20 = vld [vmem:[%s14591_s21 + $0xbc8] sm:$0xff] }
 0x473   : > { %12955 = vmatprep.subr.msk.bf16.mxu0 %vm15084_vm5, %v15088_v28  ;;  %v2483_v28 = vld [vmem:[%s14591_s21 + $0x428] sm:$0xff]  ;;  %v12869_v53 = vpack.c.bf16 %v2479_v42, %v2476_v57  ;;  %v10712_v42 = vld [vmem:[%s14591_s21 + $0xab8] sm:$0xff] }
 0x474   : > { %3503 = vmatmul.mubr.f32.gmra.mrb[48].mxu0 %v15257_v34  ;;  %12862 = vmatpush1.bf16.msra.mxu1 %v12861_v33  ;;  %v12871_v50 = vpack.c.bf16 %v2486_v45, %v2483_v28  ;;  %v10696_v33 = vld [vmem:[%s14591_s21 + $0xa38] sm:$0xff]  ;;  %v10715_v28 = vld [vmem:[%s14591_s21 + $0xad0] sm:$0xff] }
 0x475   : > { %10667 = vmatprep.mubr.msk.f32.mxu0 %vm2842_vm7, %v15273_v47  ;;  %12864 = vmatprep.subr.bf16.mxu1 %v12863_v41  ;;  %v10703_v41 = vld [vmem:[%s14591_s21 + $0xa70] sm:$0xff]  ;;  %v12989_v45 = vpack.c.bf16 %v10715_v28, %v10712_v42  ;;  %v10744_v42 = vld [vmem:[%s14591_s21 + $0xbb8] sm:$0xff] }
 0x476   : > { %12958 = vmatpush1.bf16.msk.msra.mxu0 %vm15084_vm5, %v15079_v9  ;;  %v2485_v9 = vld [vmem:[%s14591_s21 + $0x438] sm:$0xff] }
 0x477   : > { %12960 = vmatprep.subr.bf16.mxu0 %v15061_v48  ;;  %v12873_v48 = vpack.c.bf16 %v2485_v9, %v2482_v55  ;;  %v10718_v55 = vld [vmem:[%s14591_s21 + $0xae8] sm:$0xff]  ;;  %v10721_v9 = vld [vmem:[%s14591_s21 + $0xb00] sm:$0xff]  ;;  %v10748_v28 = vld [vmem:[%s14591_s21 + $0xbd8] sm:$0xff] }
 0x478   : > { %3508 = vmatmul.mubr.f32.gmra.mrb[50].mxu0 %v15266_v40  ;;  %12866 = vmatpush1.bf16.msra.mxu1 %v12865_v32  ;;  %v12993_v61 = vpack.c.bf16 %v10721_v9, %v10718_v55  ;;  %v10710_v55 = vld [vmem:[%s14591_s21 + $0xaa8] sm:$0xff] }
 0x479   : > { %3590 = vmatprep.mubr.f32.mxu0 %v14559_v39  ;;  %12868 = vmatprep.subr.bf16.mxu1 %v12867_v7  ;;  %v10708_v7 = vld [vmem:[%s14591_s21 + $0xa98] sm:$0xff] }
 0x47c   : > { %10673 = vmatmul.mubr.msk.f32.vlgmr.msra.gmra.mrb[52].mxu0 %vm2161_vm6, %v10668_v54  ;;  %12870 = vmatpush1.bf16.msra.mxu1 %v12869_v53  ;;  %v10711_v53 = vld [vmem:[%s14591_s21 + $0xab0] sm:$0xff] }
 0x47d   : > { %12962 = vmatpush1.bf16.msra.mxu0 %v15045_v58  ;;  %12872 = vmatprep.subr.bf16.mxu1 %v12871_v50  ;;  %v12877_v58 = vpack.c.bf16 %v2491_v1, %v2488_v0  ;;  %v10727_v0 = vld [vmem:[%s14591_s21 + $0xb30] sm:$0xff] }
 0x47e   : > { %12965 = vmatprep.subr.msk.bf16.mxu0 %vm15084_vm5, %v15090_v29  ;;  %3596 = vmatprep.mubr.f32.mxu0 %v14559_v39  ;;  %v2497_v29 = vld [vmem:[%s14591_s21 + $0x498] sm:$0xff] }
 0x47f   : > { %v12881_v16 = vpack.c.bf16 %v2497_v29, %v2494_v13  ;;  %v10730_v13 = vld [vmem:[%s14591_s21 + $0xb48] sm:$0xff]  ;;  %v10733_v29 = vld [vmem:[%s14591_s21 + $0xb60] sm:$0xff] }
 0x480   : > { %12874 = vmatpush1.bf16.msra.mxu1 %v12873_v48  ;;  %10674 = vmatmul.mubr.msk.f32.gmra.mrb[54].mxu0 %vm2161_vm6, %v10669_v2  ;;  %v10720_v48 = vld [vmem:[%s14591_s21 + $0xaf8] sm:$0xff]  ;;  %v13001_v22 = vpack.c.bf16 %v10733_v29, %v10730_v13  ;;  %v10763_v29 = vld [vmem:[%s14591_s21 + $0xc50] sm:$0xff] }
 0x481   : > { %12968 = vmatpush1.bf16.msk.msra.mxu0 %vm15084_vm5, %v15081_v4  ;;  %12876 = vmatprep.subr.bf16.mxu1 %v12875_v63  ;;  %v12883_v4 = vpack.c.bf16 %v2504_v15, %v2501_v31  ;;  %v10724_v63 = vld [vmem:[%s14591_s21 + $0xb18] sm:$0xff]  ;;  %v12995_v1 = vpack.c.bf16 %v10720_v48, %v10717_v60  ;;  %v10683_v31 = vld [vmem:[%s14591_s21 + $0x9d0] sm:$0xff]  ;;  %v10686_v15 = vld [vmem:[%s14591_s21 + $0x9e8] sm:$0xff]  ;;  %vm8663_vm5 = vcmask 1046528  }
 0x482   : > { %3602 = vmatprep.mubr.f32.mxu0 %v14559_v39  ;;  %v12997_v8 = vpack.c.bf16 %v10727_v0, %v10724_v63  ;;  %v13075_v6 = vpack.c.bf16 %v10686_v15, %v10683_v31  ;;  %v10750_v48 = vld [vmem:[%s14591_s21 + $0xbe8] sm:$0xff]  ;;  %v10757_v0 = vld [vmem:[%s14591_s21 + $0xc20] sm:$0xff]  ;;  %v10760_v13 = vld [vmem:[%s14591_s21 + $0xc38] sm:$0xff] }
 0x483   : > { %v10754_v63 = vld [vmem:[%s14591_s21 + $0xc08] sm:$0xff]  ;;  %v13021_v31 = vpack.c.bf16 %v10763_v29, %v10760_v13  ;;  %v10764_v15 = vld [vmem:[%s14591_s21 + $0xc58] sm:$0xff] }
 0x484   : > { %12878 = vmatpush1.bf16.msra.mxu1 %v12877_v58  ;;  %10675 = vmatmul.mubr.msk.f32.gmra.mrb[56].mxu0 %vm2161_vm6, %v10670_v14  ;;  %v10731_v58 = vld [vmem:[%s14591_s21 + $0xb50] sm:$0xff] }
 0x485   : > { %12880 = vmatprep.subr.bf16.mxu1 %v12879_v12  ;;  %3673 = vmatprep.mubr.f32.mxu0 %v14559_v39  ;;  %v10734_v12 = vld [vmem:[%s14591_s21 + $0xb68] sm:$0xff] }
 0x488   : > { %12882 = vmatpush1.bf16.msra.mxu1 %v12881_v16  ;;  %10678 = vmatmul.mubr.msk.f32.vlgmr.msra.gmra.mrb[58].mxu0 %vm2161_vm6, %v10668_v54  ;;  %v10714_v54 = vld [vmem:[%s14591_s21 + $0xac8] sm:$0xff] }
 0x489   : > { %12884 = vmatprep.subr.bf16.mxu1 %v12883_v4  ;;  %3679 = vmatprep.mubr.f32.mxu0 %v14559_v39  ;;  %v12991_v50 = vpack.c.bf16 %v10714_v54, %v10711_v53  ;;  %v10729_v4 = vld [vmem:[%s14591_s21 + $0xb40] sm:$0xff] }
 0x48c   : > { %12886 = vmatpush1.bf16.msra.mxu1 %v12885_v62  ;;  %10679 = vmatmul.mubr.msk.f32.gmra.mrb[60].mxu0 %vm2161_vm6, %v10669_v2  ;;  %v10723_v2 = vld [vmem:[%s14591_s21 + $0xb10] sm:$0xff]  ;;  %v10732_v62 = vld [vmem:[%s14591_s21 + $0xb58] sm:$0xff] }
 0x48d   : > { %3685 = vmatprep.mubr.f32.mxu0 %v14559_v39  ;;  %12970 = vmatprep.subr.bf16.mxu1 %v12969_v49  ;;  %v12999_v16 = vpack.c.bf16 %v10726_v10, %v10723_v2  ;;  %v13077_v49 = vpack.c.bf16 %v10740_v21, %v10737_v17  ;;  %v13003_v35 = vpack.c.bf16 %v10732_v62, %v10729_v4  ;;  %v10753_v10 = vld [vmem:[%s14591_s21 + $0xc00] sm:$0xff]  ;;  %v10762_v4 = vld [vmem:[%s14591_s21 + $0xc48] sm:$0xff] }
 0x48e   : > { %v10713_v21 = vld [vmem:[%s14591_s21 + $0xac0] sm:$0xff] }
 0x48f   : > { %3335 = vmatmul.mubr.f32.vlgmr.msra.gmra.mrb[24].mxu1 %v15249_v30  ;;  %v12979_v30 = vpack.c.bf16 %v10696_v33, %v10693_v3  ;;  %v13005_v3 = vpack.c.bf16 %v10739_v25, %v10736_v51  ;;  %v10738_v33 = vld [vmem:[%s14591_s21 + $0xb88] sm:$0xff] }
 0x490   : > { %10663 = vmatprep.mubr.msk.f32.mxu1 %vm2842_vm7, %v15261_v36  ;;  %10680 = vmatmul.mubr.msk.f32.gmra.mrb[62].mxu0 %vm2161_vm6, %v10670_v14  ;;  %v10700_v36 = vld [vmem:[%s14591_s21 + $0xa58] sm:$0xff]  ;;  %v13073_v14 = vpack.c.bf16 %v10734_v12, %v10731_v58  ;;  %v10770_v25 = vld [vmem:[%s14591_s21 + $0xc88] sm:$0xff]  ;;  %vm8659_vm6 = vcmask 56320  }
 0x491   : > { %12972 = vmatpush1.bf16.msra.mxu1 %v12971_v5  ;;  %v12981_v23 = vpack.c.bf16 %v10703_v41, %v10700_v36  ;;  %v13079_v5 = vpack.c.bf16 %v10692_v24, %v10689_v11  ;;  %v10752_v36 = vld [vmem:[%s14591_s21 + $0xbf8] sm:$0xff]  ;;  %v10742_v41 = vld [vmem:[%s14591_s21 + $0xba8] sm:$0xff]  ;;  %v10769_v11 = vld [vmem:[%s14591_s21 + $0xc80] sm:$0xff] }
 0x492   : > { %12974 = vmatprep.subr.bf16.mxu1 %v12973_v26  ;;  %13074 = vmatprep.subr.bf16.mxu0 %v13073_v14  ;;  %v10743_v26 = vld [vmem:[%s14591_s21 + $0xbb0] sm:$0xff]  ;;  %v10756_v58 = vld [vmem:[%s14591_s21 + $0xc18] sm:$0xff]  ;;  %v10761_v14 = vld [vmem:[%s14591_s21 + $0xc40] sm:$0xff] }
 0x493   : > { %3341 = vmatmul.mubr.f32.gmra.mrb[26].mxu1 %v15257_v34  ;;  %v10702_v34 = vld [vmem:[%s14591_s21 + $0xa68] sm:$0xff]  ;;  %13076 = vmatpush3.bf16.msra.mxu0 %v13075_v6  ;;  %v13081_v52 = vpack.c.bf16 %v10746_v20, %v10743_v26  ;;  %v13019_v12 = vpack.c.bf16 %v10756_v58, %v10753_v10  ;;  %v13093_v6 = vpack.c.bf16 %v10764_v15, %v10761_v14  ;;  %v10767_v24 = vld [vmem:[%s14591_s21 + $0xc70] sm:$0xff]  ;;  %v10768_v26 = vld [vmem:[%s14591_s21 + $0xc78] sm:$0xff] }
 0x494   : > { %10664 = vmatprep.mubr.msk.f32.mxu1 %vm2842_vm7, %v15273_v47  ;;  %v12983_v37 = vpack.c.bf16 %v10702_v34, %v10699_v18  ;;  %v10706_v47 = vld [vmem:[%s14591_s21 + $0xa88] sm:$0xff]  ;;  %13078 = vmatprep.subr.bf16.mxu0 %v13077_v49  ;;  %v13097_v20 = vpack.c.bf16 %v10770_v25, %v10767_v24 }
 0x495   : > { %12976 = vmatpush1.bf16.msra.mxu1 %v12975_v56  ;;  %v12985_v32 = vpack.c.bf16 %v10709_v38, %v10706_v47  ;;  %v10695_v56 = vld [vmem:[%s14591_s21 + $0xa30] sm:$0xff]  ;;  %v10704_v47 = vld [vmem:[%s14591_s21 + $0xa78] sm:$0xff]  ;;  %v13007_v38 = vpack.c.bf16 %v10738_v33, %v10735_v27  ;;  %v10766_v49 = vld [vmem:[%s14591_s21 + $0xc68] sm:$0xff] }
 0x496   : > { %12978 = vmatprep.subr.bf16.mxu1 %v12977_v59  ;;  %v10698_v59 = vld [vmem:[%s14591_s21 + $0xa48] sm:$0xff]  ;;  %v13025_v51 = vpack.c.bf16 %v10769_v11, %v10766_v49  ;;  %v10719_v27 = vld [vmem:[%s14591_s21 + $0xaf0] sm:$0xff]  ;;  %v10773_v33 = vld [vmem:[%s14591_s21 + $0xca0] sm:$0xff] }
 0x497   : > { %3347 = vmatmul.mubr.f32.gmra.mrb[28].mxu1 %v15266_v40  ;;  %v10705_v40 = vld [vmem:[%s14591_s21 + $0xa80] sm:$0xff]  ;;  %13080 = vmatpush3.bf16.msra.mxu0 %v13079_v5  ;;  %v13083_v18 = vpack.c.bf16 %v10698_v59, %v10695_v56  ;;  %v10772_v59 = vld [vmem:[%s14591_s21 + $0xc98] sm:$0xff] }
 0x498   : > { %v12987_v57 = vpack.c.bf16 %v10708_v7, %v10705_v40  ;;  %13082 = vmatprep.subr.bf16.mxu0 %v13081_v52  ;;  %v10758_v40 = vld [vmem:[%s14591_s21 + $0xc28] sm:$0xff]  ;;  %v10765_v5 = vld [vmem:[%s14591_s21 + $0xc60] sm:$0xff] }
 0x499   : > { %12980 = vmatpush1.bf16.msra.mxu1 %v12979_v30  ;;  %v10749_v30 = vld [vmem:[%s14591_s21 + $0xbe0] sm:$0xff]  ;;  %v10722_v52 = vld [vmem:[%s14591_s21 + $0xb08] sm:$0xff] }
 0x49a   : > { %12982 = vmatprep.subr.bf16.mxu1 %v12981_v23  ;;  %v10745_v23 = vld [vmem:[%s14591_s21 + $0xbc0] sm:$0xff]  ;;  %v13085_v34 = vpack.c.bf16 %v10752_v36, %v10749_v30  ;;  %v13099_v56 = vpack.c.bf16 %v10722_v52, %v10719_v27  ;;  %v10776_v36 = vld [vmem:[%s14591_s21 + $0xcb8] sm:$0xff]  ;;  %v10779_v27 = vld [vmem:[%s14591_s21 + $0xcd0] sm:$0xff] }
 0x49b   : > { %v13009_v7 = vpack.c.bf16 %v10745_v23, %v10742_v41  ;;  %13084 = vmatpush3.bf16.msra.mxu0 %v13083_v18  ;;  %v10771_v41 = vld [vmem:[%s14591_s21 + $0xc90] sm:$0xff]  ;;  %v10774_v23 = vld [vmem:[%s14591_s21 + $0xca8] sm:$0xff]  ;;  %v13101_v18 = vpack.c.bf16 %v10776_v36, %v10773_v33 }
 0x49c   : > { %13086 = vmatprep.subr.bf16.mxu0 %v13085_v34  ;;  %v13031_v34 = vpack.c.bf16 %v10774_v23, %v10771_v41  ;;  %v10782_v52 = vld [vmem:[%s14591_s21 + $0xce8] sm:$0xff]  ;;  %v10783_v36 = vld [vmem:[%s14591_s21 + $0xcf0] sm:$0xff] }
 0x49d   : > { %12984 = vmatpush1.bf16.msra.mxu1 %v12983_v37  ;;  %v10701_v37 = vld [vmem:[%s14591_s21 + $0xa60] sm:$0xff] }
 0x49e   : > { %12986 = vmatprep.subr.bf16.mxu1 %v12985_v32  ;;  %v10755_v32 = vld [vmem:[%s14591_s21 + $0xc10] sm:$0xff]  ;;  %v13087_v53 = vpack.c.bf16 %v10704_v47, %v10701_v37  ;;  %v10725_v37 = vld [vmem:[%s14591_s21 + $0xb20] sm:$0xff]  ;;  %v10728_v47 = vld [vmem:[%s14591_s21 + $0xb38] sm:$0xff] }
 0x49f   : > { %v13089_v54 = vpack.c.bf16 %v10758_v40, %v10755_v32  ;;  %v10778_v32 = vld [vmem:[%s14591_s21 + $0xcc8] sm:$0xff]  ;;  %v10781_v40 = vld [vmem:[%s14591_s21 + $0xce0] sm:$0xff] }
 0x4a0   : > { %13088 = vmatpush3.bf16.msra.mxu0 %v13087_v53 }
 0x4a1   : > { %12988 = vmatpush1.bf16.msra.mxu1 %v12987_v57  ;;  %v10741_v57 = vld [vmem:[%s14591_s21 + $0xba0] sm:$0xff]  ;;  %13090 = vmatprep.subr.bf16.mxu0 %v13089_v54 }
 0x4a2   : > { %12990 = vmatprep.subr.bf16.mxu1 %v12989_v45  ;;  %v10751_v45 = vld [vmem:[%s14591_s21 + $0xbf0] sm:$0xff]  ;;  %v13011_v9 = vpack.c.bf16 %v10744_v42, %v10741_v57 }
 0x4a3   : > { %v13013_v60 = vpack.c.bf16 %v10751_v45, %v10748_v28 }
 0x4a5   : > { %12992 = vmatpush1.bf16.msra.mxu1 %v12991_v50  ;;  %v10707_v50 = vld [vmem:[%s14591_s21 + $0xa90] sm:$0xff] }
 0x4a6   : > { %12994 = vmatprep.subr.bf16.mxu1 %v12993_v61  ;;  %v10747_v61 = vld [vmem:[%s14591_s21 + $0xbd0] sm:$0xff] }
 0x4a7   : > { %v13015_v2 = vpack.c.bf16 %v10750_v48, %v10747_v61 }
 0x4a9   : > { %12996 = vmatpush1.bf16.msra.mxu1 %v12995_v1  ;;  %v13091_v1 = vpack.c.bf16 %v10710_v55, %v10707_v50 }
 0x4aa   : > { %12998 = vmatprep.subr.bf16.mxu1 %v12997_v8  ;;  %v13017_v8 = vpack.c.bf16 %v10757_v0, %v10754_v63 }
 0x4ab   : > { %13092 = vmatpush3.bf16.msra.mxu0 %v13091_v1 }
 0x4ac   : > { %13094 = vmatprep.subr.bf16.mxu0 %v13093_v6 }
 0x4ad   : > { %13000 = vmatpush1.bf16.msra.mxu1 %v12999_v16  ;;  %v10759_v16 = vld [vmem:[%s14591_s21 + $0xc30] sm:$0xff] }
 0x4ae   : > { %13002 = vmatprep.subr.bf16.mxu1 %v13001_v22  ;;  %v13023_v17 = vpack.c.bf16 %v10762_v4, %v10759_v16  ;;  %v10716_v22 = vld [vmem:[%s14591_s21 + $0xad8] sm:$0xff] }
 0x4af   : > { %v13095_v62 = vpack.c.bf16 %v10716_v22, %v10713_v21 }
 0x4b1   : > { %13004 = vmatpush1.bf16.msra.mxu1 %v13003_v35  ;;  %13096 = vmatpush3.bf16.msra.mxu0 %v13095_v62  ;;  %v13027_v35 = vpack.c.bf16 %v10768_v26, %v10765_v5  ;;  %v10777_v5 = vld [vmem:[%s14591_s21 + $0xcc0] sm:$0xff] }
 0x4b2   : > { %13006 = vmatprep.subr.bf16.mxu1 %v13005_v3  ;;  %13098 = vmatprep.subr.bf16.mxu0 %v13097_v20  ;;  %v10775_v3 = vld [vmem:[%s14591_s21 + $0xcb0] sm:$0xff] }
 0x4b3   : > { %v13029_v30 = vpack.c.bf16 %v10775_v3, %v10772_v59  ;;  %v10787_v59 = vld [vmem:[%s14591_s21 + $0xd10] sm:$0xff] }
 0x4b5   : > { %13008 = vmatpush1.bf16.msra.mxu1 %v13007_v38  ;;  %13100 = vmatpush3.bf16.msra.mxu0 %v13099_v56  ;;  %v13103_v38 = vpack.c.bf16 %v10728_v47, %v10725_v37  ;;  %v10784_v56 = vld [vmem:[%s14591_s21 + $0xcf8] sm:$0xff]  ;;  %v10790_v47 = vld [vmem:[%s14591_s21 + $0xd28] sm:$0xff] }
 0x4b6   : > { %13010 = vmatprep.subr.bf16.mxu1 %v13009_v7  ;;  %13102 = vmatprep.subr.bf16.mxu0 %v13101_v18  ;;  %v13033_v7 = vpack.c.bf16 %v10781_v40, %v10778_v32  ;;  %v13037_v23 = vpack.c.bf16 %v10787_v59, %v10784_v56  ;;  %v10786_v18 = vld [vmem:[%s14591_s21 + $0xd08] sm:$0xff]  ;;  %v10788_v37 = vld [vmem:[%s14591_s21 + $0xd18] sm:$0xff]  ;;  %v10817_v56 = vld [vmem:[%s14591_s21 + $0xe00] sm:$0xff] }
 0x4b7   : > { %v13039_v32 = vpack.c.bf16 %v10786_v18, %v10783_v36  ;;  %v10818_v18 = vld [vmem:[%s14591_s21 + $0xe08] sm:$0xff] }
 0x4b9   : > { %13012 = vmatpush1.bf16.msra.mxu1 %v13011_v9  ;;  %13104 = vmatpush3.bf16.msra.mxu0 %v13103_v38  ;;  %v10793_v38 = vld [vmem:[%s14591_s21 + $0xd40] sm:$0xff] }
 0x4ba   : > { %13014 = vmatprep.subr.bf16.mxu1 %v13013_v60  ;;  %13105 = vmatprep.subr.bf16.mxu0 %v14560_v19 }
 0x4bd   : > { %13016 = vmatpush1.bf16.msra.mxu1 %v13015_v2 }
 0x4be   : > { %13018 = vmatprep.subr.bf16.mxu1 %v13017_v8 }
 0x4c1   : > { %13020 = vmatpush1.bf16.msra.mxu1 %v13019_v12 }
 0x4c2   : > { %13022 = vmatprep.subr.bf16.mxu1 %v13021_v31 }
 0x4c5   : > { %13024 = vmatpush1.bf16.msra.mxu1 %v13023_v17 }
 0x4c6   : > { %13026 = vmatprep.subr.bf16.mxu1 %v13025_v51 }
 0x4c9   : > { %13028 = vmatpush1.bf16.msra.mxu1 %v13027_v35  ;;  %v10780_v35 = vld [vmem:[%s14591_s21 + $0xcd8] sm:$0xff] }
 0x4ca   : > { %13030 = vmatprep.subr.bf16.mxu1 %v13029_v30  ;;  %v13035_v33 = vpack.c.bf16 %v10780_v35, %v10777_v5  ;;  %v13106_v30 = vpack.c.bf16 %v10782_v52, %v10779_v27  ;;  %v10810_v5 = vld [vmem:[%s14591_s21 + $0xdc8] sm:$0xff]  ;;  %v10812_v35 = vld [vmem:[%s14591_s21 + $0xdd8] sm:$0xff] }
 0x4cb   : > { %v10814_v52 = vld [vmem:[%s14591_s21 + $0xde8] sm:$0xff] }
 0x4cc   : > { %v13057_v36 = vpack.c.bf16 %v10817_v56, %v10814_v52  ;;  %v10871_v52 = vld [vmem:[%s17424_s3 + $0x4d8] sm:$0xff] }
 0x4cd   : > { %13032 = vmatpush1.bf16.msra.mxu1 %v13031_v34  ;;  %v10785_v34 = vld [vmem:[%s14591_s21 + $0xd00] sm:$0xff] }
 0x4ce   : > { %13034 = vmatprep.subr.bf16.mxu1 %v13033_v7  ;;  %v13109_v40 = vpack.c.bf16 %v10788_v37, %v10785_v34  ;;  %v10789_v7 = vld [vmem:[%s14591_s21 + $0xd20] sm:$0xff]  ;;  %v10820_v37 = vld [vmem:[%s14591_s21 + $0xe18] sm:$0xff] }
 0x4d2   : > { %v11521_v57 = vpop.f32.mrb[28].mxu0 }
 0x4d3   : > { %v11522_v42 = vpop.f32.mrb[29].mxu0 }
 0x4d4   : > { %v11523_v28 = vadd.f32 %v11522_v42, %v11521_v57  ;;  %v13041_v42 = vpack.c.bf16 %v10793_v38, %v10790_v47  ;;  %v10823_v47 = vld [vmem:[%s14591_s21 + $0xe30] sm:$0xff] }
 0x4d6   : > { %v11524_v45 = vpop.f32.mrb[30].mxu0 }
 0x4d7   : > { %v11525_v53 = vpop.f32.mrb[31].mxu0 }
 0x4d8   : > { %v11526_v54 = vadd.f32 %v11525_v53, %v11524_v45  ;;  %v10791_v45 = vld [vmem:[%s14591_s21 + $0xd30] sm:$0xff]  ;;  %v10794_v53 = vld [vmem:[%s14591_s21 + $0xd48] sm:$0xff] }
 0x4da   : > { %v11527_v50 = vpop.f32.mrb[32].mxu0 }
 0x4db   : > { %v11528_v55 = vpop.f32.mrb[33].mxu0 }
 0x4dc   : > { %v11529_v9 = vadd.f32 %v11528_v55, %v11527_v50  ;;  %v10796_v50 = vld [vmem:[%s14591_s21 + $0xd58] sm:$0xff]  ;;  %v10799_v55 = vld [vmem:[%s14591_s21 + $0xd70] sm:$0xff] }
 0x4fa   : > { %v3164_v60 = vpop.f32.mrb[34].mxu0 }
 0x4fb   : > { %v3165_v61 = vadd.f32 %v11523_v28, %v3164_v60  ;;  %v3166_v48 = vpop.f32.mrb[35].mxu0  ;;  %v10792_v28 = vld [vmem:[%s14591_s21 + $0xd38] sm:$0xff]  ;;  %v13112_v60 = vpack.c.bf16 %v10794_v53, %v10791_v45  ;;  %v10826_v45 = vld [vmem:[%s14591_s21 + $0xe48] sm:$0xff]  ;;  %v10829_v53 = vld [vmem:[%s14591_s21 + $0xe60] sm:$0xff] }
 0x4fe   : > { %v3169_v63 = vpop.f32.mrb[36].mxu0 }
 0x4ff   : > { %v3170_v0 = vadd.f32 %v11526_v54, %v3169_v63  ;;  %v3171_v1 = vpop.f32.mrb[37].mxu0  ;;  %v13045_v63 = vpack.c.bf16 %v10799_v55, %v10796_v50  ;;  %v10825_v55 = vld [vmem:[%s14591_s21 + $0xe40] sm:$0xff] }
 0x500   : > { %v10797_v1 = vld [vmem:[%s14591_s21 + $0xd60] sm:$0xff] }
 0x502   : > { %v3174_v2 = vpop.f32.mrb[38].mxu0 }
 0x503   : > { %v3175_v8 = vadd.f32 %v11529_v9, %v3174_v2  ;;  %v3176_v10 = vpop.f32.mrb[39].mxu0  ;;  %v13043_v9 = vpack.c.bf16 %v10792_v28, %v10789_v7  ;;  %v10800_v2 = vld [vmem:[%s14591_s21 + $0xd78] sm:$0xff]  ;;  %v13061_v7 = vpack.c.bf16 %v10823_v47, %v10820_v37 }
 0x504   : > { %v10802_v10 = vld [vmem:[%s14591_s21 + $0xd88] sm:$0xff]  ;;  %v10824_v28 = vld [vmem:[%s14591_s21 + $0xe38] sm:$0xff] }
 0x51b   : > { %v11562_v58 = vpop.f32.mrb[40].mxu0 }
 0x51c   : > { %v11563_v12 = vpop.f32.mrb[41].mxu0 }
 0x51d   : > { %v11564_v13 = vadd.f32 %v11563_v12, %v11562_v58  ;;  %v10805_v58 = vld [vmem:[%s14591_s21 + $0xda0] sm:$0xff] }
 0x51f   : > { %v11565_v29 = vpop.f32.mrb[42].mxu0  ;;  %v3420_v14 = vadd.f32 %v11564_v13, %v3165_v61  ;;  %v10795_v61 = vld [vmem:[%s14591_s21 + $0xd50] sm:$0xff]  ;;  %v13115_v13 = vpack.c.bf16 %v10800_v2, %v10797_v1 }
 0x520   : > { %v11566_v31 = vpop.f32.mrb[43].mxu0 }
 0x521   : > { %v11567_v15 = vadd.f32 %v11566_v31, %v11565_v29  ;;  %v10801_v29 = vld [vmem:[%s14591_s21 + $0xd80] sm:$0xff]  ;;  %v13049_v31 = vpack.c.bf16 %v10805_v58, %v10802_v10  ;;  %v10834_v58 = vld [vmem:[%s14591_s21 + $0xe88] sm:$0xff] }
 0x523   : > { %v11568_v16 = vpop.f32.mrb[44].mxu0  ;;  %v3425_v4 = vadd.f32 %v11567_v15, %v3170_v0  ;;  %v10798_v0 = vld [vmem:[%s14591_s21 + $0xd68] sm:$0xff]  ;;  %v10804_v15 = vld [vmem:[%s14591_s21 + $0xd98] sm:$0xff] }
 0x524   : > { %v11569_v6 = vpop.f32.mrb[45].mxu0  ;;  %v13047_v12 = vpack.c.bf16 %v10798_v0, %v10795_v61  ;;  %v10827_v61 = vld [vmem:[%s14591_s21 + $0xe50] sm:$0xff] }
 0x525   : > { %v11570_v17 = vadd.f32 %v11569_v6, %v11568_v16  ;;  %v10803_v16 = vld [vmem:[%s14591_s21 + $0xd90] sm:$0xff] }
 0x526   : > { %v10835_v0 = vld [vmem:[%s14591_s21 + $0xe90] sm:$0xff] }
 0x527   : > { %v3430_v21 = vadd.f32 %v11570_v17, %v3175_v8  ;;  %v10808_v17 = vld [vmem:[%s14591_s21 + $0xdb8] sm:$0xff] }
 0x543   : > { %v3499_v22 = vpop.f32.mrb[46].mxu0 }
 0x544   : > { %v15694_v62 = vadd.f32 %v3499_v22, %v3420_v14  ;;  %v3501_v49 = vpop.f32.mrb[47].mxu0  ;;  %v13051_v22 = vpack.c.bf16 %v10804_v15, %v10801_v29  ;;  %v10910_v15 = vld [vmem:[%s17424_s3 + $0x610] sm:$0xff] }
 0x547   : > { %v3504_v11 = vpop.f32.mrb[48].mxu0 }
 0x548   : > { %v15696_v24 = vadd.f32 %v3504_v11, %v3425_v4  ;;  %v3506_v51 = vpop.f32.mrb[49].mxu0  ;;  %v10806_v4 = vld [vmem:[%s14591_s21 + $0xda8] sm:$0xff]  ;;  %v10807_v11 = vld [vmem:[%s14591_s21 + $0xdb0] sm:$0xff] }
 0x549   : > { %v13118_v49 = vpack.c.bf16 %v10806_v4, %v10803_v16  ;;  %v13055_v59 = vpack.c.bf16 %v10810_v5, %v10807_v11  ;;  %v10913_v16 = vld [vmem:[%s17424_s3 + $0x628] sm:$0xff] }
 0x54b   : > { %v3509_v25 = vpop.f32.mrb[50].mxu0 }
 0x54c   : > { %v15699_v26 = vadd.f32 %v3509_v25, %v3430_v21  ;;  %v3511_v20 = vpop.f32.mrb[51].mxu0  ;;  %v10811_v21 = vld [vmem:[%s14591_s21 + $0xdd0] sm:$0xff] }
 0x54d   : > { %v13053_v25 = vpack.c.bf16 %v10811_v21, %v10808_v17  ;;  %v10809_v20 = vld [vmem:[%s14591_s21 + $0xdc0] sm:$0xff]  ;;  %v10862_v21 = vld [vmem:[%s17424_s3 + $0x490] sm:$0xff] }
 0x54f   : > { %v3592_v3 = vpop.f32.mrb[52].mxu0 }
 0x550   : > { %v3594_v41 = vpop.f32.mrb[53].mxu0 }
 0x551   : > { %3922 = vmatprep.mubr.f32.mxu1 %v3594_v41  ;;  %4088 = vmatprep.mubr.f32.mxu0 %v3594_v41  ;;  %v10816_v41 = vld [vmem:[%s14591_s21 + $0xdf8] sm:$0xff] }
 0x552   : > { %3923 = vmatmul.mubr.f32.vlgmr.msra.gmra.mrb[24].mxu1 %v3592_v3  ;;  %4089 = vmatmul.mubr.f32.vlgmr.msra.gmra.mrb[64].mxu0 %v3592_v3  ;;  %v13121_v3 = vpack.c.bf16 %v10812_v35, %v10809_v20 }
 0x553   : > { %13036 = vmatpush1.bf16.msra.mxu1 %v13035_v33  ;;  %13107 = vmatpush1.bf16.msra.mxu0 %v13106_v30  ;;  %v3598_v57 = vpop.f32.mrb[54].mxu0  ;;  %v10813_v33 = vld [vmem:[%s14591_s21 + $0xde0] sm:$0xff] }
 0x554   : > { %13038 = vmatprep.subr.bf16.mxu1 %v13037_v23  ;;  %13108 = vmatprep.subr.bf16.mxu0 %v14560_v19  ;;  %v3600_v54 = vpop.f32.mrb[55].mxu0  ;;  %v10815_v23 = vld [vmem:[%s14591_s21 + $0xdf0] sm:$0xff]  ;;  %v13059_v38 = vpack.c.bf16 %v10816_v41, %v10813_v33 }
 0x555   : > { %4093 = vmatprep.mubr.f32.mxu0 %v3600_v54  ;;  %3928 = vmatprep.mubr.f32.mxu1 %v3600_v54 }
 0x556   : > { %4094 = vmatmul.mubr.f32.gmra.mrb[66].mxu0 %v3598_v57  ;;  %3929 = vmatmul.mubr.f32.gmra.mrb[26].mxu1 %v3598_v57  ;;  %v10822_v57 = vld [vmem:[%s14591_s21 + $0xe28] sm:$0xff] }
 0x557   : > { %13040 = vmatpush1.bf16.msra.mxu1 %v13039_v32  ;;  %13110 = vmatpush1.bf16.msra.mxu0 %v13109_v40  ;;  %v3604_v48 = vpop.f32.mrb[56].mxu0  ;;  %v13124_v32 = vpack.c.bf16 %v10818_v18, %v10815_v23  ;;  %v10819_v40 = vld [vmem:[%s14591_s21 + $0xe10] sm:$0xff]  ;;  %v10843_v23 = vld [vmem:[%s14601_s29 + $0x1] ss:$4 sm:$0x7] }
 0x558   : > { %13042 = vmatprep.subr.bf16.mxu1 %v13041_v42  ;;  %13111 = vmatprep.subr.bf16.mxu0 %v14560_v19  ;;  %v3606_v8 = vpop.f32.mrb[57].mxu0  ;;  %v10821_v42 = vld [vmem:[%s14591_s21 + $0xe20] sm:$0xff]  ;;  %v13063_v54 = vpack.c.bf16 %v10822_v57, %v10819_v40 }
 0x559   : > { %4098 = vmatprep.mubr.f32.mxu0 %v3606_v8  ;;  %3934 = vmatprep.mubr.f32.mxu1 %v3606_v8  ;;  %v13127_v50 = vpack.c.bf16 %v10824_v28, %v10821_v42  ;;  %v10831_v8 = vld [vmem:[%s14591_s21 + $0xe70] sm:$0xff]  ;;  %v10844_v28 = vld [vmem:[%s14601_s29 + $0x2] ss:$4 sm:$0x7] }
 0x55a   : > { %4099 = vmatmul.mubr.f32.gmra.mrb[68].mxu0 %v3604_v48  ;;  %3935 = vmatmul.mubr.f32.gmra.mrb[28].mxu1 %v3604_v48  ;;  %v10830_v48 = vld [vmem:[%s14591_s21 + $0xe68] sm:$0xff]  ;;  %v13071_v29 = vpack.c.bf16 %v10834_v58, %v10831_v8 }
 0x55b   : > { %13044 = vmatpush1.bf16.msra.mxu1 %v13043_v9  ;;  %13113 = vmatpush1.bf16.msra.mxu0 %v13112_v60  ;;  %v15727_v14 = vpop.f32.mrb[58].mxu0  ;;  %v13065_v9 = vpack.c.bf16 %v10829_v53, %v10826_v45  ;;  %v10828_v60 = vld [vmem:[%s14591_s21 + $0xe58] sm:$0xff]  ;;  %v13130_v2 = vpack.c.bf16 %v10830_v48, %v10827_v61 }
 0x55c   : > { %13046 = vmatprep.subr.bf16.mxu1 %v13045_v63  ;;  %13114 = vmatprep.subr.bf16.mxu0 %v14560_v19  ;;  %v3677_v6 = vpop.f32.mrb[59].mxu0  ;;  %v10832_v63 = vld [vmem:[%s14591_s21 + $0xe78] sm:$0xff]  ;;  %v13067_v1 = vpack.c.bf16 %v10828_v60, %v10825_v55 }
 0x55d   : > { %10837 = vmatprep.mubr.msk.f32.mxu1 %vm2842_vm7, %v3677_v6  ;;  %10840 = vmatprep.mubr.msk.f32.mxu0 %vm2842_vm7, %v3677_v6  ;;  %v13069_v10 = vpack.c.bf16 %v10835_v0, %v10832_v63  ;;  %v13245_v6 = vpack.c.bf16 %v10913_v16, %v10910_v15  ;;  %v4269_v15 = vrot.slane %v10844_v28, %v14979_v44 }
 0x55f   : > { %13048 = vmatpush1.bf16.msra.mxu1 %v13047_v12  ;;  %13116 = vmatpush1.bf16.msra.mxu0 %v13115_v13  ;;  %v15738_v51 = vpop.f32.mrb[60].mxu0  ;;  %v10833_v12 = vld [vmem:[%s14591_s21 + $0xe80] sm:$0xff]  ;;  %v10836_v13 = vld [vmem:[%s14591_s21 + $0xe98] sm:$0xff] }
 0x560   : > { %13050 = vmatprep.subr.bf16.mxu1 %v13049_v31  ;;  %13117 = vmatprep.subr.bf16.mxu0 %v14560_v19  ;;  %v15744_v27 = vpop.f32.mrb[61].mxu0  ;;  %v13133_v31 = vpack.c.bf16 %v10836_v13, %v10833_v12  ;;  %v4265_v13 = vrot.slane %v10844_v28, %v14982_v46 }
 0x563   : > { %13052 = vmatpush1.bf16.msra.mxu1 %v13051_v22  ;;  %13119 = vmatpush1.bf16.msra.mxu0 %v13118_v49  ;;  %v15749_v30 = vpop.f32.mrb[62].mxu0  ;;  %v10865_v22 = vld [vmem:[%s17424_s3 + $0x4a8] sm:$0xff] }
 0x564   : > { %13054 = vmatprep.subr.bf16.mxu1 %v13053_v25  ;;  %13120 = vmatprep.subr.bf16.mxu0 %v14560_v19  ;;  %v3689_v34 = vpop.f32.mrb[63].mxu0  ;;  %v13247_v11 = vpack.c.bf16 %v10865_v22, %v10862_v21  ;;  %v10919_v25 = vld [vmem:[%s17424_s3 + $0x658] sm:$0xff] }
 0x567   : > { %13056 = vmatpush1.bf16.msra.mxu1 %v13055_v59  ;;  %13122 = vmatpush1.bf16.msra.mxu0 %v13121_v3 }
 0x568   : > { %13058 = vmatprep.subr.bf16.mxu1 %v13057_v36  ;;  %13123 = vmatprep.subr.bf16.mxu0 %v14560_v19 }
 0x56b   : > { %13060 = vmatpush1.bf16.msra.mxu1 %v13059_v38  ;;  %13125 = vmatpush1.bf16.msra.mxu0 %v13124_v32 }
 0x56c   : > { %13062 = vmatprep.subr.bf16.mxu1 %v13061_v7  ;;  %13126 = vmatprep.subr.bf16.mxu0 %v14560_v19  ;;  %v4234_v7 = vrot.slane %v10843_v23, %v14977_v43 }
 0x56f   : > { %13064 = vmatpush1.bf16.msra.mxu1 %v13063_v54  ;;  %13128 = vmatpush1.bf16.msra.mxu0 %v13127_v50  ;;  %v4238_v54 = vrot.slane %v10843_v23, %v14982_v46 }
 0x570   : > { %13066 = vmatprep.subr.bf16.mxu1 %v13065_v9  ;;  %13129 = vmatprep.subr.bf16.mxu0 %v14560_v19 }
 0x573   : > { %13068 = vmatpush1.bf16.msra.mxu1 %v13067_v1  ;;  %13131 = vmatpush1.bf16.msra.mxu0 %v13130_v2  ;;  %v4261_v1 = vrot.slane %v10844_v28, %v14977_v43  ;;  %v10861_v28 = vld [vmem:[%s17424_s3 + $0x488] sm:$0xff] }
 0x574   : > { %13070 = vmatprep.subr.bf16.mxu1 %v13069_v10  ;;  %13132 = vmatprep.subr.bf16.mxu0 %v14560_v19  ;;  %v4242_v10 = vrot.slane %v10843_v23, %v14979_v44 }
 0x577   : > { %13072 = vmatpush1.bf16.msra.mxu1 %v13071_v29  ;;  %13134 = vmatpush1.bf16.msra.mxu0 %v13133_v31 }
 0x578   : > { %13246 = vmatprep.subr.bf16.mxu1 %v13245_v6 }
 0x57a   : > { %4006 = vmatmul.mubr.f32.vlgmr.msra.gmra.mrb[24].mxu1 %v15727_v14  ;;  %4169 = vmatmul.mubr.f32.vlgmr.msra.gmra.mrb[70].mxu0 %v15727_v14 }
 0x57b   : > { %10838 = vmatprep.mubr.msk.f32.mxu1 %vm2842_vm7, %v15744_v27  ;;  %10841 = vmatprep.mubr.msk.f32.mxu0 %vm2842_vm7, %v15744_v27  ;;  %v10868_v27 = vld [vmem:[%s17424_s3 + $0x4c0] sm:$0xff] }
 0x57c   : > { %13248 = vmatpush3.bf16.msra.mxu1 %v13247_v11  ;;  %v13251_v59 = vpack.c.bf16 %v10871_v52, %v10868_v27 }
 0x57e   : > { %4012 = vmatmul.mubr.f32.gmra.mrb[26].mxu1 %v15738_v51  ;;  %4174 = vmatmul.mubr.f32.gmra.mrb[72].mxu0 %v15738_v51  ;;  %v10916_v51 = vld [vmem:[%s17424_s3 + $0x640] sm:$0xff] }
 0x57f   : > { %10839 = vmatprep.mubr.msk.f32.mxu1 %vm2842_vm7, %v3689_v34  ;;  %10842 = vmatprep.mubr.msk.f32.mxu0 %vm2842_vm7, %v3689_v34  ;;  %v13249_v20 = vpack.c.bf16 %v10919_v25, %v10916_v51  ;;  %vm8841_vm7 = vcmask 916480  }
 0x581   : > { %13250 = vmatprep.subr.bf16.mxu1 %v13249_v20 }
 0x582   : > { %4018 = vmatmul.mubr.f32.gmra.mrb[28].mxu1 %v15749_v30  ;;  %4179 = vmatmul.mubr.f32.gmra.mrb[74].mxu0 %v15749_v30  ;;  %v4193_v30 = vld [vmem:[%s14601_s29] ss:$4 sm:$0x7] }
 0x583   : > { %4359 = vmatprep.mubr.f32.mxu0 %v14559_v39  ;;  %13252 = vmatpush3.bf16.msra.mxu1 %v13251_v59  ;;  %v4198_v36 = vrot.slane %v4193_v30, %v14977_v43  ;;  %v4202_v41 = vrot.slane %v4193_v30, %v14982_v46  ;;  %v4206_v38 = vrot.slane %v4193_v30, %v14979_v44 }
 0x625   : > { %v11603_v14 = vpop.f32.mrb[64].mxu0 }
 0x626   : > { %v11604_v4 = vpop.f32.mrb[65].mxu0 }
 0x627   : > { %v11605_v17 = vadd.f32 %v11604_v4, %v11603_v14 }
 0x629   : > { %v11606_v49 = vpop.f32.mrb[66].mxu0 }
 0x62a   : > { %v11607_v5 = vpop.f32.mrb[67].mxu0 }
 0x62b   : > { %v11608_v35 = vadd.f32 %v11607_v5, %v11606_v49 }
 0x62d   : > { %v11609_v56 = vpop.f32.mrb[68].mxu0 }
 0x62e   : > { %v11610_v3 = vpop.f32.mrb[69].mxu0 }
 0x62f   : > { %v11611_v33 = vadd.f32 %v11610_v3, %v11609_v56 }
 0x64d   : > { %v4007_v18 = vpop.f32.mrb[24].mxu1  ;;  %v4170_v34 = vpop.f32.mrb[70].mxu0 }
 0x64e   : > { %v4210_v37 = vadd.f32 %v4198_v36, %v4007_v18  ;;  %v4171_v47 = vadd.f32 %v11605_v17, %v4170_v34  ;;  %v4009_v32 = vpop.f32.mrb[25].mxu1  ;;  %v4172_v40 = vpop.f32.mrb[71].mxu0 }
 0x64f   : > { %v4211_v57 = vadd.f32 %v4202_v41, %v4009_v32  ;;  %v4283_v40 = vld [vmem:[%s17421_s8 + $0x8] sm:$0xff] }
 0x650   : > { %v4219_v42 = vmax.f32 %v4210_v37, 0.0  ;;  %v4186_v45 = vadd.f32 %v4171_v47, %v15694_v62 }
 0x651   : > { %v4220_v53 = vmax.f32 %v4211_v57, 0.0  ;;  %v4013_v50 = vpop.f32.mrb[26].mxu1  ;;  %v4175_v55 = vpop.f32.mrb[72].mxu0  ;;  %v4284_v57 = vld [vmem:[%s17421_s8 + $0x10] sm:$0x3f] }
 0x652   : > { %v4212_v9 = vadd.f32 %v4206_v38, %v4186_v45  ;;  %v4213_v60 = vadd.f32 %v4198_v36, %v4013_v50  ;;  %v4176_v61 = vadd.f32 %v11608_v35, %v4175_v55  ;;  %v4015_v48 = vpop.f32.mrb[27].mxu1  ;;  %v4177_v63 = vpop.f32.mrb[73].mxu0  ;;  %v4246_v0 = vmul.f32 %v4234_v7, %v4219_v42  ;;  %v10851_v42 = vld [vmem:[%s17421_s8 + $0x18] sm:$0xff]  ;;  %v10864_v45 = vld [vmem:[%s17424_s3 + $0x4a0] sm:$0xff]  ;;  %v10853_v50 = vld [vmem:[%s17421_s8 + $0x28] sm:$0x3f] }
 0x653   : > { %v4214_v2 = vadd.f32 %v4202_v41, %v4015_v48  ;;  %v4247_v12 = vmul.f32 %v4238_v54, %v4220_v53  ;;  %v10852_v53 = vld [vmem:[%s17421_s8 + $0x20] sm:$0xff] }
 0x654   : > { %v4221_v8 = vmax.f32 %v4212_v9, 0.0  ;;  %v4222_v58 = vmax.f32 %v4213_v60, 0.0  ;;  %v4189_v62 = vadd.f32 %v4176_v61, %v15696_v24  ;;  %v4273_v22 = vadd.f32 %v4261_v1, %v4246_v0  ;;  %v10860_v55 = vld [vmem:[%s17424_s3 + $0x480] sm:$0xff]  ;;  %v10863_v9 = vld [vmem:[%s17424_s3 + $0x498] sm:$0xff]  ;;  %v10870_v61 = vld [vmem:[%s17424_s3 + $0x4d0] sm:$0xff] }
 0x655   : > { %v4223_v29 = vmax.f32 %v4214_v2, 0.0  ;;  %v4019_v31 = vpop.f32.mrb[28].mxu1  ;;  %v4180_v14 = vpop.f32.mrb[74].mxu0  ;;  %v4274_v35 = vadd.f32 %v4265_v13, %v4247_v12  ;;  %v10867_v60 = vld [vmem:[%s17424_s3 + $0x4b8] sm:$0xff]  ;;  %v13151_v48 = vpack.c.bf16 %v10863_v9, %v10860_v55  ;;  %v10866_v0 = vld [vmem:[%s17424_s3 + $0x4b0] sm:$0xff]  ;;  %v10873_v2 = vld [vmem:[%s17424_s3 + $0x4e8] sm:$0xff] }
 0x656   : > { %v4249_v16 = vmul.f32 %v4234_v7, %v4222_v58  ;;  %v4215_v4 = vadd.f32 %v4206_v38, %v4189_v62  ;;  %v4216_v6 = vadd.f32 %v4198_v36, %v4019_v31  ;;  %v4021_v17 = vpop.f32.mrb[29].mxu1  ;;  %v4182_v21 = vpop.f32.mrb[75].mxu0  ;;  %v4181_v11 = vadd.f32 %v11611_v33, %v4180_v14  ;;  %v10872_v62 = vld [vmem:[%s17424_s3 + $0x4e0] sm:$0xff]  ;;  %v10875_v12 = vld [vmem:[%s17424_s3 + $0x4f8] sm:$0xff]  ;;  %v10914_v9 = vld [vmem:[%s17424_s3 + $0x630] sm:$0xff] }
 0x657   : > { %v4250_v49 = vmul.f32 %v4238_v54, %v4223_v29  ;;  %v4217_v51 = vadd.f32 %v4202_v41, %v4021_v17  ;;  %v4248_v25 = vmul.f32 %v4242_v10, %v4221_v8  ;;  %v13153_v63 = vpack.c.bf16 %v10870_v61, %v10867_v60  ;;  %v10876_v8 = vld [vmem:[%s17424_s3 + $0x500] sm:$0xff]  ;;  %v10882_v29 = vld [vmem:[%s17424_s3 + $0x530] sm:$0xff]  ;;  %v10917_v60 = vld [vmem:[%s17424_s3 + $0x648] sm:$0xff] }
 0x658   : > { %v4276_v5 = vadd.f32 %v4261_v1, %v4249_v16  ;;  %v4224_v24 = vmax.f32 %v4215_v4, 0.0  ;;  %v4225_v20 = vmax.f32 %v4216_v6, 0.0  ;;  %v4192_v52 = vadd.f32 %v4181_v11, %v15699_v26  ;;  %v10881_v16 = vld [vmem:[%s17424_s3 + $0x528] sm:$0xff]  ;;  %v10888_v6 = vld [vmem:[%s17424_s3 + $0x560] sm:$0xff]  ;;  %v10891_v11 = vld [vmem:[%s17424_s3 + $0x578] sm:$0xff] }
 0x659   : > { %v4277_v27 = vadd.f32 %v4265_v13, %v4250_v49  ;;  %v4226_v56 = vmax.f32 %v4217_v51, 0.0  ;;  %v4275_v18 = vadd.f32 %v4269_v15, %v4248_v25  ;;  %v13157_v58 = vpack.c.bf16 %v10876_v8, %v10873_v2  ;;  %v10885_v4 = vld [vmem:[%s17424_s3 + $0x548] sm:$0xff]  ;;  %v10887_v49 = vld [vmem:[%s17424_s3 + $0x558] sm:$0xff]  ;;  %v10894_v51 = vld [vmem:[%s17424_s3 + $0x590] sm:$0xff] }
 0x65a   : > { %v15813_v59 = vpack.c.bf16 %v4276_v5, %v4273_v22  ;;  %v4251_v3 = vmul.f32 %v4242_v10, %v4224_v24  ;;  %v4218_v30 = vadd.f32 %v4206_v38, %v4192_v52  ;;  %v4252_v41 = vmul.f32 %v4234_v7, %v4225_v20  ;;  %v4282_v38 = vld [vmem:[%s17421_s8] sm:$0xff]  ;;  %v10890_v24 = vld [vmem:[%s17424_s3 + $0x570] sm:$0xff]  ;;  %v10893_v20 = vld [vmem:[%s17424_s3 + $0x588] sm:$0xff] }
 0x65b   : > { %v4253_v36 = vmul.f32 %v4238_v54, %v4226_v56  ;;  %v15815_v23 = vpack.c.bf16 %v4277_v27, %v4274_v35  ;;  %v13149_v54 = vpack.c.bf16 %v10864_v45, %v10861_v28  ;;  %v13159_v31 = vpack.c.bf16 %v10875_v12, %v10872_v62  ;;  %v10884_v22 = vld [vmem:[%s17424_s3 + $0x540] sm:$0xff]  ;;  %v10897_v35 = vld [vmem:[%s17424_s3 + $0x5a8] sm:$0xff]  ;;  %v10911_v45 = vld [vmem:[%s17424_s3 + $0x618] sm:$0xff] }
 0x65c   : > { %v4278_v33 = vadd.f32 %v4269_v15, %v4251_v3  ;;  %v4227_v37 = vmax.f32 %v4218_v30, 0.0  ;;  %v15824_v47 = vadd.f32 %v4261_v1, %v4252_v41  ;;  %v10869_v1 = vld [vmem:[%s17424_s3 + $0x4c8] sm:$0xff]  ;;  %v13165_v21 = vpack.c.bf16 %v10888_v6, %v10885_v4  ;;  %v10900_v27 = vld [vmem:[%s17424_s3 + $0x5c0] sm:$0xff]  ;;  %v10899_v30 = vld [vmem:[%s17424_s3 + $0x5b8] sm:$0xff] }
 0x65d   : > { %13136 = vmatprep.subr.bf16.mxu0 %v15815_v23  ;;  %v15818_v34 = vadd.f32 %v4265_v13, %v4253_v36  ;;  %v10879_v13 = vld [vmem:[%s17424_s3 + $0x518] sm:$0xff]  ;;  %v13167_v25 = vpack.c.bf16 %v10887_v49, %v10884_v22  ;;  %v13169_v5 = vpack.c.bf16 %v10894_v51, %v10891_v11  ;;  %v13171_v52 = vpack.c.bf16 %v10893_v20, %v10890_v24  ;;  %v10896_v3 = vld [vmem:[%s17424_s3 + $0x5a0] sm:$0xff]  ;;  %v10925_v2 = vld [vmem:[%s17424_s3 + $0x688] sm:$0xff] }
 0x65e   : > { %13138 = vmatpush1.bf16.msra.mxu0 %v15813_v59  ;;  %v15821_v26 = vpack.c.bf16 %v4278_v33, %v4275_v18  ;;  %v4254_v32 = vmul.f32 %v4242_v10, %v4227_v37  ;;  %v13155_v10 = vpack.c.bf16 %v10869_v1, %v10866_v0  ;;  %v13161_v14 = vpack.c.bf16 %v10882_v29, %v10879_v13  ;;  %v10903_v36 = vld [vmem:[%s17424_s3 + $0x5d8] sm:$0xff]  ;;  %v10906_v18 = vld [vmem:[%s17424_s3 + $0x5f0] sm:$0xff]  ;;  %v10908_v28 = vld [vmem:[%s17424_s3 + $0x600] sm:$0xff] }
 0x65f   : > { %4299 = vmatprep.subr.mxu0 %v15818_v34  ;;  %v13173_v56 = vpack.c.bf16 %v10900_v27, %v10897_v35  ;;  %v13175_v33 = vpack.c.bf16 %v10899_v30, %v10896_v3  ;;  %v13177_v41 = vpack.c.bf16 %v10906_v18, %v10903_v36  ;;  %v10902_v37 = vld [vmem:[%s17424_s3 + $0x5d0] sm:$0xff]  ;;  %v13187_v61 = vpack.c.bf16 %v10917_v60, %v10914_v9  ;;  %v10920_v8 = vld [vmem:[%s17424_s3 + $0x660] sm:$0xff]  ;;  %v10877_v13 = vld [vmem:[%s17424_s3 + $0x508] sm:$0xff] }
 0x660   : > { %v15834_v7 = vadd.f32 %v4269_v15, %v4254_v32  ;;  %v10878_v15 = vld [vmem:[%s17424_s3 + $0x510] sm:$0xff]  ;;  %v10909_v32 = vld [vmem:[%s17424_s3 + $0x608] sm:$0xff]  ;;  %v10931_v4 = vld [vmem:[%s17424_s3 + $0x6b8] sm:$0xff] }
 0x661   : > { %v13163_v17 = vpack.c.bf16 %v10881_v16, %v10878_v15  ;;  %v10922_v0 = vld [vmem:[%s17424_s3 + $0x670] sm:$0xff]  ;;  %v10928_v15 = vld [vmem:[%s17424_s3 + $0x6a0] sm:$0xff]  ;;  %v10883_v11 = vld [vmem:[%s17424_s3 + $0x538] sm:$0xff] }
 0x662   : > { %4300 = vmatpush1.msra.mxu0 %v15824_v47  ;;  %v10874_v12 = vld [vmem:[%s17424_s3 + $0x4f0] sm:$0xff]  ;;  %v10880_v49 = vld [vmem:[%s17424_s3 + $0x520] sm:$0xff]  ;;  %v10937_v35 = vld [vmem:[%s17424_s3 + $0x6e8] sm:$0xff] }
 0x663   : > { %10845 = vmatmul.mubr.msk.f32.vlgmr.msra.gmra.mrb[76].mxu0 %vm4285_vm8, %v4282_v38  ;;  %13139 = vmatprep.subr.bf16.mxu0 %v14560_v19  ;;  %v13255_v29 = vpack.c.bf16 %v10877_v13, %v10874_v12  ;;  %v10926_v6 = vld [vmem:[%s17424_s3 + $0x690] sm:$0xff]  ;;  %v13259_v51 = vpack.c.bf16 %v10883_v11, %v10880_v49  ;;  %v10932_v27 = vld [vmem:[%s17424_s3 + $0x6c0] sm:$0xff]  ;;  %v10889_v36 = vld [vmem:[%s17424_s3 + $0x568] sm:$0xff] }
 0x664   : > { %13141 = vmatpush3.bf16.msra.mxu0 %v15821_v26  ;;  %4365 = vmatprep.mubr.f32.mxu0 %v14559_v39  ;;  %v10934_v24 = vld [vmem:[%s17424_s3 + $0x6d0] sm:$0xff]  ;;  %v10952_v12 = vld [vmem:[%s17424_s3 + $0x760] sm:$0xff] }
 0x665   : > { %12006 = vmatprep.subr.mxu0 %v14559_v39  ;;  %v10886_v30 = vld [vmem:[%s17424_s3 + $0x550] sm:$0xff] }
 0x666   : > { %v13263_v18 = vpack.c.bf16 %v10889_v36, %v10886_v30  ;;  %v10946_v9 = vld [vmem:[%s17424_s3 + $0x730] sm:$0xff]  ;;  %v10956_v30 = vld [vmem:[%s17424_s3 + $0x780] sm:$0xff] }
 0x667   : > { %10846 = vmatmul.mubr.msk.f32.gmra.mrb[78].mxu0 %vm4285_vm8, %v4283_v40 }
 0x668   : > { %12007 = vmatpush3.msra.mxu0 %v15834_v7  ;;  %4371 = vmatprep.mubr.f32.mxu0 %v14559_v39 }
 0x669   : > { %13143 = vmatprep.subr.bf16.mxu0 %v15815_v23 }
 0x66b   : > { %10847 = vmatmul.mubr.msk.f32.gmra.mrb[80].mxu0 %vm4285_vm8, %v4284_v57 }
 0x66c   : > { %12008 = vmatprep.mubr.msk.f32.mxu0 %vm14561_vm9, %v14559_v39 }
 0x66f   : > { %12009 = vmatmul.mubr.msk.f32.vlgmr.msra.gmra.mrb[82].mxu0 %vm4285_vm8, %v4282_v38  ;;  %v10905_v38 = vld [vmem:[%s17424_s3 + $0x5e8] sm:$0xff] }
 0x670   : > { %13145 = vmatpush1.bf16.msra.mxu0 %v15813_v59  ;;  %12011 = vmatprep.mubr.msk.f32.mxu0 %vm14561_vm9, %v14559_v39 }
 0x671   : > { %4619 = vmatprep.subr.mxu0 %v15818_v34 }
 0x673   : > { %12012 = vmatmul.mubr.msk.f32.gmra.mrb[84].mxu0 %vm4285_vm8, %v4283_v40  ;;  %v10912_v40 = vld [vmem:[%s17424_s3 + $0x620] sm:$0xff] }
 0x674   : > { %4620 = vmatpush1.msra.mxu0 %v15824_v47  ;;  %12014 = vmatprep.mubr.msk.f32.mxu0 %vm14561_vm9, %v14559_v39 }
 0x675   : > { %13146 = vmatprep.subr.bf16.mxu0 %v14560_v19 }
 0x677   : > { %12015 = vmatmul.mubr.msk.f32.gmra.mrb[86].mxu0 %vm4285_vm8, %v4284_v57  ;;  %v13179_v57 = vpack.c.bf16 %v10905_v38, %v10902_v37  ;;  %v10940_v37 = vld [vmem:[%s17424_s3 + $0x700] sm:$0xff] }
 0x678   : > { %4679 = vmatprep.mubr.f32.mxu0 %v14559_v39 }
 0x67b   : > { %10854 = vmatmul.mubr.msk.f32.vlgmr.msra.gmra.mrb[88].mxu0 %vm4285_vm8, %v10851_v42 }
 0x67c   : > { %13148 = vmatpush3.bf16.msra.mxu0 %v15821_v26  ;;  %4685 = vmatprep.mubr.f32.mxu0 %v14559_v39 }
 0x67d   : > { %12021 = vmatprep.subr.mxu0 %v14559_v39 }
 0x67f   : > { %10855 = vmatmul.mubr.msk.f32.gmra.mrb[90].mxu0 %vm4285_vm8, %v10852_v53 }
 0x680   : > { %12022 = vmatpush3.msra.mxu0 %v15834_v7  ;;  %4691 = vmatprep.mubr.f32.mxu0 %v14559_v39 }
 0x681   : > { %13150 = vmatprep.subr.bf16.mxu0 %v13149_v54  ;;  %v10918_v54 = vld [vmem:[%s17424_s3 + $0x650] sm:$0xff] }
 0x683   : > { %10856 = vmatmul.mubr.msk.f32.gmra.mrb[92].mxu0 %vm4285_vm8, %v10853_v50 }
 0x684   : > { %12023 = vmatprep.mubr.msk.f32.mxu0 %vm14561_vm9, %v14559_v39 }
 0x687   : > { %12024 = vmatmul.mubr.msk.f32.vlgmr.msra.gmra.mrb[94].mxu0 %vm4285_vm8, %v10851_v42  ;;  %v13181_v42 = vpack.c.bf16 %v10912_v40, %v10909_v32  ;;  %v10943_v32 = vld [vmem:[%s17424_s3 + $0x718] sm:$0xff]  ;;  %v10938_v40 = vld [vmem:[%s17424_s3 + $0x6f0] sm:$0xff] }
 0x688   : > { %12026 = vmatprep.mubr.msk.f32.mxu0 %vm14561_vm9, %v14559_v39  ;;  %13152 = vmatpush1.bf16.msra.mxu0 %v13151_v48  ;;  %v10921_v48 = vld [vmem:[%s17424_s3 + $0x668] sm:$0xff] }
 0x689   : > { %13154 = vmatprep.subr.bf16.mxu0 %v13153_v63  ;;  %v10924_v63 = vld [vmem:[%s17424_s3 + $0x680] sm:$0xff] }
 0x68a   : > { %v13189_v1 = vpack.c.bf16 %v10924_v63, %v10921_v48  ;;  %v10944_v48 = vld [vmem:[%s17424_s3 + $0x720] sm:$0xff]  ;;  %v10947_v63 = vld [vmem:[%s17424_s3 + $0x738] sm:$0xff] }
 0x68b   : > { %12027 = vmatmul.mubr.msk.f32.gmra.mrb[96].mxu0 %vm4285_vm8, %v10852_v53  ;;  %v10915_v53 = vld [vmem:[%s17424_s3 + $0x638] sm:$0xff] }
 0x68c   : > { %12029 = vmatprep.mubr.msk.f32.mxu0 %vm14561_vm9, %v14559_v39  ;;  %13156 = vmatpush1.bf16.msra.mxu0 %v13155_v10  ;;  %v13185_v55 = vpack.c.bf16 %v10918_v54, %v10915_v53  ;;  %v10923_v10 = vld [vmem:[%s17424_s3 + $0x678] sm:$0xff] }
 0x68d   : > { %13158 = vmatprep.subr.bf16.mxu0 %v13157_v58  ;;  %v13253_v58 = vpack.c.bf16 %v10925_v2, %v10922_v0  ;;  %v13191_v62 = vpack.c.bf16 %v10923_v10, %v10920_v8  ;;  %v10895_v53 = vld [vmem:[%s17424_s3 + $0x598] sm:$0xff]  ;;  %v10898_v2 = vld [vmem:[%s17424_s3 + $0x5b0] sm:$0xff]  ;;  %v10901_v8 = vld [vmem:[%s17424_s3 + $0x5c8] sm:$0xff] }
 0x68e   : > { %v13271_v10 = vpack.c.bf16 %v10901_v8, %v10898_v2  ;;  %v10970_v2 = vld [vmem:[%s17424_s3 + $0x7f0] sm:$0xff]  ;;  %v10973_v8 = vld [vmem:[%s17424_s3 + $0x808] sm:$0xff] }
 0x68f   : > { %12030 = vmatmul.mubr.msk.f32.gmra.mrb[98].mxu0 %vm4285_vm8, %v10853_v50  ;;  %v13183_v50 = vpack.c.bf16 %v10911_v45, %v10908_v28  ;;  %13254 = vmatprep.subr.bf16.mxu1 %v13253_v58  ;;  %v10892_v45 = vld [vmem:[%s17424_s3 + $0x580] sm:$0xff]  ;;  %v10951_v58 = vld [vmem:[%s17424_s3 + $0x758] sm:$0xff] }
 0x690   : > { %13160 = vmatpush1.bf16.msra.mxu0 %v13159_v31  ;;  %v10927_v31 = vld [vmem:[%s17424_s3 + $0x698] sm:$0xff]  ;;  %13256 = vmatpush3.bf16.msra.mxu1 %v13255_v29  ;;  %v13267_v54 = vpack.c.bf16 %v10895_v53, %v10892_v45  ;;  %v10965_v53 = vld [vmem:[%s17424_s3 + $0x7c8] sm:$0xff] }
 0x691   : > { %13162 = vmatprep.subr.bf16.mxu0 %v13161_v14  ;;  %v10930_v14 = vld [vmem:[%s17424_s3 + $0x6b0] sm:$0xff]  ;;  %v10955_v29 = vld [vmem:[%s17424_s3 + $0x778] sm:$0xff] }
 0x692   : > { %v13193_v16 = vpack.c.bf16 %v10930_v14, %v10927_v31  ;;  %v10950_v31 = vld [vmem:[%s17424_s3 + $0x750] sm:$0xff]  ;;  %v10953_v14 = vld [vmem:[%s17424_s3 + $0x768] sm:$0xff] }
 0x694   : > { %13164 = vmatpush1.bf16.msra.mxu0 %v13163_v17  ;;  %v10929_v17 = vld [vmem:[%s17424_s3 + $0x6a8] sm:$0xff] }
 0x695   : > { %13166 = vmatprep.subr.bf16.mxu0 %v13165_v21  ;;  %v13257_v21 = vpack.c.bf16 %v10931_v4, %v10928_v15  ;;  %v13195_v22 = vpack.c.bf16 %v10929_v17, %v10926_v6  ;;  %v13273_v15 = vpack.c.bf16 %v10955_v29, %v10952_v12  ;;  %v10904_v4 = vld [vmem:[%s17424_s3 + $0x5e0] sm:$0xff]  ;;  %v10907_v6 = vld [vmem:[%s17424_s3 + $0x5f8] sm:$0xff]  ;;  %v10974_v29 = vld [vmem:[%s17424_s3 + $0x810] sm:$0xff] }
 0x696   : > { %v13275_v17 = vpack.c.bf16 %v10907_v6, %v10904_v4  ;;  %v10979_v4 = vld [vmem:[%s17424_s3 + $0x838] sm:$0xff] }
 0x697   : > { %13258 = vmatprep.subr.bf16.mxu1 %v13257_v21  ;;  %v10957_v21 = vld [vmem:[%s17424_s3 + $0x788] sm:$0xff] }
 0x698   : > { %13168 = vmatpush1.bf16.msra.mxu0 %v13167_v25  ;;  %v10933_v25 = vld [vmem:[%s17424_s3 + $0x6c8] sm:$0xff]  ;;  %13260 = vmatpush3.bf16.msra.mxu1 %v13259_v51 }
 0x699   : > { %13170 = vmatprep.subr.bf16.mxu0 %v13169_v5  ;;  %v10936_v5 = vld [vmem:[%s17424_s3 + $0x6e0] sm:$0xff] }
 0x69a   : > { %v13197_v20 = vpack.c.bf16 %v10936_v5, %v10933_v25 }
 0x69c   : > { %13172 = vmatpush1.bf16.msra.mxu0 %v13171_v52  ;;  %v10935_v52 = vld [vmem:[%s17424_s3 + $0x6d8] sm:$0xff] }
 0x69d   : > { %13174 = vmatprep.subr.bf16.mxu0 %v13173_v56  ;;  %v13261_v56 = vpack.c.bf16 %v10937_v35, %v10934_v24  ;;  %v13199_v3 = vpack.c.bf16 %v10935_v52, %v10932_v27 }
 0x69f   : > { %13262 = vmatprep.subr.bf16.mxu1 %v13261_v56 }
 0x6a0   : > { %13176 = vmatpush1.bf16.msra.mxu0 %v13175_v33  ;;  %v10939_v33 = vld [vmem:[%s17424_s3 + $0x6f8] sm:$0xff]  ;;  %13264 = vmatpush3.bf16.msra.mxu1 %v13263_v18 }
 0x6a1   : > { %13178 = vmatprep.subr.bf16.mxu0 %v13177_v41  ;;  %v10942_v41 = vld [vmem:[%s17424_s3 + $0x710] sm:$0xff]  ;;  %v10959_v18 = vld [vmem:[%s17424_s3 + $0x798] sm:$0xff] }
 0x6a2   : > { %v13201_v38 = vpack.c.bf16 %v10942_v41, %v10939_v33  ;;  %v10958_v33 = vld [vmem:[%s17424_s3 + $0x790] sm:$0xff]  ;;  %v10961_v41 = vld [vmem:[%s17424_s3 + $0x7a8] sm:$0xff] }
 0x6a4   : > { %13180 = vmatpush1.bf16.msra.mxu0 %v13179_v57  ;;  %v10941_v57 = vld [vmem:[%s17424_s3 + $0x708] sm:$0xff] }
 0x6a5   : > { %13182 = vmatprep.subr.bf16.mxu0 %v13181_v42  ;;  %v13265_v42 = vpack.c.bf16 %v10943_v32, %v10940_v37  ;;  %v13203_v28 = vpack.c.bf16 %v10941_v57, %v10938_v40  ;;  %v10963_v37 = vld [vmem:[%s17424_s3 + $0x7b8] sm:$0xff]  ;;  %v13215_v40 = vpack.c.bf16 %v10959_v18, %v10956_v30  ;;  %v13278_v57 = vpack.c.bf16 %v10961_v41, %v10958_v33  ;;  %v10982_v18 = vld [vmem:[%s17424_s3 + $0x850] sm:$0xff]  ;;  %v10985_v33 = vld [vmem:[%s17424_s3 + $0x868] sm:$0xff] }
 0x6a7   : > { %13266 = vmatprep.subr.bf16.mxu1 %v13265_v42  ;;  %v10962_v42 = vld [vmem:[%s17424_s3 + $0x7b0] sm:$0xff] }
 0x6a8   : > { %13184 = vmatpush1.bf16.msra.mxu0 %v13183_v50  ;;  %v10945_v50 = vld [vmem:[%s17424_s3 + $0x728] sm:$0xff]  ;;  %13268 = vmatpush3.bf16.msra.mxu1 %v13267_v54  ;;  %v10964_v54 = vld [vmem:[%s17424_s3 + $0x7c0] sm:$0xff] }
 0x6a9   : > { %13186 = vmatprep.subr.bf16.mxu0 %v13185_v55  ;;  %v10948_v55 = vld [vmem:[%s17424_s3 + $0x740] sm:$0xff] }
 0x6aa   : > { %v13205_v60 = vpack.c.bf16 %v10948_v55, %v10945_v50  ;;  %v10967_v50 = vld [vmem:[%s17424_s3 + $0x7d8] sm:$0xff]  ;;  %v10969_v55 = vld [vmem:[%s17424_s3 + $0x7e8] sm:$0xff] }
 0x6ac   : > { %13188 = vmatpush1.bf16.msra.mxu0 %v13187_v61  ;;  %v10949_v61 = vld [vmem:[%s17424_s3 + $0x748] sm:$0xff] }
 0x6ad   : > { %13190 = vmatprep.subr.bf16.mxu0 %v13189_v1  ;;  %v13269_v0 = vpack.c.bf16 %v10949_v61, %v10946_v9  ;;  %v13207_v1 = vpack.c.bf16 %v10947_v63, %v10944_v48  ;;  %v10972_v9 = vld [vmem:[%s17424_s3 + $0x800] sm:$0xff]  ;;  %v13281_v61 = vpack.c.bf16 %v10967_v50, %v10964_v54  ;;  %v10991_v54 = vld [vmem:[%s17424_s3 + $0x898] sm:$0xff] }
 0x6ae   : > { %v10968_v48 = vld [vmem:[%s17424_s3 + $0x7e0] sm:$0xff] }
 0x6af   : > { %13270 = vmatprep.subr.bf16.mxu1 %v13269_v0  ;;  %v13221_v0 = vpack.c.bf16 %v10972_v9, %v10969_v55  ;;  %v10993_v55 = vld [vmem:[%s17424_s3 + $0x8a8] sm:$0xff]  ;;  %v10996_v9 = vld [vmem:[%s17424_s3 + $0x8c0] sm:$0xff] }
 0x6b0   : > { %13192 = vmatpush1.bf16.msra.mxu0 %v13191_v62  ;;  %v10954_v62 = vld [vmem:[%s17424_s3 + $0x770] sm:$0xff]  ;;  %13272 = vmatpush3.bf16.msra.mxu1 %v13271_v10 }
 0x6b1   : > { %13194 = vmatprep.subr.bf16.mxu0 %v13193_v16  ;;  %v13209_v13 = vpack.c.bf16 %v10954_v62, %v10951_v58  ;;  %v13211_v16 = vpack.c.bf16 %v10953_v14, %v10950_v31  ;;  %13274 = vmatprep.subr.bf16.mxu1 %v13273_v15  ;;  %v10975_v58 = vld [vmem:[%s17424_s3 + $0x818] sm:$0xff]  ;;  %v10978_v62 = vld [vmem:[%s17424_s3 + $0x830] sm:$0xff]  ;;  %v10977_v15 = vld [vmem:[%s17424_s3 + $0x828] sm:$0xff] }
 0x6b2   : > { %v13225_v14 = vpack.c.bf16 %v10978_v62, %v10975_v58  ;;  %v10999_v58 = vld [vmem:[%s17424_s3 + $0x8d8] sm:$0xff]  ;;  %v11002_v62 = vld [vmem:[%s17424_s3 + $0x8f0] sm:$0xff] }
 0x6b4   : > { %13196 = vmatpush1.bf16.msra.mxu0 %v13195_v22  ;;  %v10960_v22 = vld [vmem:[%s17424_s3 + $0x7a0] sm:$0xff]  ;;  %13276 = vmatpush3.bf16.msra.mxu1 %v13275_v17  ;;  %v10981_v17 = vld [vmem:[%s17424_s3 + $0x848] sm:$0xff] }
 0x6b5   : > { %13198 = vmatprep.subr.bf16.mxu0 %v13197_v20  ;;  %v13213_v49 = vpack.c.bf16 %v10960_v22, %v10957_v21  ;;  %13277 = vmatprep.subr.bf16.mxu1 %v14560_v19  ;;  %v10984_v21 = vld [vmem:[%s17424_s3 + $0x860] sm:$0xff]  ;;  %v13227_v22 = vpack.c.bf16 %v10977_v15, %v10974_v29  ;;  %v10998_v29 = vld [vmem:[%s17424_s3 + $0x8d0] sm:$0xff] }
 0x6b6   : > { %v13229_v30 = vpack.c.bf16 %v10984_v21, %v10981_v17  ;;  %v11000_v15 = vld [vmem:[%s17424_s3 + $0x8e0] sm:$0xff]  ;;  %v4508_v17 = vld [vmem:[%s17424_s3 + $0x190] sm:$0xff]  ;;  %v4511_v21 = vld [vmem:[%s17424_s3 + $0x1a8] sm:$0xff] }
 0x6b8   : > { %13200 = vmatpush1.bf16.msra.mxu0 %v13199_v3 }
 0x6b9   : > { %13202 = vmatprep.subr.bf16.mxu0 %v13201_v38  ;;  %v10966_v38 = vld [vmem:[%s17424_s3 + $0x7d0] sm:$0xff] }
 0x6ba   : > { %v13217_v45 = vpack.c.bf16 %v10966_v38, %v10963_v37  ;;  %v10987_v37 = vld [vmem:[%s17424_s3 + $0x878] sm:$0xff]  ;;  %v10990_v38 = vld [vmem:[%s17424_s3 + $0x890] sm:$0xff] }
 0x6bc   : > { %13204 = vmatpush1.bf16.msra.mxu0 %v13203_v28 }
 0x6bd   : > { %13206 = vmatprep.subr.bf16.mxu0 %v13205_v60  ;;  %v13219_v60 = vpack.c.bf16 %v10965_v53, %v10962_v42  ;;  %v10988_v53 = vld [vmem:[%s17424_s3 + $0x880] sm:$0xff] }
 0x6c0   : > { %13208 = vmatpush1.bf16.msra.mxu0 %v13207_v1  ;;  %v10971_v1 = vld [vmem:[%s17424_s3 + $0x7f8] sm:$0xff] }
 0x6c1   : > { %13210 = vmatprep.subr.bf16.mxu0 %v13209_v13  ;;  %v13223_v12 = vpack.c.bf16 %v10971_v1, %v10968_v48  ;;  %v13284_v13 = vpack.c.bf16 %v10973_v8, %v10970_v2  ;;  %v10992_v48 = vld [vmem:[%s17424_s3 + $0x8a0] sm:$0xff]  ;;  %v10995_v1 = vld [vmem:[%s17424_s3 + $0x8b8] sm:$0xff]  ;;  %v10994_v2 = vld [vmem:[%s17424_s3 + $0x8b0] sm:$0xff] }
 0x6c2   : > { %v10997_v8 = vld [vmem:[%s17424_s3 + $0x8c8] sm:$0xff] }
 0x6c4   : > { %13212 = vmatpush1.bf16.msra.mxu0 %v13211_v16  ;;  %v10976_v16 = vld [vmem:[%s17424_s3 + $0x820] sm:$0xff] }
 0x6c5   : > { %13214 = vmatprep.subr.bf16.mxu0 %v13213_v49  ;;  %v13287_v49 = vpack.c.bf16 %v10979_v4, %v10976_v16  ;;  %v11003_v16 = vld [vmem:[%s17424_s3 + $0x8f8] sm:$0xff]  ;;  %v4459_v4 = vld [vmem:[%s17424_s3 + $0x8] sm:$0xff] }
 0x736   : > { %v15967_v11 = vpop.f32.mrb[76].mxu0 }
 0x737   : > { %v15969_v51 = vpop.f32.mrb[77].mxu0 }
 0x73a   : > { %v15971_v25 = vpop.f32.mrb[78].mxu0 }
 0x73b   : > { %v15973_v5 = vpop.f32.mrb[79].mxu0 }
 0x73e   : > { %v15975_v24 = vpop.f32.mrb[80].mxu0 }
 0x73f   : > { %v15977_v20 = vpop.f32.mrb[81].mxu0 }
 0x742   : > { %v15979_v35 = vpop.f32.mrb[82].mxu0 }
 0x743   : > { %v12010_v27 = vpop.f32.mrb[83].mxu0 }
 0x744   : > { %v10980_v27 = vld [vmem:[%s17424_s3 + $0x840] sm:$0xff] }
 0x746   : > { %v15981_v52 = vpop.f32.mrb[84].mxu0 }
 0x747   : > { %v12013_v56 = vpop.f32.mrb[85].mxu0 }
 0x74a   : > { %v15983_v3 = vpop.f32.mrb[86].mxu0 }
 0x74b   : > { %v12016_v36 = vpop.f32.mrb[87].mxu0 }
 0x74c   : > { %v10983_v36 = vld [vmem:[%s17424_s3 + $0x858] sm:$0xff] }
 0x74e   : > { %v4681_v32 = vpop.f32.mrb[88].mxu0 }
 0x74f   : > { %v4683_v28 = vpop.f32.mrb[89].mxu0 }
 0x750   : > { %4987 = vmatprep.mubr.f32.mxu0 %v4683_v28  ;;  %5153 = vmatprep.mubr.f32.mxu1 %v4683_v28  ;;  %v13233_v28 = vpack.c.bf16 %v10990_v38, %v10987_v37  ;;  %v4465_v37 = vld [vmem:[%s17424_s3 + $0x38] sm:$0xff]  ;;  %v4468_v38 = vld [vmem:[%s17424_s3 + $0x50] sm:$0xff] }
 0x751   : > { %4988 = vmatmul.mubr.f32.vlgmr.msra.gmra.mrb[100].mxu0 %v4681_v32  ;;  %5154 = vmatmul.mubr.f32.vlgmr.msra.gmra.mrb[30].mxu1 %v4681_v32  ;;  %v13231_v32 = vpack.c.bf16 %v10983_v36, %v10980_v27  ;;  %v4458_v27 = vld [vmem:[%s17424_s3] sm:$0xff]  ;;  %v13397_v36 = vpack.c.bf16 %v4511_v21, %v4508_v17 }
 0x752   : > { %13216 = vmatpush1.bf16.msra.mxu0 %v13215_v40  ;;  %13279 = vmatpush3.bf16.msra.mxu1 %v13278_v57  ;;  %v4687_v63 = vpop.f32.mrb[90].mxu0  ;;  %v13290_v40 = vpack.c.bf16 %v10985_v33, %v10982_v18  ;;  %v10986_v57 = vld [vmem:[%s17424_s3 + $0x870] sm:$0xff]  ;;  %v4461_v18 = vld [vmem:[%s17424_s3 + $0x18] sm:$0xff] }
 0x753   : > { %13218 = vmatprep.subr.bf16.mxu0 %v13217_v45  ;;  %13280 = vmatprep.subr.bf16.mxu1 %v14560_v19  ;;  %v4689_v10 = vpop.f32.mrb[91].mxu0  ;;  %v10989_v45 = vld [vmem:[%s17424_s3 + $0x888] sm:$0xff]  ;;  %v4460_v33 = vld [vmem:[%s17424_s3 + $0x10] sm:$0xff] }
 0x754   : > { %5158 = vmatprep.mubr.f32.mxu1 %v4689_v10  ;;  %4993 = vmatprep.mubr.f32.mxu0 %v4689_v10 }
 0x755   : > { %5159 = vmatmul.mubr.f32.gmra.mrb[32].mxu1 %v4687_v63  ;;  %4994 = vmatmul.mubr.f32.gmra.mrb[102].mxu0 %v4687_v63 }
 0x756   : > { %13220 = vmatpush1.bf16.msra.mxu0 %v13219_v60  ;;  %13282 = vmatpush3.bf16.msra.mxu1 %v13281_v61  ;;  %v4693_v31 = vpop.f32.mrb[92].mxu0  ;;  %v13235_v60 = vpack.c.bf16 %v10989_v45, %v10986_v57  ;;  %v13293_v61 = vpack.c.bf16 %v10991_v54, %v10988_v53  ;;  %v13303_v57 = vpack.c.bf16 %v4461_v18, %v4458_v27  ;;  %v4464_v45 = vld [vmem:[%s17424_s3 + $0x30] sm:$0xff]  ;;  %v4467_v53 = vld [vmem:[%s17424_s3 + $0x48] sm:$0xff]  ;;  %v4466_v54 = vld [vmem:[%s17424_s3 + $0x40] sm:$0xff] }
 0x757   : > { %13222 = vmatprep.subr.bf16.mxu0 %v13221_v0  ;;  %13283 = vmatprep.subr.bf16.mxu1 %v14560_v19  ;;  %v4695_v6 = vpop.f32.mrb[93].mxu0  ;;  %v13237_v0 = vpack.c.bf16 %v10996_v9, %v10993_v55  ;;  %v13305_v55 = vpack.c.bf16 %v4468_v38, %v4465_v37  ;;  %v4486_v27 = vld [vmem:[%s17424_s3 + $0xe0] sm:$0xff]  ;;  %v4485_v38 = vld [vmem:[%s17424_s3 + $0xd8] sm:$0xff] }
 0x758   : > { %5163 = vmatprep.mubr.f32.mxu1 %v4695_v6  ;;  %4999 = vmatprep.mubr.f32.mxu0 %v4695_v6  ;;  %v4462_v6 = vld [vmem:[%s17424_s3 + $0x20] sm:$0xff] }
 0x759   : > { %5164 = vmatmul.mubr.f32.gmra.mrb[34].mxu1 %v4693_v31  ;;  %5000 = vmatmul.mubr.f32.gmra.mrb[104].mxu0 %v4693_v31  ;;  %v11001_v31 = vld [vmem:[%s17424_s3 + $0x8e8] sm:$0xff]  ;;  %v4482_v37 = vld [vmem:[%s17424_s3 + $0xc0] sm:$0xff] }
 0x75a   : > { %13224 = vmatpush1.bf16.msra.mxu0 %v13223_v12  ;;  %13285 = vmatpush3.bf16.msra.mxu1 %v13284_v13  ;;  %v16012_v56 = vpop.f32.mrb[94].mxu0  ;;  %v13239_v12 = vpack.c.bf16 %v10995_v1, %v10992_v48  ;;  %v13296_v13 = vpack.c.bf16 %v10997_v8, %v10994_v2  ;;  %v4520_v48 = vld [vmem:[%s17424_s3 + $0x1f0] sm:$0xff]  ;;  %v13307_v1 = vpack.c.bf16 %v4467_v53, %v4464_v45  ;;  %v4470_v8 = vld [vmem:[%s17424_s3 + $0x60] sm:$0xff] }
 0x75b   : > { %13226 = vmatprep.subr.bf16.mxu0 %v13225_v14  ;;  %13286 = vmatprep.subr.bf16.mxu1 %v14560_v19  ;;  %v12025_v41 = vpop.f32.mrb[95].mxu0  ;;  %v13241_v14 = vpack.c.bf16 %v11002_v62, %v10999_v58  ;;  %v4472_v62 = vld [vmem:[%s17424_s3 + $0x70] sm:$0xff]  ;;  %v4538_v45 = vld [vmem:[%s17424_s3 + $0x280] sm:$0xff]  ;;  %v13319_v53 = vpack.c.bf16 %v4485_v38, %v4482_v37 }
 0x75c   : > { %5070 = vmatprep.mubr.f32.mxu0 %v14559_v39  ;;  %12064 = vmatprep.mubr.msk.f32.mxu1 %vm14561_vm9, %v14559_v39  ;;  %v4463_v41 = vld [vmem:[%s17424_s3 + $0x28] sm:$0xff]  ;;  %v4506_v38 = vld [vmem:[%s17424_s3 + $0x180] sm:$0xff] }
 0x75e   : > { %13228 = vmatpush1.bf16.msra.mxu0 %v13227_v22  ;;  %13288 = vmatpush3.bf16.msra.mxu1 %v13287_v49  ;;  %v16024_v42 = vpop.f32.mrb[96].mxu0  ;;  %v13243_v22 = vpack.c.bf16 %v11001_v31, %v10998_v29  ;;  %v13299_v49 = vpack.c.bf16 %v11003_v16, %v11000_v15  ;;  %v4480_v29 = vld [vmem:[%s17424_s3 + $0xb0] sm:$0xff]  ;;  %v4526_v31 = vld [vmem:[%s17424_s3 + $0x220] sm:$0xff] }
 0x75f   : > { %13230 = vmatprep.subr.bf16.mxu0 %v13229_v30  ;;  %13289 = vmatprep.subr.bf16.mxu1 %v14560_v19  ;;  %v12028_v50 = vpop.f32.mrb[97].mxu0  ;;  %v13301_v30 = vpack.c.bf16 %v4462_v6, %v4459_v4  ;;  %v4476_v4 = vld [vmem:[%s17424_s3 + $0x90] sm:$0xff]  ;;  %v4479_v6 = vld [vmem:[%s17424_s3 + $0xa8] sm:$0xff] }
 0x760   : > { %v4469_v50 = vld [vmem:[%s17424_s3 + $0x58] sm:$0xff]  ;;  %v13315_v18 = vpack.c.bf16 %v4479_v6, %v4476_v4 }
 0x761   : > { %v13403_v2 = vpack.c.bf16 %v4469_v50, %v4466_v54  ;;  %v4553_v4 = vld [vmem:[%s17424_s3 + $0x2f8] sm:$0xff] }
 0x762   : > { %13232 = vmatpush1.bf16.msra.mxu0 %v13231_v32  ;;  %13291 = vmatpush3.bf16.msra.mxu1 %v13290_v40  ;;  %v16033_v63 = vpop.f32.mrb[98].mxu0  ;;  %v4514_v32 = vld [vmem:[%s17424_s3 + $0x1c0] sm:$0xff]  ;;  %v4517_v40 = vld [vmem:[%s17424_s3 + $0x1d8] sm:$0xff] }
 0x763   : > { %13234 = vmatprep.subr.bf16.mxu0 %v13233_v28  ;;  %13292 = vmatprep.subr.bf16.mxu1 %v14560_v19  ;;  %v12031_v10 = vpop.f32.mrb[99].mxu0  ;;  %v13399_v28 = vpack.c.bf16 %v4463_v41, %v4460_v33  ;;  %v13401_v9 = vpack.c.bf16 %v4517_v40, %v4514_v32  ;;  %v4487_v40 = vld [vmem:[%s17424_s3 + $0xe8] sm:$0xff] }
 0x766   : > { %13236 = vmatpush1.bf16.msra.mxu0 %v13235_v60  ;;  %13294 = vmatpush3.bf16.msra.mxu1 %v13293_v61  ;;  %v4471_v60 = vld [vmem:[%s17424_s3 + $0x68] sm:$0xff]  ;;  %v4474_v61 = vld [vmem:[%s17424_s3 + $0x80] sm:$0xff] }
 0x767   : > { %13238 = vmatprep.subr.bf16.mxu0 %v13237_v0  ;;  %13295 = vmatprep.subr.bf16.mxu1 %v14560_v19  ;;  %v4523_v0 = vld [vmem:[%s17424_s3 + $0x208] sm:$0xff]  ;;  %v13309_v10 = vpack.c.bf16 %v4474_v61, %v4471_v60  ;;  %v4490_v60 = vld [vmem:[%s17424_s3 + $0x100] sm:$0xff] }
 0x768   : > { %v13405_v58 = vpack.c.bf16 %v4523_v0, %v4520_v48  ;;  %v4493_v48 = vld [vmem:[%s17424_s3 + $0x118] sm:$0xff]  ;;  %v4495_v0 = vld [vmem:[%s17424_s3 + $0x128] sm:$0xff] }
 0x76a   : > { %13240 = vmatpush1.bf16.msra.mxu0 %v13239_v12  ;;  %13297 = vmatpush3.bf16.msra.mxu1 %v13296_v13  ;;  %v4475_v12 = vld [vmem:[%s17424_s3 + $0x88] sm:$0xff]  ;;  %v4477_v13 = vld [vmem:[%s17424_s3 + $0x98] sm:$0xff] }
 0x76b   : > { %13242 = vmatprep.subr.bf16.mxu0 %v13241_v14  ;;  %13298 = vmatprep.subr.bf16.mxu1 %v14560_v19  ;;  %v4529_v14 = vld [vmem:[%s17424_s3 + $0x238] sm:$0xff]  ;;  %v13407_v16 = vpack.c.bf16 %v4475_v12, %v4472_v62  ;;  %v13313_v17 = vpack.c.bf16 %v4480_v29, %v4477_v13  ;;  %v4494_v62 = vld [vmem:[%s17424_s3 + $0x120] sm:$0xff]  ;;  %v4496_v13 = vld [vmem:[%s17424_s3 + $0x130] sm:$0xff] }
 0x76c   : > { %v13409_v21 = vpack.c.bf16 %v4529_v14, %v4526_v31  ;;  %v4497_v12 = vld [vmem:[%s17424_s3 + $0x138] sm:$0xff]  ;;  %v4499_v31 = vld [vmem:[%s17424_s3 + $0x148] sm:$0xff] }
 0x76d   : > { %v4501_v14 = vld [vmem:[%s17424_s3 + $0x158] sm:$0xff]  ;;  %v13327_v6 = vpack.c.bf16 %v4497_v12, %v4494_v62  ;;  %v4528_v62 = vld [vmem:[%s17424_s3 + $0x230] sm:$0xff] }
 0x76e   : > { %13244 = vmatpush1.bf16.msra.mxu0 %v13243_v22  ;;  %13300 = vmatpush3.bf16.msra.mxu1 %v13299_v49  ;;  %v4481_v22 = vld [vmem:[%s17424_s3 + $0xb8] sm:$0xff]  ;;  %v4483_v49 = vld [vmem:[%s17424_s3 + $0xc8] sm:$0xff] }
 0x76f   : > { %13302 = vmatprep.subr.bf16.mxu0 %v13301_v30  ;;  %13398 = vmatprep.subr.bf16.mxu1 %v13397_v36  ;;  %v4532_v30 = vld [vmem:[%s17424_s3 + $0x250] sm:$0xff]  ;;  %v4535_v36 = vld [vmem:[%s17424_s3 + $0x268] sm:$0xff]  ;;  %v13317_v41 = vpack.c.bf16 %v4486_v27, %v4483_v49  ;;  %v4502_v49 = vld [vmem:[%s17424_s3 + $0x160] sm:$0xff] }
 0x770   : > { %v13413_v32 = vpack.c.bf16 %v4535_v36, %v4532_v30  ;;  %v4505_v30 = vld [vmem:[%s17424_s3 + $0x178] sm:$0xff]  ;;  %v4507_v36 = vld [vmem:[%s17424_s3 + $0x188] sm:$0xff] }
 0x771   : > { %5071 = vmatmul.mubr.f32.vlgmr.msra.gmra.mrb[100].mxu0 %v16012_v56  ;;  %12065 = vmatmul.mubr.f32.vlgmr.msra.gmra.mrb[36].mxu1 %v16012_v56  ;;  %v4473_v56 = vld [vmem:[%s17424_s3 + $0x78] sm:$0xff] }
 0x772   : > { %13304 = vmatpush1.bf16.msra.mxu0 %v13303_v57  ;;  %13400 = vmatpush3.bf16.msra.mxu1 %v13399_v28  ;;  %v13311_v15 = vpack.c.bf16 %v4473_v56, %v4470_v8  ;;  %v4489_v57 = vld [vmem:[%s17424_s3 + $0xf8] sm:$0xff]  ;;  %v4492_v28 = vld [vmem:[%s17424_s3 + $0x110] sm:$0xff]  ;;  %v4547_v8 = vld [vmem:[%s17424_s3 + $0x2c8] sm:$0xff] }
 0x773   : > { %5076 = vmatprep.mubr.f32.mxu0 %v14559_v39  ;;  %12067 = vmatprep.mubr.msk.f32.mxu1 %vm14561_vm9, %v14559_v39  ;;  %v13321_v50 = vpack.c.bf16 %v4492_v28, %v4489_v57  ;;  %v4513_v57 = vld [vmem:[%s17424_s3 + $0x1b8] sm:$0xff]  ;;  %v4516_v28 = vld [vmem:[%s17424_s3 + $0x1d0] sm:$0xff] }
 0x774   : > { %13306 = vmatprep.subr.bf16.mxu0 %v13305_v55  ;;  %13402 = vmatprep.subr.bf16.mxu1 %v13401_v9  ;;  %v4488_v55 = vld [vmem:[%s17424_s3 + $0xf0] sm:$0xff]  ;;  %v4491_v9 = vld [vmem:[%s17424_s3 + $0x108] sm:$0xff] }
 0x775   : > { %5077 = vmatmul.mubr.f32.gmra.mrb[102].mxu0 %v16024_v42  ;;  %12068 = vmatmul.mubr.f32.gmra.mrb[38].mxu1 %v16024_v42  ;;  %v4478_v42 = vld [vmem:[%s17424_s3 + $0xa0] sm:$0xff]  ;;  %v13323_v56 = vpack.c.bf16 %v4491_v9, %v4488_v55  ;;  %v4565_v9 = vld [vmem:[%s17424_s3 + $0x358] sm:$0xff] }
 0x776   : > { %13308 = vmatpush1.bf16.msra.mxu0 %v13307_v1  ;;  %13404 = vmatpush3.bf16.msra.mxu1 %v13403_v2  ;;  %v13411_v33 = vpack.c.bf16 %v4481_v22, %v4478_v42  ;;  %v4498_v1 = vld [vmem:[%s17424_s3 + $0x140] sm:$0xff]  ;;  %v4544_v2 = vld [vmem:[%s17424_s3 + $0x2b0] sm:$0xff]  ;;  %v13423_v42 = vpack.c.bf16 %v4499_v31, %v4496_v13  ;;  %v4503_v22 = vld [vmem:[%s17424_s3 + $0x168] sm:$0xff] }
 0x777   : > { %5082 = vmatprep.mubr.f32.mxu0 %v14559_v39  ;;  %12070 = vmatprep.mubr.msk.f32.mxu1 %vm14561_vm9, %v14559_v39  ;;  %v13421_v29 = vpack.c.bf16 %v4547_v8, %v4544_v2  ;;  %v4562_v55 = vld [vmem:[%s17424_s3 + $0x340] sm:$0xff]  ;;  %v4521_v2 = vld [vmem:[%s17424_s3 + $0x1f8] sm:$0xff]  ;;  %v4568_v8 = vld [vmem:[%s17424_s3 + $0x370] sm:$0xff] }
 0x778   : > { %13310 = vmatprep.subr.bf16.mxu0 %v13309_v10  ;;  %13406 = vmatprep.subr.bf16.mxu1 %v13405_v58  ;;  %v13419_v10 = vpack.c.bf16 %v4493_v48, %v4490_v60  ;;  %v13325_v58 = vpack.c.bf16 %v4498_v1, %v4495_v0  ;;  %v4519_v60 = vld [vmem:[%s17424_s3 + $0x1e8] sm:$0xff]  ;;  %v13433_v0 = vpack.c.bf16 %v4565_v9, %v4562_v55  ;;  %v4518_v1 = vld [vmem:[%s17424_s3 + $0x1e0] sm:$0xff]  ;;  %v4524_v31 = vld [vmem:[%s17424_s3 + $0x210] sm:$0xff] }
 0x779   : > { %5083 = vmatmul.mubr.f32.gmra.mrb[104].mxu0 %v16033_v63  ;;  %12071 = vmatmul.mubr.f32.gmra.mrb[40].mxu1 %v16033_v63  ;;  %v4484_v63 = vld [vmem:[%s17424_s3 + $0xd0] sm:$0xff]  ;;  %v13343_v12 = vpack.c.bf16 %v4521_v2, %v4518_v1  ;;  %v4595_v9 = vld [vmem:[%s17424_s3 + $0x448] sm:$0xff] }
 0x77a   : > { %13312 = vmatpush1.bf16.msra.mxu0 %v13311_v15  ;;  %5313 = vmatprep.mubr.f32.mxu0 %v15969_v51  ;;  %v13415_v54 = vpack.c.bf16 %v4487_v40, %v4484_v63  ;;  %v4504_v15 = vld [vmem:[%s17424_s3 + $0x170] sm:$0xff]  ;;  %v4509_v63 = vld [vmem:[%s17424_s3 + $0x198] sm:$0xff]  ;;  %v4559_v40 = vld [vmem:[%s17424_s3 + $0x328] sm:$0xff] }
 0x77b   : > { %13408 = vmatpush3.bf16.msra.mxu1 %v13407_v16  ;;  %5479 = vmatprep.mubr.f32.mxu1 %v15969_v51  ;;  %v4541_v51 = vld [vmem:[%s17424_s3 + $0x298] sm:$0xff]  ;;  %v4550_v16 = vld [vmem:[%s17424_s3 + $0x2e0] sm:$0xff]  ;;  %v4592_v55 = vld [vmem:[%s17424_s3 + $0x430] sm:$0xff] }
 0x77c   : > { %13314 = vmatprep.subr.bf16.mxu0 %v13313_v17  ;;  %13410 = vmatprep.subr.bf16.mxu1 %v13409_v21  ;;  %v13417_v61 = vpack.c.bf16 %v4541_v51, %v4538_v45  ;;  %v13329_v17 = vpack.c.bf16 %v4504_v15, %v4501_v14  ;;  %v4500_v21 = vld [vmem:[%s17424_s3 + $0x150] sm:$0xff]  ;;  %v13425_v27 = vpack.c.bf16 %v4553_v4, %v4550_v16  ;;  %v4527_v14 = vld [vmem:[%s17424_s3 + $0x228] sm:$0xff]  ;;  %v4574_v15 = vld [vmem:[%s17424_s3 + $0x3a0] sm:$0xff] }
 0x77d   : > { %v13335_v45 = vpack.c.bf16 %v4509_v63, %v4506_v38  ;;  %v4577_v16 = vld [vmem:[%s17424_s3 + $0x3b8] sm:$0xff]  ;;  %v4531_v4 = vld [vmem:[%s17424_s3 + $0x248] sm:$0xff]  ;;  %v4536_v38 = vld [vmem:[%s17424_s3 + $0x270] sm:$0xff] }
 0x77e   : > { %13316 = vmatpush1.bf16.msra.mxu0 %v13315_v18  ;;  %v4510_v18 = vld [vmem:[%s17424_s3 + $0x1a0] sm:$0xff]  ;;  %v4539_v63 = vld [vmem:[%s17424_s3 + $0x288] sm:$0xff]  ;;  %v4548_v2 = vld [vmem:[%s17424_s3 + $0x2d0] sm:$0xff] }
 0x77f   : > { %13412 = vmatpush3.bf16.msra.mxu1 %v13411_v33  ;;  %13318 = vmatprep.subr.bf16.mxu0 %v13317_v41  ;;  %v13331_v33 = vpack.c.bf16 %v4503_v22, %v4500_v21  ;;  %v13427_v41 = vpack.c.bf16 %v4505_v30, %v4502_v49  ;;  %v13333_v37 = vpack.c.bf16 %v4510_v18, %v4507_v36  ;;  %v4530_v22 = vld [vmem:[%s17424_s3 + $0x240] sm:$0xff]  ;;  %v4533_v49 = vld [vmem:[%s17424_s3 + $0x258] sm:$0xff]  ;;  %v4583_v30 = vld [vmem:[%s17424_s3 + $0x3e8] sm:$0xff] }
 0x780   : > { %13414 = vmatprep.subr.bf16.mxu1 %v13413_v32  ;;  %v4556_v32 = vld [vmem:[%s17424_s3 + $0x310] sm:$0xff]  ;;  %v4537_v36 = vld [vmem:[%s17424_s3 + $0x278] sm:$0xff] }
 0x781   : > { %v13430_v51 = vpack.c.bf16 %v4559_v40, %v4556_v32  ;;  %v4540_v18 = vld [vmem:[%s17424_s3 + $0x290] sm:$0xff]  ;;  %v4586_v32 = vld [vmem:[%s17424_s3 + $0x400] sm:$0xff]  ;;  %v4589_v40 = vld [vmem:[%s17424_s3 + $0x418] sm:$0xff] }
 0x782   : > { %13320 = vmatpush1.bf16.msra.mxu0 %v13319_v53  ;;  %v4512_v53 = vld [vmem:[%s17424_s3 + $0x1b0] sm:$0xff] }
 0x783   : > { %13416 = vmatpush3.bf16.msra.mxu1 %v13415_v54  ;;  %13322 = vmatprep.subr.bf16.mxu0 %v13321_v50  ;;  %v4515_v54 = vld [vmem:[%s17424_s3 + $0x1c8] sm:$0xff]  ;;  %v13337_v50 = vpack.c.bf16 %v4516_v28, %v4513_v57  ;;  %v4546_v28 = vld [vmem:[%s17424_s3 + $0x2c0] sm:$0xff] }
 0x784   : > { %13418 = vmatprep.subr.bf16.mxu1 %v13417_v61  ;;  %v4522_v61 = vld [vmem:[%s17424_s3 + $0x200] sm:$0xff]  ;;  %v13339_v48 = vpack.c.bf16 %v4515_v54, %v4512_v53  ;;  %v4543_v57 = vld [vmem:[%s17424_s3 + $0x2a8] sm:$0xff] }
 0x785   : > { %v13357_v53 = vpack.c.bf16 %v4546_v28, %v4543_v57  ;;  %v4542_v54 = vld [vmem:[%s17424_s3 + $0x2a0] sm:$0xff]  ;;  %v4584_v28 = vld [vmem:[%s17424_s3 + $0x3f0] sm:$0xff] }
 0x786   : > { %13324 = vmatpush1.bf16.msra.mxu0 %v13323_v56  ;;  %v13341_v56 = vpack.c.bf16 %v4522_v61, %v4519_v60  ;;  %v4549_v60 = vld [vmem:[%s17424_s3 + $0x2d8] sm:$0xff]  ;;  %v4552_v61 = vld [vmem:[%s17424_s3 + $0x2f0] sm:$0xff] }
 0x787   : > { %13420 = vmatpush3.bf16.msra.mxu1 %v13419_v10  ;;  %13326 = vmatprep.subr.bf16.mxu0 %v13325_v58  ;;  %v4571_v10 = vld [vmem:[%s17424_s3 + $0x388] sm:$0xff]  ;;  %v4525_v58 = vld [vmem:[%s17424_s3 + $0x218] sm:$0xff]  ;;  %v13361_v1 = vpack.c.bf16 %v4552_v61, %v4549_v60  ;;  %v4600_v61 = vld [vmem:[%s17424_s3 + $0x470] sm:$0xff] }
 0x788   : > { %13422 = vmatprep.subr.bf16.mxu1 %v13421_v29  ;;  %v13436_v13 = vpack.c.bf16 %v4571_v10, %v4568_v8  ;;  %v13345_v29 = vpack.c.bf16 %v4528_v62, %v4525_v58  ;;  %v4551_v8 = vld [vmem:[%s17424_s3 + $0x2e8] sm:$0xff]  ;;  %v4601_v10 = vld [vmem:[%s17424_s3 + $0x478] sm:$0xff]  ;;  %v4558_v62 = vld [vmem:[%s17424_s3 + $0x320] sm:$0xff] }
 0x789   : > { %v4555_v58 = vld [vmem:[%s17424_s3 + $0x308] sm:$0xff]  ;;  %v4597_v60 = vld [vmem:[%s17424_s3 + $0x458] sm:$0xff] }
 0x78a   : > { %13328 = vmatpush1.bf16.msra.mxu0 %v13327_v6  ;;  %v4534_v6 = vld [vmem:[%s17424_s3 + $0x260] sm:$0xff] }
 0x78b   : > { %13424 = vmatpush3.bf16.msra.mxu1 %v13423_v42  ;;  %13330 = vmatprep.subr.bf16.mxu0 %v13329_v17  ;;  %v13347_v42 = vpack.c.bf16 %v4527_v14, %v4524_v31  ;;  %v13439_v17 = vpack.c.bf16 %v4577_v16, %v4574_v15  ;;  %v13349_v21 = vpack.c.bf16 %v4534_v6, %v4531_v4  ;;  %v4554_v31 = vld [vmem:[%s17424_s3 + $0x300] sm:$0xff]  ;;  %v4557_v14 = vld [vmem:[%s17424_s3 + $0x318] sm:$0xff]  ;;  %v4564_v16 = vld [vmem:[%s17424_s3 + $0x350] sm:$0xff] }
 0x78c   : > { %13426 = vmatprep.subr.bf16.mxu1 %v13425_v27  ;;  %v4580_v27 = vld [vmem:[%s17424_s3 + $0x3d0] sm:$0xff]  ;;  %v4561_v15 = vld [vmem:[%s17424_s3 + $0x338] sm:$0xff]  ;;  %v13367_v4 = vpack.c.bf16 %v4557_v14, %v4554_v31 }
 0x78d   : > { %v4560_v6 = vld [vmem:[%s17424_s3 + $0x330] sm:$0xff] }
 0x78e   : > { %13332 = vmatpush1.bf16.msra.mxu0 %v13331_v33  ;;  %v13351_v33 = vpack.c.bf16 %v4533_v49, %v4530_v22  ;;  %v4570_v22 = vld [vmem:[%s17424_s3 + $0x380] sm:$0xff]  ;;  %v11019_v14 = vld [vmem:[%s17424_s3 + $0x930] sm:$0xff] }
 0x78f   : > { %13428 = vmatpush3.bf16.msra.mxu1 %v13427_v41  ;;  %13334 = vmatprep.subr.bf16.mxu0 %v13333_v37  ;;  %v13442_v41 = vpack.c.bf16 %v4583_v30, %v4580_v27  ;;  %v13353_v37 = vpack.c.bf16 %v4540_v18, %v4537_v36  ;;  %v4569_v27 = vld [vmem:[%s17424_s3 + $0x378] sm:$0xff]  ;;  %v4576_v30 = vld [vmem:[%s17424_s3 + $0x3b0] sm:$0xff]  ;;  %v4575_v36 = vld [vmem:[%s17424_s3 + $0x3a8] sm:$0xff] }
 0x790   : > { %13429 = vmatprep.subr.bf16.mxu1 %v14560_v19  ;;  %v4582_v18 = vld [vmem:[%s17424_s3 + $0x3e0] sm:$0xff] }
 0x792   : > { %5480 = vmatmul.mubr.f32.vlgmr.msra.gmra.mrb[42].mxu1 %v15967_v11  ;;  %13336 = vmatpush1.bf16.msra.mxu0 %v13335_v45  ;;  %v13355_v45 = vpack.c.bf16 %v4539_v63, %v4536_v38  ;;  %v4585_v38 = vld [vmem:[%s17424_s3 + $0x3f8] sm:$0xff]  ;;  %v4588_v63 = vld [vmem:[%s17424_s3 + $0x410] sm:$0xff] }
 0x793   : > { %5484 = vmatprep.mubr.f32.mxu1 %v15973_v5  ;;  %13431 = vmatpush3.bf16.msra.mxu1 %v13430_v51  ;;  %v13445_v51 = vpack.c.bf16 %v4589_v40, %v4586_v32  ;;  %v11005_v40 = vld [vmem:[%s17421_s8 + $0x38] sm:$0xff]  ;;  %v13385_v57 = vpack.c.bf16 %v4588_v63, %v4585_v38  ;;  %v11049_v63 = vld [vmem:[%s17424_s3 + $0xa20] sm:$0xff] }
 0x794   : > { %13338 = vmatprep.subr.bf16.mxu0 %v13337_v50  ;;  %13432 = vmatprep.subr.bf16.mxu1 %v14560_v19  ;;  %v4545_v50 = vld [vmem:[%s17424_s3 + $0x2b8] sm:$0xff] }
 0x796   : > { %5485 = vmatmul.mubr.f32.gmra.mrb[44].mxu1 %v15971_v25  ;;  %13340 = vmatpush1.bf16.msra.mxu0 %v13339_v48  ;;  %v13359_v48 = vpack.c.bf16 %v4545_v50, %v4542_v54  ;;  %v11006_v54 = vld [vmem:[%s17421_s8 + $0x40] sm:$0x3f] }
 0x797   : > { %5489 = vmatprep.mubr.f32.mxu1 %v15977_v20  ;;  %13434 = vmatpush3.bf16.msra.mxu1 %v13433_v0  ;;  %v13448_v0 = vpack.c.bf16 %v4595_v9, %v4592_v55  ;;  %v4590_v55 = vld [vmem:[%s17424_s3 + $0x420] sm:$0xff]  ;;  %v4593_v9 = vld [vmem:[%s17424_s3 + $0x438] sm:$0xff] }
 0x798   : > { %13342 = vmatprep.subr.bf16.mxu0 %v13341_v56  ;;  %13435 = vmatprep.subr.bf16.mxu1 %v14560_v19  ;;  %v4598_v56 = vld [vmem:[%s17424_s3 + $0x460] sm:$0xff] }
 0x79a   : > { %5490 = vmatmul.mubr.f32.gmra.mrb[46].mxu1 %v15975_v24  ;;  %13344 = vmatpush1.bf16.msra.mxu0 %v13343_v12  ;;  %v13363_v12 = vpack.c.bf16 %v4551_v8, %v4548_v2  ;;  %v11014_v8 = vld [vmem:[%s17424_s3 + $0x908] sm:$0xff] }
 0x79b   : > { %13437 = vmatpush3.bf16.msra.mxu1 %v13436_v13  ;;  %13346 = vmatprep.subr.bf16.mxu0 %v13345_v29  ;;  %v13451_v13 = vpack.c.bf16 %v4601_v10, %v4598_v56  ;;  %v13365_v29 = vpack.c.bf16 %v4558_v62, %v4555_v58  ;;  %v11017_v56 = vld [vmem:[%s17424_s3 + $0x920] sm:$0xff]  ;;  %v11016_v62 = vld [vmem:[%s17424_s3 + $0x918] sm:$0xff] }
 0x79c   : > { %13438 = vmatprep.subr.bf16.mxu1 %v14560_v19  ;;  %12105 = vmatprep.mubr.msk.f32.mxu1 %vm14561_vm9, %v14559_v39  ;;  %v11013_v10 = vld [vmem:[%s17424_s3 + $0x900] sm:$0xff]  ;;  %v13460_v58 = vpack.c.bf16 %v11017_v56, %v11014_v8  ;;  %v11068_v8 = vld [vmem:[%s17424_s3 + $0xab8] sm:$0xff] }
 0x79e   : > { %13348 = vmatpush1.bf16.msra.mxu0 %v13347_v42  ;;  %v4563_v42 = vld [vmem:[%s17424_s3 + $0x348] sm:$0xff] }
 0x79f   : > { %13440 = vmatpush3.bf16.msra.mxu1 %v13439_v17  ;;  %13350 = vmatprep.subr.bf16.mxu0 %v13349_v21  ;;  %v13369_v17 = vpack.c.bf16 %v4564_v16, %v4561_v15  ;;  %v4567_v21 = vld [vmem:[%s17424_s3 + $0x368] sm:$0xff]  ;;  %v13371_v49 = vpack.c.bf16 %v4563_v42, %v4560_v6 }
 0x7a0   : > { %13441 = vmatprep.subr.bf16.mxu1 %v14560_v19  ;;  %v11022_v15 = vld [vmem:[%s17424_s3 + $0x948] sm:$0xff] }
 0x7a1   : > { %v11026_v16 = vld [vmem:[%s17424_s3 + $0x968] sm:$0xff]  ;;  %v13466_v6 = vpack.c.bf16 %v11022_v15, %v11019_v14  ;;  %v11021_v14 = vld [vmem:[%s17424_s3 + $0x940] sm:$0xff]  ;;  %v11024_v15 = vld [vmem:[%s17424_s3 + $0x958] sm:$0xff] }
 0x7a2   : > { %13352 = vmatpush1.bf16.msra.mxu0 %v13351_v33 }
 0x7a3   : > { %13443 = vmatpush3.bf16.msra.mxu1 %v13442_v41  ;;  %13354 = vmatprep.subr.bf16.mxu0 %v13353_v37  ;;  %v4581_v37 = vld [vmem:[%s17424_s3 + $0x3d8] sm:$0xff] }
 0x7a4   : > { %13444 = vmatprep.subr.bf16.mxu1 %v14560_v19 }
 0x7a6   : > { %13356 = vmatpush1.bf16.msra.mxu0 %v13355_v45  ;;  %v4587_v45 = vld [vmem:[%s17424_s3 + $0x408] sm:$0xff] }
 0x7a7   : > { %13446 = vmatpush3.bf16.msra.mxu1 %v13445_v51  ;;  %13358 = vmatprep.subr.bf16.mxu0 %v13357_v53  ;;  %v4591_v51 = vld [vmem:[%s17424_s3 + $0x428] sm:$0xff]  ;;  %v4594_v53 = vld [vmem:[%s17424_s3 + $0x440] sm:$0xff] }
 0x7a8   : > { %13447 = vmatprep.subr.bf16.mxu1 %v14560_v19  ;;  %v13389_v50 = vpack.c.bf16 %v4594_v53, %v4591_v51  ;;  %v11055_v51 = vld [vmem:[%s17424_s3 + $0xa50] sm:$0xff]  ;;  %v11058_v53 = vld [vmem:[%s17424_s3 + $0xa68] sm:$0xff] }
 0x7aa   : > { %13360 = vmatpush1.bf16.msra.mxu0 %v13359_v48  ;;  %v13393_v48 = vpack.c.bf16 %v4600_v61, %v4597_v60  ;;  %v11066_v60 = vld [vmem:[%s17424_s3 + $0xaa8] sm:$0xff]  ;;  %v11061_v61 = vld [vmem:[%s17424_s3 + $0xa80] sm:$0xff] }
 0x7ab   : > { %13449 = vmatpush3.bf16.msra.mxu1 %v13448_v0  ;;  %13362 = vmatprep.subr.bf16.mxu0 %v13361_v1  ;;  %v4596_v0 = vld [vmem:[%s17424_s3 + $0x450] sm:$0xff]  ;;  %v4599_v1 = vld [vmem:[%s17424_s3 + $0x468] sm:$0xff] }
 0x7ac   : > { %13450 = vmatprep.subr.bf16.mxu1 %v14560_v19  ;;  %v13395_v2 = vpack.c.bf16 %v4599_v1, %v4596_v0  ;;  %v11015_v1 = vld [vmem:[%s17424_s3 + $0x910] sm:$0xff] }
 0x7ae   : > { %13364 = vmatpush1.bf16.msra.mxu0 %v13363_v12  ;;  %v11020_v12 = vld [vmem:[%s17424_s3 + $0x938] sm:$0xff] }
 0x7af   : > { %13452 = vmatpush3.bf16.msra.mxu1 %v13451_v13  ;;  %13366 = vmatprep.subr.bf16.mxu0 %v13365_v29  ;;  %v11023_v13 = vld [vmem:[%s17424_s3 + $0x950] sm:$0xff]  ;;  %v13462_v29 = vpack.c.bf16 %v11016_v62, %v11013_v10  ;;  %v11072_v62 = vld [vmem:[%s17424_s3 + $0xad8] sm:$0xff] }
 0x7b0   : > { %13454 = vmatprep.subr.bf16.mxu1 %v15815_v23  ;;  %v13373_v23 = vpack.c.bf16 %v4570_v22, %v4567_v21  ;;  %v13464_v31 = vpack.c.bf16 %v11023_v13, %v11020_v12  ;;  %v11028_v21 = vld [vmem:[%s17424_s3 + $0x978] sm:$0xff]  ;;  %v11071_v10 = vld [vmem:[%s17424_s3 + $0xad0] sm:$0xff] }
 0x7b1   : > { %5314 = vmatmul.mubr.f32.vlgmr.msra.gmra.mrb[100].mxu0 %v15967_v11  ;;  %v4566_v11 = vld [vmem:[%s17424_s3 + $0x360] sm:$0xff]  ;;  %v11032_v22 = vld [vmem:[%s17424_s3 + $0x998] sm:$0xff]  ;;  %v13496_v12 = vpack.c.bf16 %v11071_v10, %v11068_v8  ;;  %v11098_v10 = vld [vmem:[%s17424_s3 + $0xba8] sm:$0xff] }
 0x7b2   : > { %12106 = vmatmul.mubr.f32.vlgmr.msra.gmra.mrb[48].mxu1 %v15979_v35  ;;  %5319 = vmatprep.mubr.f32.mxu0 %v15973_v5  ;;  %v4573_v5 = vld [vmem:[%s17424_s3 + $0x398] sm:$0xff] }
 0x7b3   : > { %13368 = vmatpush1.bf16.msra.mxu0 %v13367_v4  ;;  %13456 = vmatpush1.bf16.msra.mxu1 %v15813_v59  ;;  %v13375_v59 = vpack.c.bf16 %v4569_v27, %v4566_v11  ;;  %v11029_v4 = vld [vmem:[%s17424_s3 + $0x980] sm:$0xff]  ;;  %v11031_v11 = vld [vmem:[%s17424_s3 + $0x990] sm:$0xff]  ;;  %v11034_v27 = vld [vmem:[%s17424_s3 + $0x9a8] sm:$0xff] }
 0x7b4   : > { %5592 = vmatprep.subr.mxu1 %v15818_v34  ;;  %12108 = vmatprep.mubr.msk.f32.mxu1 %vm14561_vm9, %v14559_v39  ;;  %v13377_v34 = vpack.c.bf16 %v4576_v30, %v4573_v5  ;;  %v13468_v42 = vpack.c.bf16 %v11029_v4, %v11026_v16  ;;  %v11038_v5 = vld [vmem:[%s17424_s3 + $0x9c8] sm:$0xff]  ;;  %v11041_v30 = vld [vmem:[%s17424_s3 + $0x9e0] sm:$0xff]  ;;  %v11048_v8 = vld [vmem:[%s17424_s3 + $0xa18] sm:$0xff] }
 0x7b5   : > { %5320 = vmatmul.mubr.f32.gmra.mrb[102].mxu0 %v15971_v25  ;;  %13370 = vmatprep.subr.bf16.mxu0 %v13369_v17  ;;  %v4572_v25 = vld [vmem:[%s17424_s3 + $0x390] sm:$0xff]  ;;  %v11025_v17 = vld [vmem:[%s17424_s3 + $0x960] sm:$0xff]  ;;  %v11074_v16 = vld [vmem:[%s17424_s3 + $0xae8] sm:$0xff] }
 0x7b6   : > { %12109 = vmatmul.mubr.f32.gmra.mrb[50].mxu1 %v15981_v52  ;;  %5325 = vmatprep.mubr.f32.mxu0 %v15977_v20  ;;  %v4579_v20 = vld [vmem:[%s17424_s3 + $0x3c8] sm:$0xff]  ;;  %v13379_v33 = vpack.c.bf16 %v4575_v36, %v4572_v25  ;;  %v11040_v25 = vld [vmem:[%s17424_s3 + $0x9d8] sm:$0xff]  ;;  %v11077_v4 = vld [vmem:[%s17424_s3 + $0xb00] sm:$0xff] }
 0x7b7   : > { %13372 = vmatpush1.bf16.msra.mxu0 %v13371_v49  ;;  %5593 = vmatpush1.msra.mxu1 %v15824_v47  ;;  %v11004_v47 = vld [vmem:[%s17421_s8 + $0x30] sm:$0xff]  ;;  %v13381_v41 = vpack.c.bf16 %v4582_v18, %v4579_v20  ;;  %v11044_v20 = vld [vmem:[%s17424_s3 + $0x9f8] sm:$0xff] }
 0x7b8   : > { %12111 = vmatprep.mubr.msk.f32.mxu1 %vm14561_vm9, %v14559_v39  ;;  %13374 = vmatprep.subr.bf16.mxu0 %v13373_v23  ;;  %v11035_v49 = vld [vmem:[%s17424_s3 + $0x9b0] sm:$0xff] }
 0x7b9   : > { %5326 = vmatmul.mubr.f32.gmra.mrb[104].mxu0 %v15975_v24  ;;  %13457 = vmatprep.subr.bf16.mxu1 %v14560_v19  ;;  %v4578_v24 = vld [vmem:[%s17424_s3 + $0x3c0] sm:$0xff]  ;;  %v13472_v23 = vpack.c.bf16 %v11035_v49, %v11032_v22  ;;  %v11047_v18 = vld [vmem:[%s17424_s3 + $0xa10] sm:$0xff]  ;;  %v13500_v49 = vpack.c.bf16 %v11077_v4, %v11074_v16  ;;  %v11054_v4 = vld [vmem:[%s17424_s3 + $0xa48] sm:$0xff] }
 0x7ba   : > { %12112 = vmatmul.mubr.f32.gmra.mrb[52].mxu1 %v15983_v3  ;;  %5396 = vmatprep.mubr.f32.mxu0 %v14559_v39  ;;  %v13383_v32 = vpack.c.bf16 %v4581_v37, %v4578_v24  ;;  %v11050_v24 = vld [vmem:[%s17424_s3 + $0xa28] sm:$0xff]  ;;  %v11053_v37 = vld [vmem:[%s17424_s3 + $0xa40] sm:$0xff]  ;;  %v11051_v16 = vld [vmem:[%s17424_s3 + $0xa30] sm:$0xff] }
 0x7bb   : > { %13376 = vmatpush1.bf16.msra.mxu0 %v13375_v59  ;;  %5652 = vmatprep.mubr.f32.mxu1 %v14559_v39  ;;  %v13474_v59 = vpack.c.bf16 %v11034_v27, %v11031_v11  ;;  %v13484_v38 = vpack.c.bf16 %v11053_v37, %v11050_v24  ;;  %v11073_v22 = vld [vmem:[%s17424_s3 + $0xae0] sm:$0xff]  ;;  %v11027_v11 = vld [vmem:[%s17424_s3 + $0x970] sm:$0xff]  ;;  %v11030_v27 = vld [vmem:[%s17424_s3 + $0x988] sm:$0xff] }
 0x7bc   : > { %13378 = vmatprep.subr.bf16.mxu0 %v13377_v34  ;;  %v11037_v34 = vld [vmem:[%s17424_s3 + $0x9c0] sm:$0xff]  ;;  %v11090_v24 = vld [vmem:[%s17424_s3 + $0xb68] sm:$0xff] }
 0x7bd   : > { %v13478_v36 = vpack.c.bf16 %v11040_v25, %v11037_v34  ;;  %v11084_v34 = vld [vmem:[%s17424_s3 + $0xb38] sm:$0xff]  ;;  %v11086_v37 = vld [vmem:[%s17424_s3 + $0xb48] sm:$0xff] }
 0x7be   : > { %11007 = vmatmul.mubr.msk.f32.vlgmr.msra.gmra.mrb[54].mxu1 %vm4285_vm8, %v11004_v47 }
 0x7bf   : > { %13459 = vmatpush3.bf16.msra.mxu1 %v15821_v26  ;;  %13380 = vmatpush1.bf16.msra.mxu0 %v13379_v33  ;;  %v13387_v26 = vpack.c.bf16 %v4587_v45, %v4584_v28  ;;  %v11046_v33 = vld [vmem:[%s17424_s3 + $0xa08] sm:$0xff]  ;;  %v11059_v28 = vld [vmem:[%s17424_s3 + $0xa70] sm:$0xff] }
 0x7c0   : > { %12118 = vmatprep.subr.mxu1 %v14559_v39  ;;  %13382 = vmatprep.subr.bf16.mxu0 %v13381_v41 }
 0x7c1   : > { %5658 = vmatprep.mubr.f32.mxu1 %v14559_v39 }
 0x7c2   : > { %11008 = vmatmul.mubr.msk.f32.gmra.mrb[56].mxu1 %vm4285_vm8, %v11005_v40 }
 0x7c3   : > { %12119 = vmatpush3.msra.mxu1 %v15834_v7  ;;  %13384 = vmatpush1.bf16.msra.mxu0 %v13383_v32  ;;  %v13391_v7 = vpack.c.bf16 %v4593_v9, %v4590_v55  ;;  %v11052_v32 = vld [vmem:[%s17424_s3 + $0xa38] sm:$0xff]  ;;  %v11063_v55 = vld [vmem:[%s17424_s3 + $0xa90] sm:$0xff] }
 0x7c4   : > { %13386 = vmatprep.subr.bf16.mxu0 %v13385_v57  ;;  %5664 = vmatprep.mubr.f32.mxu1 %v14559_v39  ;;  %v11056_v57 = vld [vmem:[%s17424_s3 + $0xa58] sm:$0xff] }
 0x7c5   : > { %v13488_v45 = vpack.c.bf16 %v11059_v28, %v11056_v57  ;;  %v11039_v57 = vld [vmem:[%s17424_s3 + $0x9d0] sm:$0xff]  ;;  %v11042_v28 = vld [vmem:[%s17424_s3 + $0x9e8] sm:$0xff] }
 0x7c6   : > { %11009 = vmatmul.mubr.msk.f32.gmra.mrb[58].mxu1 %vm4285_vm8, %v11006_v54 }
 0x7c7   : > { %13388 = vmatpush1.bf16.msra.mxu0 %v13387_v26  ;;  %12120 = vmatprep.mubr.msk.f32.mxu1 %vm14561_vm9, %v14559_v39  ;;  %v13490_v26 = vpack.c.bf16 %v11058_v53, %v11055_v51  ;;  %v11085_v51 = vld [vmem:[%s17424_s3 + $0xb40] sm:$0xff]  ;;  %v11088_v53 = vld [vmem:[%s17424_s3 + $0xb58] sm:$0xff] }
 0x7c8   : > { %13390 = vmatprep.subr.bf16.mxu0 %v13389_v50  ;;  %v11065_v50 = vld [vmem:[%s17424_s3 + $0xaa0] sm:$0xff] }
 0x7ca   : > { %12121 = vmatmul.mubr.msk.f32.vlgmr.msra.gmra.mrb[60].mxu1 %vm4285_vm8, %v11004_v47  ;;  %v13480_v47 = vpack.c.bf16 %v11047_v18, %v11044_v20  ;;  %v11079_v20 = vld [vmem:[%s17424_s3 + $0xb10] sm:$0xff]  ;;  %v11033_v18 = vld [vmem:[%s17424_s3 + $0x9a0] sm:$0xff] }
 0x7cb   : > { %13392 = vmatpush1.bf16.msra.mxu0 %v13391_v7  ;;  %12123 = vmatprep.mubr.msk.f32.mxu1 %vm14561_vm9, %v14559_v39  ;;  %v11064_v7 = vld [vmem:[%s17424_s3 + $0xa98] sm:$0xff] }
 0x7cc   : > { %13394 = vmatprep.subr.bf16.mxu0 %v13393_v48  ;;  %v13556_v48 = vpack.c.bf16 %v11066_v60, %v11063_v55  ;;  %v13494_v0 = vpack.c.bf16 %v11064_v7, %v11061_v61  ;;  %v11095_v55 = vld [vmem:[%s17424_s3 + $0xb90] sm:$0xff]  ;;  %v11096_v61 = vld [vmem:[%s17424_s3 + $0xb98] sm:$0xff] }
 0x7cd   : > { %v11091_v7 = vld [vmem:[%s17424_s3 + $0xb70] sm:$0xff] }
 0x7ce   : > { %12124 = vmatmul.mubr.msk.f32.gmra.mrb[62].mxu1 %vm4285_vm8, %v11005_v40  ;;  %v13486_v40 = vpack.c.bf16 %v11052_v32, %v11049_v63  ;;  %13557 = vmatprep.subr.bf16.mxu1 %v13556_v48  ;;  %v11094_v48 = vld [vmem:[%s17424_s3 + $0xb88] sm:$0xff] }
 0x7cf   : > { %13396 = vmatpush1.bf16.msra.mxu0 %v13395_v2  ;;  %12126 = vmatprep.mubr.msk.f32.mxu1 %vm14561_vm9, %v14559_v39  ;;  %v11018_v2 = vld [vmem:[%s17424_s3 + $0x928] sm:$0xff] }
 0x7d0   : > { %13461 = vmatprep.subr.bf16.mxu0 %v13460_v58  ;;  %v13558_v56 = vpack.c.bf16 %v11018_v2, %v11015_v1  ;;  %v11069_v58 = vld [vmem:[%s17424_s3 + $0xac0] sm:$0xff]  ;;  %v13514_v1 = vpack.c.bf16 %v11094_v48, %v11091_v7 }
 0x7d1   : > { %v13560_v13 = vpack.c.bf16 %v11072_v62, %v11069_v58  ;;  %v11045_v2 = vld [vmem:[%s17424_s3 + $0xa00] sm:$0xff]  ;;  %v11099_v62 = vld [vmem:[%s17424_s3 + $0xbb0] sm:$0xff] }
 0x7d2   : > { %5397 = vmatmul.mubr.f32.vlgmr.msra.gmra.mrb[100].mxu0 %v15979_v35  ;;  %12127 = vmatmul.mubr.msk.f32.gmra.mrb[64].mxu1 %vm4285_vm8, %v11006_v54  ;;  %v13470_v35 = vpack.c.bf16 %v11028_v21, %v11025_v17  ;;  %v11062_v54 = vld [vmem:[%s17424_s3 + $0xa88] sm:$0xff]  ;;  %v11075_v17 = vld [vmem:[%s17424_s3 + $0xaf0] sm:$0xff]  ;;  %v11101_v58 = vld [vmem:[%s17424_s3 + $0xbc0] sm:$0xff]  ;;  %vm9176_vm8 = vcmask 1044480  }
 0x7d3   : > { %5402 = vmatprep.mubr.f32.mxu0 %v14559_v39  ;;  %13463 = vmatpush1.bf16.msra.mxu0 %v13462_v29  ;;  %v13492_v9 = vpack.c.bf16 %v11065_v50, %v11062_v54  ;;  %v11067_v29 = vld [vmem:[%s17424_s3 + $0xab0] sm:$0xff]  ;;  %v11078_v21 = vld [vmem:[%s17424_s3 + $0xb08] sm:$0xff]  ;;  %v13510_v54 = vpack.c.bf16 %v11088_v53, %v11085_v51  ;;  %v11092_v50 = vld [vmem:[%s17424_s3 + $0xb78] sm:$0xff] }
 0x7d4   : > { %13465 = vmatprep.subr.bf16.mxu0 %v13464_v31  ;;  %v11070_v31 = vld [vmem:[%s17424_s3 + $0xac8] sm:$0xff]  ;;  %13559 = vmatpush3.bf16.msra.mxu1 %v13558_v56  ;;  %v13512_v60 = vpack.c.bf16 %v11095_v55, %v11092_v50  ;;  %v13578_v56 = vpack.c.bf16 %v11048_v8, %v11045_v2 }
 0x7d5   : > { %13561 = vmatprep.subr.bf16.mxu1 %v13560_v13  ;;  %v11102_v13 = vld [vmem:[%s17424_s3 + $0xbc8] sm:$0xff] }
 0x7d6   : > { %5403 = vmatmul.mubr.f32.gmra.mrb[102].mxu0 %v15981_v52  ;;  %v13476_v52 = vpack.c.bf16 %v11041_v30, %v11038_v5  ;;  %v11080_v5 = vld [vmem:[%s17424_s3 + $0xb18] sm:$0xff]  ;;  %v11083_v30 = vld [vmem:[%s17424_s3 + $0xb30] sm:$0xff] }
 0x7d7   : > { %5408 = vmatprep.mubr.f32.mxu0 %v14559_v39  ;;  %13467 = vmatpush1.bf16.msra.mxu0 %v13466_v6  ;;  %v13498_v6 = vpack.c.bf16 %v11070_v31, %v11067_v29  ;;  %v11097_v29 = vld [vmem:[%s17424_s3 + $0xba0] sm:$0xff]  ;;  %v11100_v31 = vld [vmem:[%s17424_s3 + $0xbb8] sm:$0xff] }
 0x7d8   : > { %13469 = vmatprep.subr.bf16.mxu0 %v13468_v42  ;;  %v13562_v42 = vpack.c.bf16 %v11024_v15, %v11021_v14  ;;  %v13580_v14 = vpack.c.bf16 %v11102_v13, %v11099_v62  ;;  %v13518_v15 = vpack.c.bf16 %v11100_v31, %v11097_v29  ;;  %v11109_v29 = vld [vmem:[%s17424_s3 + $0xc00] sm:$0xff] }
 0x7da   : > { %5409 = vmatmul.mubr.f32.gmra.mrb[104].mxu0 %v15983_v3  ;;  %v11043_v3 = vld [vmem:[%s17424_s3 + $0x9f0] sm:$0xff]  ;;  %13563 = vmatpush3.bf16.msra.mxu1 %v13562_v42  ;;  %v11104_v42 = vld [vmem:[%s17424_s3 + $0xbd8] sm:$0xff] }
 0x7db   : > { %13471 = vmatpush1.bf16.msra.mxu0 %v13470_v35  ;;  %v13482_v41 = vpack.c.bf16 %v11046_v33, %v11043_v3  ;;  %v13564_v35 = vpack.c.bf16 %v11078_v21, %v11075_v17  ;;  %v13504_v3 = vpack.c.bf16 %v11083_v30, %v11080_v5  ;;  %v11082_v33 = vld [vmem:[%s17424_s3 + $0xb28] sm:$0xff]  ;;  %v11107_v17 = vld [vmem:[%s17424_s3 + $0xbf0] sm:$0xff]  ;;  %v11105_v21 = vld [vmem:[%s17424_s3 + $0xbe0] sm:$0xff] }
 0x7dc   : > { %13473 = vmatprep.subr.bf16.mxu0 %v13472_v23  ;;  %v11076_v23 = vld [vmem:[%s17424_s3 + $0xaf8] sm:$0xff]  ;;  %v13506_v32 = vpack.c.bf16 %v11082_v33, %v11079_v20  ;;  %v11057_v5 = vld [vmem:[%s17424_s3 + $0xa60] sm:$0xff] }
 0x7dd   : > { %13565 = vmatprep.subr.bf16.mxu1 %v13564_v35  ;;  %v13502_v25 = vpack.c.bf16 %v11076_v23, %v11073_v22  ;;  %v13520_v22 = vpack.c.bf16 %v11107_v17, %v11104_v42  ;;  %v11103_v35 = vld [vmem:[%s17424_s3 + $0xbd0] sm:$0xff]  ;;  %v11106_v23 = vld [vmem:[%s17424_s3 + $0xbe8] sm:$0xff]  ;;  %v11060_v30 = vld [vmem:[%s17424_s3 + $0xa78] sm:$0xff] }
 0x7de   : > { %v11119_v42 = vld [vmem:[%s17424_s3 + $0xc50] sm:$0xff] }
 0x7df   : > { %13475 = vmatpush1.bf16.msra.mxu0 %v13474_v59  ;;  %v11081_v59 = vld [vmem:[%s17424_s3 + $0xb20] sm:$0xff] }
 0x7e0   : > { %13477 = vmatprep.subr.bf16.mxu0 %v13476_v52  ;;  %v13566_v52 = vpack.c.bf16 %v11030_v27, %v11027_v11  ;;  %v13522_v27 = vpack.c.bf16 %v11106_v23, %v11103_v35 }
 0x7e2   : > { %13567 = vmatpush3.bf16.msra.mxu1 %v13566_v52  ;;  %v11110_v52 = vld [vmem:[%s17424_s3 + $0xc08] sm:$0xff] }
 0x7e3   : > { %13479 = vmatpush1.bf16.msra.mxu0 %v13478_v36  ;;  %v13568_v36 = vpack.c.bf16 %v11084_v34, %v11081_v59  ;;  %v13586_v59 = vpack.c.bf16 %v11060_v30, %v11057_v5  ;;  %v11113_v34 = vld [vmem:[%s17424_s3 + $0xc20] sm:$0xff]  ;;  %v11120_v5 = vld [vmem:[%s17424_s3 + $0xc58] sm:$0xff]  ;;  %v11122_v30 = vld [vmem:[%s17424_s3 + $0xc68] sm:$0xff] }
 0x7e4   : > { %13481 = vmatprep.subr.bf16.mxu0 %v13480_v47  ;;  %v11036_v47 = vld [vmem:[%s17424_s3 + $0x9b8] sm:$0xff] }
 0x7e5   : > { %v13570_v63 = vpack.c.bf16 %v11036_v47, %v11033_v18  ;;  %13569 = vmatprep.subr.bf16.mxu1 %v13568_v36 }
 0x7e7   : > { %13483 = vmatpush1.bf16.msra.mxu0 %v13482_v41  ;;  %v11087_v41 = vld [vmem:[%s17424_s3 + $0xb50] sm:$0xff]  ;;  %13571 = vmatpush3.bf16.msra.mxu1 %v13570_v63 }
 0x7e8   : > { %13485 = vmatprep.subr.bf16.mxu0 %v13484_v38  ;;  %v11089_v38 = vld [vmem:[%s17424_s3 + $0xb60] sm:$0xff] }
 0x7eb   : > { %13487 = vmatpush1.bf16.msra.mxu0 %v13486_v40  ;;  %v13572_v40 = vpack.c.bf16 %v11090_v24, %v11087_v41 }
 0x7ec   : > { %13489 = vmatprep.subr.bf16.mxu0 %v13488_v45  ;;  %v13508_v45 = vpack.c.bf16 %v11089_v38, %v11086_v37 }
 0x7ed   : > { %13573 = vmatprep.subr.bf16.mxu1 %v13572_v40 }
 0x7ef   : > { %13491 = vmatpush1.bf16.msra.mxu0 %v13490_v26  ;;  %v13574_v26 = vpack.c.bf16 %v11042_v28, %v11039_v57 }
 0x7f0   : > { %13493 = vmatprep.subr.bf16.mxu0 %v13492_v9  ;;  %v11093_v9 = vld [vmem:[%s17424_s3 + $0xb80] sm:$0xff] }
 0x7f1   : > { %13575 = vmatpush3.bf16.msra.mxu1 %v13574_v26 }
 0x7f3   : > { %13495 = vmatpush1.bf16.msra.mxu0 %v13494_v0  ;;  %v13576_v0 = vpack.c.bf16 %v11096_v61, %v11093_v9 }
 0x7f4   : > { %13497 = vmatprep.subr.bf16.mxu0 %v13496_v12  ;;  %v13516_v12 = vpack.c.bf16 %v11101_v58, %v11098_v10 }
 0x7f5   : > { %13577 = vmatprep.subr.bf16.mxu1 %v13576_v0 }
 0x7f6   : > { %13579 = vmatpush3.bf16.msra.mxu1 %v13578_v56 }
 0x7f7   : > { %13499 = vmatpush1.bf16.msra.mxu0 %v13498_v6  ;;  %v13582_v6 = vpack.c.bf16 %v11054_v4, %v11051_v16  ;;  %13581 = vmatprep.subr.bf16.mxu1 %v13580_v14  ;;  %v11111_v16 = vld [vmem:[%s17424_s3 + $0xc10] sm:$0xff]  ;;  %v11114_v4 = vld [vmem:[%s17424_s3 + $0xc28] sm:$0xff] }
 0x7f8   : > { %13501 = vmatprep.subr.bf16.mxu0 %v13500_v49  ;;  %v11108_v49 = vld [vmem:[%s17424_s3 + $0xbf8] sm:$0xff] }
 0x7f9   : > { %v13584_v11 = vpack.c.bf16 %v11108_v49, %v11105_v21  ;;  %v11115_v49 = vld [vmem:[%s17424_s3 + $0xc30] sm:$0xff] }
 0x7fa   : > { %13583 = vmatpush3.bf16.msra.mxu1 %v13582_v6  ;;  %v11116_v6 = vld [vmem:[%s17424_s3 + $0xc38] sm:$0xff] }
 0x7fb   : > { %13503 = vmatpush1.bf16.msra.mxu0 %v13502_v25  ;;  %13585 = vmatprep.subr.bf16.mxu1 %v13584_v11  ;;  %v13524_v25 = vpack.c.bf16 %v11113_v34, %v11110_v52  ;;  %v13528_v23 = vpack.c.bf16 %v11119_v42, %v11116_v6  ;;  %v11118_v11 = vld [vmem:[%s17424_s3 + $0xc48] sm:$0xff]  ;;  %v11149_v6 = vld [vmem:[%s17424_s3 + $0xd40] sm:$0xff] }
 0x7fc   : > { %13505 = vmatprep.subr.bf16.mxu0 %v13504_v3  ;;  %v13530_v52 = vpack.c.bf16 %v11118_v11, %v11115_v49  ;;  %v11150_v11 = vld [vmem:[%s17424_s3 + $0xd48] sm:$0xff] }
 0x7fe   : > { %13587 = vmatpush3.bf16.msra.mxu1 %v13586_v59  ;;  %v11125_v59 = vld [vmem:[%s17424_s3 + $0xc80] sm:$0xff] }
 0x7ff   : > { %13507 = vmatpush1.bf16.msra.mxu0 %v13506_v32  ;;  %13588 = vmatprep.subr.bf16.mxu1 %v14560_v19 }
 0x800   : > { %13509 = vmatprep.subr.bf16.mxu0 %v13508_v45 }
 0x803   : > { %13511 = vmatpush1.bf16.msra.mxu0 %v13510_v54 }
 0x804   : > { %13513 = vmatprep.subr.bf16.mxu0 %v13512_v60 }
 0x807   : > { %13515 = vmatpush1.bf16.msra.mxu0 %v13514_v1 }
 0x808   : > { %13517 = vmatprep.subr.bf16.mxu0 %v13516_v12 }
 0x80b   : > { %13519 = vmatpush1.bf16.msra.mxu0 %v13518_v15  ;;  %v11112_v15 = vld [vmem:[%s17424_s3 + $0xc18] sm:$0xff] }
 0x80c   : > { %13521 = vmatprep.subr.bf16.mxu0 %v13520_v22  ;;  %v13526_v21 = vpack.c.bf16 %v11112_v15, %v11109_v29  ;;  %v13589_v22 = vpack.c.bf16 %v11114_v4, %v11111_v16  ;;  %v11142_v29 = vld [vmem:[%s17424_s3 + $0xd08] sm:$0xff]  ;;  %v11144_v15 = vld [vmem:[%s17424_s3 + $0xd18] sm:$0xff] }
 0x80d   : > { %v11146_v4 = vld [vmem:[%s17424_s3 + $0xd28] sm:$0xff] }
 0x80e   : > { %v13548_v49 = vpack.c.bf16 %v11149_v6, %v11146_v4  ;;  %v6928_v4 = vld [vmem:[%s14726_s20 + $0xb0] sm:$0xff] }
 0x80f   : > { %13523 = vmatpush1.bf16.msra.mxu0 %v13522_v27  ;;  %v11117_v27 = vld [vmem:[%s17424_s3 + $0xc40] sm:$0xff] }
 0x810   : > { %13525 = vmatprep.subr.bf16.mxu0 %v13524_v25  ;;  %v13592_v34 = vpack.c.bf16 %v11120_v5, %v11117_v27  ;;  %v11121_v25 = vld [vmem:[%s17424_s3 + $0xc60] sm:$0xff]  ;;  %v11152_v5 = vld [vmem:[%s17424_s3 + $0xd58] sm:$0xff] }
 0x824   : > { %v11656_v36 = vpop.f32.mrb[30].mxu1 }
 0x825   : > { %v11657_v20 = vpop.f32.mrb[31].mxu1 }
 0x826   : > { %v11658_v18 = vadd.f32 %v11657_v20, %v11656_v36  ;;  %v13532_v20 = vpack.c.bf16 %v11125_v59, %v11122_v30  ;;  %v11155_v30 = vld [vmem:[%s17424_s3 + $0xd70] sm:$0xff] }
 0x828   : > { %v11659_v47 = vpop.f32.mrb[32].mxu1 }
 0x829   : > { %v11660_v3 = vpop.f32.mrb[33].mxu1 }
 0x82a   : > { %v11661_v33 = vadd.f32 %v11660_v3, %v11659_v47  ;;  %v11123_v47 = vld [vmem:[%s17424_s3 + $0xc70] sm:$0xff]  ;;  %v11126_v3 = vld [vmem:[%s17424_s3 + $0xc88] sm:$0xff] }
 0x82c   : > { %v11662_v41 = vpop.f32.mrb[34].mxu1 }
 0x82d   : > { %v11663_v24 = vpop.f32.mrb[35].mxu1 }
 0x82e   : > { %v11664_v37 = vadd.f32 %v11663_v24, %v11662_v41  ;;  %v11128_v41 = vld [vmem:[%s17424_s3 + $0xc98] sm:$0xff]  ;;  %v11131_v24 = vld [vmem:[%s17424_s3 + $0xcb0] sm:$0xff] }
 0x844   : > { %v5235_v38 = vpop.f32.mrb[36].mxu1 }
 0x845   : > { %v5236_v63 = vadd.f32 %v11658_v18, %v5235_v38  ;;  %v12066_v32 = vpop.f32.mrb[37].mxu1  ;;  %v11124_v18 = vld [vmem:[%s17424_s3 + $0xc78] sm:$0xff]  ;;  %v13595_v38 = vpack.c.bf16 %v11126_v3, %v11123_v47 }
 0x848   : > { %v5240_v40 = vpop.f32.mrb[38].mxu1 }
 0x849   : > { %v5241_v57 = vadd.f32 %v11661_v33, %v5240_v40  ;;  %v12069_v28 = vpop.f32.mrb[39].mxu1  ;;  %v13536_v40 = vpack.c.bf16 %v11131_v24, %v11128_v41  ;;  %v6909_v41 = vld [vmem:[%s14726_s20 + $0x18] sm:$0xff] }
 0x84a   : > { %v11129_v28 = vld [vmem:[%s17424_s3 + $0xca0] sm:$0xff] }
 0x84c   : > { %v5245_v45 = vpop.f32.mrb[40].mxu1 }
 0x84d   : > { %v5246_v51 = vadd.f32 %v11664_v37, %v5245_v45  ;;  %v12072_v53 = vpop.f32.mrb[41].mxu1  ;;  %v13534_v37 = vpack.c.bf16 %v11124_v18, %v11121_v25  ;;  %v11132_v45 = vld [vmem:[%s17424_s3 + $0xcb8] sm:$0xff]  ;;  %v13552_v25 = vpack.c.bf16 %v11155_v30, %v11152_v5  ;;  %v6934_v5 = vld [vmem:[%s14726_s20 + $0xe0] sm:$0xff]  ;;  %v6936_v30 = vld [vmem:[%s14726_s20 + $0xf0] sm:$0xff] }
 0x84e   : > { %v11134_v53 = vld [vmem:[%s17424_s3 + $0xcc8] sm:$0xff]  ;;  %v11156_v18 = vld [vmem:[%s17424_s3 + $0xd78] sm:$0xff] }
 0x865   : > { %v11716_v26 = vpop.f32.mrb[42].mxu1 }
 0x866   : > { %v11717_v54 = vpop.f32.mrb[43].mxu1 }
 0x867   : > { %v11718_v50 = vadd.f32 %v11717_v54, %v11716_v26  ;;  %v11137_v26 = vld [vmem:[%s17424_s3 + $0xce0] sm:$0xff] }
 0x869   : > { %v11719_v55 = vpop.f32.mrb[44].mxu1  ;;  %v5482_v9 = vadd.f32 %v11718_v50, %v5236_v63  ;;  %v11127_v63 = vld [vmem:[%s17424_s3 + $0xc90] sm:$0xff]  ;;  %v13598_v50 = vpack.c.bf16 %v11132_v45, %v11129_v28  ;;  %v6910_v28 = vld [vmem:[%s14726_s20 + $0x20] sm:$0xff] }
 0x86a   : > { %v11720_v60 = vpop.f32.mrb[45].mxu1  ;;  %v6912_v45 = vld [vmem:[%s14726_s20 + $0x30] sm:$0xff] }
 0x86b   : > { %v11721_v61 = vadd.f32 %v11720_v60, %v11719_v55  ;;  %v11133_v55 = vld [vmem:[%s17424_s3 + $0xcc0] sm:$0xff]  ;;  %v13540_v60 = vpack.c.bf16 %v11137_v26, %v11134_v53  ;;  %v6915_v53 = vld [vmem:[%s14726_s20 + $0x48] sm:$0xff]  ;;  %v6917_v26 = vld [vmem:[%s14726_s20 + $0x58] sm:$0xff] }
 0x86d   : > { %v11722_v7 = vpop.f32.mrb[46].mxu1  ;;  %v5487_v48 = vadd.f32 %v11721_v61, %v5241_v57  ;;  %v11130_v57 = vld [vmem:[%s17424_s3 + $0xca8] sm:$0xff]  ;;  %v11136_v61 = vld [vmem:[%s17424_s3 + $0xcd8] sm:$0xff] }
 0x86e   : > { %v11723_v0 = vpop.f32.mrb[47].mxu1  ;;  %v13538_v54 = vpack.c.bf16 %v11130_v57, %v11127_v63 }
 0x86f   : > { %v11724_v1 = vadd.f32 %v11723_v0, %v11722_v7  ;;  %v11135_v7 = vld [vmem:[%s17424_s3 + $0xcd0] sm:$0xff] }
 0x871   : > { %v5492_v2 = vadd.f32 %v11724_v1, %v5246_v51  ;;  %v11140_v1 = vld [vmem:[%s17424_s3 + $0xcf8] sm:$0xff] }
 0x885   : > { %v5561_v8 = vpop.f32.mrb[48].mxu1 }
 0x886   : > { %v16363_v56 = vadd.f32 %v5561_v8, %v5482_v9  ;;  %v12107_v10 = vpop.f32.mrb[49].mxu1  ;;  %v13542_v8 = vpack.c.bf16 %v11136_v61, %v11133_v55  ;;  %v6916_v55 = vld [vmem:[%s14726_s20 + $0x50] sm:$0xff]  ;;  %v6921_v61 = vld [vmem:[%s14726_s20 + $0x78] sm:$0xff] }
 0x889   : > { %v5566_v58 = vpop.f32.mrb[50].mxu1 }
 0x88a   : > { %v16365_v62 = vadd.f32 %v5566_v58, %v5487_v48  ;;  %v12110_v12 = vpop.f32.mrb[51].mxu1  ;;  %v11138_v48 = vld [vmem:[%s17424_s3 + $0xce8] sm:$0xff]  ;;  %v11139_v58 = vld [vmem:[%s17424_s3 + $0xcf0] sm:$0xff] }
 0x88b   : > { %v13601_v10 = vpack.c.bf16 %v11138_v48, %v11135_v7  ;;  %v13546_v42 = vpack.c.bf16 %v11142_v29, %v11139_v58  ;;  %v6918_v48 = vld [vmem:[%s14726_s20 + $0x60] sm:$0xff]  ;;  %v6927_v29 = vld [vmem:[%s14726_s20 + $0xa8] sm:$0xff] }
 0x88c   : > { %v6922_v58 = vld [vmem:[%s14726_s20 + $0x80] sm:$0xff] }
 0x88d   : > { %v5571_v13 = vpop.f32.mrb[52].mxu1 }
 0x88e   : > { %v16368_v31 = vadd.f32 %v5571_v13, %v5492_v2  ;;  %v12113_v14 = vpop.f32.mrb[53].mxu1  ;;  %v11143_v2 = vld [vmem:[%s17424_s3 + $0xd10] sm:$0xff] }
 0x88f   : > { %v13544_v13 = vpack.c.bf16 %v11143_v2, %v11140_v1  ;;  %v11141_v14 = vld [vmem:[%s17424_s3 + $0xd00] sm:$0xff]  ;;  %v6923_v2 = vld [vmem:[%s14726_s20 + $0x88] sm:$0xff] }
 0x891   : > { %v5654_v17 = vpop.f32.mrb[54].mxu1 }
 0x892   : > { %v5656_v35 = vpop.f32.mrb[55].mxu1 }
 0x893   : > { %5960 = vmatprep.mubr.f32.mxu0 %v5656_v35  ;;  %6126 = vmatprep.mubr.f32.mxu1 %v5656_v35  ;;  %v11148_v35 = vld [vmem:[%s17424_s3 + $0xd38] sm:$0xff] }
 0x894   : > { %5961 = vmatmul.mubr.f32.vlgmr.msra.gmra.mrb[100].mxu0 %v5654_v17  ;;  %6127 = vmatmul.mubr.f32.vlgmr.msra.gmra.mrb[66].mxu1 %v5654_v17  ;;  %v13604_v17 = vpack.c.bf16 %v11144_v15, %v11141_v14  ;;  %v6929_v14 = vld [vmem:[%s14726_s20 + $0xb8] sm:$0xff] }
 0x895   : > { %13527 = vmatpush1.bf16.msra.mxu0 %v13526_v21  ;;  %13590 = vmatpush3.bf16.msra.mxu1 %v13589_v22  ;;  %v5660_v36 = vpop.f32.mrb[56].mxu1  ;;  %v11145_v21 = vld [vmem:[%s17424_s3 + $0xd20] sm:$0xff]  ;;  %v13736_v15 = vpack.c.bf16 %v6929_v14, %v6927_v29 }
 0x896   : > { %13529 = vmatprep.subr.bf16.mxu0 %v13528_v23  ;;  %13591 = vmatprep.subr.bf16.mxu1 %v14560_v19  ;;  %v5662_v33 = vpop.f32.mrb[57].mxu1  ;;  %v11147_v23 = vld [vmem:[%s17424_s3 + $0xd30] sm:$0xff]  ;;  %v13550_v59 = vpack.c.bf16 %v11148_v35, %v11145_v21 }
 0x897   : > { %6131 = vmatprep.mubr.f32.mxu1 %v5662_v33  ;;  %5966 = vmatprep.mubr.f32.mxu0 %v5662_v33  ;;  %v6907_v33 = vld [vmem:[%s14726_s20 + $0x8] sm:$0xff] }
 0x898   : > { %6132 = vmatmul.mubr.f32.gmra.mrb[68].mxu1 %v5660_v36  ;;  %5967 = vmatmul.mubr.f32.gmra.mrb[102].mxu0 %v5660_v36  ;;  %v11154_v36 = vld [vmem:[%s17424_s3 + $0xd68] sm:$0xff]  ;;  %v13716_v24 = vpack.c.bf16 %v6909_v41, %v6907_v33  ;;  %v6942_v41 = vld [vmem:[%s14726_s20 + $0x120] sm:$0xff] }
 0x899   : > { %13531 = vmatpush1.bf16.msra.mxu0 %v13530_v52  ;;  %13593 = vmatpush3.bf16.msra.mxu1 %v13592_v34  ;;  %v5666_v32 = vpop.f32.mrb[58].mxu1  ;;  %v13607_v52 = vpack.c.bf16 %v11150_v11, %v11147_v23  ;;  %v11151_v34 = vld [vmem:[%s17424_s3 + $0xd50] sm:$0xff]  ;;  %v6935_v23 = vld [vmem:[%s14726_s20 + $0xe8] sm:$0xff]  ;;  %v6937_v11 = vld [vmem:[%s14726_s20 + $0xf8] sm:$0xff] }
 0x89a   : > { %13533 = vmatprep.subr.bf16.mxu0 %v13532_v20  ;;  %13594 = vmatprep.subr.bf16.mxu1 %v14560_v19  ;;  %v5668_v51 = vpop.f32.mrb[59].mxu1  ;;  %v11153_v20 = vld [vmem:[%s17424_s3 + $0xd60] sm:$0xff]  ;;  %v13554_v47 = vpack.c.bf16 %v11154_v36, %v11151_v34  ;;  %v6941_v34 = vld [vmem:[%s14726_s20 + $0x118] sm:$0xff]  ;;  %s17439_s3 = sld [smem:[#allocation15_spill]] }
 0x89b   : > { %6136 = vmatprep.mubr.f32.mxu1 %v5668_v51  ;;  %5972 = vmatprep.mubr.f32.mxu0 %v5668_v51  ;;  %v13610_v3 = vpack.c.bf16 %v11156_v18, %v11153_v20  ;;  %v13722_v51 = vpack.c.bf16 %v6912_v45, %v6910_v28  ;;  %v6938_v36 = vld [vmem:[%s14726_s20 + $0x100] sm:$0xff]  ;;  %v6940_v20 = vld [vmem:[%s14726_s20 + $0x110] sm:$0xff]  ;;  %v6951_v45 = vld [vmem:[%s14726_s20 + $0x168] sm:$0xff] }
 0x89c   : > { %6137 = vmatmul.mubr.f32.gmra.mrb[70].mxu1 %v5666_v32  ;;  %5973 = vmatmul.mubr.f32.gmra.mrb[104].mxu0 %v5666_v32  ;;  %v6911_v32 = vld [vmem:[%s14726_s20 + $0x28] sm:$0xff]  ;;  %v13750_v18 = vpack.c.bf16 %v6940_v20, %v6938_v36 }
 0x89d   : > { %13535 = vmatpush1.bf16.msra.mxu0 %v13534_v37  ;;  %13596 = vmatpush3.bf16.msra.mxu1 %v13595_v38  ;;  %v5737_v9 = vpop.f32.mrb[60].mxu1  ;;  %v6906_v37 = vld [vmem:[%s14726_s20] sm:$0xff]  ;;  %v6908_v38 = vld [vmem:[%s14726_s20 + $0x10] sm:$0xff] }
 0x89e   : > { %13537 = vmatprep.subr.bf16.mxu0 %v13536_v40  ;;  %13597 = vmatprep.subr.bf16.mxu1 %v14560_v19  ;;  %v12122_v0 = vpop.f32.mrb[61].mxu1  ;;  %v13718_v63 = vpack.c.bf16 %v6908_v38, %v6906_v37  ;;  %v6913_v40 = vld [vmem:[%s14726_s20 + $0x38] sm:$0xff]  ;;  %v6947_v38 = vld [vmem:[%s14726_s20 + $0x148] sm:$0xff] }
 0x89f   : > { %6043 = vmatprep.mubr.f32.mxu0 %v14559_v39  ;;  %12161 = vmatprep.mubr.msk.f32.mxu1 %vm14561_vm9, %v14559_v39  ;;  %v13720_v57 = vpack.c.bf16 %v6913_v40, %v6911_v32  ;;  %v6920_v0 = vld [vmem:[%s14726_s20 + $0x70] sm:$0xff]  ;;  %v6946_v40 = vld [vmem:[%s14726_s20 + $0x140] sm:$0xff] }
 0x8a0   : > { %v13730_v1 = vpack.c.bf16 %v6920_v0, %v6918_v48 }
 0x8a1   : > { %13539 = vmatpush1.bf16.msra.mxu0 %v13538_v54  ;;  %13599 = vmatpush3.bf16.msra.mxu1 %v13598_v50  ;;  %v5742_v12 = vpop.f32.mrb[62].mxu1  ;;  %v13724_v54 = vpack.c.bf16 %v6917_v26, %v6915_v53  ;;  %v6914_v50 = vld [vmem:[%s14726_s20 + $0x40] sm:$0xff] }
 0x8a2   : > { %13541 = vmatprep.subr.bf16.mxu0 %v13540_v60  ;;  %13600 = vmatprep.subr.bf16.mxu1 %v14560_v19  ;;  %v12125_v16 = vpop.f32.mrb[63].mxu1  ;;  %v6919_v60 = vld [vmem:[%s14726_s20 + $0x68] sm:$0xff]  ;;  %v6950_v26 = vld [vmem:[%s14726_s20 + $0x160] sm:$0xff] }
 0x8a3   : > { %v13728_v7 = vpack.c.bf16 %v6921_v61, %v6919_v60  ;;  %v6926_v16 = vld [vmem:[%s14726_s20 + $0xa0] sm:$0xff] }
 0x8a4   : > { %v13738_v6 = vpack.c.bf16 %v6928_v4, %v6926_v16 }
 0x8a5   : > { %13543 = vmatpush1.bf16.msra.mxu0 %v13542_v8  ;;  %13602 = vmatpush3.bf16.msra.mxu1 %v13601_v10  ;;  %v5747_v22 = vpop.f32.mrb[64].mxu1  ;;  %v6925_v8 = vld [vmem:[%s14726_s20 + $0x98] sm:$0xff] }
 0x8a6   : > { %13545 = vmatprep.subr.bf16.mxu0 %v13544_v13  ;;  %13603 = vmatprep.subr.bf16.mxu1 %v14560_v19  ;;  %v12128_v27 = vpop.f32.mrb[65].mxu1  ;;  %v13732_v10 = vpack.c.bf16 %v6925_v8, %v6923_v2  ;;  %v6231_v8 = vld [vmem:[%s14616_s14] ss:$4 sm:$0x7] }
 0x8a7   : > { %v13744_v27 = vpack.c.bf16 %v6937_v11, %v6935_v23  ;;  %v6244_v16 = vrot.slane %v6231_v8, %v14979_v44 }
 0x8a9   : > { %13547 = vmatpush1.bf16.msra.mxu0 %v13546_v42  ;;  %13605 = vmatpush3.bf16.msra.mxu1 %v13604_v17  ;;  %v6931_v42 = vld [vmem:[%s14726_s20 + $0xc8] sm:$0xff]  ;;  %v6933_v17 = vld [vmem:[%s14726_s20 + $0xd8] sm:$0xff] }
 0x8aa   : > { %13549 = vmatprep.subr.bf16.mxu0 %v13548_v49  ;;  %13606 = vmatprep.subr.bf16.mxu1 %v14560_v19  ;;  %v13740_v21 = vpack.c.bf16 %v6933_v17, %v6931_v42  ;;  %v6932_v49 = vld [vmem:[%s14726_s20 + $0xd0] sm:$0xff] }
 0x8ad   : > { %13551 = vmatpush1.bf16.msra.mxu0 %v13550_v59  ;;  %13608 = vmatpush3.bf16.msra.mxu1 %v13607_v52  ;;  %v13746_v59 = vpack.c.bf16 %v6936_v30, %v6934_v5  ;;  %v6939_v52 = vld [vmem:[%s14726_s20 + $0x108] sm:$0xff] }
 0x8ae   : > { %13553 = vmatprep.subr.bf16.mxu0 %v13552_v25  ;;  %13609 = vmatprep.subr.bf16.mxu1 %v14560_v19  ;;  %v13748_v25 = vpack.c.bf16 %v6941_v34, %v6939_v52 }
 0x8b1   : > { %13555 = vmatpush1.bf16.msra.mxu0 %v13554_v47  ;;  %13611 = vmatpush3.bf16.msra.mxu1 %v13610_v3  ;;  %v6943_v47 = vld [vmem:[%s14726_s20 + $0x128] sm:$0xff]  ;;  %v6945_v3 = vld [vmem:[%s14726_s20 + $0x138] sm:$0xff] }
 0x8b2   : > { %13717 = vmatprep.subr.bf16.mxu0 %v13716_v24  ;;  %v13752_v33 = vpack.c.bf16 %v6945_v3, %v6943_v47  ;;  %v6944_v24 = vld [vmem:[%s14726_s20 + $0x130] sm:$0xff] }
 0x8b3   : > { %v13754_v37 = vpack.c.bf16 %v6944_v24, %v6942_v41 }
 0x8b4   : > { %6044 = vmatmul.mubr.f32.vlgmr.msra.gmra.mrb[100].mxu0 %v5737_v9  ;;  %12162 = vmatmul.mubr.f32.vlgmr.msra.gmra.mrb[72].mxu1 %v5737_v9  ;;  %v13726_v9 = vpack.c.bf16 %v6916_v55, %v6914_v50 }
 0x8b5   : > { %6049 = vmatprep.mubr.f32.mxu0 %v14559_v39  ;;  %12164 = vmatprep.mubr.msk.f32.mxu1 %vm14561_vm9, %v14559_v39 }
 0x8b6   : > { %13719 = vmatpush1.bf16.msra.mxu0 %v13718_v63  ;;  %v6949_v63 = vld [vmem:[%s14726_s20 + $0x158] sm:$0xff] }
 0x8b7   : > { %13721 = vmatprep.subr.bf16.mxu0 %v13720_v57  ;;  %v13756_v32 = vpack.c.bf16 %v6949_v63, %v6947_v38  ;;  %v6948_v57 = vld [vmem:[%s14726_s20 + $0x150] sm:$0xff] }
 0x8b8   : > { %6050 = vmatmul.mubr.f32.gmra.mrb[102].mxu0 %v5742_v12  ;;  %12165 = vmatmul.mubr.f32.gmra.mrb[74].mxu1 %v5742_v12  ;;  %v6924_v12 = vld [vmem:[%s14726_s20 + $0x90] sm:$0xff]  ;;  %v13758_v28 = vpack.c.bf16 %v6948_v57, %v6946_v40 }
 0x8b9   : > { %6055 = vmatprep.mubr.f32.mxu0 %v14559_v39  ;;  %12167 = vmatprep.mubr.msk.f32.mxu1 %vm14561_vm9, %v14559_v39  ;;  %v13734_v13 = vpack.c.bf16 %v6924_v12, %v6922_v58  ;;  %v6240_v58 = vrot.slane %v6231_v8, %v14982_v46  ;;  %v11157_v12 = vld [vmem:[%s14616_s14 + $0x1] ss:$4 sm:$0x7] }
 0x8ba   : > { %13723 = vmatpush1.bf16.msra.mxu0 %v13722_v51  ;;  %v6953_v51 = vld [vmem:[%s14726_s20 + $0x178] sm:$0xff]  ;;  %v6272_v42 = vrot.slane %v11157_v12, %v14977_v43  ;;  %v6276_v23 = vrot.slane %v11157_v12, %v14982_v46  ;;  %v6280_v47 = vrot.slane %v11157_v12, %v14979_v44 }
 0x8bb   : > { %13725 = vmatprep.subr.bf16.mxu0 %v13724_v54  ;;  %v13760_v53 = vpack.c.bf16 %v6953_v51, %v6951_v45  ;;  %v6952_v54 = vld [vmem:[%s14726_s20 + $0x170] sm:$0xff] }
 0x8bc   : > { %6056 = vmatmul.mubr.f32.gmra.mrb[104].mxu0 %v5747_v22  ;;  %12168 = vmatmul.mubr.f32.gmra.mrb[76].mxu1 %v5747_v22  ;;  %v6930_v22 = vld [vmem:[%s14726_s20 + $0xc0] sm:$0xff]  ;;  %v13762_v50 = vpack.c.bf16 %v6952_v54, %v6950_v26 }
 0x8bd   : > { %6403 = vmatprep.mubr.f32.mxu1 %v14559_v39  ;;  %v13742_v35 = vpack.c.bf16 %v6932_v49, %v6930_v22  ;;  %v11158_v22 = vld [vmem:[%s14616_s14 + $0x2] ss:$4 sm:$0x7] }
 0x8be   : > { %13727 = vmatpush1.bf16.msra.mxu0 %v13726_v9  ;;  %v6299_v36 = vrot.slane %v11158_v22, %v14977_v43  ;;  %v6303_v41 = vrot.slane %v11158_v22, %v14982_v46  ;;  %v6307_v63 = vrot.slane %v11158_v22, %v14979_v44  ;;  %v6492_v22 = vld [vmem:[%s17423_s4 + $0x8] sm:$0x7] }
 0x8bf   : > { %13729 = vmatprep.subr.bf16.mxu0 %v13728_v7 }
 0x8c2   : > { %13731 = vmatpush1.bf16.msra.mxu0 %v13730_v1 }
 0x8c3   : > { %13733 = vmatprep.subr.bf16.mxu0 %v13732_v10  ;;  %v6236_v10 = vrot.slane %v6231_v8, %v14977_v43 }
 0x8c6   : > { %13735 = vmatpush1.bf16.msra.mxu0 %v13734_v13 }
 0x8c7   : > { %13737 = vmatprep.subr.bf16.mxu0 %v13736_v15 }
 0x8ca   : > { %13739 = vmatpush1.bf16.msra.mxu0 %v13738_v6 }
 0x8cb   : > { %13741 = vmatprep.subr.bf16.mxu0 %v13740_v21 }
 0x8ce   : > { %13743 = vmatpush1.bf16.msra.mxu0 %v13742_v35 }
 0x8cf   : > { %13745 = vmatprep.subr.bf16.mxu0 %v13744_v27 }
 0x8d2   : > { %13747 = vmatpush1.bf16.msra.mxu0 %v13746_v59 }
 0x8d3   : > { %13749 = vmatprep.subr.bf16.mxu0 %v13748_v25 }
 0x8d6   : > { %13751 = vmatpush1.bf16.msra.mxu0 %v13750_v18 }
 0x8d7   : > { %13753 = vmatprep.subr.bf16.mxu0 %v13752_v33 }
 0x8da   : > { %13755 = vmatpush1.bf16.msra.mxu0 %v13754_v37 }
 0x8db   : > { %13757 = vmatprep.subr.bf16.mxu0 %v13756_v32 }
 0x8de   : > { %13759 = vmatpush1.bf16.msra.mxu0 %v13758_v28 }
 0x8df   : > { %13761 = vmatprep.subr.bf16.mxu0 %v13760_v53 }
 0x8e2   : > { %13763 = vmatpush1.bf16.msra.mxu0 %v13762_v50 }
 0x967   : > { %v11782_v55 = vpop.f32.mrb[66].mxu1 }
 0x968   : > { %v11783_v9 = vpop.f32.mrb[67].mxu1 }
 0x969   : > { %v11784_v60 = vadd.f32 %v11783_v9, %v11782_v55 }
 0x96b   : > { %v11785_v61 = vpop.f32.mrb[68].mxu1 }
 0x96c   : > { %v11786_v7 = vpop.f32.mrb[69].mxu1 }
 0x96d   : > { %v11787_v48 = vadd.f32 %v11786_v7, %v11785_v61 }
 0x96f   : > { %v11788_v0 = vpop.f32.mrb[70].mxu1 }
 0x970   : > { %v11789_v1 = vpop.f32.mrb[71].mxu1 }
 0x971   : > { %v11790_v2 = vadd.f32 %v11789_v1, %v11788_v0 }
 0x987   : > { %v6045_v13 = vpop.f32.mrb[100].mxu0  ;;  %v6208_v29 = vpop.f32.mrb[72].mxu1 }
 0x988   : > { %v6248_v14 = vadd.f32 %v6236_v10, %v6045_v13  ;;  %v6209_v15 = vadd.f32 %v11784_v60, %v6208_v29  ;;  %v6047_v4 = vpop.f32.mrb[101].mxu0  ;;  %v12163_v6 = vpop.f32.mrb[73].mxu1 }
 0x989   : > { %v6249_v17 = vadd.f32 %v6240_v58, %v6047_v4  ;;  %v6320_v4 = vld [vmem:[%s14711_s27] sm:$0xff]  ;;  %v6321_v6 = vld [vmem:[%s14711_s27 + $0x8] sm:$0x7] }
 0x98a   : > { %v6257_v21 = vmax.f32 %v6248_v14, 0.0  ;;  %v6224_v49 = vadd.f32 %v6209_v15, %v16363_v56 }
 0x98b   : > { %v6258_v35 = vmax.f32 %v6249_v17, 0.0  ;;  %v6051_v11 = vpop.f32.mrb[102].mxu0  ;;  %v6213_v27 = vpop.f32.mrb[74].mxu1  ;;  %v6658_v17 = vld [vmem:[%s17419_s12 + $0x8] sm:$0xff] }
 0x98c   : > { %v6250_v5 = vadd.f32 %v6244_v16, %v6224_v49  ;;  %v6251_v30 = vadd.f32 %v6236_v10, %v6051_v11  ;;  %v6214_v59 = vadd.f32 %v11787_v48, %v6213_v27  ;;  %v6053_v52 = vpop.f32.mrb[103].mxu0  ;;  %v12166_v34 = vpop.f32.mrb[75].mxu1  ;;  %v6284_v25 = vmul.f32 %v6272_v42, %v6257_v21  ;;  %v6660_v21 = vld [vmem:[%s17419_s12 + $0x18] sm:$0xff]  ;;  %v6662_v11 = vld [vmem:[%s17419_s12 + $0x28] sm:$0xff] }
 0x98d   : > { %v6252_v20 = vadd.f32 %v6240_v58, %v6053_v52  ;;  %v6285_v33 = vmul.f32 %v6276_v23, %v6258_v35  ;;  %v13628_v49 = vpack.c.bf16 %v6660_v21, %v6658_v17  ;;  %v6657_v35 = vld [vmem:[%s17419_s12] sm:$0xff]  ;;  %v6664_v27 = vld [vmem:[%s17419_s12 + $0x38] sm:$0xff]  ;;  %v6663_v52 = vld [vmem:[%s17419_s12 + $0x30] sm:$0xff] }
 0x98e   : > { %v6259_v18 = vmax.f32 %v6250_v5, 0.0  ;;  %v6260_v3 = vmax.f32 %v6251_v30, 0.0  ;;  %v6227_v56 = vadd.f32 %v6214_v59, %v16365_v62  ;;  %v6311_v51 = vadd.f32 %v6299_v36, %v6284_v25  ;;  %v6661_v59 = vld [vmem:[%s17419_s12 + $0x20] sm:$0xff]  ;;  %v6666_v34 = vld [vmem:[%s17419_s12 + $0x48] sm:$0xff]  ;;  %v6668_v25 = vld [vmem:[%s17419_s12 + $0x58] sm:$0xff] }
 0x98f   : > { %v6261_v24 = vmax.f32 %v6252_v20, 0.0  ;;  %v6057_v37 = vpop.f32.mrb[104].mxu0  ;;  %v6218_v38 = vpop.f32.mrb[76].mxu1  ;;  %v6312_v60 = vadd.f32 %v6303_v41, %v6285_v33  ;;  %v13632_v30 = vpack.c.bf16 %v6664_v27, %v6662_v11  ;;  %v13636_v20 = vpack.c.bf16 %v6668_v25, %v6666_v34  ;;  %v6698_v17 = vld [vmem:[%s17419_s12 + $0x148] sm:$0xff]  ;;  %v6700_v21 = vld [vmem:[%s17419_s12 + $0x158] sm:$0xff] }
 0x990   : > { %v6287_v32 = vmul.f32 %v6272_v42, %v6260_v3  ;;  %v6253_v40 = vadd.f32 %v6244_v16, %v6227_v56  ;;  %v6254_v57 = vadd.f32 %v6236_v10, %v6057_v37  ;;  %v6059_v28 = vpop.f32.mrb[105].mxu0  ;;  %v12169_v45 = vpop.f32.mrb[77].mxu1  ;;  %v6219_v26 = vadd.f32 %v11790_v2, %v6218_v38  ;;  %v6670_v3 = vld [vmem:[%s17419_s12 + $0x68] sm:$0xff]  ;;  %v6672_v56 = vld [vmem:[%s17419_s12 + $0x78] sm:$0xff]  ;;  %v6671_v37 = vld [vmem:[%s17419_s12 + $0x70] sm:$0xff] }
 0x991   : > { %v6288_v53 = vmul.f32 %v6276_v23, %v6261_v24  ;;  %v6255_v54 = vadd.f32 %v6240_v58, %v6059_v28  ;;  %v6286_v50 = vmul.f32 %v6280_v47, %v6259_v18  ;;  %v6665_v18 = vld [vmem:[%s17419_s12 + $0x40] sm:$0xff]  ;;  %v6674_v38 = vld [vmem:[%s17419_s12 + $0x88] sm:$0xff]  ;;  %v6675_v28 = vld [vmem:[%s17419_s12 + $0x90] sm:$0xff] }
 0x992   : > { %v6314_v55 = vadd.f32 %v6299_v36, %v6287_v32  ;;  %v6262_v62 = vmax.f32 %v6253_v40, 0.0  ;;  %v6263_v9 = vmax.f32 %v6254_v57, 0.0  ;;  %v6230_v7 = vadd.f32 %v6219_v26, %v16368_v31  ;;  %v6669_v24 = vld [vmem:[%s17419_s12 + $0x60] sm:$0xff]  ;;  %v6678_v45 = vld [vmem:[%s17419_s12 + $0xa8] sm:$0xff]  ;;  %v6704_v27 = vld [vmem:[%s17419_s12 + $0x178] sm:$0xff] }
 0x993   : > { %v6315_v61 = vadd.f32 %v6303_v41, %v6288_v53  ;;  %v6264_v48 = vmax.f32 %v6255_v54, 0.0  ;;  %v6313_v12 = vadd.f32 %v6307_v63, %v6286_v50  ;;  %v13642_v32 = vpack.c.bf16 %v6671_v37, %v6669_v24  ;;  %v6673_v57 = vld [vmem:[%s17419_s12 + $0x80] sm:$0xff]  ;;  %v6679_v50 = vld [vmem:[%s17419_s12 + $0xb0] sm:$0xff]  ;;  %v6702_v11 = vld [vmem:[%s17419_s12 + $0x168] sm:$0xff] }
 0x994   : > { %v13614_v0 = vpack.c.bf16 %v6314_v55, %v6311_v51  ;;  %v6289_v44 = vmul.f32 %v6280_v47, %v6262_v62  ;;  %v6256_v1 = vadd.f32 %v6244_v16, %v6230_v7  ;;  %v6290_v29 = vmul.f32 %v6272_v42, %v6263_v9  ;;  %v6491_v42 = vld [vmem:[%s17423_s4] sm:$0xff]  ;;  %v6680_v51 = vld [vmem:[%s17419_s12 + $0xb8] sm:$0xff]  ;;  %v6682_v55 = vld [vmem:[%s17419_s12 + $0xc8] sm:$0xff]  ;;  %s17440_s4 = sld [smem:[#allocation14_spill]] }
 0x995   : > { %v6291_v8 = vmul.f32 %v6276_v23, %v6264_v48  ;;  %v13612_v10 = vpack.c.bf16 %v6315_v61, %v6312_v60  ;;  %v6659_v23 = vld [vmem:[%s17419_s12 + $0x10] sm:$0xff]  ;;  %v13646_v53 = vpack.c.bf16 %v6675_v28, %v6673_v57  ;;  %v13648_v26 = vpack.c.bf16 %v6680_v51, %v6678_v45  ;;  %v6677_v54 = vld [vmem:[%s17419_s12 + $0xa0] sm:$0xff]  ;;  %v6684_v62 = vld [vmem:[%s17419_s12 + $0xd8] sm:$0xff] }
 0x996   : > { %v6316_v13 = vadd.f32 %v6307_v63, %v6289_v44  ;;  %v6265_v2 = vmax.f32 %v6256_v1, 0.0  ;;  %v6317_v31 = vadd.f32 %v6299_v36, %v6290_v29  ;;  %v13630_v5 = vpack.c.bf16 %v6659_v23, %v6657_v35  ;;  %v6681_v61 = vld [vmem:[%s17419_s12 + $0xc0] sm:$0xff]  ;;  %v6683_v7 = vld [vmem:[%s17419_s12 + $0xd0] sm:$0xff]  ;;  %v6686_v48 = vld [vmem:[%s17419_s12 + $0xe8] sm:$0xff] }
 0x997   : > { %v6318_v58 = vadd.f32 %v6303_v41, %v6291_v8  ;;  %13613 = vmatprep.subr.bf16.mxu1 %v13612_v10  ;;  %v13634_v36 = vpack.c.bf16 %v6663_v52, %v6661_v59  ;;  %v13640_v41 = vpack.c.bf16 %v6672_v56, %v6670_v3  ;;  %v13650_v9 = vpack.c.bf16 %v6679_v50, %v6677_v54  ;;  %v6685_v8 = vld [vmem:[%s17419_s12 + $0xe0] sm:$0xff]  ;;  %v6699_v23 = vld [vmem:[%s17419_s12 + $0x150] sm:$0xff]  ;;  %v6706_v25 = vld [vmem:[%s17419_s12 + $0x188] sm:$0xff] }
 0x998   : > { %13615 = vmatpush1.bf16.msra.mxu1 %v13614_v0  ;;  %v13616_v14 = vpack.c.bf16 %v6316_v13, %v6313_v12  ;;  %v6292_v15 = vmul.f32 %v6280_v47, %v6265_v2  ;;  %v6667_v47 = vld [vmem:[%s17419_s12 + $0x50] sm:$0xff]  ;;  %v13652_v60 = vpack.c.bf16 %v6684_v62, %v6682_v55  ;;  %v13654_v44 = vpack.c.bf16 %v6683_v7, %v6681_v61  ;;  %v6690_v12 = vld [vmem:[%s17419_s12 + $0x108] sm:$0xff]  ;;  %v6692_v13 = vld [vmem:[%s17419_s12 + $0x118] sm:$0xff] }
 0x999   : > { %11159 = vmatprep.subr.msk.mxu1 %vm6329_vm10, %v6318_v58  ;;  %v13638_v33 = vpack.c.bf16 %v6667_v47, %v6665_v18  ;;  %v13660_v2 = vpack.c.bf16 %v6692_v13, %v6690_v12  ;;  %v6697_v35 = vld [vmem:[%s17419_s12 + $0x140] sm:$0xff]  ;;  %v6703_v52 = vld [vmem:[%s17419_s12 + $0x170] sm:$0xff]  ;;  %v6957_v47 = vld [vmem:[%s14726_s20 + $0x198] sm:$0xff] }
 0x99a   : > { %v6319_v16 = vadd.f32 %v6307_v63, %v6292_v15  ;;  %v6676_v63 = vld [vmem:[%s17419_s12 + $0x98] sm:$0xff]  ;;  %v6694_v15 = vld [vmem:[%s17419_s12 + $0x128] sm:$0xff]  ;;  %v6701_v59 = vld [vmem:[%s17419_s12 + $0x160] sm:$0xff] }
 0x99b   : > { %v13644_v40 = vpack.c.bf16 %v6676_v63, %v6674_v38  ;;  %v13674_v34 = vpack.c.bf16 %v6703_v52, %v6701_v59  ;;  %v6705_v3 = vld [vmem:[%s17419_s12 + $0x180] sm:$0xff]  ;;  %v6707_v56 = vld [vmem:[%s17419_s12 + $0x190] sm:$0xff]  ;;  %v6710_v63 = vld [vmem:[%s17419_s12 + $0x1a8] sm:$0xff] }
 0x99c   : > { %11160 = vmatpush1.msk.msra.mxu1 %vm6329_vm10, %v6317_v31  ;;  %v6954_v24 = vld [vmem:[%s14726_s20 + $0x180] sm:$0xff]  ;;  %v6956_v37 = vld [vmem:[%s14726_s20 + $0x190] sm:$0xff]  ;;  %v6961_v28 = vld [vmem:[%s14726_s20 + $0x1b8] sm:$0xff] }
 0x99d   : > { %11161 = vmatmul.mubr.msk.f32.vlgmr.msra.gmra.mrb[78].mxu1 %vm6322_vm11, %v6320_v4  ;;  %13617 = vmatprep.subr.bf16.mxu1 %v13616_v14  ;;  %v13766_v38 = vpack.c.bf16 %v6956_v37, %v6954_v24  ;;  %v6709_v45 = vld [vmem:[%s17419_s12 + $0x1a0] sm:$0xff]  ;;  %v6711_v51 = vld [vmem:[%s17419_s12 + $0x1b0] sm:$0xff]  ;;  %v6714_v62 = vld [vmem:[%s17419_s12 + $0x1c8] sm:$0xff] }
 0x99e   : > { %13619 = vmatpush3.bf16.msra.mxu1 %v13616_v14  ;;  %6409 = vmatprep.mubr.f32.mxu1 %v14559_v39  ;;  %v6958_v54 = vld [vmem:[%s14726_s20 + $0x1a0] sm:$0xff]  ;;  %v6960_v50 = vld [vmem:[%s14726_s20 + $0x1b0] sm:$0xff]  ;;  %v6965_v7 = vld [vmem:[%s14726_s20 + $0x1d8] sm:$0xff] }
 0x99f   : > { %12174 = vmatprep.subr.msk.mxu1 %vm6329_vm10, %v6319_v16  ;;  %v13770_v55 = vpack.c.bf16 %v6960_v50, %v6958_v54  ;;  %v6718_v13 = vld [vmem:[%s17419_s12 + $0x1e8] sm:$0xff]  ;;  %v6732_v50 = vld [vmem:[%s17419_s12 + $0x258] sm:$0xff] }
 0x9a1   : > { %11162 = vmatmul.mubr.msk.f32.gmra.mrb[80].mxu1 %vm6322_vm11, %v6321_v6 }
 0x9a2   : > { %12175 = vmatpush3.msk.msra.mxu1 %vm6329_vm10, %v6319_v16  ;;  %12176 = vmatprep.mubr.msk.f32.mxu1 %vm6322_vm11, %v6320_v4 }
 0x9a3   : > { %13621 = vmatprep.subr.bf16.mxu1 %v13612_v10  ;;  %v6687_v10 = vld [vmem:[%s17419_s12 + $0xf0] sm:$0xff] }
 0x9a4   : > { %v13658_v29 = vpack.c.bf16 %v6687_v10, %v6685_v8  ;;  %v6962_v8 = vld [vmem:[%s14726_s20 + $0x1c0] sm:$0xff]  ;;  %v6964_v10 = vld [vmem:[%s14726_s20 + $0x1d0] sm:$0xff] }
 0x9a5   : > { %12177 = vmatmul.mubr.msk.f32.vlgmr.msra.gmra.mrb[82].mxu1 %vm6322_vm11, %v6321_v6  ;;  %v6693_v6 = vld [vmem:[%s17419_s12 + $0x120] sm:$0xff]  ;;  %v13774_v12 = vpack.c.bf16 %v6964_v10, %v6962_v8 }
 0x9a6   : > { %13623 = vmatpush1.bf16.msra.mxu1 %v13614_v0  ;;  %6563 = vmatprep.mubr.f32.mxu1 %v14559_v39  ;;  %v6688_v0 = vld [vmem:[%s17419_s12 + $0xf8] sm:$0xff]  ;;  %v6978_v10 = vld [vmem:[%s14726_s20 + $0x240] sm:$0xff] }
 0x9a7   : > { %11166 = vmatprep.subr.msk.mxu1 %vm6329_vm10, %v6318_v58  ;;  %v13656_v1 = vpack.c.bf16 %v6688_v0, %v6686_v48  ;;  %v6689_v58 = vld [vmem:[%s17419_s12 + $0x100] sm:$0xff]  ;;  %v6715_v0 = vld [vmem:[%s17419_s12 + $0x1d0] sm:$0xff] }
 0x9a8   : > { %v6713_v48 = vld [vmem:[%s17419_s12 + $0x1c0] sm:$0xff] }
 0x9aa   : > { %11167 = vmatpush1.msk.msra.mxu1 %vm6329_vm10, %v6317_v31  ;;  %v6696_v31 = vld [vmem:[%s17419_s12 + $0x138] sm:$0xff] }
 0x9ab   : > { %11168 = vmatmul.mubr.msk.f32.vlgmr.msra.gmra.mrb[84].mxu1 %vm6322_vm11, %v6491_v42  ;;  %13625 = vmatprep.subr.bf16.mxu1 %v13616_v14 }
 0x9ac   : > { %13627 = vmatpush3.bf16.msra.mxu1 %v13616_v14  ;;  %6569 = vmatprep.mubr.f32.mxu1 %v14559_v39  ;;  %v6691_v14 = vld [vmem:[%s17419_s12 + $0x110] sm:$0xff] }
 0x9ad   : > { %12183 = vmatprep.subr.msk.mxu1 %vm6329_vm10, %v6319_v16  ;;  %v13662_v4 = vpack.c.bf16 %v6691_v14, %v6689_v58  ;;  %v6969_v14 = vld [vmem:[%s14726_s20 + $0x1f8] sm:$0xff] }
 0x9af   : > { %11169 = vmatmul.mubr.msk.f32.gmra.mrb[86].mxu1 %vm6322_vm11, %v6492_v22 }
 0x9b0   : > { %12184 = vmatpush3.msk.msra.mxu1 %vm6329_vm10, %v6319_v16  ;;  %12185 = vmatprep.mubr.msk.f32.mxu1 %vm6322_vm11, %v6491_v42  ;;  %v13664_v16 = vpack.c.bf16 %v6696_v31, %v6694_v15  ;;  %v6695_v42 = vld [vmem:[%s17419_s12 + $0x130] sm:$0xff]  ;;  %v6717_v15 = vld [vmem:[%s17419_s12 + $0x1e0] sm:$0xff]  ;;  %vm9172_vm10 = vcmask 39936  }
 0x9b1   : > { %13629 = vmatprep.subr.bf16.mxu1 %v13628_v49  ;;  %v13668_v49 = vpack.c.bf16 %v6700_v21, %v6698_v17  ;;  %v6719_v31 = vld [vmem:[%s17419_s12 + $0x1f0] sm:$0xff]  ;;  %v6722_v21 = vld [vmem:[%s17419_s12 + $0x208] sm:$0xff] }
 0x9b3   : > { %12186 = vmatmul.mubr.msk.f32.vlgmr.msra.gmra.mrb[88].mxu1 %vm6322_vm11, %v6492_v22  ;;  %v13666_v22 = vpack.c.bf16 %v6695_v42, %v6693_v6  ;;  %v6966_v6 = vld [vmem:[%s14726_s20 + $0x1e0] sm:$0xff]  ;;  %v6968_v42 = vld [vmem:[%s14726_s20 + $0x1f0] sm:$0xff]  ;;  %vm9346_vm11 = vcmask 654336  }
 0x9b4   : > { %13631 = vmatpush1.bf16.msra.mxu1 %v13630_v5  ;;  %v13670_v5 = vpack.c.bf16 %v6699_v23, %v6697_v35  ;;  %v13778_v17 = vpack.c.bf16 %v6968_v42, %v6966_v6  ;;  %v6973_v23 = vld [vmem:[%s14726_s20 + $0x218] sm:$0xff]  ;;  %v6733_v42 = vld [vmem:[%s17419_s12 + $0x260] sm:$0xff] }
 0x9b5   : > { %13633 = vmatprep.subr.bf16.mxu1 %v13632_v30  ;;  %v13672_v30 = vpack.c.bf16 %v6704_v27, %v6702_v11 }
 0x9b8   : > { %13635 = vmatpush1.bf16.msra.mxu1 %v13634_v36  ;;  %v6708_v36 = vld [vmem:[%s17419_s12 + $0x198] sm:$0xff] }
 0x9b9   : > { %13637 = vmatprep.subr.bf16.mxu1 %v13636_v20  ;;  %v6955_v20 = vld [vmem:[%s14726_s20 + $0x188] sm:$0xff]  ;;  %v13676_v18 = vpack.c.bf16 %v6708_v36, %v6706_v25  ;;  %v6721_v25 = vld [vmem:[%s17419_s12 + $0x200] sm:$0xff]  ;;  %v6723_v36 = vld [vmem:[%s17419_s12 + $0x210] sm:$0xff] }
 0x9bc   : > { %13639 = vmatpush1.bf16.msra.mxu1 %v13638_v33  ;;  %v13764_v33 = vpack.c.bf16 %v6957_v47, %v6955_v20  ;;  %v6970_v20 = vld [vmem:[%s14726_s20 + $0x200] sm:$0xff]  ;;  %v6726_v47 = vld [vmem:[%s17419_s12 + $0x228] sm:$0xff] }
 0x9bd   : > { %13641 = vmatprep.subr.bf16.mxu1 %v13640_v41  ;;  %v13678_v41 = vpack.c.bf16 %v6707_v56, %v6705_v3  ;;  %v6728_v56 = vld [vmem:[%s17419_s12 + $0x238] sm:$0xff] }
 0x9be   : > { %13765 = vmatprep.subr.bf16.mxu0 %v13764_v33  ;;  %v6975_v33 = vld [vmem:[%s14726_s20 + $0x228] sm:$0xff] }
 0x9bf   : > { %13767 = vmatpush1.bf16.msra.mxu0 %v13766_v38 }
 0x9c0   : > { %13643 = vmatpush1.bf16.msra.mxu1 %v13642_v32  ;;  %v6712_v32 = vld [vmem:[%s17419_s12 + $0x1b8] sm:$0xff] }
 0x9c1   : > { %13645 = vmatprep.subr.bf16.mxu1 %v13644_v40  ;;  %v6959_v40 = vld [vmem:[%s14726_s20 + $0x1a8] sm:$0xff]  ;;  %v13680_v57 = vpack.c.bf16 %v6712_v32, %v6710_v63  ;;  %v13694_v63 = vpack.c.bf16 %v6723_v36, %v6721_v25 }
 0x9c4   : > { %13647 = vmatpush1.bf16.msra.mxu1 %v13646_v53  ;;  %v13768_v53 = vpack.c.bf16 %v6961_v28, %v6959_v40  ;;  %v6725_v40 = vld [vmem:[%s17419_s12 + $0x220] sm:$0xff]  ;;  %v13696_v28 = vpack.c.bf16 %v6728_v56, %v6726_v47  ;;  %v6742_v47 = vld [vmem:[%s17419_s12 + $0x2a8] sm:$0xff] }
 0x9c5   : > { %13649 = vmatprep.subr.bf16.mxu1 %v13648_v26  ;;  %v13682_v26 = vpack.c.bf16 %v6711_v51, %v6709_v45  ;;  %v6974_v51 = vld [vmem:[%s14726_s20 + $0x220] sm:$0xff]  ;;  %v6991_v56 = vld [vmem:[%s14726_s20 + $0x2a8] sm:$0xff] }
 0x9c6   : > { %13769 = vmatprep.subr.bf16.mxu0 %v13768_v53  ;;  %v6976_v53 = vld [vmem:[%s14726_s20 + $0x230] sm:$0xff] }
 0x9c7   : > { %13771 = vmatpush1.bf16.msra.mxu0 %v13770_v55  ;;  %v6979_v55 = vld [vmem:[%s14726_s20 + $0x248] sm:$0xff] }
 0x9c8   : > { %13651 = vmatpush1.bf16.msra.mxu1 %v13650_v9  ;;  %v6716_v9 = vld [vmem:[%s17419_s12 + $0x1d8] sm:$0xff] }
 0x9c9   : > { %13653 = vmatprep.subr.bf16.mxu1 %v13652_v60  ;;  %v6963_v60 = vld [vmem:[%s14726_s20 + $0x1c8] sm:$0xff]  ;;  %v13684_v61 = vpack.c.bf16 %v6716_v9, %v6714_v62  ;;  %v6981_v62 = vld [vmem:[%s14726_s20 + $0x258] sm:$0xff] }
 0x9ca   : > { %v13788_v8 = vpack.c.bf16 %v6981_v62, %v6979_v55 }
 0x9cc   : > { %13655 = vmatpush1.bf16.msra.mxu1 %v13654_v44  ;;  %v13772_v44 = vpack.c.bf16 %v6965_v7, %v6963_v60 }
 0x9cd   : > { %13657 = vmatprep.subr.bf16.mxu1 %v13656_v1  ;;  %v13686_v1 = vpack.c.bf16 %v6715_v0, %v6713_v48  ;;  %v13786_v48 = vpack.c.bf16 %v6976_v53, %v6974_v51  ;;  %v6729_v0 = vld [vmem:[%s17419_s12 + $0x240] sm:$0xff] }
 0x9ce   : > { %13773 = vmatprep.subr.bf16.mxu0 %v13772_v44  ;;  %v6731_v44 = vld [vmem:[%s17419_s12 + $0x250] sm:$0xff] }
 0x9cf   : > { %13775 = vmatpush1.bf16.msra.mxu0 %v13774_v12  ;;  %v6980_v12 = vld [vmem:[%s14726_s20 + $0x250] sm:$0xff] }
 0x9d0   : > { %13659 = vmatpush1.bf16.msra.mxu1 %v13658_v29  ;;  %v6720_v29 = vld [vmem:[%s17419_s12 + $0x1f8] sm:$0xff]  ;;  %v13790_v6 = vpack.c.bf16 %v6980_v12, %v6978_v10 }
 0x9d1   : > { %13661 = vmatprep.subr.bf16.mxu1 %v13660_v2  ;;  %v6967_v2 = vld [vmem:[%s14726_s20 + $0x1e8] sm:$0xff]  ;;  %v13688_v58 = vpack.c.bf16 %v6720_v29, %v6718_v13 }
 0x9d2   : > { %v6734_v13 = vld [vmem:[%s17419_s12 + $0x268] sm:$0xff] }
 0x9d4   : > { %13663 = vmatpush1.bf16.msra.mxu1 %v13662_v4  ;;  %v13776_v4 = vpack.c.bf16 %v6969_v14, %v6967_v2  ;;  %v6736_v2 = vld [vmem:[%s17419_s12 + $0x278] sm:$0xff] }
 0x9d5   : > { %13665 = vmatprep.subr.bf16.mxu1 %v13664_v16  ;;  %v13690_v16 = vpack.c.bf16 %v6719_v31, %v6717_v15  ;;  %v6985_v14 = vld [vmem:[%s14726_s20 + $0x278] sm:$0xff] }
 0x9d6   : > { %13777 = vmatprep.subr.bf16.mxu0 %v13776_v4 }
 0x9d7   : > { %13779 = vmatpush1.bf16.msra.mxu0 %v13778_v17  ;;  %v6735_v17 = vld [vmem:[%s17419_s12 + $0x270] sm:$0xff] }
 0x9d8   : > { %13667 = vmatpush1.bf16.msra.mxu1 %v13666_v22  ;;  %v6724_v22 = vld [vmem:[%s17419_s12 + $0x218] sm:$0xff] }
 0x9d9   : > { %13669 = vmatprep.subr.bf16.mxu1 %v13668_v49  ;;  %v6971_v49 = vld [vmem:[%s14726_s20 + $0x208] sm:$0xff]  ;;  %v13692_v35 = vpack.c.bf16 %v6724_v22, %v6722_v21  ;;  %v13704_v21 = vpack.c.bf16 %v6736_v2, %v6734_v13  ;;  %v7245_v13 = vld [vmem:[%s14621_s19] sm:$0xff] }
 0x9da   : > { %v13780_v11 = vpack.c.bf16 %v6973_v23, %v6971_v49  ;;  %v6982_v49 = vld [vmem:[%s14726_s20 + $0x260] sm:$0xff]  ;;  %v6738_v23 = vld [vmem:[%s17419_s12 + $0x288] sm:$0xff] }
 0x9db   : > { %v7250_v2 = vld [vmem:[%s14621_s19 + $0x28] sm:$0xff] }
 0x9dc   : > { %13671 = vmatpush1.bf16.msra.mxu1 %v13670_v5  ;;  %13781 = vmatprep.subr.bf16.mxu0 %v13780_v11  ;;  %v6740_v11 = vld [vmem:[%s17419_s12 + $0x298] sm:$0xff] }
 0x9dd   : > { %13673 = vmatprep.subr.bf16.mxu1 %v13672_v30  ;;  %v13708_v25 = vpack.c.bf16 %v6740_v11, %v6738_v23  ;;  %v7258_v23 = vld [vmem:[%s14621_s19 + $0x68] sm:$0xff]  ;;  %v7260_v11 = vld [vmem:[%s14621_s19 + $0x78] sm:$0xff] }
 0x9e0   : > { %13675 = vmatpush1.bf16.msra.mxu1 %v13674_v34 }
 0x9e1   : > { %13677 = vmatprep.subr.bf16.mxu1 %v13676_v18  ;;  %v6972_v18 = vld [vmem:[%s14726_s20 + $0x210] sm:$0xff] }
 0x9e2   : > { %v13782_v32 = vpack.c.bf16 %v6972_v18, %v6970_v20  ;;  %v6986_v20 = vld [vmem:[%s14726_s20 + $0x280] sm:$0xff]  ;;  %v6988_v18 = vld [vmem:[%s14726_s20 + $0x290] sm:$0xff] }
 0x9e4   : > { %13679 = vmatpush1.bf16.msra.mxu1 %v13678_v41  ;;  %v6977_v41 = vld [vmem:[%s14726_s20 + $0x238] sm:$0xff] }
 0x9e5   : > { %13681 = vmatprep.subr.bf16.mxu1 %v13680_v57  ;;  %v6727_v57 = vld [vmem:[%s17419_s12 + $0x230] sm:$0xff]  ;;  %v13784_v45 = vpack.c.bf16 %v6977_v41, %v6975_v33  ;;  %v6993_v33 = vld [vmem:[%s14726_s20 + $0x2b8] sm:$0xff] }
 0x9e6   : > { %v13698_v7 = vpack.c.bf16 %v6727_v57, %v6725_v40  ;;  %v6990_v40 = vld [vmem:[%s14726_s20 + $0x2a0] sm:$0xff]  ;;  %v6992_v57 = vld [vmem:[%s14726_s20 + $0x2b0] sm:$0xff] }
 0x9e8   : > { %13683 = vmatpush1.bf16.msra.mxu1 %v13682_v26  ;;  %v6730_v26 = vld [vmem:[%s17419_s12 + $0x248] sm:$0xff] }
 0x9e9   : > { %13685 = vmatprep.subr.bf16.mxu1 %v13684_v61 }
 0x9ec   : > { %13687 = vmatpush1.bf16.msra.mxu1 %v13686_v1  ;;  %v13700_v1 = vpack.c.bf16 %v6732_v50, %v6730_v26 }
 0x9ed   : > { %13689 = vmatprep.subr.bf16.mxu1 %v13688_v58  ;;  %v6983_v58 = vld [vmem:[%s14726_s20 + $0x268] sm:$0xff] }
 0x9ee   : > { %v13792_v22 = vpack.c.bf16 %v6985_v14, %v6983_v58  ;;  %v7252_v58 = vld [vmem:[%s14621_s19 + $0x38] sm:$0xff]  ;;  %v7152_v14 = vld [vmem:[%s17432_s1] sm:$0xff] }
 0x9f0   : > { %13691 = vmatpush1.bf16.msra.mxu1 %v13690_v16  ;;  %v13702_v16 = vpack.c.bf16 %v6731_v44, %v6729_v0  ;;  %v7248_v0 = vld [vmem:[%s14621_s19 + $0x18] sm:$0xff] }
 0x9f1   : > { %13693 = vmatprep.subr.bf16.mxu1 %v13692_v35  ;;  %v6984_v35 = vld [vmem:[%s14726_s20 + $0x270] sm:$0xff] }
 0xa70   : > { %v6405_v27 = vpop.f32.mrb[78].mxu1 }
 0xa71   : > { %v6407_v5 = vpop.f32.mrb[79].mxu1 }
 0xa74   : > { %v6411_v30 = vpop.f32.mrb[80].mxu1 }
 0xa75   : > { %v6413_v59 = vpop.f32.mrb[81].mxu1 }
 0xa78   : > { %v12178_v52 = vpop.f32.mrb[82].mxu1 }
 0xa79   : > { %v6482_v34 = vpop.f32.mrb[83].mxu1 }
 0xa7e   : > { %v6565_v3 = vpop.f32.mrb[84].mxu1 }
 0xa7f   : > { %v6651_v24 = vmax.f32 %v6405_v27, %v6565_v3  ;;  %v6567_v37 = vpop.f32.mrb[85].mxu1  ;;  %v6987_v27 = vld [vmem:[%s14726_s20 + $0x288] sm:$0xff]  ;;  %v6744_v3 = vld [vmem:[%s17419_s12 + $0x2b8] sm:$0xff] }
 0xa80   : > { %v6652_v38 = vmax.f32 %v6407_v5, %v6567_v37  ;;  %v6989_v5 = vld [vmem:[%s14726_s20 + $0x298] sm:$0xff]  ;;  %v6741_v37 = vld [vmem:[%s17419_s12 + $0x2a0] sm:$0xff] }
 0xa81   : > { %v13796_v36 = vpack.c.bf16 %v6989_v5, %v6987_v27  ;;  %v13822_v5 = vpack.c.bf16 %v7260_v11, %v7258_v23 }
 0xa82   : > { %v6571_v54 = vpop.f32.mrb[86].mxu1  ;;  %6816 = vmatprep.mubr.f32.mxu1 %v6652_v38  ;;  %7058 = vmatprep.mubr.f32.mxu0 %v6652_v38  ;;  %v13712_v38 = vpack.c.bf16 %v6744_v3, %v6742_v47  ;;  %v7266_v47 = vld [vmem:[%s14621_s19 + $0xa8] sm:$0xff]  ;;  %v7268_v3 = vld [vmem:[%s14621_s19 + $0xb8] sm:$0xff] }
 0xa83   : > { %v6654_v9 = vmax.f32 %v6411_v30, %v6571_v54  ;;  %v6573_v60 = vpop.f32.mrb[87].mxu1  ;;  %6817 = vmatmul.mubr.f32.vlgmr.msra.gmra.mrb[90].mxu1 %v6651_v24  ;;  %7059 = vmatmul.mubr.f32.vlgmr.msra.gmra.mrb[106].mxu0 %v6651_v24  ;;  %v13706_v30 = vpack.c.bf16 %v6735_v17, %v6733_v42  ;;  %v13798_v24 = vpack.c.bf16 %v6988_v18, %v6986_v20  ;;  %v7256_v42 = vld [vmem:[%s14621_s19 + $0x58] sm:$0xff]  ;;  %v7153_v17 = vld [vmem:[%s17432_s1 + $0x8] sm:$0x7]  ;;  %v7261_v20 = vld [vmem:[%s14621_s19 + $0x80] sm:$0xff]  ;;  %s17438_s1 = sld [smem:[#allocation13_spill]] }
 0xa84   : > { %v6655_v61 = vmax.f32 %v6413_v59, %v6573_v60  ;;  %13695 = vmatpush1.bf16.msra.mxu1 %v13694_v63  ;;  %13783 = vmatpush1.bf16.msra.mxu0 %v13782_v32  ;;  %v13794_v59 = vpack.c.bf16 %v6984_v35, %v6982_v49  ;;  %v13800_v63 = vpack.c.bf16 %v6993_v33, %v6991_v56  ;;  %v6743_v32 = vld [vmem:[%s17419_s12 + $0x2b0] sm:$0xff]  ;;  %v7253_v49 = vld [vmem:[%s14621_s19 + $0x40] sm:$0xff] }
 0xa85   : > { %13697 = vmatprep.subr.bf16.mxu1 %v13696_v28  ;;  %13785 = vmatprep.subr.bf16.mxu0 %v13784_v45  ;;  %v13714_v28 = vpack.c.bf16 %v6743_v32, %v6741_v37  ;;  %v13802_v45 = vpack.c.bf16 %v6992_v57, %v6990_v40  ;;  %v7255_v35 = vld [vmem:[%s14621_s19 + $0x50] sm:$0xff]  ;;  %v13830_v33 = vpack.c.bf16 %v7268_v3, %v7266_v47  ;;  %v7270_v37 = vld [vmem:[%s14621_s19 + $0xc8] sm:$0xff]  ;;  %v7269_v40 = vld [vmem:[%s14621_s19 + $0xc0] sm:$0xff] }
 0xa86   : > { %v12187_v29 = vpop.f32.mrb[88].mxu1  ;;  %6822 = vmatprep.mubr.f32.mxu1 %v6655_v61  ;;  %7064 = vmatprep.mubr.f32.mxu0 %v6655_v61  ;;  %v13820_v27 = vpack.c.bf16 %v7255_v35, %v7253_v49  ;;  %v7263_v18 = vld [vmem:[%s14621_s19 + $0x90] sm:$0xff]  ;;  %v11183_v49 = vld [vmem:[%s17435_s11 + $0x1] ss:$4 sm:$0x3] }
 0xa87   : > { %v16626_v15 = vmax.f32 %v12178_v52, %v12187_v29  ;;  %v6642_v31 = vpop.f32.mrb[89].mxu1  ;;  %6823 = vmatmul.mubr.f32.gmra.mrb[92].mxu1 %v6654_v9  ;;  %7065 = vmatmul.mubr.f32.gmra.mrb[108].mxu0 %v6654_v9  ;;  %v6737_v52 = vld [vmem:[%s17419_s12 + $0x280] sm:$0xff]  ;;  %v7247_v29 = vld [vmem:[%s14621_s19 + $0x10] sm:$0xff]  ;;  %v13828_v56 = vpack.c.bf16 %v7263_v18, %v7261_v20 }
 0xa88   : > { %v6653_v4 = vmax.f32 %v6482_v34, %v6642_v31  ;;  %13699 = vmatpush1.bf16.msra.mxu1 %v13698_v7  ;;  %13787 = vmatpush1.bf16.msra.mxu0 %v13786_v48  ;;  %v6739_v34 = vld [vmem:[%s17419_s12 + $0x290] sm:$0xff]  ;;  %v7246_v48 = vld [vmem:[%s14621_s19 + $0x8] sm:$0xff]  ;;  %v13814_v31 = vpack.c.bf16 %v7252_v58, %v7250_v2  ;;  %v7285_v58 = vld [vmem:[%s14621_s19 + $0x140] sm:$0xff] }
 0xa89   : > { %13701 = vmatprep.subr.bf16.mxu1 %v13700_v1  ;;  %13789 = vmatprep.subr.bf16.mxu0 %v13788_v8  ;;  %v13710_v41 = vpack.c.bf16 %v6739_v34, %v6737_v52  ;;  %v13810_v12 = vpack.c.bf16 %v7248_v0, %v7246_v48  ;;  %v7262_v52 = vld [vmem:[%s14621_s19 + $0x88] sm:$0xff]  ;;  %v7264_v34 = vld [vmem:[%s14621_s19 + $0x98] sm:$0xff]  ;;  %v7271_v57 = vld [vmem:[%s14621_s19 + $0xd0] sm:$0xff] }
 0xa8a   : > { %6893 = vmatprep.mubr.f32.mxu1 %v14559_v39  ;;  %7135 = vmatprep.mubr.f32.mxu0 %v14559_v39  ;;  %v7284_v48 = vld [vmem:[%s14621_s19 + $0x138] sm:$0xff]  ;;  %v11189_v8 = vld [vmem:[%s17437_s28 + $0x10] sm:$0xff] }
 0xa8c   : > { %13703 = vmatpush1.bf16.msra.mxu1 %v13702_v16  ;;  %13791 = vmatpush1.bf16.msra.mxu0 %v13790_v6  ;;  %v7251_v16 = vld [vmem:[%s14621_s19 + $0x30] sm:$0xff]  ;;  %v7254_v6 = vld [vmem:[%s14621_s19 + $0x48] sm:$0xff] }
 0xa8d   : > { %13705 = vmatprep.subr.bf16.mxu1 %v13704_v21  ;;  %13793 = vmatprep.subr.bf16.mxu0 %v13792_v22  ;;  %v13818_v22 = vpack.c.bf16 %v7256_v42, %v7254_v6  ;;  %v7289_v42 = vld [vmem:[%s17435_s11] ss:$4 sm:$0x3] }
 0xa90   : > { %13707 = vmatpush1.bf16.msra.mxu1 %v13706_v30  ;;  %13795 = vmatpush1.bf16.msra.mxu0 %v13794_v59  ;;  %v7257_v30 = vld [vmem:[%s14621_s19 + $0x60] sm:$0xff]  ;;  %v7259_v59 = vld [vmem:[%s14621_s19 + $0x70] sm:$0xff] }
 0xa91   : > { %13709 = vmatprep.subr.bf16.mxu1 %v13708_v25  ;;  %13797 = vmatprep.subr.bf16.mxu0 %v13796_v36  ;;  %v13824_v25 = vpack.c.bf16 %v7259_v59, %v7257_v30  ;;  %v13826_v36 = vpack.c.bf16 %v7264_v34, %v7262_v52  ;;  %v11184_v30 = vld [vmem:[%s17435_s11 + $0x2] ss:$4 sm:$0x3]  ;;  %v7399_v52 = vrot.slane %v11183_v49, %v14982_v46 }
 0xa92   : > { %v7412_v47 = vrot.slane %v11184_v30, %v14977_v43 }
 0xa94   : > { %13711 = vmatpush1.bf16.msra.mxu1 %v13710_v41  ;;  %13799 = vmatpush1.bf16.msra.mxu0 %v13798_v24  ;;  %v7265_v41 = vld [vmem:[%s14621_s19 + $0xa0] sm:$0xff]  ;;  %v7267_v24 = vld [vmem:[%s14621_s19 + $0xb0] sm:$0xff] }
 0xa95   : > { %13713 = vmatprep.subr.bf16.mxu1 %v13712_v38  ;;  %13801 = vmatprep.subr.bf16.mxu0 %v13800_v63  ;;  %v7272_v38 = vld [vmem:[%s14621_s19 + $0xd8] sm:$0xff]  ;;  %v13832_v63 = vpack.c.bf16 %v7267_v24, %v7265_v41 }
 0xa96   : > { %v13834_v32 = vpack.c.bf16 %v7272_v38, %v7270_v37 }
 0xa98   : > { %13715 = vmatpush1.bf16.msra.mxu1 %v13714_v28  ;;  %13803 = vmatpush1.bf16.msra.mxu0 %v13802_v45  ;;  %v7274_v28 = vld [vmem:[%s14621_s19 + $0xe8] sm:$0xff]  ;;  %v7276_v45 = vld [vmem:[%s14621_s19 + $0xf8] sm:$0xff] }
 0xa9b   : > { %11173 = vmatmul.mubr.msk.f32.vlgmr.msra.gmra.mrb[90].mxu1 %vm6745_vm12, %v6653_v4  ;;  %11175 = vmatmul.mubr.msk.f32.vlgmr.msra.gmra.mrb[106].mxu0 %vm6745_vm12, %v6653_v4  ;;  %v7249_v4 = vld [vmem:[%s14621_s19 + $0x20] sm:$0xff] }
 0xa9c   : > { %6899 = vmatprep.mubr.f32.mxu1 %v14559_v39  ;;  %7141 = vmatprep.mubr.f32.mxu0 %v14559_v39  ;;  %v13816_v21 = vpack.c.bf16 %v7251_v16, %v7249_v4 }
 0xa9f   : > { %11174 = vmatmul.mubr.msk.f32.gmra.mrb[92].mxu1 %vm6745_vm12, %v16626_v15  ;;  %11176 = vmatmul.mubr.msk.f32.gmra.mrb[108].mxu0 %vm6745_vm12, %v16626_v15  ;;  %v13812_v15 = vpack.c.bf16 %v7247_v29, %v7245_v13  ;;  %v7288_v13 = vld [vmem:[%s14621_s19 + $0x158] sm:$0xff]  ;;  %vm10262_vm12 = vcmask 73728  }
 0xaa0   : > { %7232 = vmatprep.mubr.f32.mxu1 %v14559_v39  ;;  %7501 = vmatprep.mubr.f32.mxu0 %v14559_v39 }
 0xb6e   : > { %v6895_v51 = vpop.f32.mrb[90].mxu1  ;;  %v7137_v53 = vpop.f32.mrb[106].mxu0 }
 0xb6f   : > { %v7148_v26 = vmax.f32 %v6895_v51, %v7137_v53  ;;  %v6897_v54 = vpop.f32.mrb[91].mxu1  ;;  %v7139_v50 = vpop.f32.mrb[107].mxu0  ;;  %v13836_v51 = vpack.c.bf16 %v7271_v57, %v7269_v40  ;;  %v13838_v53 = vpack.c.bf16 %v7276_v45, %v7274_v28  ;;  %v11196_v45 = vld [vmem:[%s17436_s23 + $0x168] sm:$0xff] }
 0xb70   : > { %v7149_v55 = vmax.f32 %v6897_v54, %v7139_v50  ;;  %v7275_v54 = vld [vmem:[%s14621_s19 + $0xf0] sm:$0xff]  ;;  %v7278_v50 = vld [vmem:[%s14621_s19 + $0x108] sm:$0xff] }
 0xb72   : > { %v6901_v62 = vpop.f32.mrb[92].mxu1  ;;  %v7143_v9 = vpop.f32.mrb[108].mxu0 }
 0xb73   : > { %v7150_v60 = vmax.f32 %v6901_v62, %v7143_v9  ;;  %v6903_v61 = vpop.f32.mrb[93].mxu1  ;;  %v7145_v7 = vpop.f32.mrb[109].mxu0 }
 0xb74   : > { %v7151_v44 = vmax.f32 %v6903_v61, %v7145_v7  ;;  %v7279_v61 = vld [vmem:[%s14621_s19 + $0x110] sm:$0xff]  ;;  %v7282_v7 = vld [vmem:[%s14621_s19 + $0x128] sm:$0xff] }
 0xb75   : > { %v13807_v1 = vpack.c.bf16 %v7150_v60, %v7148_v26  ;;  %v7273_v26 = vld [vmem:[%s14621_s19 + $0xe0] sm:$0xff] }
 0xb76   : > { %v13804_v10 = vpack.c.bf16 %v7151_v44, %v7149_v55  ;;  %v7280_v55 = vld [vmem:[%s14621_s19 + $0x118] sm:$0xff]  ;;  %v13840_v62 = vpack.c.bf16 %v7275_v54, %v7273_v26  ;;  %v7277_v60 = vld [vmem:[%s14621_s19 + $0x100] sm:$0xff]  ;;  %v13846_v44 = vpack.c.bf16 %v7284_v48, %v7282_v7 }
 0xb77   : > { %v13842_v9 = vpack.c.bf16 %v7280_v55, %v7278_v50  ;;  %v13844_v0 = vpack.c.bf16 %v7279_v61, %v7277_v60  ;;  %v11243_v26 = vld [vmem:[%s17437_s28 + $0x20] sm:$0xff]  ;;  %v7424_v50 = vld [vmem:[%s17437_s28 + $0x8] sm:$0x1]  ;;  %v11202_v61 = vld [vmem:[%s17436_s23 + $0x198] sm:$0xff] }
 0xb78   : > { %13806 = vmatprep.subr.msk.bf16.mxu1 %vm16659_vm14, %v13804_v10  ;;  %v7283_v10 = vld [vmem:[%s14621_s19 + $0x130] sm:$0xff]  ;;  %v11244_v55 = vld [vmem:[%s17437_s28 + $0x28] sm:$0x1] }
 0xb79   : > { %13809 = vmatpush1.bf16.msk.msra.mxu1 %vm16659_vm14, %v13807_v1  ;;  %v7281_v1 = vld [vmem:[%s14621_s19 + $0x120] sm:$0xff]  ;;  %v11200_v60 = vld [vmem:[%s17436_s23 + $0x188] sm:$0xff] }
 0xb7a   : > { %13811 = vmatprep.subr.bf16.mxu1 %v13810_v12  ;;  %v7286_v12 = vld [vmem:[%s14621_s19 + $0x148] sm:$0xff]  ;;  %v13848_v29 = vpack.c.bf16 %v7283_v10, %v7281_v1  ;;  %v13870_v48 = vpack.c.bf16 %v11202_v61, %v11200_v60  ;;  %v11206_v10 = vld [vmem:[%s17436_s23 + $0x1b8] sm:$0xff]  ;;  %v11235_v60 = vld [vmem:[%s17436_s23 + $0x2a0] sm:$0xff] }
 0xb7b   : > { %v13850_v2 = vpack.c.bf16 %v7288_v13, %v7286_v12  ;;  %v11204_v1 = vld [vmem:[%s17436_s23 + $0x1a8] sm:$0xff]  ;;  %v11190_v12 = vld [vmem:[%s17437_s28 + $0x18] sm:$0x1]  ;;  %v11237_v61 = vld [vmem:[%s17436_s23 + $0x2b0] sm:$0xff] }
 0xb7c   : > { %11179 = vmatmul.mubr.msk.f32.vlgmr.msra.gmra.mrb[94].mxu1 %vm7154_vm15, %v7152_v14  ;;  %v7287_v14 = vld [vmem:[%s14621_s19 + $0x150] sm:$0xff] }
 0xb7d   : > { %7238 = vmatprep.mubr.f32.mxu1 %v14559_v39  ;;  %13813 = vmatpush1.bf16.msra.mxu1 %v13812_v15  ;;  %v13852_v15 = vpack.c.bf16 %v7287_v14, %v7285_v58  ;;  %v11205_v58 = vld [vmem:[%s17436_s23 + $0x1b0] sm:$0xff]  ;;  %v11208_v14 = vld [vmem:[%s17436_s23 + $0x1c8] sm:$0xff] }
 0xb7e   : > { %13815 = vmatprep.subr.bf16.mxu1 %v13814_v31 }
 0xb80   : > { %11180 = vmatmul.mubr.msk.f32.gmra.mrb[96].mxu1 %vm7154_vm15, %v7153_v17  ;;  %v7294_v17 = vrot.slane %v7289_v42, %v14977_v43 }
 0xb81   : > { %13817 = vmatpush1.bf16.msra.mxu1 %v13816_v21  ;;  %v7298_v21 = vrot.slane %v7289_v42, %v14982_v46  ;;  %v11212_v42 = vld [vmem:[%s17436_s23 + $0x1e8] sm:$0xff] }
 0xb82   : > { %13819 = vmatprep.subr.bf16.mxu1 %v13818_v22 }
 0xb85   : > { %13821 = vmatpush1.bf16.msra.mxu1 %v13820_v27 }
 0xb86   : > { %13823 = vmatprep.subr.bf16.mxu1 %v13822_v5  ;;  %v7395_v5 = vrot.slane %v11183_v49, %v14977_v43  ;;  %v11211_v49 = vld [vmem:[%s17436_s23 + $0x1e0] sm:$0xff] }
 0xb89   : > { %13825 = vmatpush1.bf16.msra.mxu1 %v13824_v25 }
 0xb8a   : > { %13827 = vmatprep.subr.bf16.mxu1 %v13826_v36 }
 0xb8d   : > { %13829 = vmatpush1.bf16.msra.mxu1 %v13828_v56 }
 0xb8e   : > { %13831 = vmatprep.subr.bf16.mxu1 %v13830_v33  ;;  %v7416_v33 = vrot.slane %v11184_v30, %v14982_v46  ;;  %v11215_v30 = vld [vmem:[%s17436_s23 + $0x200] sm:$0xff] }
 0xb91   : > { %13833 = vmatpush1.bf16.msra.mxu1 %v13832_v63 }
 0xb92   : > { %13835 = vmatprep.subr.bf16.mxu1 %v13834_v32 }
 0xb95   : > { %13837 = vmatpush1.bf16.msra.mxu1 %v13836_v51  ;;  %v11198_v51 = vld [vmem:[%s17436_s23 + $0x178] sm:$0xff] }
 0xb96   : > { %13839 = vmatprep.subr.bf16.mxu1 %v13838_v53  ;;  %v7423_v53 = vld [vmem:[%s17437_s28] sm:$0xff]  ;;  %v13866_v54 = vpack.c.bf16 %v11198_v51, %v11196_v45  ;;  %v11232_v45 = vld [vmem:[%s17436_s23 + $0x288] sm:$0xff]  ;;  %v11234_v51 = vld [vmem:[%s17436_s23 + $0x298] sm:$0xff] }
 0xb99   : > { %13841 = vmatpush1.bf16.msra.mxu1 %v13840_v62  ;;  %v11195_v62 = vld [vmem:[%s17436_s23 + $0x160] sm:$0xff] }
 0xb9a   : > { %13843 = vmatprep.subr.bf16.mxu1 %v13842_v9  ;;  %v11197_v9 = vld [vmem:[%s17436_s23 + $0x170] sm:$0xff] }
 0xb9b   : > { %v13868_v7 = vpack.c.bf16 %v11197_v9, %v11195_v62  ;;  %v11238_v62 = vld [vmem:[%s17436_s23 + $0x2b8] sm:$0xff] }
 0xb9d   : > { %13845 = vmatpush1.bf16.msra.mxu1 %v13844_v0  ;;  %v11199_v0 = vld [vmem:[%s17436_s23 + $0x180] sm:$0xff] }
 0xb9e   : > { %13847 = vmatprep.subr.bf16.mxu1 %v13846_v44  ;;  %v11201_v44 = vld [vmem:[%s17436_s23 + $0x190] sm:$0xff] }
 0xb9f   : > { %v13872_v13 = vpack.c.bf16 %v11201_v44, %v11199_v0 }
 0xba1   : > { %13849 = vmatpush1.bf16.msra.mxu1 %v13848_v29  ;;  %v13874_v29 = vpack.c.bf16 %v11206_v10, %v11204_v1 }
 0xba2   : > { %13851 = vmatprep.subr.bf16.mxu1 %v13850_v2  ;;  %v11203_v2 = vld [vmem:[%s17436_s23 + $0x1a0] sm:$0xff] }
 0xba5   : > { %13853 = vmatpush1.bf16.msra.mxu1 %v13852_v15  ;;  %v11210_v15 = vld [vmem:[%s17436_s23 + $0x1d8] sm:$0xff] }
 0xc4f   : > { %v7234_v31 = vpop.f32.mrb[94].mxu1 }
 0xc50   : > { %v7236_v4 = vpop.f32.mrb[95].mxu1 }
 0xc51   : > { %11181 = vmatprep.mubr.msk.f32.mxu1 %vm7301_vm0, %v7236_v4  ;;  %v13878_v4 = vpack.c.bf16 %v11210_v15, %v11208_v14  ;;  %v7516_v14 = vld [vmem:[%s17436_s23 + $0x10] sm:$0xff] }
 0xc52   : > { %7373 = vmatmul.mubr.f32.vlgmr.msra.gmra.mrb[98].mxu1 %v7234_v31  ;;  %v13876_v31 = vpack.c.bf16 %v11205_v58, %v11203_v2  ;;  %v7514_v58 = vld [vmem:[%s17436_s23] sm:$0xff] }
 0xc53   : > { %v7240_v16 = vpop.f32.mrb[96].mxu1 }
 0xc54   : > { %v7242_v6 = vpop.f32.mrb[97].mxu1 }
 0xc55   : > { %11182 = vmatprep.mubr.msk.f32.mxu1 %vm7301_vm0, %v7242_v6  ;;  %v11209_v6 = vld [vmem:[%s17436_s23 + $0x1d0] sm:$0xff] }
 0xc56   : > { %7379 = vmatmul.mubr.f32.gmra.mrb[100].mxu1 %v7240_v16  ;;  %v11207_v16 = vld [vmem:[%s17436_s23 + $0x1c0] sm:$0xff] }
 0xc57   : > { %7928 = vmatprep.mubr.f32.mxu1 %v14559_v39 }
 0xd25   : > { %v7374_v22 = vpop.f32.mrb[98].mxu1 }
 0xd26   : > { %v7375_v35 = vadd.f32 %v7374_v22, %v7294_v17  ;;  %v7376_v23 = vpop.f32.mrb[99].mxu1 }
 0xd27   : > { %v7377_v11 = vadd.f32 %v7376_v23, %v7298_v21  ;;  %v11216_v23 = vld [vmem:[%s17436_s23 + $0x208] sm:$0xff] }
 0xd28   : > { %v7385_v27 = vmax.f32 %v7375_v35, 0.0  ;;  %v11213_v35 = vld [vmem:[%s17436_s23 + $0x1f0] sm:$0xff] }
 0xd29   : > { %v7386_v59 = vmax.f32 %v7377_v11, 0.0  ;;  %v7380_v34 = vpop.f32.mrb[100].mxu1  ;;  %v11218_v11 = vld [vmem:[%s17436_s23 + $0x218] sm:$0xff] }
 0xd2a   : > { %v7381_v25 = vadd.f32 %v7380_v34, %v7294_v17  ;;  %v7382_v36 = vpop.f32.mrb[101].mxu1  ;;  %v7402_v18 = vmul.f32 %v7395_v5, %v7385_v27  ;;  %v11214_v17 = vld [vmem:[%s17436_s23 + $0x1f8] sm:$0xff]  ;;  %v13884_v27 = vpack.c.bf16 %v11213_v35, %v11211_v49  ;;  %v7523_v49 = vld [vmem:[%s17436_s23 + $0x48] sm:$0xff] }
 0xd2b   : > { %v7383_v20 = vadd.f32 %v7382_v36, %v7298_v21  ;;  %v7403_v56 = vmul.f32 %v7399_v52, %v7386_v59  ;;  %v13880_v21 = vpack.c.bf16 %v11209_v6, %v11207_v16  ;;  %v13882_v22 = vpack.c.bf16 %v11214_v17, %v11212_v42  ;;  %v11217_v59 = vld [vmem:[%s17436_s23 + $0x210] sm:$0xff]  ;;  %v11222_v34 = vld [vmem:[%s17436_s23 + $0x238] sm:$0xff] }
 0xd2c   : > { %v7387_v3 = vmax.f32 %v7381_v25, 0.0  ;;  %v7419_v38 = vadd.f32 %v7412_v47, %v7402_v18  ;;  %v13888_v25 = vpack.c.bf16 %v11217_v59, %v11215_v30  ;;  %v11221_v18 = vld [vmem:[%s17436_s23 + $0x230] sm:$0xff]  ;;  %v13912_v6 = vpack.c.bf16 %v7516_v14, %v7514_v58  ;;  %v7525_v35 = vld [vmem:[%s17436_s23 + $0x58] sm:$0xff]  ;;  %v7522_v30 = vld [vmem:[%s17436_s23 + $0x40] sm:$0xff] }
 0xd2d   : > { %v7388_v41 = vmax.f32 %v7383_v20, 0.0  ;;  %v7420_v32 = vadd.f32 %v7416_v33, %v7403_v56  ;;  %v11219_v20 = vld [vmem:[%s17436_s23 + $0x220] sm:$0xff]  ;;  %v7524_v59 = vld [vmem:[%s17436_s23 + $0x50] sm:$0xff]  ;;  %v7551_v14 = vld [vmem:[%s17436_s23 + $0x128] sm:$0xff] }
 0xd2e   : > { %v7404_v24 = vmul.f32 %v7395_v5, %v7387_v3  ;;  %v13886_v5 = vpack.c.bf16 %v11218_v11, %v11216_v23  ;;  %v11226_v3 = vld [vmem:[%s17436_s23 + $0x258] sm:$0xff]  ;;  %v13892_v56 = vpack.c.bf16 %v11221_v18, %v11219_v20  ;;  %v7526_v20 = vld [vmem:[%s17436_s23 + $0x60] sm:$0xff]  ;;  %v7528_v18 = vld [vmem:[%s17436_s23 + $0x70] sm:$0xff] }
 0xd2f   : > { %v7405_v37 = vmul.f32 %v7399_v52, %v7388_v41  ;;  %v11220_v52 = vld [vmem:[%s17436_s23 + $0x228] sm:$0xff]  ;;  %v11223_v41 = vld [vmem:[%s17436_s23 + $0x240] sm:$0xff]  ;;  %v7548_v58 = vld [vmem:[%s17436_s23 + $0x110] sm:$0xff] }
 0xd30   : > { %v7421_v63 = vadd.f32 %v7412_v47, %v7404_v24  ;;  %v13890_v36 = vpack.c.bf16 %v11222_v34, %v11220_v52  ;;  %v11224_v47 = vld [vmem:[%s17436_s23 + $0x248] sm:$0xff]  ;;  %v11225_v24 = vld [vmem:[%s17436_s23 + $0x250] sm:$0xff]  ;;  %v7529_v34 = vld [vmem:[%s17436_s23 + $0x78] sm:$0xff] }
 0xd31   : > { %v7422_v40 = vadd.f32 %v7416_v33, %v7405_v37  ;;  %v13894_v33 = vpack.c.bf16 %v11226_v3, %v11224_v47  ;;  %v11228_v37 = vld [vmem:[%s17436_s23 + $0x268] sm:$0xff]  ;;  %v7533_v3 = vld [vmem:[%s17436_s23 + $0x98] sm:$0xff] }
 0xd32   : > { %v13857_v57 = vpack.c.bf16 %v7421_v63, %v7419_v38  ;;  %v11230_v38 = vld [vmem:[%s17436_s23 + $0x278] sm:$0xff]  ;;  %v13896_v63 = vpack.c.bf16 %v11225_v24, %v11223_v41  ;;  %v7527_v52 = vld [vmem:[%s17436_s23 + $0x68] sm:$0xff]  ;;  %v7530_v41 = vld [vmem:[%s17436_s23 + $0x80] sm:$0xff] }
 0xd33   : > { %v13854_v28 = vpack.c.bf16 %v7422_v40, %v7420_v32  ;;  %v13898_v32 = vpack.c.bf16 %v11230_v38, %v11228_v37  ;;  %v11227_v40 = vld [vmem:[%s17436_s23 + $0x260] sm:$0xff]  ;;  %v7531_v47 = vld [vmem:[%s17436_s23 + $0x88] sm:$0xff]  ;;  %v7532_v24 = vld [vmem:[%s17436_s23 + $0x90] sm:$0xff] }
 0xd34   : > { %v7535_v37 = vld [vmem:[%s17436_s23 + $0xa8] sm:$0xff]  ;;  %v7537_v38 = vld [vmem:[%s17436_s23 + $0xb8] sm:$0xff] }
 0xd35   : > { %13856 = vmatprep.subr.msk.bf16.mxu0 %vm16659_vm14, %v13854_v28  ;;  %13956 = vmatprep.subr.msk.bf16.mxu1 %vm16659_vm14, %v13854_v28 }
 0xd36   : > { %13859 = vmatpush1.bf16.msk.msra.mxu0 %vm16659_vm14, %v13857_v57  ;;  %13959 = vmatpush1.bf16.msk.msra.mxu1 %vm16659_vm14, %v13857_v57 }
 0xd37   : > { %13862 = vmatprep.subr.msk.bf16.mxu0 %vm16659_vm14, %v13854_v28 }
 0xd39   : > { %11187 = vmatmul.mubr.msk.f32.vlgmr.msra.gmra.mrb[110].mxu0 %vm7154_vm15, %v7423_v53  ;;  %11247 = vmatmul.mubr.msk.f32.vlgmr.msra.gmra.mrb[102].mxu1 %vm7154_vm15, %v11243_v26  ;;  %v13902_v53 = vpack.c.bf16 %v11234_v51, %v11232_v45  ;;  %v11231_v26 = vld [vmem:[%s17436_s23 + $0x280] sm:$0xff]  ;;  %v7541_v45 = vld [vmem:[%s17436_s23 + $0xd8] sm:$0xff] }
 0xd3a   : > { %13865 = vmatpush1.bf16.msk.msra.mxu0 %vm16659_vm14, %v13857_v57  ;;  %7507 = vmatprep.mubr.f32.mxu0 %v14559_v39  ;;  %v11229_v57 = vld [vmem:[%s17436_s23 + $0x270] sm:$0xff] }
 0xd3b   : > { %7934 = vmatprep.mubr.f32.mxu1 %v14559_v39  ;;  %13867 = vmatprep.subr.bf16.mxu0 %v13866_v54  ;;  %v13900_v28 = vpack.c.bf16 %v11229_v57, %v11227_v40  ;;  %v11233_v54 = vld [vmem:[%s17436_s23 + $0x290] sm:$0xff]  ;;  %v7534_v40 = vld [vmem:[%s17436_s23 + $0xa0] sm:$0xff] }
 0xd3c   : > { %v7536_v57 = vld [vmem:[%s17436_s23 + $0xb0] sm:$0xff] }
 0xd3d   : > { %11188 = vmatmul.mubr.msk.f32.gmra.mrb[112].mxu0 %vm7154_vm15, %v7424_v50  ;;  %11248 = vmatmul.mubr.msk.f32.gmra.mrb[104].mxu1 %vm7154_vm15, %v11244_v55  ;;  %v13904_v50 = vpack.c.bf16 %v11233_v54, %v11231_v26  ;;  %v11236_v55 = vld [vmem:[%s17436_s23 + $0x2a8] sm:$0xff]  ;;  %v13932_v51 = vpack.c.bf16 %v7536_v57, %v7534_v40  ;;  %v7538_v26 = vld [vmem:[%s17436_s23 + $0xc0] sm:$0xff]  ;;  %v7540_v54 = vld [vmem:[%s17436_s23 + $0xd0] sm:$0xff] }
 0xd3e   : > { %7631 = vmatprep.mubr.f32.mxu0 %v14559_v39  ;;  %8203 = vmatprep.mubr.f32.mxu1 %v14559_v39  ;;  %v13906_v9 = vpack.c.bf16 %v11238_v62, %v11236_v55  ;;  %v7545_v55 = vld [vmem:[%s17436_s23 + $0xf8] sm:$0xff]  ;;  %v13936_v62 = vpack.c.bf16 %v7540_v54, %v7538_v26  ;;  %v11263_v40 = vld [vmem:[%s17436_s23 + $0x330] sm:$0xff]  ;;  %v11266_v57 = vld [vmem:[%s17436_s23 + $0x348] sm:$0xff] }
 0xd3f   : > { %v11270_v26 = vld [vmem:[%s17436_s23 + $0x368] sm:$0xff] }
 0xd41   : > { %11193 = vmatmul.mubr.msk.f32.vlgmr.msra.gmra.mrb[114].mxu0 %vm7154_vm15, %v11189_v8  ;;  %v13908_v8 = vpack.c.bf16 %v11237_v61, %v11235_v60  ;;  %v7542_v60 = vld [vmem:[%s17436_s23 + $0xe0] sm:$0xff]  ;;  %v7544_v61 = vld [vmem:[%s17436_s23 + $0xf0] sm:$0xff] }
 0xd42   : > { %7637 = vmatprep.mubr.f32.mxu0 %v14559_v39  ;;  %13869 = vmatpush1.bf16.msra.mxu0 %v13868_v7  ;;  %v7515_v7 = vld [vmem:[%s17436_s23 + $0x8] sm:$0xff] }
 0xd43   : > { %13871 = vmatprep.subr.bf16.mxu0 %v13870_v48  ;;  %v7517_v48 = vld [vmem:[%s17436_s23 + $0x18] sm:$0xff] }
 0xd44   : > { %v13910_v0 = vpack.c.bf16 %v7517_v48, %v7515_v7  ;;  %v7549_v7 = vld [vmem:[%s17436_s23 + $0x118] sm:$0xff]  ;;  %v13940_v48 = vpack.c.bf16 %v7544_v61, %v7542_v60 }
 0xd45   : > { %11194 = vmatmul.mubr.msk.f32.gmra.mrb[116].mxu0 %vm7154_vm15, %v11190_v12  ;;  %v11276_v60 = vld [vmem:[%s17436_s23 + $0x398] sm:$0xff] }
 0xd46   : > { %13873 = vmatpush1.bf16.msra.mxu0 %v13872_v13 }
 0xd47   : > { %13875 = vmatprep.subr.bf16.mxu0 %v13874_v29 }
 0xd4a   : > { %13877 = vmatpush1.bf16.msra.mxu0 %v13876_v31  ;;  %v7519_v31 = vld [vmem:[%s17436_s23 + $0x28] sm:$0xff] }
 0xd4b   : > { %13879 = vmatprep.subr.bf16.mxu0 %v13878_v4  ;;  %v7521_v4 = vld [vmem:[%s17436_s23 + $0x38] sm:$0xff] }
 0xd4c   : > { %v13914_v17 = vpack.c.bf16 %v7521_v4, %v7519_v31  ;;  %v7553_v31 = vld [vmem:[%s17436_s23 + $0x138] sm:$0xff] }
 0xd4e   : > { %13881 = vmatpush1.bf16.msra.mxu0 %v13880_v21  ;;  %v7518_v21 = vld [vmem:[%s17436_s23 + $0x20] sm:$0xff] }
 0xd4f   : > { %13883 = vmatprep.subr.bf16.mxu0 %v13882_v22  ;;  %v7520_v22 = vld [vmem:[%s17436_s23 + $0x30] sm:$0xff] }
 0xd50   : > { %v13916_v11 = vpack.c.bf16 %v7520_v22, %v7518_v21  ;;  %v7557_v21 = vld [vmem:[%s17436_s23 + $0x158] sm:$0xff] }
 0xd52   : > { %13885 = vmatpush1.bf16.msra.mxu0 %v13884_v27 }
 0xd53   : > { %13887 = vmatprep.subr.bf16.mxu0 %v13886_v5  ;;  %v13918_v5 = vpack.c.bf16 %v7525_v35, %v7523_v49  ;;  %v7554_v35 = vld [vmem:[%s17436_s23 + $0x140] sm:$0xff] }
 0xd56   : > { %13889 = vmatpush1.bf16.msra.mxu0 %v13888_v25  ;;  %v13920_v25 = vpack.c.bf16 %v7524_v59, %v7522_v30  ;;  %v11249_v59 = vld [vmem:[%s17436_s23 + $0x2c0] sm:$0xff] }
 0xd57   : > { %13891 = vmatprep.subr.bf16.mxu0 %v13890_v36  ;;  %v13922_v36 = vpack.c.bf16 %v7529_v34, %v7527_v52  ;;  %v11251_v52 = vld [vmem:[%s17436_s23 + $0x2d0] sm:$0xff]  ;;  %v11254_v34 = vld [vmem:[%s17436_s23 + $0x2e8] sm:$0xff] }
 0xd5a   : > { %13893 = vmatpush1.bf16.msra.mxu0 %v13892_v56  ;;  %v13924_v56 = vpack.c.bf16 %v7528_v18, %v7526_v20  ;;  %v11253_v18 = vld [vmem:[%s17436_s23 + $0x2e0] sm:$0xff] }
 0xd5b   : > { %13895 = vmatprep.subr.bf16.mxu0 %v13894_v33  ;;  %v13926_v33 = vpack.c.bf16 %v7533_v3, %v7531_v47  ;;  %v11255_v47 = vld [vmem:[%s17436_s23 + $0x2f0] sm:$0xff]  ;;  %v11258_v3 = vld [vmem:[%s17436_s23 + $0x308] sm:$0xff] }
 0xd5e   : > { %13897 = vmatpush1.bf16.msra.mxu0 %v13896_v63  ;;  %v13928_v63 = vpack.c.bf16 %v7532_v24, %v7530_v41  ;;  %v11257_v24 = vld [vmem:[%s17436_s23 + $0x300] sm:$0xff] }
 0xd5f   : > { %13899 = vmatprep.subr.bf16.mxu0 %v13898_v32  ;;  %v13930_v32 = vpack.c.bf16 %v7537_v38, %v7535_v37  ;;  %v11259_v37 = vld [vmem:[%s17436_s23 + $0x310] sm:$0xff]  ;;  %v11262_v38 = vld [vmem:[%s17436_s23 + $0x328] sm:$0xff] }
 0xd62   : > { %13901 = vmatpush1.bf16.msra.mxu0 %v13900_v28  ;;  %v7539_v28 = vld [vmem:[%s17436_s23 + $0xc8] sm:$0xff] }
 0xd63   : > { %13903 = vmatprep.subr.bf16.mxu0 %v13902_v53  ;;  %v13934_v53 = vpack.c.bf16 %v7541_v45, %v7539_v28  ;;  %v11268_v28 = vld [vmem:[%s17436_s23 + $0x358] sm:$0xff] }
 0xd66   : > { %13905 = vmatpush1.bf16.msra.mxu0 %v13904_v50  ;;  %v7543_v50 = vld [vmem:[%s17436_s23 + $0xe8] sm:$0xff] }
 0xd67   : > { %13907 = vmatprep.subr.bf16.mxu0 %v13906_v9  ;;  %v13938_v9 = vpack.c.bf16 %v7545_v55, %v7543_v50  ;;  %v11269_v55 = vld [vmem:[%s17436_s23 + $0x360] sm:$0xff] }
 0xd6a   : > { %13909 = vmatpush1.bf16.msra.mxu0 %v13908_v8  ;;  %v7547_v8 = vld [vmem:[%s17436_s23 + $0x108] sm:$0xff] }
 0xd6b   : > { %13911 = vmatprep.subr.bf16.mxu0 %v13910_v0  ;;  %v13942_v0 = vpack.c.bf16 %v7549_v7, %v7547_v8  ;;  %v11273_v7 = vld [vmem:[%s17436_s23 + $0x380] sm:$0xff] }
 0xe0c   : > { %v16801_v44 = vpop.f32.mrb[110].mxu0  ;;  %v16803_v1 = vpop.f32.mrb[102].mxu1 }
 0xe0d   : > { %v7505_v10 = vpop.f32.mrb[111].mxu0  ;;  %v16805_v12 = vpop.f32.mrb[103].mxu1 }
 0xe10   : > { %v16807_v13 = vpop.f32.mrb[112].mxu0  ;;  %v16809_v29 = vpop.f32.mrb[104].mxu1 }
 0xe11   : > { %v16811_v2 = vpop.f32.mrb[113].mxu0  ;;  %v16815_v15 = vpop.f32.mrb[105].mxu1 }
 0xe14   : > { %v7633_v16 = vpop.f32.mrb[114].mxu0 }
 0xe15   : > { %v7635_v42 = vpop.f32.mrb[115].mxu0 }
 0xe16   : > { %11239 = vmatprep.mubr.msk.f32.mxu0 %vm7301_vm0, %v7635_v42  ;;  %v7552_v42 = vld [vmem:[%s17436_s23 + $0x130] sm:$0xff] }
 0xe17   : > { %7760 = vmatmul.mubr.f32.vlgmr.msra.gmra.mrb[118].mxu0 %v7633_v16  ;;  %v13946_v16 = vpack.c.bf16 %v7553_v31, %v7551_v14  ;;  %v11277_v31 = vld [vmem:[%s17436_s23 + $0x3a0] sm:$0xff] }
 0xe18   : > { %13913 = vmatpush1.bf16.msra.mxu0 %v13912_v6  ;;  %v7639_v23 = vpop.f32.mrb[116].mxu0  ;;  %v7550_v6 = vld [vmem:[%s17436_s23 + $0x120] sm:$0xff] }
 0xe19   : > { %v7641_v27 = vpop.f32.mrb[117].mxu0  ;;  %13915 = vmatprep.subr.bf16.mxu0 %v13914_v17  ;;  %v7555_v17 = vld [vmem:[%s17436_s23 + $0x148] sm:$0xff]  ;;  %v13948_v22 = vpack.c.bf16 %v7552_v42, %v7550_v6  ;;  %v11284_v6 = vld [vmem:[%s17436_s23 + $0x3d8] sm:$0xff] }
 0xe1a   : > { %11240 = vmatprep.mubr.msk.f32.mxu0 %vm7301_vm0, %v7641_v27  ;;  %v13950_v49 = vpack.c.bf16 %v7557_v21, %v7555_v17  ;;  %v11252_v27 = vld [vmem:[%s17436_s23 + $0x2d8] sm:$0xff]  ;;  %v11281_v21 = vld [vmem:[%s17436_s23 + $0x3c0] sm:$0xff] }
 0xe1b   : > { %7766 = vmatmul.mubr.f32.gmra.mrb[120].mxu0 %v7639_v23  ;;  %v7556_v23 = vld [vmem:[%s17436_s23 + $0x150] sm:$0xff] }
 0xe1c   : > { %13917 = vmatpush1.bf16.msra.mxu0 %v13916_v11  ;;  %11241 = vmatprep.mubr.msk.f32.mxu0 %vm7301_vm0, %v7505_v10  ;;  %v7546_v10 = vld [vmem:[%s17436_s23 + $0x100] sm:$0xff]  ;;  %v11250_v11 = vld [vmem:[%s17436_s23 + $0x2c8] sm:$0xff] }
 0xe1d   : > { %13919 = vmatprep.subr.bf16.mxu0 %v13918_v5  ;;  %v13944_v4 = vpack.c.bf16 %v7548_v58, %v7546_v10  ;;  %v13952_v5 = vpack.c.bf16 %v7556_v23, %v7554_v35  ;;  %v13960_v30 = vpack.c.bf16 %v11252_v27, %v11250_v11  ;;  %v11280_v10 = vld [vmem:[%s17436_s23 + $0x3b8] sm:$0xff]  ;;  %v11285_v27 = vld [vmem:[%s17436_s23 + $0x3e0] sm:$0xff] }
 0xe1e   : > { %v11288_v35 = vld [vmem:[%s17436_s23 + $0x3f8] sm:$0xff] }
 0xe20   : > { %13921 = vmatpush1.bf16.msra.mxu0 %v13920_v25  ;;  %v11256_v25 = vld [vmem:[%s17436_s23 + $0x2f8] sm:$0xff] }
 0xe21   : > { %13923 = vmatprep.subr.bf16.mxu0 %v13922_v36  ;;  %v13962_v36 = vpack.c.bf16 %v11251_v52, %v11249_v59  ;;  %v13964_v20 = vpack.c.bf16 %v11256_v25, %v11254_v34  ;;  %v11292_v59 = vld [vmem:[%s17436_s23 + $0x418] sm:$0xff]  ;;  %v11289_v25 = vld [vmem:[%s17436_s23 + $0x400] sm:$0xff] }
 0xe24   : > { %13925 = vmatpush1.bf16.msra.mxu0 %v13924_v56  ;;  %v11260_v56 = vld [vmem:[%s17436_s23 + $0x318] sm:$0xff] }
 0xe25   : > { %13927 = vmatprep.subr.bf16.mxu0 %v13926_v33  ;;  %v13966_v33 = vpack.c.bf16 %v11255_v47, %v11253_v18  ;;  %v13968_v41 = vpack.c.bf16 %v11260_v56, %v11258_v3  ;;  %v8073_v18 = vld [vmem:[%s17438_s1] ss:$4 sm:$0x3] }
 0xe26   : > { %v8078_v47 = vrot.slane %v8073_v18, %v14977_v43  ;;  %v8082_v3 = vrot.slane %v8073_v18, %v14982_v46 }
 0xe28   : > { %13929 = vmatpush1.bf16.msra.mxu0 %v13928_v63  ;;  %v11264_v63 = vld [vmem:[%s17436_s23 + $0x338] sm:$0xff] }
 0xe29   : > { %13931 = vmatprep.subr.bf16.mxu0 %v13930_v32  ;;  %v11261_v32 = vld [vmem:[%s17436_s23 + $0x320] sm:$0xff] }
 0xe2a   : > { %v13974_v45 = vpack.c.bf16 %v11263_v40, %v11261_v32 }
 0xe2c   : > { %13933 = vmatpush1.bf16.msra.mxu0 %v13932_v51  ;;  %v11265_v51 = vld [vmem:[%s17436_s23 + $0x340] sm:$0xff] }
 0xe2d   : > { %13935 = vmatprep.subr.bf16.mxu0 %v13934_v53  ;;  %v11267_v53 = vld [vmem:[%s17436_s23 + $0x350] sm:$0xff] }
 0xe2e   : > { %v13978_v54 = vpack.c.bf16 %v11267_v53, %v11265_v51 }
 0xe30   : > { %13937 = vmatpush1.bf16.msra.mxu0 %v13936_v62  ;;  %v11271_v62 = vld [vmem:[%s17436_s23 + $0x370] sm:$0xff] }
 0xe31   : > { %13939 = vmatprep.subr.bf16.mxu0 %v13938_v9  ;;  %v11274_v9 = vld [vmem:[%s17436_s23 + $0x388] sm:$0xff]  ;;  %v13982_v61 = vpack.c.bf16 %v11271_v62, %v11269_v55 }
 0xe32   : > { %v13984_v8 = vpack.c.bf16 %v11276_v60, %v11274_v9  ;;  %v8127_v60 = vld [vmem:[%s17439_s3] sm:$0x7f] }
 0xe34   : > { %13941 = vmatpush1.bf16.msra.mxu0 %v13940_v48  ;;  %v11275_v48 = vld [vmem:[%s17436_s23 + $0x390] sm:$0xff] }
 0xe35   : > { %13943 = vmatprep.subr.bf16.mxu0 %v13942_v0  ;;  %v11278_v0 = vld [vmem:[%s17436_s23 + $0x3a8] sm:$0xff]  ;;  %v13986_v58 = vpack.c.bf16 %v11275_v48, %v11273_v7 }
 0xe36   : > { %v13988_v14 = vpack.c.bf16 %v11280_v10, %v11278_v0  ;;  %v11300_v7 = vld [vmem:[%s17439_s3 + $0x8] sm:$0x7f]  ;;  %v11306_v0 = vld [vmem:[%s17440_s4 + $0xa0] sm:$0xff] }
 0xe37   : > { %v11307_v10 = vld [vmem:[%s17440_s4 + $0xa8] sm:$0xff] }
 0xe38   : > { %13945 = vmatpush1.bf16.msra.mxu0 %v13944_v4  ;;  %v11279_v4 = vld [vmem:[%s17436_s23 + $0x3b0] sm:$0xff] }
 0xe39   : > { %13947 = vmatprep.subr.bf16.mxu0 %v13946_v16  ;;  %v11282_v16 = vld [vmem:[%s17436_s23 + $0x3c8] sm:$0xff]  ;;  %v13990_v42 = vpack.c.bf16 %v11279_v4, %v11277_v31  ;;  %v11309_v31 = vld [vmem:[%s17440_s4 + $0xb8] sm:$0xff] }
 0xe3a   : > { %v13992_v17 = vpack.c.bf16 %v11284_v6, %v11282_v16  ;;  %v11310_v16 = vld [vmem:[%s17440_s4 + $0xc0] sm:$0xff]  ;;  %v11311_v6 = vld [vmem:[%s17440_s4 + $0xc8] sm:$0xff] }
 0xe3c   : > { %13949 = vmatpush1.bf16.msra.mxu0 %v13948_v22  ;;  %v11283_v22 = vld [vmem:[%s17436_s23 + $0x3d0] sm:$0xff] }
 0xe3d   : > { %13951 = vmatprep.subr.bf16.mxu0 %v13950_v49  ;;  %v11286_v49 = vld [vmem:[%s17436_s23 + $0x3e8] sm:$0xff]  ;;  %v13994_v23 = vpack.c.bf16 %v11283_v22, %v11281_v21  ;;  %v11313_v21 = vld [vmem:[%s17440_s4 + $0xd8] sm:$0xff] }
 0xe3e   : > { %v13996_v11 = vpack.c.bf16 %v11288_v35, %v11286_v49  ;;  %v11314_v49 = vld [vmem:[%s17440_s4 + $0xe0] sm:$0xff]  ;;  %v11315_v35 = vld [vmem:[%s17440_s4 + $0xe8] sm:$0xff] }
 0xe40   : > { %13953 = vmatpush1.bf16.msra.mxu0 %v13952_v5  ;;  %v11287_v5 = vld [vmem:[%s17436_s23 + $0x3f0] sm:$0xff] }
 0xe41   : > { %13961 = vmatprep.subr.bf16.mxu0 %v13960_v30  ;;  %v11290_v30 = vld [vmem:[%s17436_s23 + $0x408] sm:$0xff]  ;;  %v13998_v52 = vpack.c.bf16 %v11287_v5, %v11285_v27  ;;  %v11317_v27 = vld [vmem:[%s17440_s4 + $0xf8] sm:$0xff] }
 0xe42   : > { %v14000_v34 = vpack.c.bf16 %v11292_v59, %v11290_v30  ;;  %v11318_v30 = vld [vmem:[%s17440_s4 + $0x100] sm:$0xff]  ;;  %v11319_v59 = vld [vmem:[%s17440_s4 + $0x108] sm:$0xff] }
 0xe43   : > { %7843 = vmatmul.mubr.f32.vlgmr.msra.gmra.mrb[118].mxu0 %v16801_v44  ;;  %v13970_v44 = vpack.c.bf16 %v11259_v37, %v11257_v24 }
 0xe44   : > { %11242 = vmatprep.mubr.msk.f32.mxu0 %vm7301_vm0, %v16811_v2  ;;  %13963 = vmatpush1.bf16.msra.mxu0 %v13962_v36  ;;  %v13972_v2 = vpack.c.bf16 %v11264_v63, %v11262_v38  ;;  %v11291_v36 = vld [vmem:[%s17436_s23 + $0x410] sm:$0xff]  ;;  %v11296_v63 = vld [vmem:[%s17438_s1 + $0x2] ss:$4 sm:$0x3] }
 0xe45   : > { %13965 = vmatprep.subr.bf16.mxu0 %v13964_v20  ;;  %v14002_v20 = vpack.c.bf16 %v11291_v36, %v11289_v25  ;;  %v8120_v51 = vrot.slane %v11296_v63, %v14982_v46  ;;  %v11321_v25 = vld [vmem:[%s17440_s4 + $0x118] sm:$0xff] }
 0xe47   : > { %7849 = vmatmul.mubr.f32.gmra.mrb[120].mxu0 %v16807_v13  ;;  %v13976_v13 = vpack.c.bf16 %v11268_v28, %v11266_v57  ;;  %v8116_v28 = vrot.slane %v11296_v63, %v14977_v43  ;;  %v8215_v63 = vld [vmem:[%s17440_s4 + $0x28] sm:$0xff] }
 0xe48   : > { %13967 = vmatpush1.bf16.msra.mxu0 %v13966_v33  ;;  %11293 = vmatprep.mubr.msk.f32.mxu0 %vm7301_vm0, %v16805_v12  ;;  %v11272_v12 = vld [vmem:[%s17436_s23 + $0x378] sm:$0xff]  ;;  %v11295_v33 = vld [vmem:[%s17438_s1 + $0x1] ss:$4 sm:$0x3]  ;;  %s17443_s1 = sld [smem:[#allocation17_spill]] }
 0xe49   : > { %13969 = vmatprep.subr.bf16.mxu0 %v13968_v41  ;;  %v13980_v50 = vpack.c.bf16 %v11272_v12, %v11270_v26 }
 0xe4c   : > { %13971 = vmatpush1.bf16.msra.mxu0 %v13970_v44 }
 0xe4d   : > { %13973 = vmatprep.subr.bf16.mxu0 %v13972_v2 }
 0xe50   : > { %13975 = vmatpush1.bf16.msra.mxu0 %v13974_v45 }
 0xe51   : > { %13977 = vmatprep.subr.bf16.mxu0 %v13976_v13 }
 0xe54   : > { %13979 = vmatpush1.bf16.msra.mxu0 %v13978_v54 }
 0xe55   : > { %13981 = vmatprep.subr.bf16.mxu0 %v13980_v50 }
 0xe58   : > { %13983 = vmatpush1.bf16.msra.mxu0 %v13982_v61  ;;  %v11304_v61 = vld [vmem:[%s17440_s4 + $0x90] sm:$0xff] }
 0xe59   : > { %13985 = vmatprep.subr.bf16.mxu0 %v13984_v8  ;;  %v11305_v8 = vld [vmem:[%s17440_s4 + $0x98] sm:$0xff] }
 0xe5a   : > { %v14017_v48 = vpack.c.bf16 %v11305_v8, %v11304_v61  ;;  %v11324_v61 = vld [vmem:[%s17439_s3 + $0x10] sm:$0x7f]  ;;  %v11328_v8 = vld [vmem:[%s17440_s4 + $0x120] sm:$0xff]  ;;  %s17444_s3 = sld [smem:[#allocation16_spill]] }
 0xe5c   : > { %13987 = vmatpush1.bf16.msra.mxu0 %v13986_v58  ;;  %v14020_v58 = vpack.c.bf16 %v11307_v10, %v11306_v0  ;;  %v11331_v0 = vld [vmem:[%s17440_s4 + $0x138] sm:$0xff] }
 0xe5d   : > { %13989 = vmatprep.subr.bf16.mxu0 %v13988_v14  ;;  %v11308_v14 = vld [vmem:[%s17440_s4 + $0xb0] sm:$0xff] }
 0xe5e   : > { %v14023_v4 = vpack.c.bf16 %v11309_v31, %v11308_v14  ;;  %v11334_v14 = vld [vmem:[%s17440_s4 + $0x150] sm:$0xff]  ;;  %v11335_v31 = vld [vmem:[%s17440_s4 + $0x158] sm:$0xff] }
 0xe60   : > { %13991 = vmatpush1.bf16.msra.mxu0 %v13990_v42  ;;  %v14026_v42 = vpack.c.bf16 %v11311_v6, %v11310_v16  ;;  %v11336_v16 = vld [vmem:[%s17440_s4 + $0x160] sm:$0xff]  ;;  %v11337_v6 = vld [vmem:[%s17440_s4 + $0x168] sm:$0xff] }
 0xe61   : > { %13993 = vmatprep.subr.bf16.mxu0 %v13992_v17  ;;  %v11312_v17 = vld [vmem:[%s17440_s4 + $0xd0] sm:$0xff] }
 0xe62   : > { %v14029_v22 = vpack.c.bf16 %v11313_v21, %v11312_v17  ;;  %v11338_v17 = vld [vmem:[%s17440_s4 + $0x170] sm:$0xff]  ;;  %v11339_v21 = vld [vmem:[%s17440_s4 + $0x178] sm:$0xff] }
 0xe64   : > { %13995 = vmatpush1.bf16.msra.mxu0 %v13994_v23  ;;  %v14032_v23 = vpack.c.bf16 %v11315_v35, %v11314_v49  ;;  %v11340_v49 = vld [vmem:[%s17440_s4 + $0x180] sm:$0xff]  ;;  %v11341_v35 = vld [vmem:[%s17440_s4 + $0x188] sm:$0xff] }
 0xe65   : > { %13997 = vmatprep.subr.bf16.mxu0 %v13996_v11  ;;  %v11316_v11 = vld [vmem:[%s17440_s4 + $0xf0] sm:$0xff] }
 0xe66   : > { %v14035_v5 = vpack.c.bf16 %v11317_v27, %v11316_v11  ;;  %v11342_v11 = vld [vmem:[%s17440_s4 + $0x190] sm:$0xff]  ;;  %v11343_v27 = vld [vmem:[%s17440_s4 + $0x198] sm:$0xff] }
 0xe68   : > { %13999 = vmatpush1.bf16.msra.mxu0 %v13998_v52  ;;  %v14038_v52 = vpack.c.bf16 %v11319_v59, %v11318_v30  ;;  %v11344_v30 = vld [vmem:[%s17440_s4 + $0x1a0] sm:$0xff]  ;;  %v11345_v59 = vld [vmem:[%s17440_s4 + $0x1a8] sm:$0xff] }
 0xe69   : > { %14001 = vmatprep.subr.bf16.mxu0 %v14000_v34  ;;  %v11320_v34 = vld [vmem:[%s17440_s4 + $0x110] sm:$0xff] }
 0xe6a   : > { %v14041_v36 = vpack.c.bf16 %v11321_v25, %v11320_v34 }
 0xe6c   : > { %14003 = vmatpush1.bf16.msra.mxu0 %v14002_v20 }
 0xe6d   : > { %12188 = vmatprep.subr.mxu0 %v14559_v39 }
 0xe6f   : > { %8057 = vmatmul.mubr.f32.vlgmr.msra.gmra.mrb[118].mxu0 %v16803_v1  ;;  %v8099_v1 = vrot.slane %v11295_v33, %v14977_v43  ;;  %v11333_v43 = vld [vmem:[%s17440_s4 + $0x148] sm:$0xff] }
 0xe70   : > { %11294 = vmatprep.mubr.msk.f32.mxu0 %vm7301_vm0, %v16815_v15 }
 0xe73   : > { %8063 = vmatmul.mubr.f32.gmra.mrb[120].mxu0 %v16809_v29  ;;  %v8103_v29 = vrot.slane %v11295_v33, %v14982_v46 }
 0xe74   : > { %12190 = vmatprep.mubr.msk.f32.mxu0 %vm14561_vm9, %v14559_v39 }
 0xf42   : > { %v8058_v56 = vpop.f32.mrb[118].mxu0 }
 0xf43   : > { %v8085_v41 = vadd.f32 %v8078_v47, %v8058_v56  ;;  %v8060_v24 = vpop.f32.mrb[119].mxu0 }
 0xf44   : > { %v8086_v37 = vadd.f32 %v8082_v3, %v8060_v24  ;;  %v8212_v24 = vld [vmem:[%s17440_s4 + $0x10] sm:$0xff] }
 0xf45   : > { %v8089_v38 = vmax.f32 %v8085_v41, 0.0 }
 0xf46   : > { %v8090_v15 = vmax.f32 %v8086_v37, 0.0  ;;  %v8064_v44 = vpop.f32.mrb[120].mxu0  ;;  %v8213_v37 = vld [vmem:[%s17440_s4 + $0x18] sm:$0xff] }
 0xf47   : > { %v8087_v2 = vadd.f32 %v8078_v47, %v8064_v44  ;;  %v8066_v32 = vpop.f32.mrb[121].mxu0  ;;  %v8106_v57 = vmul.f32 %v8099_v1, %v8089_v38  ;;  %v8210_v47 = vld [vmem:[%s17440_s4] sm:$0xff]  ;;  %v14047_v38 = vpack.c.bf16 %v8213_v37, %v8212_v24  ;;  %v8217_v44 = vld [vmem:[%s17440_s4 + $0x38] sm:$0xff]  ;;  %v8739_v24 = vld [vmem:[%s17443_s1 + $0x10] sm:$0xff] }
 0xf48   : > { %v8088_v40 = vadd.f32 %v8082_v3, %v8066_v32  ;;  %v8107_v13 = vmul.f32 %v8103_v29, %v8090_v15  ;;  %v8211_v3 = vld [vmem:[%s17440_s4 + $0x8] sm:$0xff]  ;;  %v8218_v32 = vld [vmem:[%s17440_s4 + $0x40] sm:$0xff]  ;;  %v8740_v37 = vld [vmem:[%s17443_s1 + $0x18] sm:$0xff] }
 0xf49   : > { %v8091_v45 = vmax.f32 %v8087_v2, 0.0  ;;  %v8123_v54 = vadd.f32 %v8116_v28, %v8106_v57  ;;  %v14044_v33 = vpack.c.bf16 %v8211_v3, %v8210_v47 }
 0xf4a   : > { %v8092_v53 = vmax.f32 %v8088_v40, 0.0  ;;  %v8124_v55 = vadd.f32 %v8120_v51, %v8107_v13  ;;  %v8219_v40 = vld [vmem:[%s17440_s4 + $0x48] sm:$0xff] }
 0xf4b   : > { %v8108_v26 = vmul.f32 %v8099_v1, %v8091_v45  ;;  %v8214_v1 = vld [vmem:[%s17440_s4 + $0x20] sm:$0xff]  ;;  %v14056_v57 = vpack.c.bf16 %v8219_v40, %v8218_v32  ;;  %v8221_v45 = vld [vmem:[%s17440_s4 + $0x58] sm:$0xff]  ;;  %v8746_v40 = vld [vmem:[%s17443_s1 + $0x48] sm:$0xff] }
 0xf4c   : > { %v8109_v12 = vmul.f32 %v8103_v29, %v8092_v53  ;;  %v14050_v15 = vpack.c.bf16 %v8215_v63, %v8214_v1  ;;  %v8216_v29 = vld [vmem:[%s17440_s4 + $0x30] sm:$0xff]  ;;  %v8223_v53 = vld [vmem:[%s17440_s4 + $0x68] sm:$0xff]  ;;  %v8741_v1 = vld [vmem:[%s17443_s1 + $0x20] sm:$0xff] }
 0xf4d   : > { %v8125_v50 = vadd.f32 %v8116_v28, %v8108_v26  ;;  %v14053_v2 = vpack.c.bf16 %v8217_v44, %v8216_v29  ;;  %v8220_v28 = vld [vmem:[%s17440_s4 + $0x50] sm:$0xff]  ;;  %v8742_v63 = vld [vmem:[%s17443_s1 + $0x28] sm:$0xff]  ;;  %v8744_v44 = vld [vmem:[%s17443_s1 + $0x38] sm:$0xff] }
 0xf4e   : > { %v8126_v62 = vadd.f32 %v8120_v51, %v8109_v12  ;;  %v14059_v13 = vpack.c.bf16 %v8221_v45, %v8220_v28  ;;  %v8222_v51 = vld [vmem:[%s17440_s4 + $0x60] sm:$0xff]  ;;  %v8224_v12 = vld [vmem:[%s17440_s4 + $0x70] sm:$0xff]  ;;  %v8748_v45 = vld [vmem:[%s17443_s1 + $0x58] sm:$0xff] }
 0xf4f   : > { %v16926_v9 = vpack.c.bf16 %v8125_v50, %v8123_v54  ;;  %v14062_v26 = vpack.c.bf16 %v8223_v53, %v8222_v51  ;;  %v8225_v54 = vld [vmem:[%s17440_s4 + $0x78] sm:$0xff]  ;;  %v8743_v29 = vld [vmem:[%s17443_s1 + $0x30] sm:$0xff]  ;;  %v8745_v32 = vld [vmem:[%s17443_s1 + $0x40] sm:$0xff] }
 0xf50   : > { %v16933_v46 = vpack.c.bf16 %v8126_v62, %v8124_v55  ;;  %v14065_v50 = vpack.c.bf16 %v8225_v54, %v8224_v12  ;;  %v8226_v55 = vld [vmem:[%s17440_s4 + $0x80] sm:$0xff]  ;;  %v8227_v62 = vld [vmem:[%s17440_s4 + $0x88] sm:$0xff]  ;;  %v8747_v28 = vld [vmem:[%s17443_s1 + $0x50] sm:$0xff] }
 0xf51   : > { %v8749_v51 = vld [vmem:[%s17443_s1 + $0x60] sm:$0xff]  ;;  %v8750_v53 = vld [vmem:[%s17443_s1 + $0x68] sm:$0xff] }
 0xf52   : > { %14006 = vmatprep.subr.msk.bf16.mxu1 %vm16929_vm3, %v16933_v46  ;;  %v11347_v54 = vld [vmem:[%s17444_s3] ss:$0 sm:$0xff] }
 0xf53   : > { %14009 = vmatpush1.bf16.msk.msra.mxu1 %vm16929_vm3, %v16926_v9 }
 0xf54   : > { %14012 = vmatprep.subr.msk.bf16.mxu1 %vm16929_vm3, %v16933_v46 }
 0xf56   : > { %11299 = vmatmul.mubr.msk.f32.vlgmr.msra.gmra.mrb[106].mxu1 %vm8128_vm4, %v8127_v60  ;;  %v14068_v60 = vpack.c.bf16 %v8227_v62, %v8226_v55 }
 0xf57   : > { %14015 = vmatpush1.bf16.msk.msra.mxu1 %vm16929_vm3, %v16926_v9  ;;  %8297 = vmatprep.mubr.f32.mxu1 %v14559_v39 }
 0xf58   : > { %14016 = vmatprep.subr.bf16.mxu1 %v14560_v19 }
 0xf5a   : > { %11303 = vmatmul.mubr.msk.f32.vlgmr.msra.gmra.mrb[108].mxu1 %vm8128_vm4, %v11300_v7  ;;  %v11329_v7 = vld [vmem:[%s17440_s4 + $0x128] sm:$0xff] }
 0xf5b   : > { %14018 = vmatpush1.bf16.msra.mxu1 %v14017_v48  ;;  %v11330_v48 = vld [vmem:[%s17440_s4 + $0x130] sm:$0xff] }
 0xf5c   : > { %14019 = vmatprep.subr.bf16.mxu1 %v14560_v19  ;;  %v14080_v10 = vpack.c.bf16 %v11331_v0, %v11330_v48  ;;  %v11355_v0 = vld [vmem:[%s17443_s1 + $0x70] sm:$0xff] }
 0xf5f   : > { %14021 = vmatpush1.bf16.msra.mxu1 %v14020_v58 }
 0xf60   : > { %14022 = vmatprep.subr.bf16.mxu1 %v14560_v19 }
 0xf63   : > { %14024 = vmatpush1.bf16.msra.mxu1 %v14023_v4  ;;  %v14086_v4 = vpack.c.bf16 %v11335_v31, %v11334_v14  ;;  %v11358_v14 = vld [vmem:[%s17443_s1 + $0x88] sm:$0xff] }
 0xf64   : > { %14025 = vmatprep.subr.bf16.mxu1 %v14560_v19 }
 0xf67   : > { %14027 = vmatpush1.bf16.msra.mxu1 %v14026_v42  ;;  %v14089_v42 = vpack.c.bf16 %v11337_v6, %v11336_v16  ;;  %v11360_v16 = vld [vmem:[%s17443_s1 + $0x98] sm:$0xff] }
 0xf68   : > { %14028 = vmatprep.subr.bf16.mxu1 %v14560_v19 }
 0xf6b   : > { %14030 = vmatpush1.bf16.msra.mxu1 %v14029_v22  ;;  %v14092_v22 = vpack.c.bf16 %v11339_v21, %v11338_v17  ;;  %v11362_v17 = vld [vmem:[%s17443_s1 + $0xa8] sm:$0xff] }
 0xf6c   : > { %14031 = vmatprep.subr.bf16.mxu1 %v14560_v19 }
 0xf6f   : > { %14033 = vmatpush1.bf16.msra.mxu1 %v14032_v23  ;;  %v14095_v23 = vpack.c.bf16 %v11341_v35, %v11340_v49  ;;  %v11364_v49 = vld [vmem:[%s17443_s1 + $0xb8] sm:$0xff] }
 0xf70   : > { %14034 = vmatprep.subr.bf16.mxu1 %v14560_v19 }
 0xf73   : > { %14036 = vmatpush1.bf16.msra.mxu1 %v14035_v5  ;;  %v14098_v5 = vpack.c.bf16 %v11343_v27, %v11342_v11  ;;  %v11366_v11 = vld [vmem:[%s17443_s1 + $0xc8] sm:$0xff] }
 0xf74   : > { %14037 = vmatprep.subr.bf16.mxu1 %v14560_v19 }
 0xf77   : > { %14039 = vmatpush1.bf16.msra.mxu1 %v14038_v52  ;;  %v14101_v52 = vpack.c.bf16 %v11345_v59, %v11344_v30  ;;  %v11368_v30 = vld [vmem:[%s17443_s1 + $0xd8] sm:$0xff] }
 0xf78   : > { %14040 = vmatprep.subr.bf16.mxu1 %v14560_v19 }
 0xf7b   : > { %14042 = vmatpush1.bf16.msra.mxu1 %v14041_v36 }
 0xf7c   : > { %14043 = vmatprep.subr.bf16.mxu1 %v14560_v19 }
0x1029   : > { %v8205_v20 = vpop.f32.mrb[106].mxu1 }
0x102a   : > { %v8207_v18 = vpop.f32.mrb[107].mxu1 }
0x102d   : > { %v8299_v56 = vpop.f32.mrb[108].mxu1 }
0x102e   : > { %v8301_v41 = vpop.f32.mrb[109].mxu1 }
0x102f   : > { %11322 = vmatprep.mubr.msk.f32.mxu1 %vm8323_vm2, %v8301_v41 }
0x1030   : > { %8392 = vmatmul.mubr.f32.vlgmr.msra.gmra.mrb[110].mxu1 %v8299_v56  ;;  %v8737_v56 = vld [vmem:[%s17443_s1] sm:$0xff] }
0x1031   : > { %14045 = vmatpush1.bf16.msra.mxu1 %v14044_v33  ;;  %11323 = vmatprep.mubr.msk.f32.mxu1 %vm8323_vm2, %v8207_v18  ;;  %v8738_v33 = vld [vmem:[%s17443_s1 + $0x8] sm:$0xff] }
0x1032   : > { %14046 = vmatprep.subr.bf16.mxu1 %v14560_v19  ;;  %v14125_v41 = vpack.c.bf16 %v8738_v33, %v8737_v56  ;;  %v11378_v33 = vld [vmem:[%s17443_s1 + $0x100] sm:$0xff] }
0x1035   : > { %14048 = vmatpush1.bf16.msra.mxu1 %v14047_v38  ;;  %v14128_v38 = vpack.c.bf16 %v8740_v37, %v8739_v24 }
0x1036   : > { %14049 = vmatprep.subr.bf16.mxu1 %v14560_v19 }
0x1039   : > { %14051 = vmatpush1.bf16.msra.mxu1 %v14050_v15  ;;  %v14131_v15 = vpack.c.bf16 %v8742_v63, %v8741_v1  ;;  %v11380_v1 = vld [vmem:[%s17443_s1 + $0x110] sm:$0xff]  ;;  %v11381_v63 = vld [vmem:[%s17443_s1 + $0x118] sm:$0xff] }
0x103a   : > { %14052 = vmatprep.subr.bf16.mxu1 %v14560_v19 }
0x103d   : > { %14054 = vmatpush1.bf16.msra.mxu1 %v14053_v2  ;;  %v14134_v2 = vpack.c.bf16 %v8744_v44, %v8743_v29  ;;  %v11382_v29 = vld [vmem:[%s17443_s1 + $0x120] sm:$0xff]  ;;  %v11383_v44 = vld [vmem:[%s17443_s1 + $0x128] sm:$0xff] }
0x103e   : > { %14055 = vmatprep.subr.bf16.mxu1 %v14560_v19 }
0x1041   : > { %14057 = vmatpush1.bf16.msra.mxu1 %v14056_v57  ;;  %v14137_v57 = vpack.c.bf16 %v8746_v40, %v8745_v32  ;;  %v11384_v32 = vld [vmem:[%s17443_s1 + $0x130] sm:$0xff]  ;;  %v11385_v40 = vld [vmem:[%s17443_s1 + $0x138] sm:$0xff] }
0x1042   : > { %14058 = vmatprep.subr.bf16.mxu1 %v14560_v19 }
0x1045   : > { %14060 = vmatpush1.bf16.msra.mxu1 %v14059_v13  ;;  %v14140_v13 = vpack.c.bf16 %v8748_v45, %v8747_v28  ;;  %v11386_v28 = vld [vmem:[%s17443_s1 + $0x140] sm:$0xff]  ;;  %v11387_v45 = vld [vmem:[%s17443_s1 + $0x148] sm:$0xff] }
0x1046   : > { %14061 = vmatprep.subr.bf16.mxu1 %v14560_v19 }
0x1049   : > { %14063 = vmatpush1.bf16.msra.mxu1 %v14062_v26  ;;  %v14143_v26 = vpack.c.bf16 %v8750_v53, %v8749_v51 }
0x104a   : > { %14064 = vmatprep.subr.bf16.mxu1 %v14560_v19 }
0x104d   : > { %14066 = vmatpush1.bf16.msra.mxu1 %v14065_v50 }
0x104e   : > { %14067 = vmatprep.subr.bf16.mxu1 %v14560_v19 }
0x1051   : > { %14069 = vmatpush1.bf16.msra.mxu1 %v14068_v60  ;;  %v11348_v60 = vld [vmem:[%s17444_s3 + $0x1] ss:$0 sm:$0xff] }
0x1052   : > { %14072 = vmatprep.subr.msk.bf16.mxu1 %vm16929_vm3, %v16933_v46  ;;  %v14077_v46 = vpack.c.bf16 %v11329_v7, %v11328_v8  ;;  %v11349_v8 = vld [vmem:[%s17444_s3 + $0x2] ss:$0 sm:$0xff]  ;;  %s17446_s3 = sld [smem:[#allocation20_spill]] }
0x1054   : > { %8465 = vmatmul.mubr.f32.vlgmr.msra.gmra.mrb[112].mxu1 %v8205_v20 }
0x1055   : > { %14075 = vmatpush1.bf16.msk.msra.mxu1 %vm16929_vm3, %v16926_v9  ;;  %8539 = vmatprep.mubr.f32.mxu1 %v14559_v39  ;;  %v11332_v9 = vld [vmem:[%s17440_s4 + $0x140] sm:$0xff]  ;;  %s17445_s4 = sld [smem:[#allocation18_spill]] }
0x1056   : > { %14076 = vmatprep.subr.bf16.mxu1 %v14560_v19  ;;  %v14083_v58 = vpack.c.bf16 %v11333_v43, %v11332_v9 }
0x1058   : > { %11327 = vmatmul.mubr.msk.f32.vlgmr.msra.gmra.mrb[114].mxu1 %vm8128_vm4, %v11324_v61 }
0x1059   : > { %14078 = vmatpush1.bf16.msra.mxu1 %v14077_v46 }
0x105a   : > { %14079 = vmatprep.subr.bf16.mxu1 %v14560_v19 }
0x105b   : > { %v8658_v46 = vld [vmem:[%s17445_s4] sm:$0x1f]  ;;  %v11352_v9 = vld [vmem:[%s17445_s4 + $0x8] sm:$0x1f]  ;;  %v11371_v37 = vld [vmem:[%s17445_s4 + $0x10] sm:$0x1f] }
0x105c   : > { %s17448_s4 = sld [smem:[#allocation21_spill]] }
0x105d   : > { %14081 = vmatpush1.bf16.msra.mxu1 %v14080_v10  ;;  %v11356_v10 = vld [vmem:[%s17443_s1 + $0x78] sm:$0xff] }
0x105e   : > { %14082 = vmatprep.subr.bf16.mxu1 %v14560_v19  ;;  %v14104_v43 = vpack.c.bf16 %v11356_v10, %v11355_v0  ;;  %v9255_v0 = vld [vmem:[%s17446_s3 + $0x28] sm:$0xff] }
0x1061   : > { %14084 = vmatpush1.bf16.msra.mxu1 %v14083_v58  ;;  %v11357_v58 = vld [vmem:[%s17443_s1 + $0x80] sm:$0xff] }
0x1062   : > { %14085 = vmatprep.subr.bf16.mxu1 %v14560_v19  ;;  %v14107_v31 = vpack.c.bf16 %v11358_v14, %v11357_v58  ;;  %v9258_v14 = vld [vmem:[%s17446_s3 + $0x40] sm:$0xff] }
0x1065   : > { %14087 = vmatpush1.bf16.msra.mxu1 %v14086_v4  ;;  %v11359_v4 = vld [vmem:[%s17443_s1 + $0x90] sm:$0xff] }
0x1066   : > { %14088 = vmatprep.subr.bf16.mxu1 %v14560_v19  ;;  %v14110_v6 = vpack.c.bf16 %v11360_v16, %v11359_v4 }
0x1069   : > { %14090 = vmatpush1.bf16.msra.mxu1 %v14089_v42  ;;  %v11361_v42 = vld [vmem:[%s17443_s1 + $0xa0] sm:$0xff] }
0x106a   : > { %14091 = vmatprep.subr.bf16.mxu1 %v14560_v19  ;;  %v14113_v21 = vpack.c.bf16 %v11362_v17, %v11361_v42 }
0x106d   : > { %14093 = vmatpush1.bf16.msra.mxu1 %v14092_v22  ;;  %v11363_v22 = vld [vmem:[%s17443_s1 + $0xb0] sm:$0xff] }
0x106e   : > { %14094 = vmatprep.subr.bf16.mxu1 %v14560_v19  ;;  %v14116_v35 = vpack.c.bf16 %v11364_v49, %v11363_v22 }
0x1071   : > { %14096 = vmatpush1.bf16.msra.mxu1 %v14095_v23  ;;  %v11365_v23 = vld [vmem:[%s17443_s1 + $0xc0] sm:$0xff] }
0x1072   : > { %14097 = vmatprep.subr.bf16.mxu1 %v14560_v19  ;;  %v14119_v27 = vpack.c.bf16 %v11366_v11, %v11365_v23 }
0x1075   : > { %14099 = vmatpush1.bf16.msra.mxu1 %v14098_v5  ;;  %v11367_v5 = vld [vmem:[%s17443_s1 + $0xd0] sm:$0xff] }
0x1076   : > { %14100 = vmatprep.subr.bf16.mxu1 %v14560_v19  ;;  %v14122_v59 = vpack.c.bf16 %v11368_v30, %v11367_v5  ;;  %v11397_v5 = vld [vmem:[%s17446_s3 + $0x50] sm:$0xff]  ;;  %v11398_v30 = vld [vmem:[%s17446_s3 + $0x58] sm:$0xff] }
0x1079   : > { %14102 = vmatpush1.bf16.msra.mxu1 %v14101_v52  ;;  %v11374_v52 = vld [vmem:[%s17443_s1 + $0xe0] sm:$0xff] }
0x107a   : > { %14124 = vmatprep.subr.bf16.mxu1 %v14560_v19 }
0x1103   : > { %v8393_v34 = vpop.f32.mrb[110].mxu1 }
0x1104   : > { %v8395_v25 = vpop.f32.mrb[111].mxu1 }
0x1127   : > { %v8466_v36 = vpop.f32.mrb[112].mxu1 }
0x1128   : > { %v8467_v20 = vadd.f32 %v8466_v36, %v8393_v34  ;;  %v8468_v18 = vpop.f32.mrb[113].mxu1  ;;  %v11375_v34 = vld [vmem:[%s17443_s1 + $0xe8] sm:$0xff] }
0x1129   : > { %v14146_v25 = vpack.c.bf16 %v11375_v34, %v11374_v52  ;;  %v11377_v18 = vld [vmem:[%s17443_s1 + $0xf8] sm:$0xff]  ;;  %v14167_v52 = vpack.c.bf16 %v11398_v30, %v11397_v5  ;;  %v11399_v34 = vld [vmem:[%s17446_s3 + $0x60] sm:$0xff] }
0x112b   : > { %v8541_v47 = vpop.f32.mrb[114].mxu1 }
0x112c   : > { %v8543_v3 = vpop.f32.mrb[115].mxu1 }
0x112d   : > { %11346 = vmatprep.mubr.msk.f32.mxu1 %vm8323_vm2, %v8543_v3 }
0x112e   : > { %8633 = vmatmul.mubr.f32.vlgmr.msra.gmra.mrb[116].mxu1 %v8541_v47 }
0x112f   : > { %12257 = vmatprep.mubr.msk.f32.mxu1 %vm14561_vm9, %v14559_v39  ;;  %14126 = vmatpush3.bf16.msra.mxu1 %v14125_v41  ;;  %v11379_v41 = vld [vmem:[%s17443_s1 + $0x108] sm:$0xff] }
0x1130   : > { %14127 = vmatprep.subr.bf16.mxu1 %v14560_v19 }
0x1133   : > { %14129 = vmatpush3.bf16.msra.mxu1 %v14128_v38  ;;  %v14152_v38 = vpack.c.bf16 %v11379_v41, %v11378_v33  ;;  %v11405_v41 = vld [vmem:[%s17446_s3 + $0x90] sm:$0xff] }
0x1134   : > { %14130 = vmatprep.subr.bf16.mxu1 %v14560_v19 }
0x1137   : > { %14132 = vmatpush3.bf16.msra.mxu1 %v14131_v15  ;;  %v14155_v15 = vpack.c.bf16 %v11381_v63, %v11380_v1  ;;  %v11412_v63 = vld [vmem:[%s17446_s3 + $0xa0] sm:$0xff] }
0x1138   : > { %14133 = vmatprep.subr.bf16.mxu1 %v14560_v19 }
0x113b   : > { %14135 = vmatpush3.bf16.msra.mxu1 %v14134_v2  ;;  %v14158_v2 = vpack.c.bf16 %v11383_v44, %v11382_v29 }
0x113c   : > { %14136 = vmatprep.subr.bf16.mxu1 %v14560_v19 }
0x113f   : > { %14138 = vmatpush3.bf16.msra.mxu1 %v14137_v57  ;;  %v14161_v57 = vpack.c.bf16 %v11385_v40, %v11384_v32  ;;  %v11414_v40 = vld [vmem:[%s17446_s3 + $0xb0] sm:$0xff] }
0x1140   : > { %14139 = vmatprep.subr.bf16.mxu1 %v14560_v19 }
0x1143   : > { %14141 = vmatpush3.bf16.msra.mxu1 %v14140_v13  ;;  %v14164_v13 = vpack.c.bf16 %v11387_v45, %v11386_v28  ;;  %v11416_v45 = vld [vmem:[%s17446_s3 + $0xc0] sm:$0xff] }
0x1144   : > { %14142 = vmatprep.subr.bf16.mxu1 %v14560_v19 }
0x1147   : > { %14144 = vmatpush3.bf16.msra.mxu1 %v14143_v26 }
0x1148   : > { %14145 = vmatprep.subr.bf16.mxu1 %v14560_v19 }
0x1201   : > { %v8634_v12 = vpop.f32.mrb[116].mxu1 }
0x1202   : > { %v8638_v50 = vadd.f32 %v8634_v12, %v8467_v20  ;;  %v8636_v55 = vpop.f32.mrb[117].mxu1  ;;  %v11376_v20 = vld [vmem:[%s17443_s1 + $0xf0] sm:$0xff]  ;;  %s17447_s1 = sld [smem:[#allocation19_spill]] }
0x1203   : > { %v14149_v3 = vpack.c.bf16 %v11377_v18, %v11376_v20  ;;  %v11401_v20 = vld [vmem:[%s17446_s3 + $0x70] sm:$0xff]  ;;  %v11402_v18 = vld [vmem:[%s17446_s3 + $0x78] sm:$0xff] }
0x1204   : > { %v8644_v62 = vadd.f32 %v11347_v54, %v8638_v50 }
0x1206   : > { %v8645_v61 = vmax.f32 %v8644_v62, 0.0  ;;  %v9250_v62 = vld [vmem:[%s17446_s3] sm:$0xff] }
0x1208   : > { %v8651_v7 = vmul.f32 %v11348_v60, %v8645_v61  ;;  %v9251_v60 = vld [vmem:[%s17446_s3 + $0x8] sm:$0xff]  ;;  %v11390_v22 = vld [vmem:[%s17447_s1 + $0x1] ss:$0 sm:$0xff] }
0x1209   : > { %v14182_v61 = vpack.c.bf16 %v9251_v60, %v9250_v62 }
0x120a   : > { %v17072_v48 = vadd.f32 %v11349_v8, %v8651_v7  ;;  %v9252_v8 = vld [vmem:[%s17446_s3 + $0x10] sm:$0xff]  ;;  %v9253_v7 = vld [vmem:[%s17446_s3 + $0x18] sm:$0xff] }
0x120c   : > { %12189 = vmatpush3.msk.msra.mxu0 %vm8663_vm5, %v17072_v48 }
0x120d   : > { %12191 = vmatmul.mubr.msk.f32.vlgmr.msra.gmra.mrb[122].mxu0 %vm8659_vm6, %v8658_v46  ;;  %12193 = vmatprep.subr.mxu0 %v14559_v39  ;;  %v9254_v46 = vld [vmem:[%s17446_s3 + $0x20] sm:$0xff] }
0x120e   : > { %12194 = vmatpush3.msk.msra.mxu0 %vm8663_vm5, %v17072_v48  ;;  %12195 = vmatprep.mubr.msk.f32.mxu0 %vm14561_vm9, %v14559_v39  ;;  %v14188_v10 = vpack.c.bf16 %v9255_v0, %v9254_v46 }
0x120f   : > { %14103 = vmatprep.subr.bf16.mxu0 %v14560_v19 }
0x1211   : > { %12196 = vmatmul.mubr.msk.f32.vlgmr.msra.gmra.mrb[124].mxu0 %vm8659_vm6, %v11352_v9  ;;  %v9256_v9 = vld [vmem:[%s17446_s3 + $0x30] sm:$0xff] }
0x1212   : > { %14105 = vmatpush3.bf16.msra.mxu0 %v14104_v43  ;;  %12226 = vmatprep.mubr.msk.f32.mxu0 %vm14561_vm9, %v14559_v39  ;;  %v9257_v43 = vld [vmem:[%s17446_s3 + $0x38] sm:$0xff] }
0x1213   : > { %14106 = vmatprep.subr.bf16.mxu0 %v14560_v19  ;;  %v14191_v58 = vpack.c.bf16 %v9257_v43, %v9256_v9 }
0x1216   : > { %14108 = vmatpush3.bf16.msra.mxu0 %v14107_v31  ;;  %v9259_v31 = vld [vmem:[%s17446_s3 + $0x48] sm:$0xff] }
0x1217   : > { %14109 = vmatprep.subr.bf16.mxu0 %v14560_v19  ;;  %v14194_v4 = vpack.c.bf16 %v9259_v31, %v9258_v14 }
0x121a   : > { %14111 = vmatpush3.bf16.msra.mxu0 %v14110_v6  ;;  %v11389_v6 = vld [vmem:[%s17447_s1] ss:$0 sm:$0xff] }
0x121b   : > { %14112 = vmatprep.subr.bf16.mxu0 %v14560_v19 }
0x121e   : > { %14114 = vmatpush3.bf16.msra.mxu0 %v14113_v21 }
0x121f   : > { %14115 = vmatprep.subr.bf16.mxu0 %v14560_v19 }
0x1222   : > { %14117 = vmatpush3.bf16.msra.mxu0 %v14116_v35  ;;  %v11391_v35 = vld [vmem:[%s17447_s1 + $0x2] ss:$0 sm:$0xff]  ;;  %s17449_s1 = sld [smem:[#allocation23_spill]] }
0x1223   : > { %14118 = vmatprep.subr.bf16.mxu0 %v14560_v19 }
0x1226   : > { %14120 = vmatpush3.bf16.msra.mxu0 %v14119_v27  ;;  %v9171_v27 = vld [vmem:[%s17448_s4] sm:$0x1f] }
0x1227   : > { %14121 = vmatprep.subr.bf16.mxu0 %v14560_v19 }
0x1228   : > { %v11431_v0 = vld [vmem:[%s17449_s1 + $0x50] sm:$0xff]  ;;  %v11433_v43 = vld [vmem:[%s17449_s1 + $0x60] sm:$0xff] }
0x1229   : > { %v11435_v31 = vld [vmem:[%s17449_s1 + $0x70] sm:$0xff] }
0x122a   : > { %14123 = vmatpush3.bf16.msra.mxu0 %v14122_v59  ;;  %v11394_v59 = vld [vmem:[%s17448_s4 + $0x8] sm:$0x1f] }
0x122b   : > { %12260 = vmatprep.subr.mxu0 %v14559_v39 }
0x12e0   : > { %v8733_v36 = vpop.f32.mrb[122].mxu0 }
0x12e1   : > { %v12192_v47 = vpop.f32.mrb[123].mxu0  ;;  %12258 = vmatmul.mubr.msk.f32.vlgmr.msra.gmra.mrb[118].mxu1 %vm8841_vm7, %v8733_v36 }
0x12e2   : > { %14147 = vmatpush3.bf16.msra.mxu1 %v14146_v25  ;;  %12293 = vmatprep.mubr.msk.f32.mxu1 %vm14561_vm9, %v14559_v39  ;;  %v11400_v25 = vld [vmem:[%s17446_s3 + $0x68] sm:$0xff]  ;;  %v14173_v47 = vpack.c.bf16 %v11402_v18, %v11401_v20  ;;  %v9749_v20 = vld [vmem:[%s17449_s1] sm:$0xff] }
0x12e3   : > { %14148 = vmatprep.subr.bf16.mxu1 %v14560_v19  ;;  %v14170_v36 = vpack.c.bf16 %v11400_v25, %v11399_v34  ;;  %v9750_v18 = vld [vmem:[%s17449_s1 + $0x8] sm:$0xff] }
0x12e4   : > { %v8822_v56 = vpop.f32.mrb[124].mxu0 }
0x12e5   : > { %12227 = vmatmul.mubr.msk.f32.vlgmr.msra.gmra.mrb[126].mxu0 %vm8841_vm7, %v8822_v56  ;;  %v12197_v24 = vpop.f32.mrb[125].mxu0  ;;  %v11404_v56 = vld [vmem:[%s17446_s3 + $0x88] sm:$0xff] }
0x12e6   : > { %12261 = vmatpush3.msk.msra.mxu0 %vm8663_vm5, %v17072_v48  ;;  %12262 = vmatprep.mubr.msk.f32.mxu0 %vm14561_vm9, %v14559_v39  ;;  %v14185_v48 = vpack.c.bf16 %v9253_v7, %v9252_v8  ;;  %v11406_v24 = vld [vmem:[%s17446_s3 + $0x98] sm:$0xff] }
0x12e7   : > { %14150 = vmatpush3.bf16.msra.mxu1 %v14149_v3  ;;  %12296 = vmatprep.subr.mxu0 %v14559_v39  ;;  %v11403_v3 = vld [vmem:[%s17446_s3 + $0x80] sm:$0xff] }
0x12e8   : > { %14151 = vmatprep.subr.bf16.mxu1 %v14560_v19  ;;  %v14176_v33 = vpack.c.bf16 %v11404_v56, %v11403_v3  ;;  %v14227_v3 = vpack.c.bf16 %v9750_v18, %v9749_v20  ;;  %v9751_v56 = vld [vmem:[%s17449_s1 + $0x10] sm:$0xff] }
0x12e9   : > { %12263 = vmatmul.mubr.msk.f32.vlgmr.msra.gmra.mrb[128].mxu0 %vm8659_vm6, %v11371_v37  ;;  %v14179_v37 = vpack.c.bf16 %v11406_v24, %v11405_v41  ;;  %v9753_v24 = vld [vmem:[%s17449_s1 + $0x20] sm:$0xff] }
0x12ea   : > { %12298 = vmatprep.mubr.msk.f32.mxu0 %vm14561_vm9, %v14559_v39 }
0x12eb   : > { %14153 = vmatpush3.bf16.msra.mxu1 %v14152_v38 }
0x12ec   : > { %14154 = vmatprep.subr.bf16.mxu1 %v14560_v19 }
0x12ef   : > { %14156 = vmatpush3.bf16.msra.mxu1 %v14155_v15  ;;  %v11413_v15 = vld [vmem:[%s17446_s3 + $0xa8] sm:$0xff] }
0x12f0   : > { %14157 = vmatprep.subr.bf16.mxu1 %v14560_v19  ;;  %v14197_v32 = vpack.c.bf16 %v11413_v15, %v11412_v63  ;;  %v9756_v63 = vld [vmem:[%s17449_s1 + $0x38] sm:$0xff] }
0x12f3   : > { %14159 = vmatpush3.bf16.msra.mxu1 %v14158_v2  ;;  %v11409_v2 = vld [vmem:[%s17448_s4 + $0x10] sm:$0x1f]  ;;  %s17451_s4 = sld [smem:[#allocation24_spill]] }
0x12f4   : > { %14160 = vmatprep.subr.bf16.mxu1 %v14560_v19 }
0x12f7   : > { %14162 = vmatpush3.bf16.msra.mxu1 %v14161_v57  ;;  %v11415_v57 = vld [vmem:[%s17446_s3 + $0xb8] sm:$0xff] }
0x12f8   : > { %14163 = vmatprep.subr.bf16.mxu1 %v14560_v19  ;;  %v14200_v28 = vpack.c.bf16 %v11415_v57, %v11414_v40  ;;  %v11447_v40 = vld [vmem:[%s17449_s1 + $0xa8] sm:$0xff] }
0x12fb   : > { %14165 = vmatpush3.bf16.msra.mxu1 %v14164_v13  ;;  %v11417_v13 = vld [vmem:[%s17446_s3 + $0xc8] sm:$0xff] }
0x12fc   : > { %14181 = vmatprep.subr.bf16.mxu1 %v14560_v19 }
0x13b4   : > { %v8984_v51 = vpop.f32.mrb[118].mxu1 }
0x13b5   : > { %v12259_v53 = vpop.f32.mrb[119].mxu1 }
0x13b6   : > { %v11418_v53 = vld [vmem:[%s17446_s3 + $0xd0] sm:$0xff] }
0x13b8   : > { %v8911_v26 = vpop.f32.mrb[126].mxu0 }
0x13b9   : > { %v8985_v12 = vadd.f32 %v8984_v51, %v8911_v26  ;;  %v12228_v54 = vpop.f32.mrb[127].mxu0  ;;  %v14203_v51 = vpack.c.bf16 %v11417_v13, %v11416_v45  ;;  %v11419_v26 = vld [vmem:[%s17446_s3 + $0xd8] sm:$0xff]  ;;  %v11448_v45 = vld [vmem:[%s17449_s1 + $0xb0] sm:$0xff] }
0x13ba   : > { %v11420_v54 = vld [vmem:[%s17446_s3 + $0xe0] sm:$0xff]  ;;  %v11449_v13 = vld [vmem:[%s17449_s1 + $0xb8] sm:$0xff] }
0x13bc   : > { %v9059_v50 = vpop.f32.mrb[128].mxu0 }
0x13bd   : > { %12294 = vmatmul.mubr.msk.f32.vlgmr.msra.gmra.mrb[120].mxu1 %vm8841_vm7, %v9059_v50  ;;  %v12264_v55 = vpop.f32.mrb[129].mxu0  ;;  %v11421_v50 = vld [vmem:[%s17446_s3 + $0xe8] sm:$0xff]  ;;  %s17450_s3 = sld [smem:[#allocation22_spill]] }
0x13be   : > { %12349 = vmatprep.mubr.msk.f32.mxu1 %vm14561_vm9, %v14559_v39  ;;  %14183 = vmatpush3.bf16.msra.mxu1 %v14182_v61  ;;  %v14209_v55 = vpack.c.bf16 %v11421_v50, %v11420_v54  ;;  %v11451_v54 = vld [vmem:[%s17449_s1 + $0xc8] sm:$0xff] }
0x13bf   : > { %14184 = vmatprep.subr.bf16.mxu1 %v14560_v19 }
0x13c2   : > { %14186 = vmatpush3.bf16.msra.mxu1 %v14185_v48 }
0x13c3   : > { %14187 = vmatprep.subr.bf16.mxu1 %v14560_v19  ;;  %v11424_v30 = vld [vmem:[%s17450_s3 + $0x1] ss:$0 sm:$0xff] }
0x13c6   : > { %14189 = vmatpush3.bf16.msra.mxu1 %v14188_v10  ;;  %v11432_v10 = vld [vmem:[%s17449_s1 + $0x58] sm:$0xff] }
0x13c7   : > { %14190 = vmatprep.subr.bf16.mxu1 %v14560_v19  ;;  %v14212_v9 = vpack.c.bf16 %v11432_v10, %v11431_v0 }
0x13ca   : > { %14192 = vmatpush3.bf16.msra.mxu1 %v14191_v58  ;;  %v11434_v58 = vld [vmem:[%s17449_s1 + $0x68] sm:$0xff] }
0x13cb   : > { %14193 = vmatprep.subr.bf16.mxu1 %v14560_v19  ;;  %v14215_v14 = vpack.c.bf16 %v11434_v58, %v11433_v43 }
0x13ce   : > { %14195 = vmatpush3.bf16.msra.mxu1 %v14194_v4  ;;  %v11436_v4 = vld [vmem:[%s17449_s1 + $0x78] sm:$0xff] }
0x13cf   : > { %12380 = vmatprep.subr.mxu1 %v14559_v39 }
0x1490   : > { %v9147_v16 = vpop.f32.mrb[120].mxu1 }
0x1491   : > { %v9151_v42 = vadd.f32 %v9147_v16, %v8985_v12  ;;  %v12295_v17 = vpop.f32.mrb[121].mxu1  ;;  %v14206_v12 = vpack.c.bf16 %v11419_v26, %v11418_v53  ;;  %v14218_v16 = vpack.c.bf16 %v11436_v4, %v11435_v31  ;;  %v14245_v53 = vpack.c.bf16 %v11449_v13, %v11448_v45  ;;  %v10178_v31 = vld [vmem:[%s17422_s6] sm:$0xff]  ;;  %v10179_v4 = vld [vmem:[%s17422_s6 + $0x8] sm:$0xff] }
0x1493   : > { %v9157_v21 = vadd.f32 %v11389_v6, %v9151_v42  ;;  %v11437_v6 = vld [vmem:[%s17449_s1 + $0x80] sm:$0xff]  ;;  %v11438_v42 = vld [vmem:[%s17449_s1 + $0x88] sm:$0xff] }
0x1494   : > { %v14221_v17 = vpack.c.bf16 %v11438_v42, %v11437_v6  ;;  %v10180_v6 = vld [vmem:[%s17422_s6 + $0x10] sm:$0xff]  ;;  %v10181_v42 = vld [vmem:[%s17422_s6 + $0x18] sm:$0xff] }
0x1495   : > { %v9158_v49 = vmax.f32 %v9157_v21, 0.0  ;;  %v11439_v21 = vld [vmem:[%s17449_s1 + $0x90] sm:$0xff] }
0x1497   : > { %v9164_v23 = vmul.f32 %v11390_v22, %v9158_v49  ;;  %v11440_v22 = vld [vmem:[%s17449_s1 + $0x98] sm:$0xff] }
0x1498   : > { %v14224_v49 = vpack.c.bf16 %v11440_v22, %v11439_v21  ;;  %v10182_v21 = vld [vmem:[%s17422_s6 + $0x20] sm:$0xff]  ;;  %v10183_v22 = vld [vmem:[%s17422_s6 + $0x28] sm:$0xff] }
0x1499   : > { %v9170_v11 = vadd.f32 %v11391_v35, %v9164_v23  ;;  %v11423_v23 = vld [vmem:[%s17450_s3] ss:$0 sm:$0xff] }
0x149b   : > { %12297 = vmatpush3.msk.msra.mxu0 %vm9176_vm8, %v9170_v11 }
0x149c   : > { %12299 = vmatmul.mubr.msk.f32.vlgmr.msra.gmra.mrb[130].mxu0 %vm9172_vm10, %v9171_v27  ;;  %12301 = vmatprep.subr.mxu0 %v14559_v39 }
0x149d   : > { %12302 = vmatpush3.msk.msra.mxu0 %vm9176_vm8, %v9170_v11  ;;  %12303 = vmatprep.mubr.msk.f32.mxu0 %vm14561_vm9, %v14559_v39 }
0x149e   : > { %14166 = vmatprep.subr.bf16.mxu0 %v14560_v19 }
0x14a0   : > { %12304 = vmatmul.mubr.msk.f32.vlgmr.msra.gmra.mrb[132].mxu0 %vm9172_vm10, %v11394_v59 }
0x14a1   : > { %14168 = vmatpush3.bf16.msra.mxu0 %v14167_v52  ;;  %12326 = vmatprep.mubr.msk.f32.mxu0 %vm14561_vm9, %v14559_v39  ;;  %v11425_v52 = vld [vmem:[%s17450_s3 + $0x2] ss:$0 sm:$0xff]  ;;  %s11461_s3 = sshll.u32 %s14764_s0, 4  ;;  %s14562_s0 = smov [#allocation2]  }
0x14a2   : > { %14169 = vmatprep.subr.bf16.mxu0 %v14560_v19  ;;  %s14464_s11 = sshll.u32 %s14562_s0, 4  ;;  %s14465_s11 = int_to_ptr.vmem [resolvable:$false] %s14464_s11 }
0x14a3   : > { %s14466_s12 = scalar_lea.vmem %s14465_s11, 32 }
0x14a5   : > { %14171 = vmatpush3.bf16.msra.mxu0 %v14170_v36  ;;  %v9672_v36 = vld [vmem:[%s17451_s4] sm:$0x1f] }
0x14a6   : > { %14172 = vmatprep.subr.bf16.mxu0 %v14560_v19 }
0x14a9   : > { %14174 = vmatpush3.bf16.msra.mxu0 %v14173_v47  ;;  %v11428_v47 = vld [vmem:[%s17451_s4 + $0x8] sm:$0x1f] }
0x14aa   : > { %14175 = vmatprep.subr.bf16.mxu0 %v14560_v19 }
0x14ad   : > { %14177 = vmatpush3.bf16.msra.mxu0 %v14176_v33  ;;  %v9752_v33 = vld [vmem:[%s17449_s1 + $0x18] sm:$0xff] }
0x14ae   : > { %14178 = vmatprep.subr.bf16.mxu0 %v14560_v19  ;;  %v14230_v41 = vpack.c.bf16 %v9752_v33, %v9751_v56 }
0x14b1   : > { %14180 = vmatpush3.bf16.msra.mxu0 %v14179_v37  ;;  %v9754_v37 = vld [vmem:[%s17449_s1 + $0x28] sm:$0xff] }
0x14b2   : > { %12352 = vmatprep.subr.mxu0 %v14559_v39 }
0x156f   : > { %v9246_v38 = vpop.f32.mrb[130].mxu0 }
0x1570   : > { %v12300_v1 = vpop.f32.mrb[131].mxu0  ;;  %12350 = vmatmul.mubr.msk.f32.vlgmr.msra.gmra.mrb[122].mxu1 %vm9346_vm11, %v9246_v38  ;;  %v14233_v38 = vpack.c.bf16 %v9754_v37, %v9753_v24 }
0x1571   : > { %12382 = vmatprep.mubr.msk.f32.mxu1 %vm14561_vm9, %v14559_v39  ;;  %v9755_v1 = vld [vmem:[%s17449_s1 + $0x30] sm:$0xff] }
0x1572   : > { %v14236_v15 = vpack.c.bf16 %v9756_v63, %v9755_v1  ;;  %v10188_v63 = vld [vmem:[%s14736_s30] sm:$0x1] }
0x1573   : > { %v9331_v29 = vpop.f32.mrb[132].mxu0 }
0x1574   : > { %12327 = vmatmul.mubr.msk.f32.vlgmr.msra.gmra.mrb[134].mxu0 %vm9346_vm11, %v9331_v29  ;;  %v12305_v44 = vpop.f32.mrb[133].mxu0  ;;  %v9757_v29 = vld [vmem:[%s17449_s1 + $0x40] sm:$0xff] }
0x1575   : > { %12353 = vmatpush3.msk.msra.mxu0 %vm9176_vm8, %v9170_v11  ;;  %12354 = vmatprep.mubr.msk.f32.mxu0 %vm14561_vm9, %v14559_v39  ;;  %v9758_v44 = vld [vmem:[%s17449_s1 + $0x48] sm:$0xff] }
0x1576   : > { %14196 = vmatprep.subr.bf16.mxu0 %v14560_v19 }
0x1578   : > { %12355 = vmatmul.mubr.msk.f32.vlgmr.msra.gmra.mrb[136].mxu0 %vm9172_vm10, %v11409_v2  ;;  %v14239_v2 = vpack.c.bf16 %v9758_v44, %v9757_v29 }
0x1579   : > { %14198 = vmatpush3.bf16.msra.mxu0 %v14197_v32  ;;  %12377 = vmatprep.mubr.msk.f32.mxu0 %vm14561_vm9, %v14559_v39  ;;  %v11446_v32 = vld [vmem:[%s17449_s1 + $0xa0] sm:$0xff] }
0x157a   : > { %14199 = vmatprep.subr.bf16.mxu0 %v14560_v19  ;;  %v14242_v57 = vpack.c.bf16 %v11447_v40, %v11446_v32 }
0x157d   : > { %14201 = vmatpush3.bf16.msra.mxu0 %v14200_v28 }
0x157e   : > { %14202 = vmatprep.subr.bf16.mxu0 %v14560_v19 }
0x1581   : > { %14204 = vmatpush3.bf16.msra.mxu0 %v14203_v51 }
0x1582   : > { %14205 = vmatprep.subr.bf16.mxu0 %v14560_v19 }
0x1585   : > { %14207 = vmatpush3.bf16.msra.mxu0 %v14206_v12  ;;  %v11450_v12 = vld [vmem:[%s17449_s1 + $0xc0] sm:$0xff] }
0x1586   : > { %14208 = vmatprep.subr.bf16.mxu0 %v14560_v19 }
0x1589   : > { %14210 = vmatpush3.bf16.msra.mxu0 %v14209_v55  ;;  %v11443_v55 = vld [vmem:[%s17451_s4 + $0x10] sm:$0x1f] }
0x158a   : > { %14211 = vmatprep.subr.bf16.mxu0 %v14560_v19 }
0x1643   : > { %v9489_v62 = vpop.f32.mrb[122].mxu1 }
0x1644   : > { %v12351_v60 = vpop.f32.mrb[123].mxu1 }
0x1645   : > { %v11452_v60 = vld [vmem:[%s17449_s1 + $0xd0] sm:$0xff] }
0x1647   : > { %v9416_v61 = vpop.f32.mrb[134].mxu0 }
0x1648   : > { %v9490_v8 = vadd.f32 %v9489_v62, %v9416_v61  ;;  %v12328_v7 = vpop.f32.mrb[135].mxu0  ;;  %v14248_v62 = vpack.c.bf16 %v11451_v54, %v11450_v12  ;;  %v11453_v61 = vld [vmem:[%s17449_s1 + $0xd8] sm:$0xff] }
0x1649   : > { %v11454_v7 = vld [vmem:[%s17449_s1 + $0xe0] sm:$0xff] }
0x164b   : > { %v9564_v48 = vpop.f32.mrb[136].mxu0 }
0x164c   : > { %12378 = vmatmul.mubr.msk.f32.vlgmr.msra.gmra.mrb[138].mxu0 %vm9346_vm11, %v9564_v48  ;;  %v12356_v46 = vpop.f32.mrb[137].mxu0  ;;  %v11455_v48 = vld [vmem:[%s17449_s1 + $0xe8] sm:$0xff]  ;;  %s17452_s1 = sld [smem:[#allocation25_spill]] }
0x164d   : > { %12410 = vmatprep.mubr.msk.f32.mxu0 %vm14561_vm9, %v14559_v39  ;;  %14213 = vmatpush3.bf16.msra.mxu0 %v14212_v9  ;;  %v14254_v46 = vpack.c.bf16 %v11455_v48, %v11454_v7 }
0x164e   : > { %14214 = vmatprep.subr.bf16.mxu0 %v14560_v19 }
0x1651   : > { %14216 = vmatpush3.bf16.msra.mxu0 %v14215_v14 }
0x1652   : > { %14217 = vmatprep.subr.bf16.mxu0 %v14560_v19  ;;  %v11458_v20 = vld [vmem:[%s17452_s1 + $0x1] ss:$0 sm:$0xff] }
0x1655   : > { %14219 = vmatpush3.bf16.msra.mxu0 %v14218_v16  ;;  %v14257_v16 = vpack.c.bf16 %v10179_v4, %v10178_v31 }
0x1656   : > { %14220 = vmatprep.subr.bf16.mxu0 %v14560_v19 }
0x1659   : > { %14222 = vmatpush3.bf16.msra.mxu0 %v14221_v17  ;;  %v14260_v17 = vpack.c.bf16 %v10181_v42, %v10180_v6 }
0x165a   : > { %14223 = vmatprep.subr.bf16.mxu0 %v14560_v19 }
0x165d   : > { %14225 = vmatpush3.bf16.msra.mxu0 %v14224_v49  ;;  %v14263_v49 = vpack.c.bf16 %v10183_v22, %v10182_v21 }
0x165e   : > { %12436 = vmatprep.subr.mxu0 %v14559_v39 }
0x171f   : > { %v9648_v35 = vpop.f32.mrb[138].mxu0 }
0x1720   : > { %v9652_v11 = vadd.f32 %v9648_v35, %v9490_v8  ;;  %v12379_v27 = vpop.f32.mrb[139].mxu0  ;;  %v14251_v8 = vpack.c.bf16 %v11453_v61, %v11452_v60  ;;  %v10184_v35 = vld [vmem:[%s17422_s6 + $0x30] sm:$0xff] }
0x1721   : > { %v10186_v27 = vld [vmem:[%s17422_s6 + $0x40] sm:$0xff] }
0x1722   : > { %v9658_v5 = vadd.f32 %v11423_v23, %v9652_v11  ;;  %v10185_v23 = vld [vmem:[%s17422_s6 + $0x38] sm:$0xff] }
0x1723   : > { %v14266_v11 = vpack.c.bf16 %v10185_v23, %v10184_v35 }
0x1724   : > { %v9659_v59 = vmax.f32 %v9658_v5, 0.0  ;;  %v10187_v5 = vld [vmem:[%s17422_s6 + $0x48] sm:$0xff]  ;;  %s17317_s6 = scalar_lea.hbm %s14741_s24, %s11461_s3 }
0x1726   : > { %v9665_v34 = vmul.f32 %v11424_v30, %v9659_v59  ;;  %v14269_v30 = vpack.c.bf16 %v10187_v5, %v10186_v27 }
0x1728   : > { %v9671_v25 = vadd.f32 %v11425_v52, %v9665_v34  ;;  %v11457_v52 = vld [vmem:[%s17452_s1] ss:$0 sm:$0xff] }
0x172a   : > { %12381 = vmatpush3.msk.msra.mxu1 %vm9176_vm8, %v9671_v25 }
0x172b   : > { %12383 = vmatmul.mubr.msk.f32.vlgmr.msra.gmra.mrb[124].mxu1 %vm9172_vm10, %v9672_v36  ;;  %12385 = vmatprep.subr.mxu1 %v14559_v39 }
0x172c   : > { %12386 = vmatpush3.msk.msra.mxu1 %vm9176_vm8, %v9671_v25  ;;  %12387 = vmatprep.mubr.msk.f32.mxu1 %vm14561_vm9, %v14559_v39 }
0x172d   : > { %14226 = vmatprep.subr.bf16.mxu1 %v14560_v19 }
0x172f   : > { %12388 = vmatmul.mubr.msk.f32.vlgmr.msra.gmra.mrb[126].mxu1 %vm9172_vm10, %v11428_v47  ;;  %v11459_v47 = vld [vmem:[%s17452_s1 + $0x2] ss:$0 sm:$0xff]  ;;  %s1033_s1 = sand.u32 1, %s14514_s16  }
0x1730   : > { %14228 = vmatpush3.bf16.msra.mxu1 %v14227_v3  ;;  %12433 = vmatprep.mubr.msk.f32.mxu1 %vm14561_vm9, %v14559_v39  ;;  %s1034_s4 = scalar_lea.vmem [#allocation2], %s1033_s1  ;;  %s10277_s8 = scalar_lea.sflag [#allocation3], %s1033_s1 }
0x1731   : > { %14229 = vmatprep.subr.bf16.mxu1 %v14560_v19  ;;  %s10289_s5 = sshll.u32 %s1034_s4, 4  ;;  %s17319_s5 = int_to_ptr.vmem [resolvable:$true] %s10289_s5 }
0x1732   : > { %s14460_s9 = scalar_lea.vmem %s17319_s5, 16  ;;  %p14467_p0 = scmp.lt.s32.totalorder %s17319_s5, %s14465_s11 }
0x1733   : > { %p14461_p11 = scmp.ne.s32.totalorder %s17319_s5, %s14460_s9  ;;  %p14468_p1 = scmp.lt.s32.totalorder %s14466_s12, %s14460_s9 }
0x1734   : > { %14231 = vmatpush3.bf16.msra.mxu1 %v14230_v41 }
0x1735   : > { %14232 = vmatprep.subr.bf16.mxu1 %v14560_v19  ;;  %p14462_p12 = pnand %p14461_p11, %p14781_p5  ;;  %p14469_p2 = por %p14468_p1, %p14467_p0 }
0x1737   : > { %p14463_p13 = pneg %p14462_p12 }
0x1738   : > { %14234 = vmatpush3.bf16.msra.mxu1 %v14233_v38 }
0x1739   : > { %14235 = vmatprep.subr.bf16.mxu1 %v14560_v19  ;;  %p14470_p3 = pnand %p14469_p2, %p14463_p13 }
0x173c   : > { %14237 = vmatpush3.bf16.msra.mxu1 %v14236_v15 }
0x173d   : > { %14238 = vmatprep.subr.bf16.mxu1 %v14560_v19 }
0x1740   : > { %14240 = vmatpush3.bf16.msra.mxu1 %v14239_v2 }
0x1741   : > { %14241 = vmatprep.subr.bf16.mxu1 %v14560_v19 }
0x17fe   : > { %v9745_v28 = vpop.f32.mrb[124].mxu1 }
0x17ff   : > { %v12384_v51 = vpop.f32.mrb[125].mxu1  ;;  %12434 = vmatmul.mubr.msk.f32.vlgmr.msra.gmra.mrb[128].mxu1 %vm9346_vm11, %v9745_v28 }
0x1800   : > { %14243 = vmatpush3.bf16.msra.mxu1 %v14242_v57  ;;  %12461 = vmatprep.mubr.msk.f32.mxu1 %vm14561_vm9, %v14559_v39 }
0x1801   : > { %14244 = vmatprep.subr.bf16.mxu1 %v14560_v19 }
0x1802   : > { %v9830_v26 = vpop.f32.mrb[126].mxu1 }
0x1803   : > { %12411 = vmatmul.mubr.msk.f32.vlgmr.msra.gmra.mrb[140].mxu0 %vm9346_vm11, %v9830_v26  ;;  %v12389_v50 = vpop.f32.mrb[127].mxu1 }
0x1804   : > { %12437 = vmatpush3.msk.msra.mxu0 %vm9176_vm8, %v9671_v25  ;;  %12438 = vmatprep.mubr.msk.f32.mxu0 %vm14561_vm9, %v14559_v39 }
0x1805   : > { %14246 = vmatpush3.bf16.msra.mxu1 %v14245_v53  ;;  %14256 = vmatprep.subr.bf16.mxu0 %v14560_v19 }
0x1806   : > { %14247 = vmatprep.subr.bf16.mxu1 %v14560_v19 }
0x1807   : > { %12439 = vmatmul.mubr.msk.f32.vlgmr.msra.gmra.mrb[142].mxu0 %vm9172_vm10, %v11443_v55 }
0x1808   : > { %12484 = vmatprep.mubr.msk.f32.mxu0 %vm14561_vm9, %v14559_v39  ;;  %14258 = vmatpush3.bf16.msra.mxu0 %v14257_v16  ;;  %vm10170_vm9 = vcmask 651264  }
0x1809   : > { %14249 = vmatpush3.bf16.msra.mxu1 %v14248_v62  ;;  %14259 = vmatprep.subr.bf16.mxu0 %v14560_v19 }
0x180a   : > { %14250 = vmatprep.subr.bf16.mxu1 %v14560_v19 }
0x180c   : > { %14261 = vmatpush3.bf16.msra.mxu0 %v14260_v17 }
0x180d   : > { %14252 = vmatpush3.bf16.msra.mxu1 %v14251_v8  ;;  %14262 = vmatprep.subr.bf16.mxu0 %v14560_v19 }
0x180e   : > { %14253 = vmatprep.subr.bf16.mxu1 %v14560_v19 }
0x1810   : > { %14264 = vmatpush3.bf16.msra.mxu0 %v14263_v49 }
0x1811   : > { %14255 = vmatpush3.bf16.msra.mxu1 %v14254_v46  ;;  %14265 = vmatprep.subr.bf16.mxu0 %v14560_v19 }
0x1814   : > { %14267 = vmatpush3.bf16.msra.mxu0 %v14266_v11 }
0x1815   : > { %14268 = vmatprep.subr.bf16.mxu0 %v14560_v19 }
0x1818   : > { %14270 = vmatpush3.bf16.msra.mxu0 %v14269_v30 }
0x18d2   : > { %v9987_v0 = vpop.f32.mrb[128].mxu1 }
0x18d3   : > { %v12435_v10 = vpop.f32.mrb[129].mxu1 }
0x18d6   : > { %v9914_v9 = vpop.f32.mrb[140].mxu0 }
0x18d7   : > { %v9988_v39 = vadd.f32 %v9987_v0, %v9914_v9  ;;  %v12412_v43 = vpop.f32.mrb[141].mxu0 }
0x18da   : > { %v10062_v58 = vpop.f32.mrb[142].mxu0 }
0x18db   : > { %12462 = vmatmul.mubr.msk.f32.vlgmr.msra.gmra.mrb[130].mxu1 %vm9346_vm11, %v10062_v58  ;;  %v12440_v14 = vpop.f32.mrb[143].mxu0 }
0x19ae   : > { %v10146_v59 = vpop.f32.mrb[130].mxu1 }
0x19af   : > { %v10150_v34 = vadd.f32 %v10146_v59, %v9988_v39  ;;  %v12463_v25 = vpop.f32.mrb[131].mxu1 }
0x19b1   : > { %v10156_v36 = vadd.f32 %v11457_v52, %v10150_v34 }
0x19b3   : > { %v10157_v18 = vmax.f32 %v10156_v36, 0.0 }
0x19b5   : > { %v10163_v3 = vmul.f32 %v11458_v20, %v10157_v18 }
0x19b7   : > { %v10169_v56 = vadd.f32 %v11459_v47, %v10163_v3 }
0x19b9   : > { %v10171_v33 = vsel %vm10170_vm9, %v10169_v56, 0.0 }
0x19ba   : > { %v10172_v41 = vrot.slane %v10171_v33, 4 }
0x19bc   : > { %v10173_v24 = vadd.f32 %v10172_v41, %v10171_v33 }
0x19be   : > { %v10174_v37 = vrot.slane %v10173_v24, 2 }
0x19c0   : > { %v10175_v38 = vadd.f32 %v10174_v37, %v10173_v24 }
0x19c2   : > { %v10176_v19 = vrot.slane %v10175_v38, 1 }
0x19c4   : > { %v10177_v1 = vadd.f32 %v10176_v19, %v10175_v38 }
0x19c6   : > { %12485 = vmatmul.mubr.msk.f32.vlgmr.msra.gmra.mrb[144].mxu0 %vm9346_vm11, %v10177_v1 }
0x1a99   : > { %v10258_v15 = vpop.f32.mrb[144].mxu0 }
0x1a9a   : > { %v10259_v29 = vadd.f32 %v10258_v15, %v10188_v63  ;;  %v12486_v44 = vpop.f32.mrb[145].mxu0 }
0x1a9c   : > { %v10263_v2 = vsel %vm10262_vm12, %v10259_v29, -inf }
0x1a9d   : > { %10264 = vmax.xlane.f32.xlu0 %v10263_v2 }
0x1b2a   : > { %v10265_v32 = vpop.xlane.xlu0 %10264 }
0x1b2b   : > { %v10266_v40 = vsub.f32 %v10259_v29, %v10265_v32 }
0x1b2d   : > { %v10267_v57 = vmul.f32 1.442695, %v10266_v40 }
0x1b2f   : > { %14456 = vpow2.f32 %v10267_v57 }
0x1b39   : > { %v14457_v28 = vpop.eup %14456 }
0x1b3a   : > { %v10269_v45 = vsel %vm10262_vm12, %v14457_v28, 0.0 }
0x1b3b   : > { %10270 = vadd.xlane.f32.xlu0 %v10269_v45 }
0x1bc8   : > { %v10271_v13 = vpop.xlane.xlu0 %10270 }
0x1bc9   : > { %14458 = vlog2.f32 %v10271_v13 }
0x1bd3   : > { %v14459_v51 = vpop.eup %14458 }
0x1bd4   : > { %v10273_v53 = vmul.f32 0.6931472, %v14459_v51 }
0x1bd6   : > { %v10274_v26 = vsub.f32 %v10266_v40, %v10273_v53 }
0x1bd8   : > { %10275 = vst.msk [vmem:[%s1034_s4] sm:$0x1] %vm10262_vm12, %v10274_v26 }
0x1bd9   : > { %14473 = shalt.err (!%p14470_p3)
}
0x1bda   : > { %s14474_s3 = scalar_lea.hbm %s17317_s6, 16  ;;  %s14478_s4 = scalar_lea.hbm %s14741_s24, 32 }
0x1bdb   : > { %p14475_p4 = scmp.ne.s32.totalorder %s17317_s6, %s14474_s3  ;;  %p14479_p9 = scmp.lt.u32.totalorder %s17317_s6, %s14741_s24 }
0x1bdc   : > { %p14480_p10 = scmp.lt.u32.totalorder %s14478_s4, %s14474_s3  ;;  %p14482_p12 = scmp.lt.u32.totalorder %s14474_s3, %s17317_s6 }
0x1bdd   : > { %p14476_p7 = pnand %p14475_p4, %p14781_p5 }
0x1bde   : > { %p14481_p11 = por %p14480_p10, %p14479_p9 }
0x1bdf   : > { %p14477_p8 = pneg %p14476_p7 }
0x1be0   : > { %p14483_p0 = por %p14482_p12, %p14481_p11 }
0x1be2   : > { %p14484_p13 = pnand %p14483_p0, %p14477_p8 }
0x1be4   : > { %14487 = shalt.err (!%p14484_p13)
}
0x1be5   : > { %14379 = dma.vmem_to_hbm [thread:$0]  (%p14781_p5), %s17319_s5, 16, %s17317_s6, %s10277_s8  }
0x1be6 PF: > { %p14385_p1 = scmp.ge.s32.totalorder %s14522_s22, 2  ;;  %s10301_s9 = sand.u32 1, %s14510_s15  }
0x1be7   : > { %s10302_s12 = scalar_lea.sflag [#allocation3], %s10301_s9 }
0x1be8   : > { %p14382_p2 = pnand %p14385_p1, %p14785_p6 }
0x1bea   : > { %14505 = dma.done.wait (!%p14382_p2), %s10302_s12, 16  }
0x1beb   : > { %14507 = vsyncadd (!%p14382_p2), %s10302_s12, 4294967280  ;;  %p79_p3 = scmp.ge.s32.totalorder %s14768_s26, 4   ;;  %s17453_s15 = smov %s14514_s16 }
0x1bec   : > { %s17454_s16 = smov %s14518_s18  ;;  %s17455_s18 = smov %s14779_s2 }
0x1bed   : > { %s17456_s22 = smov %s14768_s26  ;;  %81 = sbr.rel (!%p79_p3) target bundleno = 64 (0x40), region = 267 }
0x1bf4   :  { %10306 = vsyncpa [#allocation3], 1 }
0x1bf5   :  { %10308 = vsyncpa [#allocation3 + $0x1], 1 }

</bundles_post_ra>
